<compile_context>
chip_gen: v6e
topology: v6e:2x2x1
jax: 0.10.0
libtpu: 0.0.40
codegen_flags: <defaults>
</compile_context>

<pallas_src>
import jax
import jax.numpy as jnp
from jax.experimental import pallas as pl
from jax.experimental.pallas import tpu as pltpu

P_DROP = 0.3    # Elmo(..., dropout=0.3)
LN_EPS = 1e-5   # nn.LayerNorm default eps


def _round_up(x, m):
    return (x + m - 1) // m * m


# ---------------------------------------------------------------------------
# 1) ELMo stand-in: fused embedding gather + dropout(0.3)   (training path)
# ---------------------------------------------------------------------------
def _embed_dropout_kernel(ids_ref, table_ref, unif_ref, out_ref):
    # ids_ref:   (TM, 1) int32   token ids for this tile
    # table_ref: (V, D)  f32     embedding table, VMEM-resident across the grid
    # unif_ref:  (TM, D) f32     U[0,1) dropout draws for this tile
    # out_ref:   (TM, D) f32
    tm = ids_ref.shape[0]
    v = table_ref.shape[0]
    # Row gather as a one-hot MXU matmul (vocab is a small stand-in; for a large
    # vocab keep the table in HBM and use a scalar-prefetch / DMA row gather).
    one_hot = (ids_ref[...] ==
               jax.lax.broadcasted_iota(jnp.int32, (tm, v), 1)).astype(jnp.float32)
    rows = jnp.dot(one_hot, table_ref[...], preferred_element_type=jnp.float32)
    keep = unif_ref[...] >= P_DROP
    out_ref[...] = jnp.where(keep, rows * (1.0 / (1.0 - P_DROP)), 0.0)


def _elmo_stand_in(table, ids, uniforms, training):
    """(B, S) int ids -> (B, S, D) ELMo-like representation (+dropout in train)."""
    b, s = ids.shape
    v, d = table.shape
    if not training:
        # Dropout is identity in eval; XLA's native gather is already memory-optimal.
        return jnp.take(table, ids, axis=0)

    flat_ids = ids.reshape(-1).astype(jnp.int32)
    n = flat_ids.shape[0]
    tm = min(256, _round_up(n, 8))            # tokens per grid step (sublane-dense)
    n_pad = _round_up(n, tm)
    ids_pad = jnp.zeros((n_pad, 1), jnp.int32).at[:n, 0].set(flat_ids)
    unif_pad = jnp.ones((n_pad, d), jnp.float32).at[:n, :].set(uniforms)

    out = pl.pallas_call(
        _embed_dropout_kernel,
        out_shape=jax.ShapeDtypeStruct((n_pad, d), jnp.float32),
        grid=(pl.cdiv(n_pad, tm),),
        in_specs=[
            pl.BlockSpec((tm, 1), lambda i: (i, 0)),
            pl.BlockSpec((v, d), lambda i: (0, 0)),     # resident across the grid
            pl.BlockSpec((tm, d), lambda i: (i, 0)),
        ],
        out_specs=pl.BlockSpec((tm, d), lambda i: (i, 0)),
        compiler_params=pltpu.CompilerParams(
            dimension_semantics=("parallel",)),
    )(ids_pad, table, unif_pad)
    return out[:n].reshape(b, s, d)


# ---------------------------------------------------------------------------
# 2) FeatureEncoder: one bidirectional LSTM layer per pallas_call
# ---------------------------------------------------------------------------
def _bilstm_layer_kernel(x_ref, m_ref, wih_f_ref, whh_f_ref, b_f_ref,
                         wih_b_ref, whh_b_ref, b_b_ref, yf_ref, yb_ref):
    # x_ref: (S, B, Din) time-major inputs; m_ref: (S, B, 1) float mask
    # w*_ref: (Din, 4H)/(H, 4H)/(1, 4H) per direction; y*_ref: (S, B, H)
    s, b, _ = x_ref.shape
    h2 = whh_f_ref.shape[0]

    def cell(x_t, m_t, h, c, wih, whh, bias):
        gates = (jnp.dot(x_t, wih, preferred_element_type=jnp.float32)
                 + jnp.dot(h, whh, preferred_element_type=jnp.float32) + bias)
        i = jax.nn.sigmoid(gates[:, 0 * h2:1 * h2])
        f = jax.nn.sigmoid(gates[:, 1 * h2:2 * h2])
        g = jnp.tanh(gates[:, 2 * h2:3 * h2])
        o = jax.nn.sigmoid(gates[:, 3 * h2:4 * h2])
        c_new = f * c + i * g
        h_new = o * jnp.tanh(c_new)
        # Mask-gated update == pack_padded_sequence semantics for trailing padding:
        # padded steps neither advance the state nor emit output.
        return (m_t * h_new + (1.0 - m_t) * h,
                m_t * c_new + (1.0 - m_t) * c,
                m_t * h_new)

    wih_f = wih_f_ref[...]; whh_f = whh_f_ref[...]; b_f = b_f_ref[...]
    wih_b = wih_b_ref[...]; whh_b = whh_b_ref[...]; b_b = b_b_ref[...]

    # S is small and static here -> fully unrolled; for long sequences switch to
    # lax.fori_loop with dynamic leading-dim ref indexing.
    h = jnp.zeros((b, h2), jnp.float32)
    c = jnp.zeros((b, h2), jnp.float32)
    for t in range(s):                       # forward direction
        h, c, y = cell(x_ref[t], m_ref[t], h, c, wih_f, whh_f, b_f)
        yf_ref[t] = y

    h = jnp.zeros((b, h2), jnp.float32)
    c = jnp.zeros((b, h2), jnp.float32)
    for t in range(s - 1, -1, -1):           # backward direction
        h, c, y = cell(x_ref[t], m_ref[t], h, c, wih_b, whh_b, b_b)
        yb_ref[t] = y


def _bilstm_layer(x_tm, m_tm, lp):
    s, b, _ = x_tm.shape
    h2 = lp["whh_f"].shape[0]
    yf, yb = pl.pallas_call(
        _bilstm_layer_kernel,
        out_shape=(jax.ShapeDtypeStruct((s, b, h2), jnp.float32),
                   jax.ShapeDtypeStruct((s, b, h2), jnp.float32)),
    )(x_tm, m_tm, lp["wih_f"], lp["whh_f"], lp["b_f"],
      lp["wih_b"], lp["whh_b"], lp["b_b"])
    return jnp.concatenate([yf, yb], axis=-1)


# ---------------------------------------------------------------------------
# 3) Attention: a = mask*exp(v . tanh(W h)) / sum_over_seq ,  z = h * a
# ---------------------------------------------------------------------------
def _attention_kernel(x_ref, m_ref, w_ref, bw_ref, v_ref, bv_ref, z_ref, a_ref):
    x = x_ref[0]                                       # (S, H) for this batch row
    m = m_ref[0]                                       # (S, 1)
    u = jnp.tanh(jnp.dot(x, w_ref[...], preferred_element_type=jnp.float32)
                 + bw_ref[...])
    u = jnp.dot(u, v_ref[...], preferred_element_type=jnp.float32) + bv_ref[...]
    u = m * jnp.exp(u)                                 # (S, 1)
    a = u / jnp.sum(u, axis=0, keepdims=True)
    z_ref[0] = x * a
    a_ref[0] = a


def _attention(feats, mask_f, ap):
    b, s, h = feats.shape
    z, a = pl.pallas_call(
        _attention_kernel,
        out_shape=(jax.ShapeDtypeStruct((b, s, h), jnp.float32),
                   jax.ShapeDtypeStruct((b, s, 1), jnp.float32)),
        grid=(b,),
        in_specs=[
            pl.BlockSpec((1, s, h), lambda i: (i, 0, 0)),
            pl.BlockSpec((1, s, 1), lambda i: (i, 0, 0)),
            pl.BlockSpec((h, h), lambda i: (0, 0)),
            pl.BlockSpec((1, h), lambda i: (0, 0)),
            pl.BlockSpec((h, 1), lambda i: (0, 0)),
            pl.BlockSpec((1, 1), lambda i: (0, 0)),
        ],
        out_specs=(pl.BlockSpec((1, s, h), lambda i: (i, 0, 0)),
                   pl.BlockSpec((1, s, 1), lambda i: (i, 0, 0))),
        compiler_params=pltpu.CompilerParams(
            dimension_semantics=("parallel",)),
    )(feats, mask_f[:, :, None], ap["W"], ap["bW"], ap["v"], ap["bv"])
    return z, a[:, :, 0]


# ---------------------------------------------------------------------------
# 4) score_layer: Linear(H,12) -> LayerNorm(12) -> Linear(12, num_labels)
# ---------------------------------------------------------------------------
def _score_kernel(x_ref, w1_ref, b1_ref, g_ref, beta_ref, w2_ref, b2_ref, out_ref):
    h = jnp.dot(x_ref[...], w1_ref[...], preferred_element_type=jnp.float32) + b1_ref[...]
    mu = jnp.mean(h, axis=-1, keepdims=True)
    var = jnp.mean(jnp.square(h - mu), axis=-1, keepdims=True)
    hn = (h - mu) / jnp.sqrt(var + LN_EPS) * g_ref[...] + beta_ref[...]
    out_ref[...] = jnp.dot(hn, w2_ref[...], preferred_element_type=jnp.float32) + b2_ref[...]


def _score_layer(z, sp):
    b, s, h = z.shape
    num_labels = sp["W2"].shape[1]
    out = pl.pallas_call(
        _score_kernel,
        out_shape=jax.ShapeDtypeStruct((b * s, num_labels), jnp.float32),
    )(z.reshape(b * s, h), sp["W1"], sp["b1"], sp["gamma"], sp["beta"],
      sp["W2"], sp["b2"])
    return out.reshape(b, s, num_labels)


# ---------------------------------------------------------------------------
# Full model forward (mirrors SeqModel_Elmo.forward)
# ---------------------------------------------------------------------------
def seq_model_elmo_forward(params, word_ids, dropout_uniforms=None, training=True):
    """forward(words) -> (scores, mask, att_weights)."""
    mask = (word_ids != 0).astype(jnp.int32)            # ELMo-style padding mask
    mask_f = mask.astype(jnp.float32)

    # ElmoLayer (stand-in) ----------------------------------------------------
    emb = _elmo_stand_in(params["emb"], word_ids, dropout_uniforms, training)

    # FeatureEncoder: 2-layer biLSTM (masked == packed) -------------------------
    x_tm = jnp.transpose(emb, (1, 0, 2))                 # time-major (S, B, D)
    m_tm = jnp.transpose(mask_f, (1, 0))[:, :, None]     # (S, B, 1)
    h_tm = x_tm
    for lp in (params["lstm1"], params["lstm2"]):
        h_tm = _bilstm_layer(h_tm, m_tm, lp)
    feats = jnp.transpose(h_tm, (1, 0, 2))               # (B, S, hidden)

    # Attention -----------------------------------------------------------------
    feats_att, att_weights = _attention(feats, mask_f, params["att"])

    # score_layer ---------------------------------------------------------------
    scores = _score_layer(feats_att, params["score"])
    return scores, mask, att_weights


# ---------------------------------------------------------------------------
# Parameters (deterministic stand-ins for the PyTorch module's weights)
# ---------------------------------------------------------------------------
def init_params(key, vocab, d_elmo, hidden, num_labels):
    h2 = hidden // 2
    ks = jax.random.split(key, 5)

    def nrm(k, shape, scale):
        return jax.random.normal(k, shape, jnp.float32) * scale

    def lstm_dir(k, din):
        kk = jax.random.split(k, 3)
        return (nrm(kk[0], (din, 4 * h2), din ** -0.5),
                nrm(kk[1], (h2, 4 * h2), h2 ** -0.5),
                nrm(kk[2], (1, 4 * h2), 0.05))

    def lstm_layer(k, din):
        kf, kb = jax.random.split(k)
        wih_f, whh_f, b_f = lstm_dir(kf, din)
        wih_b, whh_b, b_b = lstm_dir(kb, din)
        return {"wih_f": wih_f, "whh_f": whh_f, "b_f": b_f,
                "wih_b": wih_b, "whh_b": whh_b, "b_b": b_b}

    ka = jax.random.split(ks[3], 2)
    ksc = jax.random.split(ks[4], 2)
    return {
        "emb": nrm(ks[0], (vocab, d_elmo), 1.0),
        "lstm1": lstm_layer(ks[1], d_elmo),
        "lstm2": lstm_layer(ks[2], hidden),
        "att": {"W": nrm(ka[0], (hidden, hidden), hidden ** -0.5),
                "bW": jnp.zeros((1, hidden), jnp.float32),
                "v": nrm(ka[1], (hidden, 1), hidden ** -0.5),
                "bv": jnp.zeros((1, 1), jnp.float32)},
        "score": {"W1": nrm(ksc[0], (hidden, 12), hidden ** -0.5),
                  "b1": jnp.zeros((1, 12), jnp.float32),
                  "gamma": jnp.ones((1, 12), jnp.float32),
                  "beta": jnp.zeros((1, 12), jnp.float32),
                  "W2": nrm(ksc[1], (12, num_labels), 12 ** -0.5),
                  "b2": jnp.zeros((1, num_labels), jnp.float32)},
    }


# ---------------------------------------------------------------------------
# Pure-JAX reference (for correctness checking only)
# ---------------------------------------------------------------------------
def _ref_forward(params, word_ids, dropout_uniforms, training):
    b, s = word_ids.shape
    table = params["emb"]
    d = table.shape[1]
    emb = jnp.take(table, word_ids.reshape(-1), axis=0)            # (B*S, D)
    if training:
        emb = jnp.where(dropout_uniforms >= P_DROP, emb / (1.0 - P_DROP), 0.0)
    emb = emb.reshape(b, s, d)
    mask_f = (word_ids != 0).astype(jnp.float32)

    def lstm_dir(x_tm, m_tm, wih, whh, bias, reverse):
        S, B, _ = x_tm.shape
        h2 = whh.shape[0]
        h = jnp.zeros((B, h2), jnp.float32)
        c = jnp.zeros((B, h2), jnp.float32)
        ys = [None] * S
        order = range(S - 1, -1, -1) if reverse else range(S)
        for t in order:
            m_t = m_tm[t]
            gates = x_tm[t] @ wih + h @ whh + bias
            i = jax.nn.sigmoid(gates[:, 0 * h2:1 * h2])
            f = jax.nn.sigmoid(gates[:, 1 * h2:2 * h2])
            g = jnp.tanh(gates[:, 2 * h2:3 * h2])
            o = jax.nn.sigmoid(gates[:, 3 * h2:4 * h2])
            c_new = f * c + i * g
            h_new = o * jnp.tanh(c_new)
            h = m_t * h_new + (1.0 - m_t) * h
            c = m_t * c_new + (1.0 - m_t) * c
            ys[t] = m_t * h_new
        return jnp.stack(ys, axis=0)

    x_tm = jnp.transpose(emb, (1, 0, 2))
    m_tm = jnp.transpose(mask_f, (1, 0))[:, :, None]
    h_tm = x_tm
    for lp in (params["lstm1"], params["lstm2"]):
        yf = lstm_dir(h_tm, m_tm, lp["wih_f"], lp["whh_f"], lp["b_f"], False)
        yb = lstm_dir(h_tm, m_tm, lp["wih_b"], lp["whh_b"], lp["b_b"], True)
        h_tm = jnp.concatenate([yf, yb], axis=-1)
    feats = jnp.transpose(h_tm, (1, 0, 2))

    ap = params["att"]
    u = jnp.tanh(feats @ ap["W"] + ap["bW"]) @ ap["v"] + ap["bv"]   # (B, S, 1)
    u = mask_f[:, :, None] * jnp.exp(u)
    a = u / jnp.sum(u, axis=1, keepdims=True)
    z = feats * a

    sp = params["score"]
    hsc = z @ sp["W1"] + sp["b1"]
    mu = jnp.mean(hsc, axis=-1, keepdims=True)
    var = jnp.mean(jnp.square(hsc - mu), axis=-1, keepdims=True)
    hn = (hsc - mu) / jnp.sqrt(var + LN_EPS) * sp["gamma"] + sp["beta"]
    scores = hn @ sp["W2"] + sp["b2"]
    return scores, (word_ids != 0).astype(jnp.int32), a[:, :, 0]


if __name__ == "__main__":
    # Keep f32 matmuls full-precision so the Pallas kernels and the reference agree tightly.
    jax.config.update("jax_default_matmul_precision", "highest")

    B, S = 2, 8
    HIDDEN = 32          # FeatureEncoder hidden_dim (16 per LSTM direction)
    NUM_LABELS = 5
    D_ELMO = 2048        # 2 concatenated ELMo representations of 1024 each
    VOCAB = 128          # stand-in vocabulary; id 0 == padding

    key = jax.random.PRNGKey(0)
    k_param, k_ids, k_drop = jax.random.split(key, 3)

    params = init_params(k_param, VOCAB, D_ELMO, HIDDEN, NUM_LABELS)

    # Two sequences of lengths 8 and 5 (trailing id-0 padding).
    lengths = jnp.array([8, 5], dtype=jnp.int32)
    ids_rand = jax.random.randint(k_ids, (B, S), 1, VOCAB, dtype=jnp.int32)
    ids = jnp.where(jnp.arange(S)[None, :] < lengths[:, None], ids_rand, 0)

    # Host-side dropout draws (shared with the reference for exact comparison).
    uniforms = jax.random.uniform(k_drop, (B * S, D_ELMO), dtype=jnp.float32)

    # ---- training-mode forward (ELMo dropout active) ----
    scores, mask, att = seq_model_elmo_forward(params, ids, uniforms, training=True)
    scores, mask, att = jax.block_until_ready((scores, mask, att))

    ref_scores, ref_mask, ref_att = _ref_forward(params, ids, uniforms, training=True)

    assert scores.shape == (B, S, NUM_LABELS)
    assert mask.shape == (B, S) and att.shape == (B, S)
    assert jnp.array_equal(mask, ref_mask), "mask mismatch"
    assert jnp.allclose(scores, ref_scores, rtol=2e-3, atol=2e-3), "scores mismatch"
    assert jnp.allclose(att, ref_att, rtol=2e-3, atol=2e-3), "attention weight mismatch"
    assert bool(jnp.all(jnp.where(mask == 0, att, 0.0) == 0.0)), "padded att not zero"
    assert bool(jnp.allclose(jnp.sum(att, axis=1), 1.0, atol=1e-4)), "att rows don't sum to 1"

    # ---- eval-mode forward (dropout identity; gather via native XLA take) ----
    scores_e, _, _ = seq_model_elmo_forward(params, ids, training=False)
    scores_e = jax.block_until_ready(scores_e)
    ref_scores_e, _, _ = _ref_forward(params, ids, None, training=False)
    assert jnp.allclose(scores_e, ref_scores_e, rtol=2e-3, atol=2e-3), "eval scores mismatch"

    print("KERNEL_OK")
</pallas_src>

<mosaic_0001>
module attributes {stable_mosaic.version = 11 : i64} {
  func.func @_embed_dropout_kernel(%arg0: i32, %arg1: memref<16x1xi32, #tpu.memory_space<vmem>>, %arg2: memref<128x2048xf32, #tpu.memory_space<vmem>>, %arg3: memref<16x2048xf32, #tpu.memory_space<vmem>>, %arg4: memref<16x2048xf32, #tpu.memory_space<vmem>>) attributes {dimension_semantics = [#tpu.dimension_semantics<parallel>], iteration_bounds = array<i64: 1>, scalar_prefetch = 0 : i64, scratch_operands = 0 : i64, tpu.core_type = #tpu.core_type<tc>, window_params = [{transform_indices = @transform_0, window_bounds = array<i64: 16, 1>}, {pipeline_mode = #tpu.pipeline_mode<synchronous>, transform_indices = @transform_1, window_bounds = array<i64: 128, 2048>}, {transform_indices = @transform_2, window_bounds = array<i64: 16, 2048>}, {transform_indices = @transform_3, window_bounds = array<i64: 16, 2048>}]} {
    %c0 = arith.constant 0 : index
    %c0_0 = arith.constant 0 : index
    %0 = vector.load %arg1[%c0, %c0_0] : memref<16x1xi32, #tpu.memory_space<vmem>>, vector<16x1xi32>
    %1 = tpu.iota {dimensions = array<i32: 1>} : vector<16x128xi32>
    %2 = vector.broadcast %0 : vector<16x1xi32> to vector<16x128xi32>
    %3 = arith.cmpi eq, %2, %1 : vector<16x128xi32>
    %4 = arith.extui %3 : vector<16x128xi1> to vector<16x128xi32>
    %5 = arith.sitofp %4 : vector<16x128xi32> to vector<16x128xf32>
    %c0_1 = arith.constant 0 : index
    %c0_2 = arith.constant 0 : index
    %6 = vector.load %arg2[%c0_1, %c0_2] : memref<128x2048xf32, #tpu.memory_space<vmem>>, vector<128x2048xf32>
    %cst = arith.constant dense<0.000000e+00> : vector<16x2048xf32>
    %7 = tpu.matmul %5, %6, %cst {dimension_numbers = #tpu.dot_dimension_numbers<[1], [0], [0], [1], [0, 0, 1, 1], [], []>, precision = #tpu.contract_precision<fp32>} : vector<16x128xf32>, vector<128x2048xf32>, vector<16x2048xf32> -> vector<16x2048xf32>
    %c0_3 = arith.constant 0 : index
    %c0_4 = arith.constant 0 : index
    %8 = vector.load %arg3[%c0_3, %c0_4] : memref<16x2048xf32, #tpu.memory_space<vmem>>, vector<16x2048xf32>
    %cst_5 = arith.constant 3.000000e-01 : f32
    %9 = vector.broadcast %cst_5 : f32 to vector<16x2048xf32>
    %10 = arith.cmpf oge, %8, %9 : vector<16x2048xf32>
    %cst_6 = arith.constant 1.42857146 : f32
    %11 = vector.broadcast %cst_6 : f32 to vector<16x2048xf32>
    %12 = arith.mulf %7, %11 : vector<16x2048xf32>
    %cst_7 = arith.constant 0.000000e+00 : f32
    %13 = vector.broadcast %cst_7 : f32 to vector<16x2048xf32>
    %14 = arith.select %10, %12, %13 : vector<16x2048xi1>, vector<16x2048xf32>
    %c0_8 = arith.constant 0 : index
    %c0_9 = arith.constant 0 : index
    %15 = vector.load %arg4[%c0_8, %c0_9] : memref<16x2048xf32, #tpu.memory_space<vmem>>, vector<16x2048xf32>
    tpu.vector_store %arg4[%c0_8, %c0_9], %14 {strides = array<i32>} : memref<16x2048xf32, #tpu.memory_space<vmem>>, vector<16x2048xf32>,
    return
  }
  func.func @transform_0(%arg0: i32) -> (i32, i32) {
    %c0_i32 = arith.constant 0 : i32
    %c0_i32_0 = arith.constant 0 : i32
    return %arg0, %c0_i32 : i32, i32
  }
  func.func @transform_1(%arg0: i32) -> (i32, i32) {
    %c0_i32 = arith.constant 0 : i32
    %c0_i32_0 = arith.constant 0 : i32
    %c0_i32_1 = arith.constant 0 : i32
    return %c0_i32, %c0_i32_0 : i32, i32
  }
  func.func @transform_2(%arg0: i32) -> (i32, i32) {
    %c0_i32 = arith.constant 0 : i32
    %c0_i32_0 = arith.constant 0 : i32
    return %arg0, %c0_i32 : i32, i32
  }
  func.func @transform_3(%arg0: i32) -> (i32, i32) {
    %c0_i32 = arith.constant 0 : i32
    %c0_i32_0 = arith.constant 0 : i32
    return %arg0, %c0_i32 : i32, i32
  }
}

</mosaic_0001>

<bundles_post_ra>
// kernel: tpu_custom_call.1
= control target key start
LH: loop header
LB: loop body
LE: loop exit
PB: predicated region body
PF: predicated region fallthrough
CT: control target
= control target key end

     0   :  { %8 = vsyncpa [#allocation3], 0  ;;  %s12632_s0 = inlined_call_operand.vmem [shape: s32[16,1], index: 0, kind: input, shape index: {}]   ;;  %s12633_s1 = inlined_call_operand.hbm [shape: f32[128,2048], index: 1, kind: input, shape index: {}]   ;;  %s12634_s2 = inlined_call_operand.hbm [shape: f32[16,2048], index: 2, kind: input, shape index: {}]   ;;  %s12635_s3 = inlined_call_operand.hbm [shape: f32[16,2048], index: 3, kind: output, shape index: {}]  }
   0x1   :  { %9 = vsyncpa [#allocation6], 0 }
   0x2   :  { %10 = vsyncpa [#allocation4], 0  ;;  %s7850_s12 = smov [#allocation2]  }
   0x3   :  { %s18_s13 = sshll.u32 %s7850_s12, 4  ;;  %s19_s13 = int_to_ptr.vmem [resolvable:$true] %s18_s13 }
   0x4   :  { %s7792_s14 = scalar_lea.vmem %s19_s13, 32768  ;;  %p7797_p1 = scmp.lt.s32.totalorder %s19_s13, %s19_s13 }
   0x5   :  { %p7793_p0 = scmp.ne.s32.totalorder %s19_s13, %s7792_s14  ;;  %p7798_p2 = scmp.lt.s32.totalorder %s7792_s14, %s7792_s14 }
   0x7   :  { %p7799_p3 = por %p7798_p2, %p7797_p1 }
   0x9   :  { %p7800_p4 = pnand %p7799_p3, %p7793_p0 }
   0xb   :  { %7803 = shalt.err (!%p7800_p4)
}
   0xc   :  { %s7851_s15 = smov 2048   ;;  %s7852_s16 = smov 128  }
   0xd   :  { %24 = dma.hbm_to_vmem [thread:$0]  %s12633_s1, 32768, %s19_s13, [#allocation3], %s7851_s15, %s7851_s15, %s7852_s16  }
   0xe   :  { %s7853_s19 = smov [#allocation5]  }
   0xf   :  { %s30_s20 = sshll.u32 %s7853_s19, 4  ;;  %s31_s20 = int_to_ptr.vmem [resolvable:$true] %s30_s20 }
  0x10   :  { %s7812_s21 = scalar_lea.vmem %s31_s20, 4096  ;;  %p7817_p6 = scmp.lt.s32.totalorder %s31_s20, %s31_s20 }
  0x11   :  { %p7813_p5 = scmp.ne.s32.totalorder %s31_s20, %s7812_s21  ;;  %p7818_p7 = scmp.lt.s32.totalorder %s7812_s21, %s7812_s21 }
  0x13   :  { %p7819_p8 = por %p7818_p7, %p7817_p6 }
  0x15   :  { %p7820_p9 = pnand %p7819_p8, %p7813_p5 }
  0x17   :  { %7823 = shalt.err (!%p7820_p9)
}
  0x18   :  { %36 = dma.hbm_to_vmem [thread:$0]  %s12634_s2, 4096, %s31_s20, [#allocation6], %s7851_s15, %s7851_s15, %s7852_s16  }
  0x19   :  { %7844 = dma.done.wait [#allocation3], 32768  }
  0x1a   :  { %7845 = vsyncadd [#allocation3], 4294934528 }
  0x1b   :  { %7846 = dma.done.wait [#allocation6], 4096  }
  0x1c   :  { %7847 = vsyncadd [#allocation6], 4294963200  ;;  %v7854_v0 = vmov 0   ;;  %v12656_v1 = vmov 0.0   ;;  %v43_v2 = vld [vmem:[%s12632_s0] sm:$0xff]  ;;  %v44_v3 = vld [vmem:[%s12632_s0 + $0x8] sm:$0xff] }
  0x1d   :  { %7783 = vset.pattern.permute.xlu0 %v7854_v0  ;;  %658 = vmatprep.mubr.f32.mxu1 %v12656_v1  ;;  %v300_v4 = vld [vmem:[#allocation2 + $0x788] sm:$0xff]  ;;  %v299_v6 = vld [vmem:[#allocation2 + $0x780] sm:$0xff]  ;;  %s7857_s0 = smov [#allocation7]  }
  0x1e   :  { %411 = vmatprep.mubr.f32.mxu0 %v12656_v1  ;;  %48 = vperm.xlu0 %7783, %v43_v2   ;;  %v7898_v5 = vand.u32 4294901760, %v300_v4  ;;  %v284_v7 = vld [vmem:[#allocation2 + $0x708] sm:$0xff]  ;;  %v283_v8 = vld [vmem:[#allocation2 + $0x700] sm:$0xff]  ;;  %v7900_v9 = vand.u32 4294901760, %v299_v6  ;;  %s7712_s2 = sshll.u32 %s7857_s0, 4  ;;  %s7713_s2 = int_to_ptr.vmem [resolvable:$true] %s7712_s2 }
  0x1f   :  { %v7902_v10 = vand.u32 4294901760, %v284_v7  ;;  %v7904_v11 = vand.u32 4294901760, %v283_v8  ;;  %v268_v12 = vld [vmem:[#allocation2 + $0x688] sm:$0xff]  ;;  %v267_v13 = vld [vmem:[#allocation2 + $0x680] sm:$0xff]  ;;  %s7824_s27 = scalar_lea.vmem %s7713_s2, 4096  ;;  %p7829_p11 = scmp.lt.s32.totalorder %s7713_s2, %s7713_s2 }
  0x20   :  { %v252_v14 = vld [vmem:[#allocation2 + $0x608] sm:$0xff]  ;;  %v7907_v15 = vsub.f32 %v300_v4, %v7898_v5  ;;  %v7909_v16 = vand.u32 4294901760, %v268_v12  ;;  %v7911_v17 = vand.u32 4294901760, %v267_v13  ;;  %v251_v19 = vld [vmem:[#allocation2 + $0x600] sm:$0xff]  ;;  %316 = vmatprep.subr.mxu0 %v7898_v5  ;;  %v7917_v20 = vsub.f32 %v299_v6, %v7900_v9  ;;  %p7825_p10 = scmp.ne.s32.totalorder %s7713_s2, %s7824_s27  ;;  %p7830_p12 = scmp.lt.s32.totalorder %s7824_s27, %s7824_s27 }
  0x21   :  { %v7913_v18 = vand.u32 4294901760, %v252_v14  ;;  %v7920_v21 = vsub.f32 %v284_v7, %v7902_v10  ;;  %v7923_v22 = vsub.f32 %v283_v8, %v7904_v11  ;;  %v7925_v23 = vand.u32 4294901760, %v251_v19  ;;  %318 = vmatpush1.msra.mxu0 %v7900_v9  ;;  %v236_v40 = vld [vmem:[#allocation2 + $0x588] sm:$0xff]  ;;  %v235_v45 = vld [vmem:[#allocation2 + $0x580] sm:$0xff] }
  0x22   :  { %51 = vperm.xlu0 %7783, %v44_v3   ;;  %v12654_v24 = vand.u32 4294901760, %v7907_v15  ;;  %v7930_v25 = vsub.f32 %v268_v12, %v7909_v16  ;;  %v7933_v26 = vsub.f32 %v267_v13, %v7911_v17  ;;  %320 = vmatprep.subr.mxu0 %v7902_v10  ;;  %v12651_v28 = vand.u32 4294901760, %v7917_v20  ;;  %v220_v46 = vld [vmem:[#allocation2 + $0x508] sm:$0xff]  ;;  %v219_v47 = vld [vmem:[#allocation2 + $0x500] sm:$0xff]  ;;  %p7831_p13 = por %p7830_p12, %p7829_p11 }
  0x23   :  { %v7936_v27 = vsub.f32 %v252_v14, %v7913_v18  ;;  %v12650_v29 = vand.u32 4294901760, %v7920_v21  ;;  %v12649_v30 = vand.u32 4294901760, %v7923_v22  ;;  %v7943_v31 = vsub.f32 %v251_v19, %v7925_v23  ;;  %322 = vmatpush1.msra.mxu0 %v7904_v11  ;;  %v204_v52 = vld [vmem:[#allocation2 + $0x488] sm:$0xff]  ;;  %v203_v53 = vld [vmem:[#allocation2 + $0x480] sm:$0xff] }
  0x24   :  { %v437_v32 = vsub.f32 %v7907_v15, %v12654_v24  ;;  %v12647_v33 = vand.u32 4294901760, %v7930_v25  ;;  %v12646_v34 = vand.u32 4294901760, %v7933_v26  ;;  %324 = vmatprep.subr.mxu0 %v7909_v16  ;;  %v443_v36 = vsub.f32 %v7917_v20, %v12651_v28  ;;  %v188_v54 = vld [vmem:[#allocation2 + $0x408] sm:$0xff]  ;;  %v187_v59 = vld [vmem:[#allocation2 + $0x400] sm:$0xff]  ;;  %p7832_p0 = pnand %p7831_p13, %p7825_p10 }
  0x25   :  { %v12644_v35 = vand.u32 4294901760, %v7936_v27  ;;  %v449_v37 = vsub.f32 %v7920_v21, %v12650_v29  ;;  %v455_v38 = vsub.f32 %v7923_v22, %v12649_v30  ;;  %v12643_v39 = vand.u32 4294901760, %v7943_v31  ;;  %326 = vmatpush1.msra.mxu0 %v7911_v17  ;;  %v108_v29 = vld [vmem:[#allocation2 + $0x188] sm:$0xff]  ;;  %v107_v24 = vld [vmem:[#allocation2 + $0x180] sm:$0xff] }
  0x26   :  { %v438_v41 = vand.u32 4294901760, %v437_v32  ;;  %v461_v42 = vsub.f32 %v7930_v25, %v12647_v33  ;;  %v467_v43 = vsub.f32 %v7933_v26, %v12646_v34  ;;  %328 = vmatprep.subr.mxu0 %v7913_v18  ;;  %v444_v48 = vand.u32 4294901760, %v443_v36  ;;  %v91_v1 = vld [vmem:[#allocation2 + $0x100] sm:$0xff] }
  0x27   :  { %v473_v44 = vsub.f32 %v7936_v27, %v12644_v35  ;;  %v450_v49 = vand.u32 4294901760, %v449_v37  ;;  %v456_v50 = vand.u32 4294901760, %v455_v38  ;;  %v479_v51 = vsub.f32 %v7943_v31, %v12643_v39  ;;  %330 = vmatpush1.msra.mxu0 %v7925_v23  ;;  %v123_v39 = vld [vmem:[#allocation2 + $0x200] sm:$0xff] }
  0x28   :  { %439 = vmatprep.subr.mxu1 %v438_v41  ;;  %v462_v55 = vand.u32 4294901760, %v461_v42  ;;  %v468_v56 = vand.u32 4294901760, %v467_v43  ;;  %v7978_v58 = vand.u32 4294901760, %v236_v40  ;;  %v7980_v61 = vand.u32 4294901760, %v235_v45 }
  0x29   :  { %v474_v57 = vand.u32 4294901760, %v473_v44  ;;  %445 = vmatpush1.msra.mxu1 %v444_v48  ;;  %v480_v60 = vand.u32 4294901760, %v479_v51  ;;  %v7982_v62 = vand.u32 4294901760, %v220_v46  ;;  %v7984_v63 = vand.u32 4294901760, %v219_v47 }
  0x2a   :  { %451 = vmatprep.subr.mxu1 %v450_v49  ;;  %v7987_v0 = vsub.f32 %v236_v40, %v7978_v58  ;;  %v7989_v2 = vand.u32 4294901760, %v204_v52  ;;  %v7991_v3 = vand.u32 4294901760, %v203_v53  ;;  %v7993_v4 = vand.u32 4294901760, %v188_v54  ;;  %332 = vmatprep.subr.mxu0 %v7978_v58  ;;  %v172_v49 = vld [vmem:[#allocation2 + $0x388] sm:$0xff] }
  0x2b   :  { %457 = vmatpush1.msra.mxu1 %v456_v50  ;;  %v7997_v6 = vsub.f32 %v235_v45, %v7980_v61  ;;  %v8000_v7 = vsub.f32 %v220_v46, %v7982_v62  ;;  %v8003_v8 = vsub.f32 %v219_v47, %v7984_v63  ;;  %v8005_v12 = vand.u32 4294901760, %v187_v59  ;;  %334 = vmatpush1.msra.mxu0 %v7980_v61 }
  0x2c   :  { %463 = vmatprep.subr.mxu1 %v462_v55  ;;  %v12642_v13 = vand.u32 4294901760, %v7987_v0  ;;  %v8010_v14 = vsub.f32 %v204_v52, %v7989_v2  ;;  %v8013_v19 = vsub.f32 %v203_v53, %v7991_v3  ;;  %v8016_v32 = vsub.f32 %v188_v54, %v7993_v4  ;;  %336 = vmatprep.subr.mxu0 %v7982_v62  ;;  %v171_v54 = vld [vmem:[#allocation2 + $0x380] sm:$0xff]  ;;  %v156_v55 = vld [vmem:[#allocation2 + $0x308] sm:$0xff] }
  0x2d   :  { %469 = vmatpush1.msra.mxu1 %v468_v56  ;;  %v12641_v36 = vand.u32 4294901760, %v7997_v6  ;;  %v12638_v37 = vand.u32 4294901760, %v8000_v7  ;;  %v12637_v38 = vand.u32 4294901760, %v8003_v8  ;;  %v8023_v40 = vsub.f32 %v187_v59, %v8005_v12  ;;  %338 = vmatpush1.msra.mxu0 %v7984_v63  ;;  %v155_v56 = vld [vmem:[#allocation2 + $0x300] sm:$0xff] }
  0x2e   :  { %13186 = vst [vmem:[#allocation11_spill] sm:$0xff] %v8016_v32  ;;  %475 = vmatprep.subr.mxu1 %v474_v57  ;;  %v485_v41 = vsub.f32 %v7987_v0, %v12642_v13  ;;  %v12636_v42 = vand.u32 4294901760, %v8010_v14  ;;  %v12639_v43 = vand.u32 4294901760, %v8013_v19  ;;  %v12640_v44 = vand.u32 4294901760, %v8016_v32  ;;  %340 = vmatprep.subr.mxu0 %v7989_v2 }
  0x2f   :  { %13187 = vst [vmem:[#allocation12_spill] sm:$0xff] %v8023_v40  ;;  %481 = vmatpush1.msra.mxu1 %v480_v60  ;;  %v491_v45 = vsub.f32 %v7997_v6, %v12641_v36  ;;  %v497_v46 = vsub.f32 %v8000_v7, %v12638_v37  ;;  %v503_v47 = vsub.f32 %v8003_v8, %v12637_v38  ;;  %v12645_v48 = vand.u32 4294901760, %v8023_v40  ;;  %v139_v38 = vld [vmem:[#allocation2 + $0x280] sm:$0xff]  ;;  %v124_v37 = vld [vmem:[#allocation2 + $0x208] sm:$0xff] }
  0x30   :  { %342 = vmatpush1.msra.mxu0 %v7991_v3  ;;  %v486_v50 = vand.u32 4294901760, %v485_v41  ;;  %v509_v51 = vsub.f32 %v8010_v14, %v12636_v42  ;;  %v515_v52 = vsub.f32 %v8013_v19, %v12639_v43  ;;  %v521_v53 = vsub.f32 %v8016_v32, %v12640_v44  ;;  %v140_v42 = vld [vmem:[#allocation2 + $0x288] sm:$0xff] }
  0x31   :  { %344 = vmatprep.subr.mxu0 %v7993_v4  ;;  %v492_v57 = vand.u32 4294901760, %v491_v45  ;;  %v498_v59 = vand.u32 4294901760, %v497_v46  ;;  %v504_v60 = vand.u32 4294901760, %v503_v47  ;;  %v527_v41 = vsub.f32 %v8023_v40, %v12645_v48  ;;  %v59_v40 = vld [vmem:[#allocation2] sm:$0xff] }
  0x32   :  { %346 = vmatpush1.msra.mxu0 %v8005_v12  ;;  %487 = vmatprep.subr.mxu1 %v486_v50  ;;  %v510_v43 = vand.u32 4294901760, %v509_v51  ;;  %v516_v44 = vand.u32 4294901760, %v515_v52  ;;  %v522_v36 = vand.u32 4294901760, %v521_v53  ;;  %v8058_v13 = vand.u32 4294901760, %v172_v49 }
  0x33   :  { %493 = vmatpush1.msra.mxu1 %v492_v57  ;;  %v528_v45 = vand.u32 4294901760, %v527_v41  ;;  %v8060_v46 = vand.u32 4294901760, %v171_v54  ;;  %v8062_v47 = vand.u32 4294901760, %v156_v55  ;;  %v8064_v35 = vand.u32 4294901760, %v155_v56 }
  0x34   :  { %499 = vmatprep.subr.mxu1 %v498_v59  ;;  %v8067_v48 = vsub.f32 %v172_v49, %v8058_v13  ;;  %v8069_v34 = vand.u32 4294901760, %v140_v42  ;;  %v8071_v50 = vand.u32 4294901760, %v139_v38  ;;  %v8073_v51 = vand.u32 4294901760, %v124_v37  ;;  %348 = vmatprep.subr.mxu0 %v8058_v13 }
  0x35   :  { %505 = vmatpush1.msra.mxu1 %v504_v60  ;;  %v8077_v52 = vsub.f32 %v171_v54, %v8060_v46  ;;  %v8080_v53 = vsub.f32 %v156_v55, %v8062_v47  ;;  %v8083_v57 = vsub.f32 %v155_v56, %v8064_v35  ;;  %v8085_v49 = vand.u32 4294901760, %v123_v39  ;;  %350 = vmatpush1.msra.mxu0 %v8060_v46 }
  0x36   :  { %13188 = vst [vmem:[#allocation13_spill] sm:$0xff] %v8067_v48  ;;  %511 = vmatprep.subr.mxu1 %v510_v43  ;;  %v12648_v59 = vand.u32 4294901760, %v8067_v48  ;;  %v8090_v41 = vsub.f32 %v140_v42, %v8069_v34  ;;  %v8093_v60 = vsub.f32 %v139_v38, %v8071_v50  ;;  %v8096_v54 = vsub.f32 %v124_v37, %v8073_v51 }
  0x37   :  { %13189 = vst [vmem:[#allocation14_spill] sm:$0xff] %v8077_v52  ;;  %13190 = vst [vmem:[#allocation15_spill] sm:$0xff] %v8080_v53  ;;  %352 = vmatprep.subr.mxu0 %v8062_v47  ;;  %517 = vmatpush1.msra.mxu1 %v516_v44  ;;  %v12652_v55 = vand.u32 4294901760, %v8077_v52  ;;  %v12653_v56 = vand.u32 4294901760, %v8080_v53  ;;  %v12655_v43 = vand.u32 4294901760, %v8083_v57  ;;  %v8103_v33 = vsub.f32 %v123_v39, %v8085_v49 }
  0x38   :  { %13191 = vst [vmem:[#allocation16_spill] sm:$0xff] %v8083_v57  ;;  %13192 = vst [vmem:[#allocation17_spill] sm:$0xff] %v8090_v41  ;;  %354 = vmatpush1.msra.mxu0 %v8064_v35  ;;  %523 = vmatprep.subr.mxu1 %v522_v36  ;;  %v533_v37 = vsub.f32 %v8067_v48, %v12648_v59  ;;  %v12662_v38 = vand.u32 4294901760, %v8090_v41  ;;  %v12669_v42 = vand.u32 4294901760, %v8093_v60  ;;  %v12670_v44 = vand.u32 4294901760, %v8096_v54  ;;  %v60_v48 = vld [vmem:[#allocation2 + $0x8] sm:$0xff] }
  0x39   :  { %13193 = vst [vmem:[#allocation18_spill] sm:$0xff] %v8093_v60  ;;  %13194 = vst [vmem:[#allocation19_spill] sm:$0xff] %v8096_v54  ;;  %356 = vmatprep.subr.mxu0 %v8069_v34  ;;  %529 = vmatpush1.msra.mxu1 %v528_v45  ;;  %v539_v39 = vsub.f32 %v8077_v52, %v12652_v55  ;;  %v545_v36 = vsub.f32 %v8080_v53, %v12653_v56  ;;  %v13196_v53 = vand.u32 4294901760, %v8103_v33  ;;  %v75_v52 = vld [vmem:[#allocation2 + $0x80] sm:$0xff] }
  0x3a   :  { %13195 = vst [vmem:[#allocation20_spill] sm:$0xff] %v8103_v33  ;;  %v551_v59 = vsub.f32 %v8083_v57, %v12655_v43  ;;  %358 = vmatpush1.msra.mxu0 %v8071_v50  ;;  %v534_v28 = vand.u32 4294901760, %v533_v37  ;;  %v557_v45 = vsub.f32 %v8090_v41, %v12662_v38  ;;  %v563_v55 = vsub.f32 %v8093_v60, %v12669_v42  ;;  %v92_v43 = vld [vmem:[#allocation2 + $0x108] sm:$0xff] }
  0x3b   :  { %v569_v56 = vsub.f32 %v8096_v54, %v12670_v44  ;;  %360 = vmatprep.subr.mxu0 %v8073_v51  ;;  %v540_v30 = vand.u32 4294901760, %v539_v39  ;;  %v546_v57 = vand.u32 4294901760, %v545_v36  ;;  %v575_v38 = vsub.f32 %v8103_v33, %v13196_v53  ;;  %v76_v41 = vld [vmem:[#allocation2 + $0x88] sm:$0xff] }
  0x3c   :  { %v552_v37 = vand.u32 4294901760, %v551_v59  ;;  %362 = vmatpush1.msra.mxu0 %v8085_v49  ;;  %535 = vmatprep.subr.mxu1 %v534_v28  ;;  %v558_v42 = vand.u32 4294901760, %v557_v45  ;;  %v564_v44 = vand.u32 4294901760, %v563_v55  ;;  %v8138_v60 = vand.u32 4294901760, %v108_v29 }
  0x3d   :  { %v570_v54 = vand.u32 4294901760, %v569_v56  ;;  %541 = vmatpush1.msra.mxu1 %v540_v30  ;;  %v576_v39 = vand.u32 4294901760, %v575_v38  ;;  %v8140_v36 = vand.u32 4294901760, %v107_v24  ;;  %v8142_v59 = vand.u32 4294901760, %v92_v43 }
  0x3e   :  { %v8144_v32 = vand.u32 4294901760, %v91_v1  ;;  %547 = vmatprep.subr.mxu1 %v546_v57  ;;  %v8147_v53 = vsub.f32 %v108_v29, %v8138_v60  ;;  %v8149_v33 = vand.u32 4294901760, %v76_v41  ;;  %v8151_v28 = vand.u32 4294901760, %v75_v52  ;;  %364 = vmatprep.subr.mxu0 %v8138_v60 }
  0x3f   :  { %v8153_v55 = vand.u32 4294901760, %v60_v48  ;;  %553 = vmatpush1.msra.mxu1 %v552_v37  ;;  %v8157_v30 = vsub.f32 %v107_v24, %v8140_v36  ;;  %v8160_v56 = vsub.f32 %v92_v43, %v8142_v59  ;;  %v8165_v29 = vand.u32 4294901760, %v59_v40  ;;  %366 = vmatpush1.msra.mxu0 %v8140_v36 }
  0x40   :  { %13197 = vst [vmem:[#allocation21_spill] sm:$0xff] %v8144_v32  ;;  %13198 = vst [vmem:[#allocation22_spill] sm:$0xff] %v8147_v53  ;;  %v8163_v57 = vsub.f32 %v91_v1, %v8144_v32  ;;  %559 = vmatprep.subr.mxu1 %v558_v42  ;;  %v8170_v45 = vsub.f32 %v76_v41, %v8149_v33  ;;  %v8173_v37 = vsub.f32 %v75_v52, %v8151_v28 }
  0x41   :  { %13199 = vst [vmem:[#allocation23_spill] sm:$0xff] %v8157_v30  ;;  %13200 = vst [vmem:[#allocation24_spill] sm:$0xff] %v8160_v56  ;;  %v8176_v24 = vsub.f32 %v60_v48, %v8153_v55  ;;  %368 = vmatprep.subr.mxu0 %v8142_v59  ;;  %565 = vmatpush1.msra.mxu1 %v564_v44  ;;  %v12687_v43 = vand.u32 4294901760, %v8160_v56  ;;  %v8183_v38 = vsub.f32 %v59_v40, %v8165_v29 }
  0x42   :  { %13201 = vst [vmem:[#allocation25_spill] sm:$0xff] %v8163_v57  ;;  %13202 = vst [vmem:[#allocation26_spill] sm:$0xff] %v8165_v29  ;;  %370 = vmatpush1.msra.mxu0 %v8144_v32  ;;  %571 = vmatprep.subr.mxu1 %v570_v54  ;;  %v13204_v52 = vand.u32 4294901760, %v8147_v53  ;;  %v13205_v42 = vand.u32 4294901760, %v8157_v30  ;;  %v13206_v32 = vand.u32 4294901760, %v8163_v57  ;;  %v13207_v44 = vand.u32 4294901760, %v8170_v45 }
  0x43   :  { %13203 = vst [vmem:[#allocation27_spill] sm:$0xff] %v8173_v37  ;;  %372 = vmatprep.subr.mxu0 %v8149_v33  ;;  %577 = vmatpush1.msra.mxu1 %v576_v39  ;;  %v593_v54 = vsub.f32 %v8160_v56, %v12687_v43  ;;  %v13210_v56 = vand.u32 4294901760, %v8183_v38 }
  0x44   :  { %v581_v48 = vsub.f32 %v8147_v53, %v13204_v52  ;;  %v587_v40 = vsub.f32 %v8157_v30, %v13205_v42  ;;  %v599_v52 = vsub.f32 %v8163_v57, %v13206_v32  ;;  %374 = vmatpush1.msra.mxu0 %v8151_v28  ;;  %v605_v39 = vsub.f32 %v8170_v45, %v13207_v44 }
  0x45   :  { %v13208_v53 = vand.u32 4294901760, %v8173_v37  ;;  %v13209_v30 = vand.u32 4294901760, %v8176_v24  ;;  %376 = vmatprep.subr.mxu0 %v8153_v55  ;;  %v594_v57 = vand.u32 4294901760, %v593_v54 }
  0x46   :  { %v582_v1 = vand.u32 4294901760, %v581_v48  ;;  %v588_v32 = vand.u32 4294901760, %v587_v40  ;;  %v600_v41 = vand.u32 4294901760, %v599_v52  ;;  %v623_v48 = vsub.f32 %v8183_v38, %v13210_v56  ;;  %378 = vmatpush1.msra.mxu0 %v8165_v29 }
  0x47   :  { %v611_v42 = vsub.f32 %v8173_v37, %v13208_v53  ;;  %v617_v43 = vsub.f32 %v8176_v24, %v13209_v30  ;;  %v606_v44 = vand.u32 4294901760, %v605_v39  ;;  %675 = vmatprep.subr.mxu0 %v7907_v15  ;;  %v45_v40 = vlaneseq }
  0x48   :  { %583 = vmatprep.subr.mxu1 %v582_v1  ;;  %v624_v30 = vand.u32 4294901760, %v623_v48  ;;  %v13211_v1 = vmov 0  ;;  %v12694_v52 = vmov 1.0   ;;  %v13216_v39 = vmov 0 }
  0x49   :  { %589 = vmatpush1.msra.mxu1 %v588_v32  ;;  %v612_v53 = vand.u32 4294901760, %v611_v42  ;;  %v618_v37 = vand.u32 4294901760, %v617_v43  ;;  %v46_v56 = vand.u32 127, %v45_v40 }
  0x4a   :  { %595 = vmatprep.subr.mxu1 %v594_v57  ;;  %v13214_v57 = vmov 0.0  }
  0x4b   :  { %601 = vmatpush1.msra.mxu1 %v600_v41 }
  0x4c   :  { %607 = vmatprep.subr.mxu1 %v606_v44 }
  0x4d   :  { %613 = vmatpush1.msra.mxu1 %v612_v53 }
  0x4e   :  { %619 = vmatprep.subr.mxu1 %v618_v37 }
  0x4f   :  { %625 = vmatpush1.msra.mxu1 %v624_v30 }
  0x50   :  { %819 = vmatprep.subr.mxu1 %v7898_v5 }
  0x99   :  { %v49_v54 = vpop.permute.xlu0 %48 }
  0x9a   :  { %vm8220_vm0 = vcmp.eq.s32.totalorder %v49_v54, %v46_v56  ;;  %v13224_v54 = vld [vmem:[#allocation11_spill] sm:$0xff] }
  0x9b   :  { %v13212_v1 = vsel %vm8220_vm0, 4294967295, %v13211_v1  ;;  %7727 = vmatmul.mubr.msk.f32.vlgmr.msra.gmra.mxu1 %vm8220_vm0, %v12694_v52  ;;  %v7725_v43 = vsel %vm8220_vm0, 1.0, %v13214_v57 }
  0x9c   :  { %13213 = vst [vmem:[#allocation28_spill] sm:$0xff] %v13212_v1  ;;  %821 = vmatpush1.msra.mxu1 %v7900_v9  ;;  %665 = vmatprep.mubr.f32.mxu1 %v13214_v57  ;;  %v8232_v37 = vsub.f32 %v7725_v43, %v7725_v43  ;;  %v13225_v43 = vld [vmem:[#allocation12_spill] sm:$0xff] }
  0x9d   :  { %823 = vmatprep.subr.mxu1 %v7902_v10  ;;  %v52_v41 = vpop.permute.xlu0 %51  ;;  %v13234_v1 = vld [vmem:[#allocation20_spill] sm:$0xff] }
  0x9e   :  { %13215 = vst [vmem:[#allocation29_spill] sm:$0xff] %v8232_v37  ;;  %825 = vmatpush1.msra.mxu1 %v7904_v11  ;;  %vm8236_vm1 = vcmp.eq.s32.totalorder %v52_v41, %v46_v56  ;;  %v8241_v42 = vand.u32 4294901760, %v8232_v37  ;;  %v13226_v41 = vld [vmem:[#allocation13_spill] sm:$0xff] }
  0x9f   :  { %v13217_v39 = vsel %vm8236_vm1, 4294967295, %v13216_v39  ;;  %827 = vmatprep.subr.mxu1 %v7909_v16  ;;  %7728 = vmatmul.mubr.msk.f32.gmra.mxu1 %vm8236_vm1, %v12694_v52  ;;  %v7726_v32 = vsel %vm8236_vm1, 1.0, %v13214_v57  ;;  %v13230_v52 = vld [vmem:[#allocation16_spill] sm:$0xff] }
  0xa0   :  { %13218 = vst [vmem:[#allocation30_spill] sm:$0xff] %v13217_v39  ;;  %13219 = vst [vmem:[#allocation31_spill] sm:$0xff] %v8241_v42  ;;  %829 = vmatpush1.msra.mxu1 %v7911_v17  ;;  %v415_v48 = vsub.f32 %v8232_v37, %v8241_v42  ;;  %v8253_v44 = vsub.f32 %v7726_v32, %v7726_v32  ;;  %914 = vmatprep.mubr.f32.mxu1 %v13214_v57  ;;  %v13227_v32 = vld [vmem:[#allocation14_spill] sm:$0xff]  ;;  %v13233_v39 = vld [vmem:[#allocation19_spill] sm:$0xff] }
  0xa1   :  { %831 = vmatprep.subr.mxu1 %v7913_v18 }
  0xa2   :  { %13220 = vst [vmem:[#allocation32_spill] sm:$0xff] %v8253_v44  ;;  %833 = vmatpush1.msra.mxu1 %v7925_v23  ;;  %v8258_v53 = vand.u32 4294901760, %v415_v48  ;;  %v8261_v30 = vand.u32 4294901760, %v8253_v44  ;;  %v13228_v48 = vld [vmem:[#allocation15_spill] sm:$0xff] }
  0xa3   :  { %835 = vmatprep.subr.mxu1 %v7978_v58 }
  0xa4   :  { %13221 = vst [vmem:[#allocation33_spill] sm:$0xff] %v8258_v53  ;;  %13222 = vst [vmem:[#allocation34_spill] sm:$0xff] %v8261_v30  ;;  %837 = vmatpush1.msra.mxu1 %v7980_v61  ;;  %417 = vmatmul.mubr.f32.vlgmr.msra.gmra.mxu0 %v8258_v53  ;;  %v426_v40 = vsub.f32 %v8253_v44, %v8261_v30  ;;  %v13232_v53 = vld [vmem:[#allocation18_spill] sm:$0xff] }
  0xa5   :  { %678 = vmatpush1.msra.mxu0 %v7917_v20  ;;  %839 = vmatprep.subr.mxu1 %v7982_v62 }
  0xa6   :  { %681 = vmatprep.subr.mxu0 %v7920_v21  ;;  %841 = vmatpush1.msra.mxu1 %v7984_v63  ;;  %v8272_v56 = vand.u32 4294901760, %v426_v40  ;;  %v13229_v40 = vld [vmem:[#allocation21_spill] sm:$0xff] }
  0xa7   :  { %684 = vmatpush1.msra.mxu0 %v7923_v22  ;;  %843 = vmatprep.subr.mxu1 %v7989_v2 }
  0xa8   :  { %13223 = vst [vmem:[#allocation35_spill] sm:$0xff] %v8272_v56  ;;  %422 = vmatprep.mubr.f32.mxu0 %v13214_v57  ;;  %687 = vmatprep.subr.mxu0 %v7930_v25 }
  0xa9   :  { %845 = vmatpush1.msra.mxu1 %v7991_v3  ;;  %428 = vmatmul.mubr.f32.gmra.mxu0 %v8272_v56  ;;  %v13231_v56 = vld [vmem:[#allocation17_spill] sm:$0xff] }
  0xaa   :  { %690 = vmatpush1.msra.mxu0 %v7933_v26  ;;  %847 = vmatprep.subr.mxu1 %v7993_v4 }
  0xab   :  { %693 = vmatprep.subr.mxu0 %v7936_v27  ;;  %849 = vmatpush1.msra.mxu1 %v8005_v12 }
  0xac   :  { %696 = vmatpush1.msra.mxu0 %v7943_v31  ;;  %851 = vmatprep.subr.mxu1 %v8058_v13 }
  0xad   :  { %699 = vmatprep.subr.mxu0 %v7987_v0  ;;  %853 = vmatpush1.msra.mxu1 %v8060_v46 }
  0xae   :  { %702 = vmatpush1.msra.mxu0 %v7997_v6  ;;  %855 = vmatprep.subr.mxu1 %v8062_v47 }
  0xaf   :  { %705 = vmatprep.subr.mxu0 %v8000_v7  ;;  %857 = vmatpush1.msra.mxu1 %v8064_v35 }
  0xb0   :  { %708 = vmatpush1.msra.mxu0 %v8003_v8  ;;  %859 = vmatprep.subr.mxu1 %v8069_v34 }
  0xb1   :  { %711 = vmatprep.subr.mxu0 %v8010_v14  ;;  %861 = vmatpush1.msra.mxu1 %v8071_v50 }
  0xb2   :  { %714 = vmatpush1.msra.mxu0 %v8013_v19  ;;  %863 = vmatprep.subr.mxu1 %v8073_v51 }
  0xb3   :  { %717 = vmatprep.subr.mxu0 %v13224_v54  ;;  %865 = vmatpush1.msra.mxu1 %v8085_v49 }
  0xb4   :  { %720 = vmatpush1.msra.mxu0 %v13225_v43  ;;  %867 = vmatprep.subr.mxu1 %v8138_v60 }
  0xb5   :  { %723 = vmatprep.subr.mxu0 %v13226_v41  ;;  %869 = vmatpush1.msra.mxu1 %v8140_v36 }
  0xb6   :  { %726 = vmatpush1.msra.mxu0 %v13227_v32  ;;  %871 = vmatprep.subr.mxu1 %v8142_v59 }
  0xb7   :  { %729 = vmatprep.subr.mxu0 %v13228_v48  ;;  %873 = vmatpush1.msra.mxu1 %v13229_v40 }
  0xb8   :  { %732 = vmatpush1.msra.mxu0 %v13230_v52  ;;  %875 = vmatprep.subr.mxu1 %v8149_v33  ;;  %v13235_v52 = vld [vmem:[#allocation22_spill] sm:$0xff] }
  0xb9   :  { %735 = vmatprep.subr.mxu0 %v13231_v56  ;;  %877 = vmatpush1.msra.mxu1 %v8151_v28  ;;  %v13236_v56 = vld [vmem:[#allocation23_spill] sm:$0xff] }
  0xba   :  { %738 = vmatpush1.msra.mxu0 %v13232_v53  ;;  %879 = vmatprep.subr.mxu1 %v8153_v55  ;;  %v13237_v53 = vld [vmem:[#allocation24_spill] sm:$0xff] }
  0xbb   :  { %741 = vmatprep.subr.mxu0 %v13233_v39  ;;  %881 = vmatpush1.msra.mxu1 %v8165_v29  ;;  %v13238_v29 = vld [vmem:[#allocation25_spill] sm:$0xff] }
  0xbc   :  { %744 = vmatpush1.msra.mxu0 %v13234_v1  ;;  %918 = vmatmul.mubr.f32.vlgmr.msra.gmra.mxu1 %v8241_v42 }
  0xbd   :  { %1109 = vmatprep.subr.mxu1 %v7898_v5  ;;  %747 = vmatprep.subr.mxu0 %v13235_v52  ;;  %v13239_v5 = vld [vmem:[#allocation27_spill] sm:$0xff] }
  0xbe   :  { %1111 = vmatpush1.msra.mxu1 %v7900_v9  ;;  %750 = vmatpush1.msra.mxu0 %v13236_v56  ;;  %v13240_v9 = vand.u32 4294901760, %v7907_v15 }
  0xbf   :  { %1113 = vmatprep.subr.mxu1 %v7902_v10  ;;  %753 = vmatprep.subr.mxu0 %v13237_v53  ;;  %v13241_v10 = vand.u32 4294901760, %v7917_v20  ;;  %v286_v20 = vld [vmem:[#allocation2 + $0x718] sm:$0xff] }
  0xc0   :  { %923 = vmatprep.mubr.f32.mxu1 %v13214_v57  ;;  %1115 = vmatpush1.msra.mxu1 %v7904_v11  ;;  %v302_v11 = vld [vmem:[#allocation2 + $0x798] sm:$0xff] }
  0xc1   :  { %756 = vmatpush1.msra.mxu0 %v13238_v29  ;;  %927 = vmatmul.mubr.f32.gmra.mxu1 %v8261_v30  ;;  %v8352_v15 = vand.u32 4294901760, %v302_v11  ;;  %v157_v30 = vld [vmem:[#allocation2 + $0x310] sm:$0xff] }
  0xc2   :  { %1117 = vmatprep.subr.mxu1 %v7909_v16  ;;  %759 = vmatprep.subr.mxu0 %v8170_v45  ;;  %v13242_v16 = vand.u32 4294901760, %v7920_v21  ;;  %v285_v21 = vld [vmem:[#allocation2 + $0x710] sm:$0xff] }
  0xc3   :  { %1119 = vmatpush1.msra.mxu1 %v7911_v17  ;;  %762 = vmatpush1.msra.mxu0 %v13239_v5  ;;  %v301_v17 = vld [vmem:[#allocation2 + $0x790] sm:$0xff] }
  0xc4   :  { %1121 = vmatprep.subr.mxu1 %v7913_v18  ;;  %765 = vmatprep.subr.mxu0 %v8176_v24  ;;  %v13243_v18 = vand.u32 4294901760, %v7923_v22  ;;  %v270_v22 = vld [vmem:[#allocation2 + $0x698] sm:$0xff] }
  0xc5   :  { %1123 = vmatpush1.msra.mxu1 %v7925_v23  ;;  %768 = vmatpush1.msra.mxu0 %v8183_v38  ;;  %v13244_v23 = vand.u32 4294901760, %v7930_v25  ;;  %v13247_v25 = vand.u32 4294901760, %v7943_v31 }
  0xc6   :  { %801 = vmatprep.mubr.f32.mxu0 %v13214_v57  ;;  %1125 = vmatprep.subr.mxu1 %v7978_v58  ;;  %v13245_v58 = vand.u32 4294901760, %v7933_v26  ;;  %v8373_v26 = vand.u32 4294901760, %v285_v21 }
  0xc7   :  { %804 = vmatmul.mubr.f32.vlgmr.msra.gmra.mxu0 %v8232_v37  ;;  %936 = vmatprep.subr.mxu0 %v13240_v9  ;;  %v254_v9 = vld [vmem:[#allocation2 + $0x618] sm:$0xff] }
  0xc8   :  { %1127 = vmatpush1.msra.mxu1 %v7980_v61  ;;  %940 = vmatpush1.msra.mxu0 %v13241_v10  ;;  %v8360_v61 = vand.u32 4294901760, %v301_v17  ;;  %v253_v10 = vld [vmem:[#allocation2 + $0x610] sm:$0xff] }
  0xc9   :  { %1129 = vmatprep.subr.mxu1 %v7982_v62  ;;  %944 = vmatprep.subr.mxu0 %v13242_v16  ;;  %v13246_v62 = vand.u32 4294901760, %v7936_v27  ;;  %v8378_v27 = vand.u32 4294901760, %v270_v22  ;;  %v238_v16 = vld [vmem:[#allocation2 + $0x598] sm:$0xff] }
  0xca   :  { %1131 = vmatpush1.msra.mxu1 %v7984_v63  ;;  %809 = vmatprep.mubr.f32.mxu0 %v13214_v57  ;;  %v8365_v63 = vand.u32 4294901760, %v286_v20  ;;  %v8384_v31 = vsub.f32 %v301_v17, %v8360_v61 }
  0xcb   :  { %948 = vmatpush1.msra.mxu0 %v13243_v18  ;;  %1133 = vmatprep.subr.mxu1 %v7989_v2  ;;  %v269_v2 = vld [vmem:[#allocation2 + $0x690] sm:$0xff]  ;;  %v8394_v18 = vand.u32 4294901760, %v254_v9 }
  0xcc   :  { %812 = vmatmul.mubr.f32.gmra.mxu0 %v8253_v44  ;;  %952 = vmatprep.subr.mxu0 %v13244_v23  ;;  %13251 = vst [vmem:[#allocation12_spill] sm:$0xff] %v8384_v31  ;;  %v8401_v23 = vsub.f32 %v285_v21, %v8373_v26  ;;  %v12705_v21 = vand.u32 4294901760, %v8384_v31 }
  0xcd   :  { %1135 = vmatpush1.msra.mxu1 %v7991_v3  ;;  %956 = vmatpush1.msra.mxu0 %v13245_v58  ;;  %v8371_v3 = vsub.f32 %v302_v11, %v8352_v15  ;;  %v8386_v11 = vand.u32 4294901760, %v269_v2  ;;  %v8409_v58 = vsub.f32 %v270_v22, %v8378_v27  ;;  %v13260_v22 = vand.u32 4294901760, %v13224_v54 }
  0xce   :  { %1137 = vmatprep.subr.mxu1 %v7993_v4  ;;  %960 = vmatprep.subr.mxu0 %v13246_v62  ;;  %v13249_v4 = vand.u32 4294901760, %v7987_v0  ;;  %v8392_v0 = vsub.f32 %v286_v20, %v8365_v63  ;;  %13255 = vst [vmem:[#allocation14_spill] sm:$0xff] %v8401_v23  ;;  %v13256_v20 = vand.u32 4294901760, %v8010_v14  ;;  %v13258_v62 = vand.u32 4294901760, %v8013_v19  ;;  %v206_v14 = vld [vmem:[#allocation2 + $0x498] sm:$0xff] }
  0xcf   :  { %1139 = vmatpush1.msra.mxu1 %v8005_v12  ;;  %964 = vmatpush1.msra.mxu0 %v13247_v25  ;;  %13248 = vst [vmem:[#allocation11_spill] sm:$0xff] %v8371_v3  ;;  %v13250_v12 = vand.u32 4294901760, %v7997_v6  ;;  %v13254_v6 = vand.u32 4294901760, %v8003_v8  ;;  %v12706_v17 = vand.u32 4294901760, %v8371_v3  ;;  %13257 = vst [vmem:[#allocation15_spill] sm:$0xff] %v8409_v58  ;;  %v221_v8 = vld [vmem:[#allocation2 + $0x510] sm:$0xff]  ;;  %v8418_v25 = vsub.f32 %v269_v2, %v8386_v11 }
  0xd0   :  { %1141 = vmatprep.subr.mxu1 %v8058_v13  ;;  %968 = vmatprep.subr.mxu0 %v13249_v4  ;;  %v13252_v13 = vand.u32 4294901760, %v8000_v7  ;;  %13253 = vst [vmem:[#allocation13_spill] sm:$0xff] %v8392_v0  ;;  %v222_v7 = vld [vmem:[#allocation2 + $0x518] sm:$0xff]  ;;  %v12707_v4 = vand.u32 4294901760, %v8392_v0  ;;  %v13262_v2 = vand.u32 4294901760, %v13225_v43  ;;  %v12708_v54 = vand.u32 4294901760, %v8401_v23 }
  0xd1   :  { %1143 = vmatpush1.msra.mxu1 %v8060_v46  ;;  %972 = vmatpush1.msra.mxu0 %v13250_v12  ;;  %v237_v46 = vld [vmem:[#allocation2 + $0x590] sm:$0xff]  ;;  %13259 = vst [vmem:[#allocation21_spill] sm:$0xff] %v8418_v25  ;;  %v8429_v19 = vand.u32 4294901760, %v222_v7  ;;  %v12709_v43 = vand.u32 4294901760, %v8409_v58 }
  0xd2   :  { %1145 = vmatprep.subr.mxu1 %v8062_v47  ;;  %976 = vmatprep.subr.mxu0 %v13252_v13  ;;  %v8403_v47 = vand.u32 4294901760, %v253_v10  ;;  %v205_v12 = vld [vmem:[#allocation2 + $0x490] sm:$0xff] }
  0xd3   :  { %1147 = vmatpush1.msra.mxu1 %v8064_v35  ;;  %980 = vmatpush1.msra.mxu0 %v13254_v6  ;;  %v8411_v35 = vand.u32 4294901760, %v238_v16  ;;  %v190_v6 = vld [vmem:[#allocation2 + $0x418] sm:$0xff] }
  0xd4   :  { %1149 = vmatprep.subr.mxu1 %v8069_v34  ;;  %984 = vmatprep.subr.mxu0 %v13256_v20  ;;  %v8420_v34 = vand.u32 4294901760, %v237_v46  ;;  %v8441_v13 = vsub.f32 %v253_v10, %v8403_v47  ;;  %v13266_v10 = vand.u32 4294901760, %v13227_v32 }
  0xd5   :  { %1151 = vmatpush1.msra.mxu1 %v8071_v50  ;;  %988 = vmatpush1.msra.mxu0 %v13258_v62  ;;  %v8427_v50 = vsub.f32 %v254_v9, %v8394_v18  ;;  %v8443_v9 = vand.u32 4294901760, %v221_v8  ;;  %v8450_v20 = vsub.f32 %v238_v16, %v8411_v35  ;;  %v8452_v62 = vand.u32 4294901760, %v206_v14  ;;  %v189_v16 = vld [vmem:[#allocation2 + $0x410] sm:$0xff] }
  0xd6   :  { %1153 = vmatprep.subr.mxu1 %v8073_v51  ;;  %992 = vmatprep.subr.mxu0 %v13260_v22  ;;  %v8437_v51 = vsub.f32 %v8371_v3, %v12706_v17  ;;  %13263 = vst [vmem:[#allocation20_spill] sm:$0xff] %v8441_v13  ;;  %v1347_v22 = vsub.f32 %v8384_v31, %v12705_v21  ;;  %v8476_v21 = vand.u32 4294901760, %v190_v6 }
  0xd7   :  { %13261 = vst [vmem:[#allocation19_spill] sm:$0xff] %v8427_v50  ;;  %1155 = vmatpush1.msra.mxu1 %v8085_v49  ;;  %996 = vmatpush1.msra.mxu0 %v13262_v2  ;;  %v13264_v49 = vand.u32 4294901760, %v13226_v41  ;;  %13265 = vst [vmem:[#allocation22_spill] sm:$0xff] %v8450_v20  ;;  %v8462_v41 = vsub.f32 %v237_v46, %v8420_v34  ;;  %v8464_v2 = vand.u32 4294901760, %v205_v12  ;;  %v13270_v46 = vld [vmem:[#allocation16_spill] sm:$0xff] }
  0xd8   :  { %1157 = vmatprep.subr.mxu1 %v8138_v60  ;;  %v12710_v60 = vand.u32 4294901760, %v8418_v25  ;;  %v13271_v17 = vand.u32 4294901760, %v13270_v46  ;;  %v8501_v46 = vand.u32 4294901760, %v189_v16  ;;  %1204 = vmatprep.mubr.f32.mxu1 %v13214_v57 }
  0xd9   :  { %1000 = vmatprep.subr.mxu0 %v13264_v49  ;;  %1159 = vmatpush1.msra.mxu1 %v8140_v36  ;;  %13267 = vst [vmem:[#allocation23_spill] sm:$0xff] %v8462_v41  ;;  %v13268_v49 = vand.u32 4294901760, %v13228_v48  ;;  %v1353_v36 = vsub.f32 %v8392_v0, %v12707_v4  ;;  %v1359_v48 = vsub.f32 %v8401_v23, %v12708_v54  ;;  %v174_v54 = vld [vmem:[#allocation2 + $0x398] sm:$0xff]  ;;  %v13290_v42 = vand.u32 4294901760, %v8462_v41 }
  0xda   :  { %1004 = vmatpush1.msra.mxu0 %v13266_v10  ;;  %1161 = vmatprep.subr.mxu1 %v8142_v59  ;;  %v8474_v10 = vsub.f32 %v222_v7, %v8429_v19  ;;  %v1342_v59 = vand.u32 4294901760, %v8437_v51  ;;  %v8487_v4 = vsub.f32 %v221_v8, %v8443_v9  ;;  %v13273_v7 = vld [vmem:[#allocation17_spill] sm:$0xff]  ;;  %v8499_v51 = vsub.f32 %v206_v14, %v8452_v62  ;;  %v13276_v8 = vld [vmem:[#allocation18_spill] sm:$0xff] }
  0xdb   :  { %1008 = vmatprep.subr.mxu0 %v13268_v49  ;;  %1163 = vmatpush1.msra.mxu1 %v13229_v40  ;;  %v13274_v32 = vand.u32 4294901760, %v13273_v7  ;;  %v8495_v40 = vsub.f32 %v8409_v58, %v12709_v43  ;;  %v1348_v7 = vand.u32 4294901760, %v1347_v22  ;;  %v13279_v14 = vand.u32 4294901760, %v13233_v39  ;;  %v173_v43 = vld [vmem:[#allocation2 + $0x390] sm:$0xff]  ;;  %v13282_v49 = vld [vmem:[#allocation26_spill] sm:$0xff] }
  0xdc   :  { %13269 = vst [vmem:[#allocation24_spill] sm:$0xff] %v8474_v10  ;;  %1012 = vmatpush1.msra.mxu0 %v13271_v17  ;;  %13272 = vst [vmem:[#allocation25_spill] sm:$0xff] %v8487_v4  ;;  %1165 = vmatprep.subr.mxu1 %v8149_v33  ;;  %v13277_v33 = vand.u32 4294901760, %v13276_v8  ;;  %v8513_v17 = vsub.f32 %v205_v12, %v8464_v2  ;;  %v13280_v8 = vand.u32 4294901760, %v8427_v50  ;;  %v13283_v39 = vand.u32 4294901760, %v8441_v13 }
  0xdd   :  { %1016 = vmatprep.subr.mxu0 %v13274_v32  ;;  %13275 = vst [vmem:[#allocation27_spill] sm:$0xff] %v8499_v51  ;;  %1167 = vmatpush1.msra.mxu1 %v8151_v28  ;;  %v8509_v32 = vsub.f32 %v8418_v25, %v12710_v60  ;;  %v1354_v28 = vand.u32 4294901760, %v1353_v36  ;;  %v8525_v60 = vsub.f32 %v190_v6, %v8476_v21  ;;  %v13285_v6 = vmov 1.0  }
  0xde   :  { %1020 = vmatpush1.msra.mxu0 %v13277_v33  ;;  %13278 = vst [vmem:[#allocation16_spill] sm:$0xff] %v8513_v17  ;;  %1169 = vmatprep.subr.mxu1 %v8153_v55  ;;  %v8521_v22 = vsub.f32 %v8427_v50, %v13280_v8  ;;  %v1360_v55 = vand.u32 4294901760, %v1359_v48  ;;  %v8532_v12 = vsub.f32 %v8441_v13, %v13283_v39  ;;  %v158_v8 = vld [vmem:[#allocation2 + $0x318] sm:$0xff]  ;;  %v13284_v33 = vand.u32 4294901760, %v13234_v1 }
  0xdf   :  { %1024 = vmatprep.subr.mxu0 %v13279_v14  ;;  %13281 = vst [vmem:[#allocation17_spill] sm:$0xff] %v8525_v60  ;;  %1171 = vmatpush1.msra.mxu1 %v13282_v49  ;;  %v8535_v14 = vand.u32 4294901760, %v174_v54  ;;  %v1366_v49 = vand.u32 4294901760, %v8495_v40  ;;  %v13287_v48 = vand.u32 4294901760, %v8450_v20  ;;  %v8550_v36 = vsub.f32 %v189_v16, %v8501_v46  ;;  %v142_v39 = vld [vmem:[#allocation2 + $0x298] sm:$0xff] }
  0xe0   :  { %1028 = vmatpush1.msra.mxu0 %v13284_v33  ;;  %7731 = vmatmul.mubr.msk.f32.vlgmr.msra.gmra.mxu1 %vm8220_vm0, %v13285_v6  ;;  %v13289_v1 = vand.u32 4294901760, %v13235_v52  ;;  %v1372_v33 = vand.u32 4294901760, %v8509_v32  ;;  %v8558_v40 = vsub.f32 %v8462_v41, %v13290_v42  ;;  %v13291_v16 = vand.u32 4294901760, %v13236_v56  ;;  %v141_v41 = vld [vmem:[#allocation2 + $0x290] sm:$0xff] }
  0xe1   :  { %v8546_v37 = vsub.f32 %v8450_v20, %v13287_v48  ;;  %13288 = vst [vmem:[#allocation18_spill] sm:$0xff] %v8550_v36  ;;  %1343 = vmatprep.subr.mxu1 %v1342_v59  ;;  %v8561_v20 = vand.u32 4294901760, %v173_v43  ;;  %v1378_v59 = vand.u32 4294901760, %v8521_v22  ;;  %v13292_v52 = vand.u32 4294901760, %v8474_v10  ;;  %1211 = vmatprep.mubr.f32.mxu1 %v13214_v57 }
  0xe2   :  { %1032 = vmatprep.subr.mxu0 %v13289_v1  ;;  %1349 = vmatpush1.msra.mxu1 %v1348_v7  ;;  %v8572_v42 = vand.u32 4294901760, %v158_v8  ;;  %v13293_v48 = vand.u32 4294901760, %v13237_v53  ;;  %v1384_v7 = vand.u32 4294901760, %v8532_v12  ;;  %v13294_v56 = vand.u32 4294901760, %v8487_v4  ;;  %v126_v1 = vld [vmem:[#allocation2 + $0x218] sm:$0xff] }
  0xe3   :  { %1036 = vmatpush1.msra.mxu0 %v13291_v16  ;;  %v8569_v32 = vsub.f32 %v8474_v10, %v13292_v52  ;;  %1355 = vmatprep.subr.mxu1 %v1354_v28  ;;  %v8583_v16 = vsub.f32 %v174_v54, %v8535_v14  ;;  %v8585_v52 = vand.u32 4294901760, %v157_v30  ;;  %v1390_v28 = vand.u32 4294901760, %v8546_v37 }
  0xe4   :  { %1040 = vmatprep.subr.mxu0 %v13293_v48  ;;  %v8580_v22 = vsub.f32 %v8487_v4, %v13294_v56  ;;  %1361 = vmatpush1.msra.mxu1 %v1360_v55  ;;  %v13296_v53 = vand.u32 4294901760, %v8499_v51  ;;  %v8595_v56 = vand.u32 4294901760, %v142_v39  ;;  %v125_v4 = vld [vmem:[#allocation2 + $0x210] sm:$0xff]  ;;  %v13297_v54 = vand.u32 4294901760, %v13238_v29 }
  0xe5   :  { %13295 = vst [vmem:[#allocation26_spill] sm:$0xff] %v8583_v16  ;;  %7732 = vmatmul.mubr.msk.f32.gmra.mxu1 %vm8236_vm1, %v13285_v6  ;;  %v1396_v55 = vand.u32 4294901760, %v8558_v40  ;;  %v13299_v37 = vand.u32 4294901760, %v8513_v17  ;;  %v8611_v48 = vand.u32 4294901760, %v141_v41  ;;  %1367 = vmatprep.subr.mxu1 %v1366_v49  ;;  %v13301_v29 = vand.u32 4294901760, %v8170_v45 }
  0xe6   :  { %v8592_v12 = vsub.f32 %v8499_v51, %v13296_v53  ;;  %1044 = vmatpush1.msra.mxu0 %v13297_v54  ;;  %v8609_v53 = vsub.f32 %v173_v43, %v8561_v20  ;;  %v110_v51 = vld [vmem:[#allocation2 + $0x198] sm:$0xff]  ;;  %v1402_v54 = vand.u32 4294901760, %v8569_v32  ;;  %v13302_v50 = vand.u32 4294901760, %v8525_v60  ;;  %v109_v43 = vld [vmem:[#allocation2 + $0x190] sm:$0xff]  ;;  %1373 = vmatpush1.msra.mxu1 %v1372_v33 }
  0xe7   :  { %v8606_v13 = vsub.f32 %v8513_v17, %v13299_v37  ;;  %1048 = vmatprep.subr.mxu0 %v13301_v29  ;;  %v8622_v37 = vsub.f32 %v158_v8, %v8572_v42  ;;  %v8624_v17 = vand.u32 4294901760, %v126_v1  ;;  %v13305_v25 = vand.u32 4294901760, %v13239_v5  ;;  %1379 = vmatprep.subr.mxu1 %v1378_v59  ;;  %v62_v59 = vld [vmem:[#allocation2 + $0x18] sm:$0xff] }
  0xe8   :  { %13300 = vst [vmem:[#allocation36_spill] sm:$0xff] %v8609_v53  ;;  %v8619_v40 = vsub.f32 %v8525_v60, %v13302_v50  ;;  %v1408_v45 = vand.u32 4294901760, %v8580_v22  ;;  %v8631_v32 = vsub.f32 %v157_v30, %v8585_v52  ;;  %v8633_v29 = vand.u32 4294901760, %v125_v4  ;;  %v94_v50 = vld [vmem:[#allocation2 + $0x118] sm:$0xff]  ;;  %v93_v30 = vld [vmem:[#allocation2 + $0x110] sm:$0xff]  ;;  %1385 = vmatpush1.msra.mxu1 %v1384_v7  ;;  %1093 = vmatprep.mubr.f32.mxu0 %v13214_v57 }
  0xe9   :  { %13303 = vst [vmem:[#allocation37_spill] sm:$0xff] %v8622_v37  ;;  %13304 = vst [vmem:[#allocation38_spill] sm:$0xff] %v8624_v17  ;;  %1052 = vmatpush1.msra.mxu0 %v13305_v25  ;;  %v13307_v8 = vand.u32 4294901760, %v8176_v24  ;;  %v1414_v60 = vand.u32 4294901760, %v8592_v12  ;;  %v13308_v33 = vand.u32 4294901760, %v8550_v36  ;;  %v8644_v25 = vsub.f32 %v142_v39, %v8595_v56  ;;  %1391 = vmatprep.subr.mxu1 %v1390_v28 }
  0xea   :  { %13306 = vst [vmem:[#allocation39_spill] sm:$0xff] %v8631_v32  ;;  %v8646_v22 = vand.u32 4294901760, %v110_v51  ;;  %v13309_v49 = vand.u32 4294901760, %v8183_v38  ;;  %v1420_v24 = vand.u32 4294901760, %v8606_v13  ;;  %v8653_v12 = vsub.f32 %v141_v41, %v8611_v48  ;;  %v77_v13 = vld [vmem:[#allocation2 + $0x90] sm:$0xff]  ;;  %1397 = vmatpush1.msra.mxu1 %v1396_v55  ;;  %1562 = vmatprep.mubr.f32.mxu1 %v13214_v57 }
  0xeb   :  { %1056 = vmatprep.subr.mxu0 %v13307_v8  ;;  %v8641_v5 = vsub.f32 %v8550_v36, %v13308_v33  ;;  %v8655_v8 = vand.u32 4294901760, %v109_v43  ;;  %v78_v33 = vld [vmem:[#allocation2 + $0x98] sm:$0xff]  ;;  %v1426_v39 = vand.u32 4294901760, %v8619_v40  ;;  %v8661_v38 = vsub.f32 %v126_v1, %v8624_v17  ;;  %1403 = vmatprep.subr.mxu1 %v1402_v54 }
  0xec   :  { %1060 = vmatpush1.msra.mxu0 %v13309_v49  ;;  %v8663_v49 = vand.u32 4294901760, %v94_v50  ;;  %v13310_v41 = vand.u32 4294901760, %v8583_v16  ;;  %v8674_v7 = vsub.f32 %v125_v4, %v8633_v29  ;;  %v8676_v1 = vand.u32 4294901760, %v93_v30  ;;  %1409 = vmatpush1.msra.mxu1 %v1408_v45  ;;  %v13345_v10 = vld [vmem:[#allocation26_spill] sm:$0xff] }
  0xed   :  { %7729 = vmatmul.mubr.msk.f32.vlgmr.msra.gmra.mxu0 %vm8220_vm0, %v13285_v6  ;;  %1220 = vmatprep.subr.mxu0 %v8352_v15  ;;  %v1432_v36 = vand.u32 4294901760, %v8641_v5  ;;  %v8682_v23 = vsub.f32 %v110_v51, %v8646_v22  ;;  %v8684_v0 = vand.u32 4294901760, %v78_v33  ;;  %v13313_v4 = vand.u32 4294901760, %v8609_v53 }
  0xee   :  { %v1437_v28 = vsub.f32 %v8583_v16, %v13310_v41  ;;  %13311 = vst [vmem:[#allocation40_spill] sm:$0xff] %v8674_v7  ;;  %13312 = vst [vmem:[#allocation41_spill] sm:$0xff] %v8676_v1  ;;  %1222 = vmatpush1.msra.mxu0 %v8360_v61  ;;  %v61_v41 = vld [vmem:[#allocation2 + $0x10] sm:$0xff]  ;;  %v8692_v16 = vsub.f32 %v109_v43, %v8655_v8  ;;  %v8694_v5 = vand.u32 4294901760, %v77_v13  ;;  %1100 = vmatprep.mubr.f32.mxu0 %v13214_v57 }
  0xef   :  { %1224 = vmatprep.subr.mxu0 %v8365_v63  ;;  %v1443_v40 = vsub.f32 %v8609_v53, %v13313_v4  ;;  %v13314_v51 = vand.u32 4294901760, %v8622_v37  ;;  %v8702_v31 = vsub.f32 %v94_v50, %v8663_v49  ;;  %v8704_v4 = vand.u32 4294901760, %v62_v59  ;;  %1415 = vmatprep.subr.mxu1 %v1414_v60  ;;  %v13346_v44 = vld [vmem:[#allocation36_spill] sm:$0xff] }
  0xf0   :  { %1226 = vmatpush1.msra.mxu0 %v8373_v26  ;;  %v13315_v43 = vand.u32 4294901760, %v8631_v32  ;;  %v8712_v53 = vsub.f32 %v93_v30, %v8676_v1  ;;  %v1438_v50 = vand.u32 4294901760, %v1437_v28  ;;  %v13316_v60 = vand.u32 4294901760, %v8644_v25  ;;  %1421 = vmatpush1.msra.mxu1 %v1420_v24 }
  0xf1   :  { %v1449_v54 = vsub.f32 %v8622_v37, %v13314_v51  ;;  %v8714_v51 = vand.u32 4294901760, %v61_v41  ;;  %7730 = vmatmul.mubr.msk.f32.gmra.mxu0 %vm8236_vm1, %v13285_v6  ;;  %1228 = vmatprep.subr.mxu0 %v8378_v27  ;;  %v8725_v55 = vsub.f32 %v78_v33, %v8684_v0  ;;  %v1444_v30 = vand.u32 4294901760, %v1443_v40 }
  0xf2   :  { %v1455_v45 = vsub.f32 %v8631_v32, %v13315_v43  ;;  %v1461_v58 = vsub.f32 %v8644_v25, %v13316_v60  ;;  %1230 = vmatpush1.msra.mxu0 %v8386_v11  ;;  %v13317_v32 = vand.u32 4294901760, %v8653_v12  ;;  %v8733_v28 = vsub.f32 %v77_v13, %v8694_v5  ;;  %1427 = vmatprep.subr.mxu1 %v1426_v39 }
  0xf3   :  { %1232 = vmatprep.subr.mxu0 %v8394_v18  ;;  %v1450_v60 = vand.u32 4294901760, %v1449_v54  ;;  %v13318_v33 = vand.u32 4294901760, %v8661_v38  ;;  %v8741_v40 = vsub.f32 %v62_v59, %v8704_v4  ;;  %1433 = vmatpush1.msra.mxu1 %v1432_v36  ;;  %v13319_v13 = vand.u32 4294901760, %v8674_v7 }
  0xf4   :  { %v1467_v37 = vsub.f32 %v8653_v12, %v13317_v32  ;;  %1234 = vmatpush1.msra.mxu0 %v8403_v47  ;;  %v1456_v32 = vand.u32 4294901760, %v1455_v45  ;;  %v8749_v54 = vsub.f32 %v61_v41, %v8714_v51  ;;  %1439 = vmatprep.subr.mxu1 %v1438_v50  ;;  %v13320_v59 = vand.u32 4294901760, %v8682_v23 }
  0xf5   :  { %v1473_v24 = vsub.f32 %v8661_v38, %v13318_v33  ;;  %v1479_v39 = vsub.f32 %v8674_v7, %v13319_v13  ;;  %1236 = vmatprep.subr.mxu0 %v8411_v35  ;;  %v1462_v33 = vand.u32 4294901760, %v1461_v58  ;;  %1445 = vmatpush1.msra.mxu1 %v1444_v30  ;;  %v13321_v13 = vand.u32 4294901760, %v8692_v16 }
  0xf6   :  { %v1485_v36 = vsub.f32 %v8682_v23, %v13320_v59  ;;  %1238 = vmatpush1.msra.mxu0 %v8420_v34  ;;  %v1468_v45 = vand.u32 4294901760, %v1467_v37  ;;  %1451 = vmatprep.subr.mxu1 %v1450_v60  ;;  %v13322_v50 = vand.u32 4294901760, %v8702_v31  ;;  %v13323_v30 = vand.u32 4294901760, %v8712_v53 }
  0xf7   :  { %v1491_v3 = vsub.f32 %v8692_v16, %v13321_v13  ;;  %1240 = vmatprep.subr.mxu0 %v8429_v19  ;;  %v1474_v58 = vand.u32 4294901760, %v1473_v24  ;;  %1457 = vmatpush1.msra.mxu1 %v1456_v32  ;;  %v1480_v37 = vand.u32 4294901760, %v1479_v39  ;;  %v12759_v41 = vand.u32 4294901760, %v8749_v54 }
  0xf8   :  { %v1497_v59 = vsub.f32 %v8702_v31, %v13322_v50  ;;  %1242 = vmatpush1.msra.mxu0 %v8443_v9  ;;  %v1503_v13 = vsub.f32 %v8712_v53, %v13323_v30  ;;  %1463 = vmatprep.subr.mxu1 %v1462_v33  ;;  %v1486_v60 = vand.u32 4294901760, %v1485_v36  ;;  %v13324_v24 = vand.u32 4294901760, %v8725_v55 }
  0xf9   :  { %1244 = vmatprep.subr.mxu0 %v8452_v62  ;;  %1469 = vmatpush1.msra.mxu1 %v1468_v45  ;;  %v1492_v32 = vand.u32 4294901760, %v1491_v3  ;;  %v13325_v39 = vand.u32 4294901760, %v8733_v28  ;;  %v13326_v33 = vand.u32 4294901760, %v8741_v40  ;;  %v1527_v3 = vsub.f32 %v8749_v54, %v12759_v41  ;;  %v13342_v41 = vld [vmem:[#allocation16_spill] sm:$0xff] }
  0xfa   :  { %v1509_v50 = vsub.f32 %v8725_v55, %v13324_v24  ;;  %1246 = vmatpush1.msra.mxu0 %v8464_v2  ;;  %1475 = vmatprep.subr.mxu1 %v1474_v58  ;;  %v1498_v30 = vand.u32 4294901760, %v1497_v59  ;;  %v1504_v24 = vand.u32 4294901760, %v1503_v13  ;;  %v13328_v13 = vld [vmem:[#allocation11_spill] sm:$0xff] }
  0xfb   :  { %v1515_v43 = vsub.f32 %v8733_v28, %v13325_v39  ;;  %1248 = vmatprep.subr.mxu0 %v8476_v21  ;;  %v1521_v36 = vsub.f32 %v8741_v40, %v13326_v33  ;;  %1481 = vmatpush1.msra.mxu1 %v1480_v37  ;;  %v1528_v37 = vand.u32 4294901760, %v1527_v3  ;;  %v13332_v39 = vld [vmem:[#allocation35_spill] sm:$0xff]  ;;  %v13334_v33 = vld [vmem:[#allocation21_spill] sm:$0xff]  ;;  %v13337_v3 = vld [vmem:[#allocation22_spill] sm:$0xff] }
  0xfc   :  { %1250 = vmatpush1.msra.mxu0 %v8501_v46  ;;  %1487 = vmatprep.subr.mxu1 %v1486_v60  ;;  %v1510_v45 = vand.u32 4294901760, %v1509_v50  ;;  %v13329_v60 = vld [vmem:[#allocation12_spill] sm:$0xff]  ;;  %v13330_v50 = vld [vmem:[#allocation13_spill] sm:$0xff] }
  0xfd   :  { %1252 = vmatprep.subr.mxu0 %v8535_v14  ;;  %1493 = vmatpush1.msra.mxu1 %v1492_v32  ;;  %v1516_v58 = vand.u32 4294901760, %v1515_v43  ;;  %v1522_v59 = vand.u32 4294901760, %v1521_v36  ;;  %v13327_v43 = vld [vmem:[#allocation33_spill] sm:$0xff]  ;;  %v13331_v32 = vld [vmem:[#allocation14_spill] sm:$0xff]  ;;  %v13335_v36 = vld [vmem:[#allocation19_spill] sm:$0xff] }
  0xfe   :  { %1254 = vmatpush1.msra.mxu0 %v8561_v20  ;;  %1499 = vmatprep.subr.mxu1 %v1498_v30  ;;  %v13333_v30 = vld [vmem:[#allocation15_spill] sm:$0xff] }
  0xff   :  { %1256 = vmatprep.subr.mxu0 %v8572_v42  ;;  %1505 = vmatpush1.msra.mxu1 %v1504_v24  ;;  %v13336_v24 = vld [vmem:[#allocation20_spill] sm:$0xff] }
 0x100   :  { %1258 = vmatpush1.msra.mxu0 %v8585_v52  ;;  %1511 = vmatprep.subr.mxu1 %v1510_v45  ;;  %v13338_v45 = vld [vmem:[#allocation23_spill] sm:$0xff] }
 0x101   :  { %1260 = vmatprep.subr.mxu0 %v8595_v56  ;;  %1517 = vmatpush1.msra.mxu1 %v1516_v58  ;;  %v13339_v58 = vld [vmem:[#allocation24_spill] sm:$0xff] }
 0x102   :  { %1262 = vmatpush1.msra.mxu0 %v8611_v48  ;;  %1523 = vmatprep.subr.mxu1 %v1522_v59  ;;  %v13340_v59 = vld [vmem:[#allocation25_spill] sm:$0xff] }
 0x103   :  { %1264 = vmatprep.subr.mxu0 %v8624_v17  ;;  %1529 = vmatpush1.msra.mxu1 %v1528_v37  ;;  %v13341_v37 = vld [vmem:[#allocation27_spill] sm:$0xff] }
 0x104   :  { %1266 = vmatpush1.msra.mxu0 %v8633_v29  ;;  %7733 = vmatmul.mubr.msk.f32.vlgmr.msra.gmra.mxu1 %vm8220_vm0, %v13285_v6 }
 0x105   :  { %1723 = vmatprep.subr.mxu1 %v8352_v15  ;;  %1268 = vmatprep.subr.mxu0 %v8646_v22 }
 0x106   :  { %1725 = vmatpush1.msra.mxu1 %v8360_v61  ;;  %1270 = vmatpush1.msra.mxu0 %v8655_v8 }
 0x107   :  { %1727 = vmatprep.subr.mxu1 %v8365_v63  ;;  %1272 = vmatprep.subr.mxu0 %v8663_v49 }
 0x108   :  { %1569 = vmatprep.mubr.f32.mxu1 %v13214_v57  ;;  %1729 = vmatpush1.msra.mxu1 %v8373_v26 }
 0x109   :  { %1274 = vmatpush1.msra.mxu0 %v8676_v1  ;;  %7734 = vmatmul.mubr.msk.f32.gmra.mxu1 %vm8236_vm1, %v13285_v6  ;;  %v13347_v6 = vld [vmem:[#allocation37_spill] sm:$0xff] }
 0x10a   :  { %1731 = vmatprep.subr.mxu1 %v8378_v27  ;;  %1276 = vmatprep.subr.mxu0 %v8684_v0 }
 0x10b   :  { %1733 = vmatpush1.msra.mxu1 %v8386_v11  ;;  %1278 = vmatpush1.msra.mxu0 %v8694_v5 }
 0x10c   :  { %1735 = vmatprep.subr.mxu1 %v8394_v18  ;;  %1280 = vmatprep.subr.mxu0 %v8704_v4 }
 0x10d   :  { %1737 = vmatpush1.msra.mxu1 %v8403_v47  ;;  %1282 = vmatpush1.msra.mxu0 %v8714_v51 }
 0x10e   :  { %1315 = vmatprep.mubr.f32.mxu0 %v13214_v57  ;;  %1739 = vmatprep.subr.mxu1 %v8411_v35 }
 0x10f   :  { %1321 = vmatmul.mubr.f32.vlgmr.msra.gmra.mxu0 %v13327_v43  ;;  %1579 = vmatprep.subr.mxu0 %v13328_v13  ;;  %v13344_v43 = vld [vmem:[#allocation18_spill] sm:$0xff] }
 0x110   :  { %1741 = vmatpush1.msra.mxu1 %v8420_v34  ;;  %1582 = vmatpush1.msra.mxu0 %v13329_v60 }
 0x111   :  { %1743 = vmatprep.subr.mxu1 %v8429_v19  ;;  %1585 = vmatprep.subr.mxu0 %v13330_v50 }
 0x112   :  { %1745 = vmatpush1.msra.mxu1 %v8443_v9  ;;  %1326 = vmatprep.mubr.f32.mxu0 %v13214_v57 }
 0x113   :  { %1588 = vmatpush1.msra.mxu0 %v13331_v32  ;;  %1747 = vmatprep.subr.mxu1 %v8452_v62 }
 0x114   :  { %1332 = vmatmul.mubr.f32.gmra.mxu0 %v13332_v39  ;;  %1591 = vmatprep.subr.mxu0 %v13333_v30  ;;  %v13343_v39 = vld [vmem:[#allocation17_spill] sm:$0xff] }
 0x115   :  { %1749 = vmatpush1.msra.mxu1 %v8464_v2  ;;  %1594 = vmatpush1.msra.mxu0 %v13334_v33 }
 0x116   :  { %1751 = vmatprep.subr.mxu1 %v8476_v21  ;;  %1597 = vmatprep.subr.mxu0 %v13335_v36 }
 0x117   :  { %1753 = vmatpush1.msra.mxu1 %v8501_v46  ;;  %1600 = vmatpush1.msra.mxu0 %v13336_v24 }
 0x118   :  { %1755 = vmatprep.subr.mxu1 %v8535_v14  ;;  %1603 = vmatprep.subr.mxu0 %v13337_v3 }
 0x119   :  { %1757 = vmatpush1.msra.mxu1 %v8561_v20  ;;  %1606 = vmatpush1.msra.mxu0 %v13338_v45 }
 0x11a   :  { %1759 = vmatprep.subr.mxu1 %v8572_v42  ;;  %1609 = vmatprep.subr.mxu0 %v13339_v58 }
 0x11b   :  { %1761 = vmatpush1.msra.mxu1 %v8585_v52  ;;  %1612 = vmatpush1.msra.mxu0 %v13340_v59 }
 0x11c   :  { %1763 = vmatprep.subr.mxu1 %v8595_v56  ;;  %1615 = vmatprep.subr.mxu0 %v13341_v37 }
 0x11d   :  { %1765 = vmatpush1.msra.mxu1 %v8611_v48  ;;  %1618 = vmatpush1.msra.mxu0 %v13342_v41 }
 0x11e   :  { %1767 = vmatprep.subr.mxu1 %v8624_v17  ;;  %1621 = vmatprep.subr.mxu0 %v13343_v39  ;;  %v13348_v17 = vld [vmem:[#allocation39_spill] sm:$0xff] }
 0x11f   :  { %1769 = vmatpush1.msra.mxu1 %v8633_v29  ;;  %1624 = vmatpush1.msra.mxu0 %v13344_v43 }
 0x120   :  { %1771 = vmatprep.subr.mxu1 %v8646_v22  ;;  %1627 = vmatprep.subr.mxu0 %v13345_v10 }
 0x121   :  { %1773 = vmatpush1.msra.mxu1 %v8655_v8  ;;  %1630 = vmatpush1.msra.mxu0 %v13346_v44 }
 0x122   :  { %1775 = vmatprep.subr.mxu1 %v8663_v49  ;;  %1633 = vmatprep.subr.mxu0 %v13347_v6 }
 0x123   :  { %1777 = vmatpush1.msra.mxu1 %v8676_v1  ;;  %1636 = vmatpush1.msra.mxu0 %v13348_v17  ;;  %v13349_v1 = vld [vmem:[#allocation31_spill] sm:$0xff] }
 0x124   :  { %1779 = vmatprep.subr.mxu1 %v8684_v0  ;;  %1639 = vmatprep.subr.mxu0 %v8644_v25 }
 0x125   :  { %1781 = vmatpush1.msra.mxu1 %v8694_v5  ;;  %1642 = vmatpush1.msra.mxu0 %v8653_v12 }
 0x126   :  { %1783 = vmatprep.subr.mxu1 %v8704_v4  ;;  %1645 = vmatprep.subr.mxu0 %v8661_v38 }
 0x127   :  { %1785 = vmatpush1.msra.mxu1 %v8714_v51  ;;  %1818 = vmatprep.mubr.f32.mxu1 %v13214_v57 }
 0x128   :  { %1648 = vmatpush1.msra.mxu0 %v8674_v7  ;;  %1822 = vmatmul.mubr.f32.vlgmr.msra.gmra.mxu1 %v13349_v1  ;;  %v13350_v7 = vld [vmem:[#allocation34_spill] sm:$0xff] }
 0x129   :  { %2013 = vmatprep.subr.mxu1 %v8352_v15  ;;  %1651 = vmatprep.subr.mxu0 %v8682_v23  ;;  %v13351_v15 = vld [vmem:[#allocation29_spill] sm:$0xff] }
 0x12a   :  { %2015 = vmatpush1.msra.mxu1 %v8360_v61  ;;  %1654 = vmatpush1.msra.mxu0 %v8692_v16  ;;  %v13352_v61 = vand.u32 4294901760, %v13328_v13  ;;  %v287_v13 = vld [vmem:[#allocation2 + $0x720] sm:$0xff] }
 0x12b   :  { %2017 = vmatprep.subr.mxu1 %v8365_v63  ;;  %1657 = vmatprep.subr.mxu0 %v8702_v31  ;;  %v13353_v63 = vand.u32 4294901760, %v13329_v60 }
 0x12c   :  { %1827 = vmatprep.mubr.f32.mxu1 %v13214_v57  ;;  %2019 = vmatpush1.msra.mxu1 %v8373_v26  ;;  %v304_v26 = vld [vmem:[#allocation2 + $0x7a8] sm:$0xff] }
 0x12d   :  { %1660 = vmatpush1.msra.mxu0 %v8712_v53  ;;  %1831 = vmatmul.mubr.f32.gmra.mxu1 %v13350_v7  ;;  %v159_v7 = vld [vmem:[#allocation2 + $0x320] sm:$0xff] }
 0x12e   :  { %2021 = vmatprep.subr.mxu1 %v8378_v27  ;;  %1663 = vmatprep.subr.mxu0 %v8725_v55  ;;  %v13354_v27 = vand.u32 4294901760, %v13330_v50  ;;  %v272_v50 = vld [vmem:[#allocation2 + $0x6a8] sm:$0xff] }
 0x12f   :  { %2023 = vmatpush1.msra.mxu1 %v8386_v11  ;;  %1666 = vmatpush1.msra.mxu0 %v8733_v28  ;;  %v303_v11 = vld [vmem:[#allocation2 + $0x7a0] sm:$0xff] }
 0x130   :  { %2025 = vmatprep.subr.mxu1 %v8394_v18  ;;  %1669 = vmatprep.subr.mxu0 %v8741_v40  ;;  %v13355_v18 = vand.u32 4294901760, %v13331_v32  ;;  %v8915_v60 = vand.u32 4294901760, %v303_v11 }
 0x131   :  { %2027 = vmatpush1.msra.mxu1 %v8403_v47  ;;  %1672 = vmatpush1.msra.mxu0 %v8749_v54  ;;  %v8907_v47 = vand.u32 4294901760, %v304_v26 }
 0x132   :  { %1705 = vmatprep.mubr.f32.mxu0 %v13214_v57  ;;  %2029 = vmatprep.subr.mxu1 %v8411_v35  ;;  %v288_v35 = vld [vmem:[#allocation2 + $0x728] sm:$0xff] }
 0x133   :  { %1708 = vmatmul.mubr.f32.vlgmr.msra.gmra.mxu0 %v13351_v15  ;;  %1840 = vmatprep.subr.mxu0 %v13352_v61  ;;  %v8920_v32 = vand.u32 4294901760, %v288_v35  ;;  %v271_v61 = vld [vmem:[#allocation2 + $0x6a0] sm:$0xff] }
 0x134   :  { %2031 = vmatpush1.msra.mxu1 %v8420_v34  ;;  %1844 = vmatpush1.msra.mxu0 %v13353_v63  ;;  %v13356_v34 = vld [vmem:[#allocation32_spill] sm:$0xff] }
 0x135   :  { %2033 = vmatprep.subr.mxu1 %v8429_v19  ;;  %1848 = vmatprep.subr.mxu0 %v13354_v27  ;;  %v13357_v19 = vand.u32 4294901760, %v13333_v30  ;;  %v13360_v30 = vand.u32 4294901760, %v13336_v24  ;;  %v256_v63 = vld [vmem:[#allocation2 + $0x628] sm:$0xff]  ;;  %v255_v27 = vld [vmem:[#allocation2 + $0x620] sm:$0xff]  ;;  %v8939_v24 = vsub.f32 %v303_v11, %v8915_v60 }
 0x136   :  { %2035 = vmatpush1.msra.mxu1 %v8443_v9  ;;  %1713 = vmatprep.mubr.f32.mxu0 %v13214_v57  ;;  %v13358_v9 = vand.u32 4294901760, %v13334_v33  ;;  %v8928_v33 = vand.u32 4294901760, %v287_v13 }
 0x137   :  { %1852 = vmatpush1.msra.mxu0 %v13355_v18  ;;  %2037 = vmatprep.subr.mxu1 %v8452_v62  ;;  %v13359_v62 = vand.u32 4294901760, %v13335_v36  ;;  %v8933_v36 = vand.u32 4294901760, %v272_v50  ;;  %13364 = vst [vmem:[#allocation12_spill] sm:$0xff] %v8939_v24  ;;  %v240_v18 = vld [vmem:[#allocation2 + $0x5a8] sm:$0xff] }
 0x138   :  { %1716 = vmatmul.mubr.f32.gmra.mxu0 %v13356_v34  ;;  %1856 = vmatprep.subr.mxu0 %v13357_v19  ;;  %v8949_v19 = vand.u32 4294901760, %v256_v63 }
 0x139   :  { %2039 = vmatpush1.msra.mxu1 %v8464_v2  ;;  %1860 = vmatpush1.msra.mxu0 %v13358_v9  ;;  %v8926_v2 = vsub.f32 %v304_v26, %v8907_v47  ;;  %v8941_v26 = vand.u32 4294901760, %v271_v61  ;;  %v8956_v9 = vsub.f32 %v287_v13, %v8928_v33  ;;  %v12767_v13 = vand.u32 4294901760, %v8939_v24 }
 0x13a   :  { %2041 = vmatprep.subr.mxu1 %v8476_v21  ;;  %1864 = vmatprep.subr.mxu0 %v13359_v62  ;;  %v13362_v21 = vand.u32 4294901760, %v13337_v3  ;;  %v8947_v3 = vsub.f32 %v288_v35, %v8920_v32  ;;  %v13369_v35 = vand.u32 4294901760, %v13341_v37  ;;  %v8964_v62 = vsub.f32 %v272_v50, %v8933_v36  ;;  %v208_v37 = vld [vmem:[#allocation2 + $0x4a8] sm:$0xff] }
 0x13b   :  { %2043 = vmatpush1.msra.mxu1 %v8501_v46  ;;  %1868 = vmatpush1.msra.mxu0 %v13360_v30  ;;  %13361 = vst [vmem:[#allocation11_spill] sm:$0xff] %v8926_v2  ;;  %v13363_v46 = vand.u32 4294901760, %v13338_v45  ;;  %v13367_v45 = vand.u32 4294901760, %v13340_v59  ;;  %v12766_v11 = vand.u32 4294901760, %v8926_v2  ;;  %13368 = vst [vmem:[#allocation14_spill] sm:$0xff] %v8956_v9  ;;  %v223_v59 = vld [vmem:[#allocation2 + $0x520] sm:$0xff] }
 0x13c   :  { %2045 = vmatprep.subr.mxu1 %v8535_v14  ;;  %1872 = vmatprep.subr.mxu0 %v13362_v21  ;;  %v13365_v14 = vand.u32 4294901760, %v13339_v58  ;;  %13366 = vst [vmem:[#allocation13_spill] sm:$0xff] %v8947_v3  ;;  %v224_v58 = vld [vmem:[#allocation2 + $0x528] sm:$0xff]  ;;  %13370 = vst [vmem:[#allocation15_spill] sm:$0xff] %v8964_v62  ;;  %v13371_v30 = vand.u32 4294901760, %v13342_v41  ;;  %v8973_v21 = vsub.f32 %v271_v61, %v8941_v26  ;;  %v13374_v50 = vand.u32 4294901760, %v13343_v39 }
 0x13d   :  { %2047 = vmatpush1.msra.mxu1 %v8561_v20  ;;  %1876 = vmatpush1.msra.mxu0 %v13363_v46  ;;  %v239_v20 = vld [vmem:[#allocation2 + $0x5a0] sm:$0xff]  ;;  %v13373_v46 = vld [vmem:[#allocation38_spill] sm:$0xff]  ;;  %v8984_v41 = vand.u32 4294901760, %v224_v58  ;;  %v13376_v61 = vand.u32 4294901760, %v13344_v43  ;;  %v12769_v39 = vand.u32 4294901760, %v8956_v9  ;;  %v13382_v43 = vand.u32 4294901760, %v13347_v6 }
 0x13e   :  { %2049 = vmatprep.subr.mxu1 %v8572_v42  ;;  %1880 = vmatprep.subr.mxu0 %v13365_v14  ;;  %v8958_v42 = vand.u32 4294901760, %v255_v27  ;;  %13372 = vst [vmem:[#allocation21_spill] sm:$0xff] %v8973_v21  ;;  %v12768_v14 = vand.u32 4294901760, %v8947_v3 }
 0x13f   :  { %2051 = vmatpush1.msra.mxu1 %v8585_v52  ;;  %1884 = vmatpush1.msra.mxu0 %v13367_v45  ;;  %v8966_v52 = vand.u32 4294901760, %v240_v18  ;;  %v207_v45 = vld [vmem:[#allocation2 + $0x4a0] sm:$0xff]  ;;  %v2263_v6 = vsub.f32 %v8956_v9, %v12769_v39 }
 0x140   :  { %2053 = vmatprep.subr.mxu1 %v8595_v56  ;;  %1888 = vmatprep.subr.mxu0 %v13369_v35  ;;  %v8975_v56 = vand.u32 4294901760, %v239_v20  ;;  %v8992_v35 = vsub.f32 %v8926_v2, %v12766_v11  ;;  %v2251_v11 = vsub.f32 %v8939_v24, %v12767_v13 }
 0x141   :  { %2055 = vmatpush1.msra.mxu1 %v8611_v48  ;;  %1892 = vmatpush1.msra.mxu0 %v13371_v30  ;;  %v8982_v48 = vsub.f32 %v256_v63, %v8949_v19  ;;  %v8996_v30 = vsub.f32 %v255_v27, %v8958_v42  ;;  %v8998_v63 = vand.u32 4294901760, %v223_v59  ;;  %v13380_v27 = vand.u32 4294901760, %v13346_v44 }
 0x142   :  { %2057 = vmatprep.subr.mxu1 %v13373_v46  ;;  %1896 = vmatprep.subr.mxu0 %v13374_v50  ;;  %v192_v46 = vld [vmem:[#allocation2 + $0x428] sm:$0xff]  ;;  %v9005_v50 = vsub.f32 %v240_v18, %v8966_v52  ;;  %v191_v18 = vld [vmem:[#allocation2 + $0x420] sm:$0xff]  ;;  %v2257_v44 = vsub.f32 %v8947_v3, %v12768_v14 }
 0x143   :  { %13375 = vst [vmem:[#allocation19_spill] sm:$0xff] %v8982_v48  ;;  %2059 = vmatpush1.msra.mxu1 %v8633_v29  ;;  %1900 = vmatpush1.msra.mxu0 %v13376_v61  ;;  %13377 = vst [vmem:[#allocation20_spill] sm:$0xff] %v8996_v30  ;;  %v13378_v29 = vand.u32 4294901760, %v13345_v10  ;;  %v9007_v61 = vand.u32 4294901760, %v208_v37  ;;  %v9017_v10 = vsub.f32 %v239_v20, %v8975_v56  ;;  %v9031_v13 = vand.u32 4294901760, %v192_v46  ;;  %v13384_v20 = vld [vmem:[#allocation41_spill] sm:$0xff] }
 0x144   :  { %2061 = vmatprep.subr.mxu1 %v8646_v22  ;;  %13379 = vst [vmem:[#allocation22_spill] sm:$0xff] %v9005_v50  ;;  %v13385_v22 = vand.u32 4294901760, %v13348_v17  ;;  %v9042_v14 = vsub.f32 %v223_v59, %v8998_v63  ;;  %v9056_v39 = vand.u32 4294901760, %v191_v18  ;;  %v13391_v59 = vand.u32 4294901760, %v8973_v21  ;;  %2108 = vmatprep.mubr.f32.mxu1 %v13214_v57 }
 0x145   :  { %1904 = vmatprep.subr.mxu0 %v13378_v29  ;;  %2063 = vmatpush1.msra.mxu1 %v8655_v8  ;;  %13381 = vst [vmem:[#allocation23_spill] sm:$0xff] %v9017_v10  ;;  %v9019_v29 = vand.u32 4294901760, %v207_v45  ;;  %v12770_v8 = vand.u32 4294901760, %v8982_v48  ;;  %v13403_v1 = vand.u32 4294901760, %v9017_v10 }
 0x146   :  { %1908 = vmatpush1.msra.mxu0 %v13380_v27  ;;  %2065 = vmatprep.subr.mxu1 %v8663_v49  ;;  %v9029_v27 = vsub.f32 %v224_v58, %v8984_v41  ;;  %v2246_v49 = vand.u32 4294901760, %v8992_v35  ;;  %13386 = vst [vmem:[#allocation25_spill] sm:$0xff] %v9042_v14  ;;  %v13387_v58 = vand.u32 4294901760, %v8644_v25  ;;  %v2252_v25 = vand.u32 4294901760, %v2251_v11  ;;  %v13396_v11 = vld [vmem:[#allocation40_spill] sm:$0xff] }
 0x147   :  { %1912 = vmatprep.subr.mxu0 %v13382_v43  ;;  %2067 = vmatpush1.msra.mxu1 %v13384_v20  ;;  %v13388_v20 = vand.u32 4294901760, %v8964_v62  ;;  %v176_v43 = vld [vmem:[#allocation2 + $0x3a8] sm:$0xff]  ;;  %v9068_v35 = vsub.f32 %v207_v45, %v9019_v29 }
 0x148   :  { %13383 = vst [vmem:[#allocation24_spill] sm:$0xff] %v9029_v27  ;;  %1916 = vmatpush1.msra.mxu0 %v13385_v22  ;;  %2069 = vmatprep.subr.mxu1 %v8684_v0  ;;  %v9054_v22 = vsub.f32 %v208_v37, %v9007_v61  ;;  %v13390_v0 = vand.u32 4294901760, %v8653_v12  ;;  %v13393_v37 = vand.u32 4294901760, %v8661_v38  ;;  %v9076_v12 = vsub.f32 %v8982_v48, %v12770_v8  ;;  %v160_v8 = vld [vmem:[#allocation2 + $0x328] sm:$0xff] }
 0x149   :  { %1920 = vmatprep.subr.mxu0 %v13387_v58  ;;  %v9050_v17 = vsub.f32 %v8964_v62, %v13388_v20  ;;  %2071 = vmatpush1.msra.mxu1 %v8694_v5  ;;  %v9064_v58 = vsub.f32 %v8973_v21, %v13391_v59  ;;  %13392 = vst [vmem:[#allocation16_spill] sm:$0xff] %v9068_v35  ;;  %v2258_v5 = vand.u32 4294901760, %v2257_v44  ;;  %v175_v59 = vld [vmem:[#allocation2 + $0x3a0] sm:$0xff]  ;;  %v13395_v38 = vand.u32 4294901760, %v8996_v30 }
 0x14a   :  { %13389 = vst [vmem:[#allocation27_spill] sm:$0xff] %v9054_v22  ;;  %1924 = vmatpush1.msra.mxu0 %v13390_v0  ;;  %2073 = vmatprep.subr.mxu1 %v8704_v4  ;;  %v9080_v0 = vsub.f32 %v192_v46, %v9031_v13  ;;  %v2264_v4 = vand.u32 4294901760, %v2263_v6  ;;  %v13397_v20 = vand.u32 4294901760, %v13396_v11  ;;  %v13398_v46 = vmov 1.0  }
 0x14b   :  { %1928 = vmatprep.subr.mxu0 %v13393_v37  ;;  %2075 = vmatpush1.msra.mxu1 %v8714_v51  ;;  %v9087_v45 = vsub.f32 %v8996_v30, %v13395_v38  ;;  %v9090_v37 = vand.u32 4294901760, %v176_v43  ;;  %v2270_v51 = vand.u32 4294901760, %v9050_v17  ;;  %v13400_v6 = vand.u32 4294901760, %v9005_v50  ;;  %v144_v38 = vld [vmem:[#allocation2 + $0x2a8] sm:$0xff] }
 0x14c   :  { %13394 = vst [vmem:[#allocation17_spill] sm:$0xff] %v9080_v0  ;;  %1932 = vmatpush1.msra.mxu0 %v13397_v20  ;;  %7737 = vmatmul.mubr.msk.f32.vlgmr.msra.gmra.mxu1 %vm8220_vm0, %v13398_v46  ;;  %v9105_v44 = vsub.f32 %v191_v18, %v9056_v39  ;;  %v13402_v20 = vand.u32 4294901760, %v8682_v23  ;;  %v2276_v11 = vand.u32 4294901760, %v9064_v58  ;;  %v9113_v17 = vsub.f32 %v9017_v10, %v13403_v1  ;;  %v143_v10 = vld [vmem:[#allocation2 + $0x2a0] sm:$0xff] }
 0x14d   :  { %v9101_v15 = vsub.f32 %v9005_v50, %v13400_v6  ;;  %2247 = vmatprep.subr.mxu1 %v2246_v49  ;;  %v9116_v50 = vand.u32 4294901760, %v175_v59  ;;  %v13404_v18 = vand.u32 4294901760, %v8692_v16  ;;  %v2282_v49 = vand.u32 4294901760, %v9076_v12  ;;  %2115 = vmatprep.mubr.f32.mxu1 %v13214_v57 }
 0x14e   :  { %13401 = vst [vmem:[#allocation18_spill] sm:$0xff] %v9105_v44  ;;  %1936 = vmatprep.subr.mxu0 %v13402_v20  ;;  %2253 = vmatpush1.msra.mxu1 %v2252_v25  ;;  %v13405_v23 = vand.u32 4294901760, %v9029_v27  ;;  %v9127_v1 = vand.u32 4294901760, %v160_v8  ;;  %v13406_v6 = vand.u32 4294901760, %v8702_v31  ;;  %v2288_v25 = vand.u32 4294901760, %v9087_v45  ;;  %v128_v20 = vld [vmem:[#allocation2 + $0x228] sm:$0xff] }
 0x14f   :  { %1940 = vmatpush1.msra.mxu0 %v13404_v18  ;;  %2259 = vmatprep.subr.mxu1 %v2258_v5  ;;  %v13407_v16 = vand.u32 4294901760, %v9042_v14  ;;  %v9138_v18 = vsub.f32 %v176_v43, %v9090_v37  ;;  %v2294_v5 = vand.u32 4294901760, %v9101_v15  ;;  %v13409_v31 = vand.u32 4294901760, %v9054_v22 }
 0x150   :  { %v9124_v58 = vsub.f32 %v9029_v27, %v13405_v23  ;;  %1944 = vmatprep.subr.mxu0 %v13406_v6  ;;  %v9140_v23 = vand.u32 4294901760, %v159_v7  ;;  %2265 = vmatpush1.msra.mxu1 %v2264_v4  ;;  %v13410_v43 = vand.u32 4294901760, %v8712_v53  ;;  %v2300_v4 = vand.u32 4294901760, %v9113_v17 }
 0x151   :  { %v9135_v12 = vsub.f32 %v9042_v14, %v13407_v16  ;;  %13408 = vst [vmem:[#allocation26_spill] sm:$0xff] %v9138_v18  ;;  %v9147_v45 = vsub.f32 %v9054_v22, %v13409_v31  ;;  %v9150_v16 = vand.u32 4294901760, %v144_v38  ;;  %v127_v14 = vld [vmem:[#allocation2 + $0x220] sm:$0xff]  ;;  %7738 = vmatmul.mubr.msk.f32.gmra.mxu1 %vm8236_vm1, %v13398_v46  ;;  %v13412_v15 = vand.u32 4294901760, %v9068_v35  ;;  %v112_v22 = vld [vmem:[#allocation2 + $0x1a8] sm:$0xff]  ;;  %2271 = vmatprep.subr.mxu1 %v2270_v51 }
 0x152   :  { %1948 = vmatpush1.msra.mxu0 %v13410_v43  ;;  %v9164_v31 = vsub.f32 %v175_v59, %v9116_v50  ;;  %v9166_v6 = vand.u32 4294901760, %v143_v10  ;;  %v13414_v53 = vand.u32 4294901760, %v8725_v55  ;;  %v2306_v43 = vand.u32 4294901760, %v9124_v58  ;;  %v111_v59 = vld [vmem:[#allocation2 + $0x1a0] sm:$0xff]  ;;  %2277 = vmatpush1.msra.mxu1 %v2276_v11 }
 0x153   :  { %v9161_v30 = vsub.f32 %v9068_v35, %v13412_v15  ;;  %v13415_v48 = vand.u32 4294901760, %v9080_v0  ;;  %v9177_v15 = vsub.f32 %v160_v8, %v9127_v1  ;;  %v9179_v35 = vand.u32 4294901760, %v128_v20  ;;  %2283 = vmatprep.subr.mxu1 %v2282_v49  ;;  %1997 = vmatprep.mubr.f32.mxu0 %v13214_v57  ;;  %v64_v49 = vld [vmem:[#allocation2 + $0x28] sm:$0xff] }
 0x154   :  { %13413 = vst [vmem:[#allocation36_spill] sm:$0xff] %v9164_v31  ;;  %1952 = vmatprep.subr.mxu0 %v13414_v53  ;;  %v13418_v21 = vand.u32 4294901760, %v8733_v28  ;;  %v2312_v55 = vand.u32 4294901760, %v9135_v12  ;;  %v9186_v58 = vsub.f32 %v159_v7, %v9140_v23  ;;  %v9188_v53 = vand.u32 4294901760, %v127_v14  ;;  %v95_v7 = vld [vmem:[#allocation2 + $0x120] sm:$0xff]  ;;  %2289 = vmatpush1.msra.mxu1 %v2288_v25 }
 0x155   :  { %v9174_v17 = vsub.f32 %v9080_v0, %v13415_v48  ;;  %13416 = vst [vmem:[#allocation37_spill] sm:$0xff] %v9177_v15  ;;  %13417 = vst [vmem:[#allocation39_spill] sm:$0xff] %v9179_v35  ;;  %v96_v48 = vld [vmem:[#allocation2 + $0x128] sm:$0xff]  ;;  %v13421_v8 = vand.u32 4294901760, %v8741_v40  ;;  %v2318_v0 = vand.u32 4294901760, %v9147_v45  ;;  %v13422_v11 = vand.u32 4294901760, %v9105_v44  ;;  %2295 = vmatprep.subr.mxu1 %v2294_v5  ;;  %2466 = vmatprep.mubr.f32.mxu1 %v13214_v57 }
 0x156   :  { %1956 = vmatpush1.msra.mxu0 %v13418_v21  ;;  %13419 = vst [vmem:[#allocation38_spill] sm:$0xff] %v9186_v58  ;;  %13420 = vst [vmem:[#allocation41_spill] sm:$0xff] %v9188_v53  ;;  %v9199_v21 = vsub.f32 %v144_v38, %v9150_v16  ;;  %v9201_v12 = vand.u32 4294901760, %v112_v22  ;;  %v13423_v51 = vand.u32 4294901760, %v8749_v54  ;;  %v2324_v40 = vand.u32 4294901760, %v9161_v30  ;;  %v79_v30 = vld [vmem:[#allocation2 + $0xa0] sm:$0xff]  ;;  %2301 = vmatpush1.msra.mxu1 %v2300_v4 }
 0x157   :  { %1960 = vmatprep.subr.mxu0 %v13421_v8  ;;  %v9196_v28 = vsub.f32 %v9105_v44, %v13422_v11  ;;  %v9208_v45 = vsub.f32 %v143_v10, %v9166_v6  ;;  %v9210_v8 = vand.u32 4294901760, %v111_v59  ;;  %v80_v11 = vld [vmem:[#allocation2 + $0xa8] sm:$0xff]  ;;  %v2330_v38 = vand.u32 4294901760, %v9174_v17  ;;  %2307 = vmatprep.subr.mxu1 %v2306_v43 }
 0x158   :  { %1964 = vmatpush1.msra.mxu0 %v13423_v51  ;;  %v9216_v54 = vsub.f32 %v128_v20, %v9179_v35  ;;  %v9218_v51 = vand.u32 4294901760, %v96_v48  ;;  %v13426_v10 = vand.u32 4294901760, %v9138_v18  ;;  %v9229_v25 = vsub.f32 %v127_v14, %v9188_v53  ;;  %2313 = vmatpush1.msra.mxu1 %v2312_v55  ;;  %v13471_v34 = vld [vmem:[#allocation26_spill] sm:$0xff] }
 0x159   :  { %13424 = vst [vmem:[#allocation40_spill] sm:$0xff] %v9208_v45  ;;  %7735 = vmatmul.mubr.msk.f32.vlgmr.msra.gmra.mxu0 %vm8220_vm0, %v13398_v46  ;;  %2124 = vmatprep.subr.mxu0 %v8907_v47  ;;  %v9231_v20 = vand.u32 4294901760, %v95_v7  ;;  %v2336_v44 = vand.u32 4294901760, %v9196_v28  ;;  %v9237_v9 = vsub.f32 %v112_v22, %v9201_v12  ;;  %v9239_v3 = vand.u32 4294901760, %v80_v11 }
 0x15a   :  { %13425 = vst [vmem:[#allocation42_spill] sm:$0xff] %v9216_v54  ;;  %v2341_v5 = vsub.f32 %v9138_v18, %v13426_v10  ;;  %13427 = vst [vmem:[#allocation43_spill] sm:$0xff] %v9229_v25  ;;  %2126 = vmatpush1.msra.mxu0 %v8915_v60  ;;  %v63_v10 = vld [vmem:[#allocation2 + $0x20] sm:$0xff]  ;;  %v13430_v14 = vand.u32 4294901760, %v9164_v31  ;;  %v9247_v18 = vsub.f32 %v111_v59, %v9210_v8  ;;  %v9249_v28 = vand.u32 4294901760, %v79_v30 }
 0x15b   :  { %13428 = vst [vmem:[#allocation44_spill] sm:$0xff] %v9237_v9  ;;  %13429 = vst [vmem:[#allocation45_spill] sm:$0xff] %v9239_v3  ;;  %2128 = vmatprep.subr.mxu0 %v8920_v32  ;;  %2004 = vmatprep.mubr.f32.mxu0 %v13214_v57  ;;  %v13432_v22 = vand.u32 4294901760, %v9177_v15  ;;  %v9257_v24 = vsub.f32 %v96_v48, %v9218_v51  ;;  %v13435_v59 = vand.u32 4294901760, %v9186_v58  ;;  %v9410_v27 = vpop.f32.mrf.mxu1 }
 0x15c   :  { %v2347_v17 = vsub.f32 %v9164_v31, %v13430_v14  ;;  %13431 = vst [vmem:[#allocation46_spill] sm:$0xff] %v9247_v18  ;;  %v9259_v14 = vand.u32 4294901760, %v64_v49  ;;  %2130 = vmatpush1.msra.mxu0 %v8928_v33  ;;  %2319 = vmatprep.subr.mxu1 %v2318_v0  ;;  %v9267_v31 = vsub.f32 %v95_v7, %v9231_v20  ;;  %v2342_v48 = vand.u32 4294901760, %v2341_v5 }
 0x15d   :  { %v2353_v43 = vsub.f32 %v9177_v15, %v13432_v22  ;;  %13433 = vst [vmem:[#allocation47_spill] sm:$0xff] %v9257_v24  ;;  %v2359_v55 = vsub.f32 %v9186_v58, %v13435_v59  ;;  %v9269_v22 = vand.u32 4294901760, %v63_v10  ;;  %7736 = vmatmul.mubr.msk.f32.gmra.mxu0 %vm8236_vm1, %v13398_v46  ;;  %2132 = vmatprep.subr.mxu0 %v8933_v36  ;;  %v13438_v0 = vand.u32 4294901760, %v9199_v21 }
 0x15e   :  { %13434 = vst [vmem:[#allocation48_spill] sm:$0xff] %v9259_v14  ;;  %13436 = vst [vmem:[#allocation49_spill] sm:$0xff] %v9267_v31  ;;  %v9280_v4 = vsub.f32 %v80_v11, %v9239_v3  ;;  %2325 = vmatpush1.msra.mxu1 %v2324_v40  ;;  %2134 = vmatpush1.msra.mxu0 %v8941_v26  ;;  %v2348_v7 = vand.u32 4294901760, %v2347_v17  ;;  %v13440_v58 = vand.u32 4294901760, %v9208_v45  ;;  %v13442_v11 = vand.u32 4294901760, %v9216_v54 }
 0x15f   :  { %13437 = vst [vmem:[#allocation50_spill] sm:$0xff] %v9269_v22  ;;  %v2365_v62 = vsub.f32 %v9199_v21, %v13438_v0  ;;  %v9288_v5 = vsub.f32 %v79_v30, %v9249_v28  ;;  %2331 = vmatprep.subr.mxu1 %v2330_v38  ;;  %2136 = vmatprep.subr.mxu0 %v8949_v19  ;;  %v2354_v0 = vand.u32 4294901760, %v2353_v43  ;;  %v13444_v30 = vand.u32 4294901760, %v9229_v25 }
 0x160   :  { %13439 = vst [vmem:[#allocation51_spill] sm:$0xff] %v9280_v4  ;;  %v2371_v15 = vsub.f32 %v9208_v45, %v13440_v58  ;;  %v2377_v40 = vsub.f32 %v9216_v54, %v13442_v11  ;;  %v9296_v17 = vsub.f32 %v64_v49, %v9259_v14  ;;  %2337 = vmatpush1.msra.mxu1 %v2336_v44  ;;  %v2360_v58 = vand.u32 4294901760, %v2359_v55 }
 0x161   :  { %13441 = vst [vmem:[#allocation52_spill] sm:$0xff] %v9288_v5  ;;  %2138 = vmatpush1.msra.mxu0 %v8958_v42  ;;  %v2383_v38 = vsub.f32 %v9229_v25, %v13444_v30  ;;  %v9304_v43 = vsub.f32 %v63_v10, %v9269_v22  ;;  %2343 = vmatprep.subr.mxu1 %v2342_v48  ;;  %v2366_v11 = vand.u32 4294901760, %v2365_v62  ;;  %v13446_v49 = vand.u32 4294901760, %v9237_v9 }
 0x162   :  { %13443 = vst [vmem:[#allocation53_spill] sm:$0xff] %v9296_v17  ;;  %2140 = vmatprep.subr.mxu0 %v8966_v52  ;;  %2349 = vmatpush1.msra.mxu1 %v2348_v7  ;;  %v2372_v55 = vand.u32 4294901760, %v2371_v15  ;;  %v13447_v30 = vand.u32 4294901760, %v9247_v18  ;;  %v2378_v62 = vand.u32 4294901760, %v2377_v40  ;;  %v13448_v48 = vand.u32 4294901760, %v9257_v24 }
 0x163   :  { %13445 = vst [vmem:[#allocation54_spill] sm:$0xff] %v9304_v43  ;;  %v2389_v44 = vsub.f32 %v9237_v9, %v13446_v49  ;;  %2142 = vmatpush1.msra.mxu0 %v8975_v56  ;;  %2355 = vmatprep.subr.mxu1 %v2354_v0  ;;  %v2384_v15 = vand.u32 4294901760, %v2383_v38  ;;  %v13449_v7 = vand.u32 4294901760, %v9267_v31  ;;  %v12811_v10 = vand.u32 4294901760, %v9304_v43 }
 0x164   :  { %v2395_v2 = vsub.f32 %v9247_v18, %v13447_v30  ;;  %2144 = vmatprep.subr.mxu0 %v8984_v41  ;;  %v2401_v49 = vsub.f32 %v9257_v24, %v13448_v48  ;;  %2361 = vmatpush1.msra.mxu1 %v2360_v58  ;;  %v13450_v40 = vand.u32 4294901760, %v9280_v4  ;;  %v13451_v38 = vand.u32 4294901760, %v9288_v5 }
 0x165   :  { %2146 = vmatpush1.msra.mxu0 %v8998_v63  ;;  %v2407_v30 = vsub.f32 %v9267_v31, %v13449_v7  ;;  %2367 = vmatprep.subr.mxu1 %v2366_v11  ;;  %v2390_v0 = vand.u32 4294901760, %v2389_v44  ;;  %v13452_v11 = vand.u32 4294901760, %v9296_v17 }
 0x166   :  { %2148 = vmatprep.subr.mxu0 %v9007_v61  ;;  %v2413_v48 = vsub.f32 %v9280_v4, %v13450_v40  ;;  %2373 = vmatpush1.msra.mxu1 %v2372_v55  ;;  %v2396_v58 = vand.u32 4294901760, %v2395_v2  ;;  %v2419_v59 = vsub.f32 %v9288_v5, %v13451_v38  ;;  %v2402_v7 = vand.u32 4294901760, %v2401_v49  ;;  %v13458_v38 = vld [vmem:[#allocation35_spill] sm:$0xff] }
 0x167   :  { %2150 = vmatpush1.msra.mxu0 %v9019_v29  ;;  %2379 = vmatprep.subr.mxu1 %v2378_v62  ;;  %v2425_v44 = vsub.f32 %v9296_v17, %v13452_v11  ;;  %v2408_v40 = vand.u32 4294901760, %v2407_v30  ;;  %v2431_v2 = vsub.f32 %v9304_v43, %v12811_v10  ;;  %v13454_v30 = vld [vmem:[#allocation11_spill] sm:$0xff]  ;;  %v13460_v11 = vld [vmem:[#allocation21_spill] sm:$0xff]  ;;  %v13468_v10 = vld [vmem:[#allocation16_spill] sm:$0xff] }
 0x168   :  { %2152 = vmatprep.subr.mxu0 %v9031_v13  ;;  %2385 = vmatpush1.msra.mxu1 %v2384_v15  ;;  %v2414_v55 = vand.u32 4294901760, %v2413_v48  ;;  %v2420_v62 = vand.u32 4294901760, %v2419_v59  ;;  %v13453_v59 = vld [vmem:[#allocation33_spill] sm:$0xff] }
 0x169   :  { %2154 = vmatpush1.msra.mxu0 %v9056_v39  ;;  %2391 = vmatprep.subr.mxu1 %v2390_v0  ;;  %v2426_v49 = vand.u32 4294901760, %v2425_v44  ;;  %v2432_v15 = vand.u32 4294901760, %v2431_v2  ;;  %v13455_v0 = vld [vmem:[#allocation12_spill] sm:$0xff]  ;;  %v13456_v48 = vld [vmem:[#allocation13_spill] sm:$0xff]  ;;  %v13461_v44 = vld [vmem:[#allocation19_spill] sm:$0xff] }
 0x16a   :  { %2156 = vmatprep.subr.mxu0 %v9090_v37  ;;  %2397 = vmatpush1.msra.mxu1 %v2396_v58  ;;  %v13457_v58 = vld [vmem:[#allocation14_spill] sm:$0xff] }
 0x16b   :  { %2158 = vmatpush1.msra.mxu0 %v9116_v50  ;;  %2403 = vmatprep.subr.mxu1 %v2402_v7  ;;  %v13459_v7 = vld [vmem:[#allocation15_spill] sm:$0xff]  ;;  %v13463_v2 = vld [vmem:[#allocation22_spill] sm:$0xff] }
 0x16c   :  { %2160 = vmatprep.subr.mxu0 %v9127_v1  ;;  %2409 = vmatpush1.msra.mxu1 %v2408_v40  ;;  %v13462_v40 = vld [vmem:[#allocation20_spill] sm:$0xff] }
 0x16d   :  { %2162 = vmatpush1.msra.mxu0 %v9140_v23  ;;  %2415 = vmatprep.subr.mxu1 %v2414_v55  ;;  %v13464_v55 = vld [vmem:[#allocation23_spill] sm:$0xff] }
 0x16e   :  { %2164 = vmatprep.subr.mxu0 %v9150_v16  ;;  %2421 = vmatpush1.msra.mxu1 %v2420_v62  ;;  %v13465_v62 = vld [vmem:[#allocation24_spill] sm:$0xff] }
 0x16f   :  { %2166 = vmatpush1.msra.mxu0 %v9166_v6  ;;  %2427 = vmatprep.subr.mxu1 %v2426_v49  ;;  %v13466_v49 = vld [vmem:[#allocation25_spill] sm:$0xff] }
 0x170   :  { %2168 = vmatprep.subr.mxu0 %v9179_v35  ;;  %2433 = vmatpush1.msra.mxu1 %v2432_v15  ;;  %v13467_v15 = vld [vmem:[#allocation27_spill] sm:$0xff] }
 0x171   :  { %2170 = vmatpush1.msra.mxu0 %v9188_v53  ;;  %7739 = vmatmul.mubr.msk.f32.vlgmr.msra.gmra.mxu1 %vm8220_vm0, %v13398_v46 }
 0x172   :  { %2627 = vmatprep.subr.mxu1 %v8907_v47  ;;  %2172 = vmatprep.subr.mxu0 %v9201_v12 }
 0x173   :  { %2629 = vmatpush1.msra.mxu1 %v8915_v60  ;;  %2174 = vmatpush1.msra.mxu0 %v9210_v8 }
 0x174   :  { %2631 = vmatprep.subr.mxu1 %v8920_v32  ;;  %2176 = vmatprep.subr.mxu0 %v9218_v51 }
 0x175   :  { %2473 = vmatprep.mubr.f32.mxu1 %v13214_v57  ;;  %2633 = vmatpush1.msra.mxu1 %v8928_v33 }
 0x176   :  { %2178 = vmatpush1.msra.mxu0 %v9231_v20  ;;  %7740 = vmatmul.mubr.msk.f32.gmra.mxu1 %vm8236_vm1, %v13398_v46  ;;  %v13472_v46 = vld [vmem:[#allocation36_spill] sm:$0xff] }
 0x177   :  { %2635 = vmatprep.subr.mxu1 %v8933_v36  ;;  %2180 = vmatprep.subr.mxu0 %v9239_v3 }
 0x178   :  { %2637 = vmatpush1.msra.mxu1 %v8941_v26  ;;  %2182 = vmatpush1.msra.mxu0 %v9249_v28 }
 0x179   :  { %2639 = vmatprep.subr.mxu1 %v8949_v19  ;;  %2184 = vmatprep.subr.mxu0 %v9259_v14 }
 0x17a   :  { %2641 = vmatpush1.msra.mxu1 %v8958_v42  ;;  %2186 = vmatpush1.msra.mxu0 %v9269_v22 }
 0x17b   :  { %2219 = vmatprep.mubr.f32.mxu0 %v13214_v57  ;;  %2643 = vmatprep.subr.mxu1 %v8966_v52 }
 0x17c   :  { %2225 = vmatmul.mubr.f32.vlgmr.msra.gmra.mxu0 %v13453_v59  ;;  %2483 = vmatprep.subr.mxu0 %v13454_v30  ;;  %v13470_v59 = vld [vmem:[#allocation18_spill] sm:$0xff] }
 0x17d   :  { %2645 = vmatpush1.msra.mxu1 %v8975_v56  ;;  %2486 = vmatpush1.msra.mxu0 %v13455_v0 }
 0x17e   :  { %2647 = vmatprep.subr.mxu1 %v8984_v41  ;;  %2489 = vmatprep.subr.mxu0 %v13456_v48 }
 0x17f   :  { %2649 = vmatpush1.msra.mxu1 %v8998_v63  ;;  %2230 = vmatprep.mubr.f32.mxu0 %v13214_v57 }
 0x180   :  { %2492 = vmatpush1.msra.mxu0 %v13457_v58  ;;  %2651 = vmatprep.subr.mxu1 %v9007_v61 }
 0x181   :  { %2236 = vmatmul.mubr.f32.gmra.mxu0 %v13458_v38  ;;  %2495 = vmatprep.subr.mxu0 %v13459_v7  ;;  %v13469_v38 = vld [vmem:[#allocation17_spill] sm:$0xff] }
 0x182   :  { %2653 = vmatpush1.msra.mxu1 %v9019_v29  ;;  %2498 = vmatpush1.msra.mxu0 %v13460_v11 }
 0x183   :  { %2655 = vmatprep.subr.mxu1 %v9031_v13  ;;  %2501 = vmatprep.subr.mxu0 %v13461_v44 }
 0x184   :  { %2657 = vmatpush1.msra.mxu1 %v9056_v39  ;;  %2504 = vmatpush1.msra.mxu0 %v13462_v40 }
 0x185   :  { %2659 = vmatprep.subr.mxu1 %v9090_v37  ;;  %2507 = vmatprep.subr.mxu0 %v13463_v2 }
 0x186   :  { %2661 = vmatpush1.msra.mxu1 %v9116_v50  ;;  %2510 = vmatpush1.msra.mxu0 %v13464_v55 }
 0x187   :  { %2663 = vmatprep.subr.mxu1 %v9127_v1  ;;  %2513 = vmatprep.subr.mxu0 %v13465_v62 }
 0x188   :  { %2665 = vmatpush1.msra.mxu1 %v9140_v23  ;;  %2516 = vmatpush1.msra.mxu0 %v13466_v49 }
 0x189   :  { %2667 = vmatprep.subr.mxu1 %v9150_v16  ;;  %2519 = vmatprep.subr.mxu0 %v13467_v15 }
 0x18a   :  { %2669 = vmatpush1.msra.mxu1 %v9166_v6  ;;  %2522 = vmatpush1.msra.mxu0 %v13468_v10  ;;  %v13473_v10 = vld [vmem:[#allocation37_spill] sm:$0xff] }
 0x18b   :  { %2671 = vmatprep.subr.mxu1 %v9179_v35  ;;  %2525 = vmatprep.subr.mxu0 %v13469_v38  ;;  %v9418_v35 = vpop.f32.mrf.mxu0 }
 0x18c   :  { %2673 = vmatpush1.msra.mxu1 %v9188_v53  ;;  %2528 = vmatpush1.msra.mxu0 %v13470_v59  ;;  %v13474_v53 = vld [vmem:[#allocation38_spill] sm:$0xff]  ;;  %v9422_v59 = vpop.f32.mrf.mxu1 }
 0x18d   :  { %2675 = vmatprep.subr.mxu1 %v9201_v12  ;;  %2531 = vmatprep.subr.mxu0 %v13471_v34 }
 0x18e   :  { %2677 = vmatpush1.msra.mxu1 %v9210_v8  ;;  %2534 = vmatpush1.msra.mxu0 %v13472_v46 }
 0x18f   :  { %2679 = vmatprep.subr.mxu1 %v9218_v51  ;;  %2537 = vmatprep.subr.mxu0 %v13473_v10  ;;  %v9430_v10 = vpop.f32.mrf.mxu0 }
 0x190   :  { %2681 = vmatpush1.msra.mxu1 %v9231_v20  ;;  %2540 = vmatpush1.msra.mxu0 %v13474_v53  ;;  %v9434_v53 = vpop.f32.mrf.mxu1 }
 0x191   :  { %2683 = vmatprep.subr.mxu1 %v9239_v3  ;;  %2543 = vmatprep.subr.mxu0 %v9199_v21  ;;  %v13475_v3 = vld [vmem:[#allocation31_spill] sm:$0xff] }
 0x192   :  { %2685 = vmatpush1.msra.mxu1 %v9249_v28  ;;  %2546 = vmatpush1.msra.mxu0 %v9208_v45  ;;  %v9446_v45 = vpop.f32.mrf.mxu1 }
 0x193   :  { %2687 = vmatprep.subr.mxu1 %v9259_v14  ;;  %2549 = vmatprep.subr.mxu0 %v9216_v54  ;;  %v306_v54 = vld [vmem:[#allocation2 + $0x7b8] sm:$0xff]  ;;  %v9442_v14 = vpop.f32.mrf.mxu0 }
 0x194   :  { %2689 = vmatpush1.msra.mxu1 %v9269_v22  ;;  %2722 = vmatprep.mubr.f32.mxu1 %v13214_v57  ;;  %v305_v22 = vld [vmem:[#allocation2 + $0x7b0] sm:$0xff] }
 0x195   :  { %2552 = vmatpush1.msra.mxu0 %v9229_v25  ;;  %2726 = vmatmul.mubr.f32.vlgmr.msra.gmra.mxu1 %v13475_v3  ;;  %v9452_v3 = vand.u32 4294901760, %v306_v54  ;;  %v9460_v25 = vpop.f32.mrf.mxu0 }
 0x196   :  { %2917 = vmatprep.subr.mxu1 %v8907_v47  ;;  %2555 = vmatprep.subr.mxu0 %v9237_v9  ;;  %v290_v47 = vld [vmem:[#allocation2 + $0x738] sm:$0xff]  ;;  %v9454_v9 = vpop.f32.mrf.mxu1 }
 0x197   :  { %2919 = vmatpush1.msra.mxu1 %v8915_v60  ;;  %2558 = vmatpush1.msra.mxu0 %v9247_v18  ;;  %v13476_v60 = vld [vmem:[#allocation34_spill] sm:$0xff]  ;;  %13477 = vst [vmem:[#allocation11_spill] sm:$0xff] %v9452_v3  ;;  %v289_v18 = vld [vmem:[#allocation2 + $0x730] sm:$0xff] }
 0x198   :  { %2921 = vmatprep.subr.mxu1 %v8920_v32  ;;  %2561 = vmatprep.subr.mxu0 %v9257_v24  ;;  %v9458_v32 = vand.u32 4294901760, %v305_v22  ;;  %v274_v24 = vld [vmem:[#allocation2 + $0x6b8] sm:$0xff] }
 0x199   :  { %2731 = vmatprep.mubr.f32.mxu1 %v13214_v57  ;;  %2923 = vmatpush1.msra.mxu1 %v8928_v33  ;;  %v9464_v33 = vand.u32 4294901760, %v290_v47 }
 0x19a   :  { %2564 = vmatpush1.msra.mxu0 %v9267_v31  ;;  %2735 = vmatmul.mubr.f32.gmra.mxu1 %v13476_v60  ;;  %v9468_v60 = vand.u32 4294901760, %v289_v18  ;;  %v9475_v31 = vand.u32 4294901760, %v274_v24 }
 0x19b   :  { %2925 = vmatprep.subr.mxu1 %v8933_v36  ;;  %2567 = vmatprep.subr.mxu0 %v9280_v4  ;;  %v805_v36 = vpop.f32.mrf.mxu0  ;;  %v9473_v4 = vsub.f32 %v306_v54, %v9452_v3  ;;  %v9488_v54 = vsub.f32 %v290_v47, %v9464_v33  ;;  %v13483_v3 = vand.u32 4294901760, %v13455_v0  ;;  %v662_v0 = vadd.f32 %v9410_v27, %v9418_v35 }
 0x19c   :  { %2927 = vmatpush1.msra.mxu1 %v8941_v26  ;;  %2570 = vmatpush1.msra.mxu0 %v9288_v5  ;;  %v9477_v26 = vpop.f32.mrf.mxu1  ;;  %v13480_v5 = vld [vmem:[#allocation29_spill] sm:$0xff]  ;;  %v9501_v47 = vsub.f32 %v274_v24, %v9475_v31 }
 0x19d   :  { %2929 = vmatprep.subr.mxu1 %v8949_v19  ;;  %2573 = vmatprep.subr.mxu0 %v9296_v17  ;;  %13478 = vst [vmem:[#allocation12_spill] sm:$0xff] %v9473_v4  ;;  %v9482_v19 = vsub.f32 %v305_v22, %v9458_v32  ;;  %v273_v17 = vld [vmem:[#allocation2 + $0x6b0] sm:$0xff]  ;;  %13482 = vst [vmem:[#allocation14_spill] sm:$0xff] %v9488_v54  ;;  %v807_v22 = vpop.f32.mrf.mxu0 }
 0x19e   :  { %2931 = vmatpush1.msra.mxu1 %v8958_v42  ;;  %2576 = vmatpush1.msra.mxu0 %v9304_v43  ;;  %v13481_v42 = vand.u32 4294901760, %v13454_v30  ;;  %v9494_v43 = vsub.f32 %v289_v18, %v9468_v60  ;;  %13486 = vst [vmem:[#allocation21_spill] sm:$0xff] %v9501_v47  ;;  %v12834_v18 = vand.u32 4294901760, %v9488_v54  ;;  %v257_v24 = vld [vmem:[#allocation2 + $0x630] sm:$0xff]  ;;  %v12833_v27 = vand.u32 4294901760, %v9501_v47 }
 0x19f   :  { %2609 = vmatprep.mubr.f32.mxu0 %v13214_v57  ;;  %2933 = vmatprep.subr.mxu1 %v8966_v52  ;;  %13479 = vst [vmem:[#allocation13_spill] sm:$0xff] %v9482_v19  ;;  %v258_v52 = vld [vmem:[#allocation2 + $0x638] sm:$0xff]  ;;  %v813_v30 = vpop.f32.mrf.mxu0 }
 0x1a0   :  { %2612 = vmatmul.mubr.f32.vlgmr.msra.gmra.mxu0 %v13480_v5  ;;  %2744 = vmatprep.subr.mxu0 %v13481_v42  ;;  %13484 = vst [vmem:[#allocation15_spill] sm:$0xff] %v9494_v43  ;;  %v13485_v5 = vand.u32 4294901760, %v13456_v48  ;;  %v9503_v42 = vand.u32 4294901760, %v273_v17  ;;  %v13488_v48 = vld [vmem:[#allocation32_spill] sm:$0xff] }
 0x1a1   :  { %2935 = vmatpush1.msra.mxu1 %v8975_v56  ;;  %2748 = vmatpush1.msra.mxu0 %v13483_v3  ;;  %v9505_v56 = vpop.f32.mrf.mxu1  ;;  %v806_v3 = vadd.f32 %v805_v36, %v662_v0  ;;  %v13497_v36 = vand.u32 4294901760, %v13463_v2 }
 0x1a2   :  { %2937 = vmatprep.subr.mxu1 %v8984_v41  ;;  %2752 = vmatprep.subr.mxu0 %v13485_v5  ;;  %v13487_v41 = vand.u32 4294901760, %v13457_v58  ;;  %v9514_v5 = vand.u32 4294901760, %v258_v52  ;;  %v13491_v58 = vand.u32 4294901760, %v9473_v4  ;;  %v9532_v35 = vsub.f32 %v273_v17, %v9503_v42  ;;  %v242_v17 = vld [vmem:[#allocation2 + $0x5b8] sm:$0xff] }
 0x1a3   :  { %2939 = vmatpush1.msra.mxu1 %v8998_v63  ;;  %2617 = vmatprep.mubr.f32.mxu0 %v13214_v57  ;;  %v13489_v63 = vand.u32 4294901760, %v13459_v7  ;;  %v664_v7 = vadd.f32 %v9422_v59, %v9430_v10  ;;  %v13495_v10 = vand.u32 4294901760, %v13462_v40 }
 0x1a4   :  { %2756 = vmatpush1.msra.mxu0 %v13487_v41  ;;  %2941 = vmatprep.subr.mxu1 %v9007_v61  ;;  %v13490_v61 = vand.u32 4294901760, %v13460_v11  ;;  %v9528_v41 = vsub.f32 %v9473_v4, %v13491_v58  ;;  %13492 = vst [vmem:[#allocation19_spill] sm:$0xff] %v9532_v35  ;;  %v13494_v11 = vand.u32 4294901760, %v9482_v19  ;;  %v9546_v58 = vand.u32 4294901760, %v257_v24 }
 0x1a5   :  { %2620 = vmatmul.mubr.f32.gmra.mxu0 %v13488_v48  ;;  %2760 = vmatprep.subr.mxu0 %v13489_v63  ;;  %v9536_v63 = vpop.f32.mrf.mxu1  ;;  %v9557_v59 = vsub.f32 %v258_v52, %v9514_v5  ;;  %v13499_v52 = vand.u32 4294901760, %v13464_v55  ;;  %v12835_v2 = vand.u32 4294901760, %v9532_v35 }
 0x1a6   :  { %2943 = vmatpush1.msra.mxu1 %v9019_v29  ;;  %2764 = vmatpush1.msra.mxu0 %v13490_v61  ;;  %v13493_v29 = vand.u32 4294901760, %v13461_v44  ;;  %v9544_v61 = vsub.f32 %v9482_v19, %v13494_v11  ;;  %v808_v44 = vadd.f32 %v807_v22, %v664_v7  ;;  %v815_v11 = vpop.f32.mrf.mxu0  ;;  %v9578_v22 = vand.u32 4294901760, %v242_v17  ;;  %v241_v7 = vld [vmem:[#allocation2 + $0x5b0] sm:$0xff] }
 0x1a7   :  { %2945 = vmatprep.subr.mxu1 %v9031_v13  ;;  %v9554_v13 = vsub.f32 %v9488_v54, %v12834_v18  ;;  %13496 = vst [vmem:[#allocation20_spill] sm:$0xff] %v9557_v59  ;;  %v1207_v0 = vpop.f32.mrf.mxu1  ;;  %v9586_v55 = vsub.f32 %v257_v24, %v9546_v58  ;;  %v13503_v24 = vand.u32 4294901760, %v13467_v15  ;;  %v9610_v15 = vsub.f32 %v9532_v35, %v12835_v2  ;;  %v13509_v2 = vld [vmem:[#allocation41_spill] sm:$0xff] }
 0x1a8   :  { %2768 = vmatprep.subr.mxu0 %v13493_v29  ;;  %2947 = vmatpush1.msra.mxu1 %v9056_v39  ;;  %v13498_v39 = vand.u32 4294901760, %v9494_v43  ;;  %v669_v29 = vadd.f32 %v9434_v53, %v9442_v14  ;;  %v13500_v53 = vand.u32 4294901760, %v13465_v62  ;;  %v3156_v14 = vand.u32 4294901760, %v9544_v61  ;;  %v13542_v61 = vld [vmem:[#allocation47_spill] sm:$0xff] }
 0x1a9   :  { %2772 = vmatpush1.msra.mxu0 %v13495_v10  ;;  %2949 = vmatprep.subr.mxu1 %v9090_v37  ;;  %v9575_v37 = vsub.f32 %v9501_v47, %v12833_v27  ;;  %13501 = vst [vmem:[#allocation22_spill] sm:$0xff] %v9586_v55  ;;  %v920_v10 = vadd.f32 %v9454_v9, %v806_v3  ;;  %v226_v27 = vld [vmem:[#allocation2 + $0x538] sm:$0xff]  ;;  %v1209_v9 = vpop.f32.mrf.mxu1  ;;  %v225_v3 = vld [vmem:[#allocation2 + $0x530] sm:$0xff]  ;;  %v13514_v62 = vand.u32 4294901760, %v13472_v46 }
 0x1aa   :  { %2776 = vmatprep.subr.mxu0 %v13497_v36  ;;  %v9565_v40 = vsub.f32 %v9494_v43, %v13498_v39  ;;  %2951 = vmatpush1.msra.mxu1 %v9116_v50  ;;  %v3150_v50 = vand.u32 4294901760, %v9528_v41  ;;  %v671_v36 = vadd.f32 %v9446_v45, %v9460_v25  ;;  %v814_v39 = vadd.f32 %v813_v30, %v669_v29  ;;  %v7547_v30 = vld [vmem:[#allocation5] sm:$0xff]  ;;  %v13510_v45 = vld [vmem:[#allocation18_spill] sm:$0xff] }
 0x1ab   :  { %2780 = vmatpush1.msra.mxu0 %v13499_v52  ;;  %2953 = vmatprep.subr.mxu1 %v9127_v1  ;;  %v13502_v1 = vand.u32 4294901760, %v13466_v49  ;;  %v12836_v52 = vand.u32 4294901760, %v9557_v59  ;;  %v922_v49 = vadd.f32 %v9477_v26, %v808_v44  ;;  %v13507_v26 = vld [vmem:[#allocation39_spill] sm:$0xff]  ;;  %v13508_v44 = vand.u32 4294901760, %v13469_v38  ;;  %v13539_v41 = vld [vmem:[#allocation46_spill] sm:$0xff] }
 0x1ac   :  { %2784 = vmatprep.subr.mxu0 %v13500_v53  ;;  %2955 = vmatpush1.msra.mxu1 %v9140_v23  ;;  %v9600_v23 = vand.u32 4294901760, %v241_v7  ;;  %v816_v29 = vadd.f32 %v815_v11, %v671_v36  ;;  %v9619_v11 = vand.u32 4294901760, %v226_v27  ;;  %vm7579_vm2 = vcmp.ge.f32.partialorder %v7547_v30, 0.3 }
 0x1ad   :  { %2788 = vmatpush1.msra.mxu0 %v13502_v1  ;;  %v1096_v53 = vpop.f32.mrf.mxu0  ;;  %2957 = vmatprep.subr.mxu1 %v9150_v16  ;;  %v13504_v1 = vld [vmem:[#allocation16_spill] sm:$0xff]  ;;  %v209_v16 = vld [vmem:[#allocation2 + $0x4b0] sm:$0xff]  ;;  %v9629_v38 = vand.u32 4294901760, %v225_v3 }
 0x1ae   :  { %2792 = vmatprep.subr.mxu0 %v13503_v24  ;;  %v1097_v25 = vadd.f32 %v1096_v53, %v920_v10  ;;  %2959 = vmatpush1.msra.mxu1 %v9166_v6  ;;  %v13505_v18 = vand.u32 4294901760, %v13504_v1  ;;  %v9613_v10 = vsub.f32 %v242_v17, %v9578_v22  ;;  %v210_v24 = vld [vmem:[#allocation2 + $0x4b8] sm:$0xff]  ;;  %v12838_v6 = vand.u32 4294901760, %v9586_v55  ;;  %v7548_v1 = vld [vmem:[#allocation5 + $0x8] sm:$0xff] }
 0x1af   :  { %v1098_v53 = vpop.f32.mrf.mxu0  ;;  %2961 = vmatprep.subr.mxu1 %v13507_v26  ;;  %v13511_v17 = vand.u32 4294901760, %v13510_v45  ;;  %v9627_v26 = vsub.f32 %v9557_v59, %v12836_v52  ;;  %v9636_v45 = vsub.f32 %v241_v7, %v9600_v23  ;;  %vm7580_vm3 = vcmp.ge.f32.partialorder %v7548_v1, 0.3  ;;  %v13515_v7 = vld [vmem:[#allocation37_spill] sm:$0xff]  ;;  %3012 = vmatprep.mubr.f32.mxu1 %v13214_v57 }
 0x1b0   :  { %2796 = vmatpush1.msra.mxu0 %v13505_v18  ;;  %13506 = vst [vmem:[#allocation23_spill] sm:$0xff] %v9613_v10  ;;  %v1208_v18 = vadd.f32 %v1207_v0, %v1097_v25  ;;  %v1099_v36 = vadd.f32 %v1098_v53, %v922_v49  ;;  %2963 = vmatpush1.msra.mxu1 %v13509_v2  ;;  %v194_v25 = vld [vmem:[#allocation2 + $0x438] sm:$0xff]  ;;  %v13512_v49 = vand.u32 4294901760, %v13471_v34  ;;  %v1214_v2 = vpop.f32.mrf.mxu1 }
 0x1b1   :  { %2800 = vmatprep.subr.mxu0 %v13508_v44  ;;  %v929_v0 = vadd.f32 %v9505_v56, %v814_v39  ;;  %2965 = vmatprep.subr.mxu1 %v9201_v12  ;;  %13513 = vst [vmem:[#allocation24_spill] sm:$0xff] %v9636_v45  ;;  %v1103_v52 = vpop.f32.mrf.mxu0  ;;  %v7563_v12 = vld [vmem:[#allocation5 + $0x80] sm:$0xff]  ;;  %v9643_v39 = vand.u32 4294901760, %v209_v16  ;;  %v931_v34 = vadd.f32 %v9536_v63, %v816_v29  ;;  %v12837_v63 = vand.u32 4294901760, %v9613_v10 }
 0x1b2   :  { %2804 = vmatpush1.msra.mxu0 %v13511_v17  ;;  %v7611_v53 = vmul.f32 1.4285715, %v1208_v18  ;;  %v1210_v44 = vadd.f32 %v1209_v9, %v1099_v36  ;;  %v9638_v17 = vand.u32 4294901760, %v210_v24  ;;  %2967 = vmatpush1.msra.mxu1 %v9210_v8  ;;  %v193_v18 = vld [vmem:[#allocation2 + $0x430] sm:$0xff]  ;;  %v13516_v9 = vand.u32 4294901760, %v13515_v7  ;;  %v1216_v7 = vpop.f32.mrf.mxu1 }
 0x1b3   :  { %2808 = vmatprep.subr.mxu0 %v13512_v49  ;;  %v1104_v56 = vadd.f32 %v1103_v52, %v929_v0  ;;  %2969 = vmatprep.subr.mxu1 %v9218_v51  ;;  %v9651_v8 = vsub.f32 %v226_v27, %v9619_v11  ;;  %v1105_v52 = vpop.f32.mrf.mxu0  ;;  %v13518_v0 = vld [vmem:[#allocation38_spill] sm:$0xff]  ;;  %v9660_v51 = vsub.f32 %v225_v3, %v9629_v38  ;;  %v13521_v27 = vld [vmem:[#allocation45_spill] sm:$0xff]  ;;  %vm7595_vm4 = vcmp.ge.f32.partialorder %v7563_v12, 0.3  ;;  %v13524_v3 = vld [vmem:[#allocation40_spill] sm:$0xff] }
 0x1b4   :  { %2812 = vmatpush1.msra.mxu0 %v13514_v62  ;;  %v7643_v36 = vsel %vm7579_vm2, %v7611_v53, 0.0  ;;  %v7612_v46 = vmul.f32 1.4285715, %v1210_v44  ;;  %v9653_v62 = vand.u32 4294901760, %v194_v25  ;;  %2971 = vmatpush1.msra.mxu1 %v9231_v20  ;;  %v13519_v49 = vand.u32 4294901760, %v13518_v0  ;;  %v7564_v53 = vld [vmem:[#allocation5 + $0x88] sm:$0xff] }
 0x1b5   :  { %2816 = vmatprep.subr.mxu0 %v13516_v9  ;;  %13517 = vst [vmem:[#allocation25_spill] sm:$0xff] %v9651_v8  ;;  %7675 = vst [vmem:[#allocation7] sm:$0xff] %v7643_v36  ;;  %v1215_v30 = vadd.f32 %v1214_v2, %v1104_v56  ;;  %v1106_v29 = vadd.f32 %v1105_v52, %v931_v34  ;;  %2973 = vmatprep.subr.mxu1 %v13521_v27  ;;  %v13522_v44 = vand.u32 4294901760, %v9199_v21  ;;  %v178_v36 = vld [vmem:[#allocation2 + $0x3b8] sm:$0xff] }
 0x1b6   :  { %2820 = vmatpush1.msra.mxu0 %v13519_v49  ;;  %13520 = vst [vmem:[#allocation27_spill] sm:$0xff] %v9660_v51  ;;  %v7644_v20 = vsel %vm7580_vm3, %v7612_v46, 0.0  ;;  %v9667_v9 = vsub.f32 %v210_v24, %v9638_v17  ;;  %v9669_v0 = vand.u32 4294901760, %v193_v18  ;;  %2975 = vmatpush1.msra.mxu1 %v9249_v28  ;;  %v13525_v2 = vand.u32 4294901760, %v13524_v3  ;;  %v13527_v46 = vld [vmem:[#allocation48_spill] sm:$0xff]  ;;  %v13528_v24 = vld [vmem:[#allocation42_spill] sm:$0xff] }
 0x1b7   :  { %2824 = vmatprep.subr.mxu0 %v13522_v44  ;;  %v12839_v56 = vand.u32 4294901760, %v9636_v45  ;;  %7676 = vst [vmem:[#allocation7 + $0x8] sm:$0xff] %v7644_v20  ;;  %v7627_v21 = vmul.f32 1.4285715, %v1215_v30  ;;  %v9676_v34 = vsub.f32 %v209_v16, %v9643_v39  ;;  %v1217_v1 = vadd.f32 %v1216_v7, %v1106_v29  ;;  %2977 = vmatprep.subr.mxu1 %v13527_v46  ;;  %v177_v30 = vld [vmem:[#allocation2 + $0x3b0] sm:$0xff]  ;;  %v13531_v16 = vld [vmem:[#allocation50_spill] sm:$0xff] }
 0x1b8   :  { %13523 = vst [vmem:[#allocation17_spill] sm:$0xff] %v9667_v9  ;;  %2828 = vmatpush1.msra.mxu0 %v13525_v2  ;;  %v13529_v52 = vand.u32 4294901760, %v13528_v24  ;;  %v9684_v28 = vsub.f32 %v9586_v55, %v12838_v6  ;;  %v12840_v49 = vand.u32 4294901760, %v9651_v8  ;;  %v9688_v27 = vsub.f32 %v194_v25, %v9653_v62  ;;  %2979 = vmatpush1.msra.mxu1 %v13531_v16  ;;  %v162_v3 = vld [vmem:[#allocation2 + $0x338] sm:$0xff]  ;;  %v13532_v2 = vld [vmem:[#allocation43_spill] sm:$0xff] }
 0x1b9   :  { %13526 = vst [vmem:[#allocation26_spill] sm:$0xff] %v9676_v34  ;;  %vm7596_vm5 = vcmp.ge.f32.partialorder %v7564_v53, 0.3  ;;  %v12841_v29 = vand.u32 4294901760, %v9660_v51  ;;  %v7659_v44 = vsel %vm7595_vm4, %v7627_v21, 0.0  ;;  %v9694_v20 = vand.u32 4294901760, %v178_v36  ;;  %3151 = vmatprep.subr.mxu1 %v3150_v50  ;;  %2901 = vmatprep.mubr.f32.mxu0 %v13214_v57 }
 0x1ba   :  { %2832 = vmatprep.subr.mxu0 %v13529_v52  ;;  %13530 = vst [vmem:[#allocation36_spill] sm:$0xff] %v9688_v27  ;;  %v7628_v7 = vmul.f32 1.4285715, %v1217_v1  ;;  %v13533_v46 = vand.u32 4294901760, %v13532_v2  ;;  %v13534_v24 = vmov 1.0   ;;  %v3180_v52 = vand.u32 4294901760, %v9610_v15 }
 0x1bb   :  { %7743 = vmatmul.mubr.msk.f32.vlgmr.msra.gmra.mxu1 %vm8220_vm0, %v13534_v24  ;;  %v9705_v16 = vsub.f32 %v9613_v10, %v12837_v63  ;;  %v12842_v12 = vand.u32 4294901760, %v9667_v9  ;;  %7691 = vst [vmem:[#allocation7 + $0x80] sm:$0xff] %v7659_v44  ;;  %v9709_v21 = vsub.f32 %v193_v18, %v9669_v0  ;;  %v161_v1 = vld [vmem:[#allocation2 + $0x330] sm:$0xff]  ;;  %v13537_v2 = vld [vmem:[#allocation44_spill] sm:$0xff]  ;;  %v9718_v15 = vsub.f32 %v9636_v45, %v12839_v56  ;;  %v146_v18 = vld [vmem:[#allocation2 + $0x2b8] sm:$0xff] }
 0x1bc   :  { %2836 = vmatpush1.msra.mxu0 %v13533_v46  ;;  %v13538_v46 = vand.u32 4294901760, %v13537_v2  ;;  %v7660_v6 = vsel %vm7596_vm5, %v7628_v7, 0.0  ;;  %v9722_v44 = vand.u32 4294901760, %v177_v30  ;;  %3157 = vmatpush1.msra.mxu1 %v3156_v14  ;;  %v13540_v50 = vand.u32 4294901760, %v13539_v41  ;;  %v145_v7 = vld [vmem:[#allocation2 + $0x2b0] sm:$0xff]  ;;  %v13557_v10 = vld [vmem:[#allocation52_spill] sm:$0xff] }
 0x1bd   :  { %13536 = vst [vmem:[#allocation16_spill] sm:$0xff] %v9709_v21  ;;  %v3186_v2 = vand.u32 4294901760, %v9627_v26  ;;  %7692 = vst [vmem:[#allocation7 + $0x88] sm:$0xff] %v7660_v6  ;;  %v9735_v53 = vand.u32 4294901760, %v162_v3  ;;  %v13541_v63 = vand.u32 4294901760, %v9554_v13  ;;  %v13543_v14 = vand.u32 4294901760, %v13542_v61  ;;  %3019 = vmatprep.mubr.f32.mxu1 %v13214_v57 }
 0x1be   :  { %2840 = vmatprep.subr.mxu0 %v13538_v46  ;;  %v9732_v46 = vsub.f32 %v9651_v8, %v12840_v49  ;;  %v3192_v41 = vand.u32 4294901760, %v9684_v28  ;;  %v9745_v26 = vsub.f32 %v9660_v51, %v12841_v29  ;;  %v9750_v6 = vand.u32 4294901760, %v161_v1  ;;  %v130_v49 = vld [vmem:[#allocation2 + $0x238] sm:$0xff]  ;;  %v13546_v29 = vld [vmem:[#allocation49_spill] sm:$0xff] }
 0x1bf   :  { %2844 = vmatpush1.msra.mxu0 %v13540_v50  ;;  %3163 = vmatprep.subr.mxu1 %v13541_v63  ;;  %v9748_v50 = vsub.f32 %v178_v36, %v9694_v20  ;;  %v13545_v13 = vand.u32 4294901760, %v9565_v40  ;;  %v3198_v63 = vand.u32 4294901760, %v9705_v16  ;;  %v9759_v28 = vsub.f32 %v9667_v9, %v12842_v12  ;;  %v129_v36 = vld [vmem:[#allocation2 + $0x230] sm:$0xff]  ;;  %v114_v9 = vld [vmem:[#allocation2 + $0x1b8] sm:$0xff] }
 0x1c0   :  { %2848 = vmatprep.subr.mxu0 %v13543_v14  ;;  %v9762_v14 = vand.u32 4294901760, %v146_v18  ;;  %v13547_v56 = vand.u32 4294901760, %v13546_v29  ;;  %7744 = vmatmul.mubr.msk.f32.gmra.mxu1 %vm8236_vm1, %v13534_v24  ;;  %v3204_v40 = vand.u32 4294901760, %v9718_v15  ;;  %v13549_v16 = vand.u32 4294901760, %v9676_v34 }
 0x1c1   :  { %13544 = vst [vmem:[#allocation39_spill] sm:$0xff] %v9748_v50  ;;  %3169 = vmatpush1.msra.mxu1 %v13545_v13  ;;  %v9776_v12 = vsub.f32 %v177_v30, %v9722_v44  ;;  %v9778_v61 = vand.u32 4294901760, %v145_v7  ;;  %v13551_v29 = vand.u32 4294901760, %v9575_v37  ;;  %v3210_v8 = vand.u32 4294901760, %v9732_v46  ;;  %3370 = vmatprep.mubr.f32.mxu1 %v13214_v57 }
 0x1c2   :  { %2852 = vmatpush1.msra.mxu0 %v13547_v56  ;;  %v9773_v13 = vsub.f32 %v9676_v34, %v13549_v16  ;;  %v13552_v56 = vld [vmem:[#allocation51_spill] sm:$0xff]  ;;  %v13554_v15 = vand.u32 4294901760, %v9688_v27  ;;  %v9791_v16 = vsub.f32 %v162_v3, %v9735_v53  ;;  %v9793_v30 = vand.u32 4294901760, %v130_v49  ;;  %v113_v34 = vld [vmem:[#allocation2 + $0x1b0] sm:$0xff] }
 0x1c3   :  { %13550 = vst [vmem:[#allocation41_spill] sm:$0xff] %v9776_v12  ;;  %3175 = vmatprep.subr.mxu1 %v13551_v29  ;;  %v13553_v51 = vand.u32 4294901760, %v13552_v56  ;;  %v13558_v37 = vand.u32 4294901760, %v13557_v10  ;;  %v3216_v29 = vand.u32 4294901760, %v9745_v26  ;;  %v9800_v46 = vsub.f32 %v161_v1, %v9750_v6  ;;  %v13561_v3 = vld [vmem:[#allocation53_spill] sm:$0xff] }
 0x1c4   :  { %v9788_v45 = vsub.f32 %v9688_v27, %v13554_v15  ;;  %13555 = vst [vmem:[#allocation18_spill] sm:$0xff] %v9791_v16  ;;  %13556 = vst [vmem:[#allocation37_spill] sm:$0xff] %v9793_v30  ;;  %3181 = vmatpush1.msra.mxu1 %v3180_v52  ;;  %v9802_v56 = vand.u32 4294901760, %v129_v36  ;;  %v98_v15 = vld [vmem:[#allocation2 + $0x138] sm:$0xff]  ;;  %v13562_v27 = vand.u32 4294901760, %v13561_v3  ;;  %v3222_v55 = vand.u32 4294901760, %v9759_v28  ;;  %v10024_v48 = vpop.f32.mrf.mxu1 }
 0x1c5   :  { %2856 = vmatprep.subr.mxu0 %v13553_v51  ;;  %13559 = vst [vmem:[#allocation38_spill] sm:$0xff] %v9800_v46  ;;  %3187 = vmatprep.subr.mxu1 %v3186_v2  ;;  %v13563_v52 = vand.u32 4294901760, %v9709_v21  ;;  %v9813_v26 = vsub.f32 %v146_v18, %v9762_v14  ;;  %v97_v1 = vld [vmem:[#allocation2 + $0x130] sm:$0xff]  ;;  %v13564_v51 = vld [vmem:[#allocation54_spill] sm:$0xff]  ;;  %v3228_v2 = vand.u32 4294901760, %v9773_v13  ;;  %v9822_v28 = vsub.f32 %v145_v7, %v9778_v61  ;;  %v13568_v7 = vld [vmem:[#allocation11_spill] sm:$0xff] }
 0x1c6   :  { %2860 = vmatpush1.msra.mxu0 %v13558_v37  ;;  %13560 = vst [vmem:[#allocation45_spill] sm:$0xff] %v9802_v56  ;;  %v9815_v37 = vand.u32 4294901760, %v114_v9  ;;  %3193 = vmatpush1.msra.mxu1 %v3192_v41  ;;  %v13565_v59 = vand.u32 4294901760, %v13564_v51  ;;  %v9824_v3 = vand.u32 4294901760, %v113_v34  ;;  %v3234_v18 = vand.u32 4294901760, %v9788_v45  ;;  %v81_v13 = vld [vmem:[#allocation2 + $0xb0] sm:$0xff] }
 0x1c7   :  { %2864 = vmatprep.subr.mxu0 %v13562_v27  ;;  %v9810_v10 = vsub.f32 %v9709_v21, %v13563_v52  ;;  %13566 = vst [vmem:[#allocation40_spill] sm:$0xff] %v9822_v28  ;;  %v82_v52 = vld [vmem:[#allocation2 + $0xb8] sm:$0xff]  ;;  %3199 = vmatprep.subr.mxu1 %v3198_v63  ;;  %v9830_v51 = vsub.f32 %v130_v49, %v9793_v30  ;;  %v13569_v27 = vand.u32 4294901760, %v9748_v50  ;;  %v9845_v49 = vand.u32 4294901760, %v97_v1 }
 0x1c8   :  { %2868 = vmatpush1.msra.mxu0 %v13565_v59  ;;  %v9832_v59 = vand.u32 4294901760, %v98_v15  ;;  %v9843_v41 = vsub.f32 %v129_v36, %v9802_v56  ;;  %v66_v21 = vld [vmem:[#allocation2 + $0x38] sm:$0xff]  ;;  %3205 = vmatpush1.msra.mxu1 %v3204_v40  ;;  %v9851_v43 = vsub.f32 %v114_v9, %v9815_v37  ;;  %v9853_v54 = vand.u32 4294901760, %v82_v52  ;;  %v13614_v25 = vld [vmem:[#allocation39_spill] sm:$0xff] }
 0x1c9   :  { %13567 = vst [vmem:[#allocation48_spill] sm:$0xff] %v9830_v51  ;;  %7741 = vmatmul.mubr.msk.f32.vlgmr.msra.gmra.mxu0 %vm8220_vm0, %v13534_v24  ;;  %3028 = vmatprep.subr.mxu0 %v13568_v7  ;;  %v3245_v63 = vsub.f32 %v9748_v50, %v13569_v27  ;;  %v3240_v35 = vand.u32 4294901760, %v9810_v10  ;;  %v65_v27 = vld [vmem:[#allocation2 + $0x30] sm:$0xff]  ;;  %v13573_v36 = vand.u32 4294901760, %v9776_v12  ;;  %v9861_v50 = vsub.f32 %v113_v34, %v9824_v3 }
 0x1ca   :  { %13570 = vst [vmem:[#allocation42_spill] sm:$0xff] %v9843_v41  ;;  %3030 = vmatpush1.msra.mxu0 %v9458_v32  ;;  %13571 = vst [vmem:[#allocation50_spill] sm:$0xff] %v9851_v43  ;;  %3211 = vmatprep.subr.mxu1 %v3210_v8  ;;  %v9863_v10 = vand.u32 4294901760, %v81_v13  ;;  %v13575_v9 = vand.u32 4294901760, %v9791_v16  ;;  %v9871_v19 = vsub.f32 %v98_v15, %v9832_v59  ;;  %v13578_v34 = vand.u32 4294901760, %v9800_v46 }
 0x1cb   :  { %13572 = vst [vmem:[#allocation43_spill] sm:$0xff] %v9853_v54  ;;  %3032 = vmatprep.subr.mxu0 %v9464_v33  ;;  %v3251_v45 = vsub.f32 %v9776_v12, %v13573_v36  ;;  %13574 = vst [vmem:[#allocation44_spill] sm:$0xff] %v9861_v50  ;;  %3217 = vmatpush1.msra.mxu1 %v3216_v29  ;;  %v9873_v36 = vand.u32 4294901760, %v66_v21  ;;  %v9881_v12 = vsub.f32 %v97_v1, %v9845_v49 }
 0x1cc   :  { %2908 = vmatprep.mubr.f32.mxu0 %v13214_v57  ;;  %v3257_v8 = vsub.f32 %v9791_v16, %v13575_v9  ;;  %13576 = vst [vmem:[#allocation46_spill] sm:$0xff] %v9871_v19  ;;  %3034 = vmatpush1.msra.mxu0 %v9468_v60  ;;  %v3263_v29 = vsub.f32 %v9800_v46, %v13578_v34  ;;  %v9883_v9 = vand.u32 4294901760, %v65_v27  ;;  %v3246_v15 = vand.u32 4294901760, %v3245_v63 }
 0x1cd   :  { %13577 = vst [vmem:[#allocation47_spill] sm:$0xff] %v9873_v36  ;;  %3223 = vmatprep.subr.mxu1 %v3222_v55  ;;  %13579 = vst [vmem:[#allocation49_spill] sm:$0xff] %v9881_v12  ;;  %7742 = vmatmul.mubr.msk.f32.gmra.mxu0 %vm8236_vm1, %v13534_v24  ;;  %v13581_v55 = vand.u32 4294901760, %v9813_v26  ;;  %v9894_v40 = vsub.f32 %v82_v52, %v9853_v54  ;;  %v3252_v1 = vand.u32 4294901760, %v3251_v45  ;;  %v13583_v46 = vand.u32 4294901760, %v9822_v28 }
 0x1ce   :  { %13580 = vst [vmem:[#allocation51_spill] sm:$0xff] %v9883_v9  ;;  %3036 = vmatprep.subr.mxu0 %v9475_v31  ;;  %3229 = vmatpush1.msra.mxu1 %v3228_v2  ;;  %v9902_v63 = vsub.f32 %v81_v13, %v9863_v10  ;;  %v13585_v52 = vand.u32 4294901760, %v9830_v51  ;;  %v9910_v45 = vsub.f32 %v66_v21, %v9873_v36  ;;  %v13587_v13 = vand.u32 4294901760, %v9843_v41 }
 0x1cf   :  { %v3269_v47 = vsub.f32 %v9813_v26, %v13581_v55  ;;  %13582 = vst [vmem:[#allocation52_spill] sm:$0xff] %v9894_v40  ;;  %3038 = vmatpush1.msra.mxu0 %v9503_v42  ;;  %v3275_v16 = vsub.f32 %v9822_v28, %v13583_v46  ;;  %3235 = vmatprep.subr.mxu1 %v3234_v18  ;;  %v3258_v55 = vand.u32 4294901760, %v3257_v8  ;;  %v3264_v46 = vand.u32 4294901760, %v3263_v29 }
 0x1d0   :  { %13584 = vst [vmem:[#allocation53_spill] sm:$0xff] %v9902_v63  ;;  %3040 = vmatprep.subr.mxu0 %v9514_v5  ;;  %v3281_v2 = vsub.f32 %v9830_v51, %v13585_v52  ;;  %13586 = vst [vmem:[#allocation54_spill] sm:$0xff] %v9910_v45  ;;  %3241 = vmatpush1.msra.mxu1 %v3240_v35  ;;  %v3287_v18 = vsub.f32 %v9843_v41, %v13587_v13  ;;  %v13589_v21 = vand.u32 4294901760, %v9851_v43 }
 0x1d1   :  { %3042 = vmatpush1.msra.mxu0 %v9546_v58  ;;  %v9918_v8 = vsub.f32 %v65_v27, %v9883_v9  ;;  %3247 = vmatprep.subr.mxu1 %v3246_v15  ;;  %v3270_v52 = vand.u32 4294901760, %v3269_v47  ;;  %v3276_v29 = vand.u32 4294901760, %v3275_v16  ;;  %v13590_v13 = vand.u32 4294901760, %v9861_v50 }
 0x1d2   :  { %3044 = vmatprep.subr.mxu0 %v9578_v22  ;;  %v3293_v35 = vsub.f32 %v9851_v43, %v13589_v21  ;;  %3253 = vmatpush1.msra.mxu1 %v3252_v1  ;;  %v3282_v47 = vand.u32 4294901760, %v3281_v2  ;;  %v13591_v15 = vand.u32 4294901760, %v9871_v19  ;;  %v3288_v16 = vand.u32 4294901760, %v3287_v18 }
 0x1d3   :  { %13588 = vst [vmem:[#allocation11_spill] sm:$0xff] %v9918_v8  ;;  %3046 = vmatpush1.msra.mxu0 %v9600_v23  ;;  %v3299_v4 = vsub.f32 %v9861_v50, %v13590_v13  ;;  %3259 = vmatprep.subr.mxu1 %v3258_v55  ;;  %v13592_v1 = vand.u32 4294901760, %v9881_v12  ;;  %v12883_v27 = vand.u32 4294901760, %v9918_v8  ;;  %v13593_v2 = vand.u32 4294901760, %v9894_v40 }
 0x1d4   :  { %3048 = vmatprep.subr.mxu0 %v9619_v11  ;;  %v3305_v21 = vsub.f32 %v9871_v19, %v13591_v15  ;;  %3265 = vmatpush1.msra.mxu1 %v3264_v46  ;;  %v3294_v55 = vand.u32 4294901760, %v3293_v35  ;;  %v13594_v18 = vand.u32 4294901760, %v9902_v63 }
 0x1d5   :  { %3050 = vmatpush1.msra.mxu0 %v9629_v38  ;;  %v3311_v13 = vsub.f32 %v9881_v12, %v13592_v1  ;;  %3271 = vmatprep.subr.mxu1 %v3270_v52  ;;  %v3317_v15 = vsub.f32 %v9894_v40, %v13593_v2  ;;  %v3300_v46 = vand.u32 4294901760, %v3299_v4  ;;  %v13595_v52 = vand.u32 4294901760, %v9910_v45 }
 0x1d6   :  { %3052 = vmatprep.subr.mxu0 %v9638_v17  ;;  %3277 = vmatpush1.msra.mxu1 %v3276_v29  ;;  %v3323_v34 = vsub.f32 %v9902_v63, %v13594_v18  ;;  %v3306_v1 = vand.u32 4294901760, %v3305_v21  ;;  %v3335_v4 = vsub.f32 %v9918_v8, %v12883_v27  ;;  %v13601_v18 = vld [vmem:[#allocation35_spill] sm:$0xff]  ;;  %v13611_v27 = vld [vmem:[#allocation26_spill] sm:$0xff] }
 0x1d7   :  { %3054 = vmatpush1.msra.mxu0 %v9643_v39  ;;  %3283 = vmatprep.subr.mxu1 %v3282_v47  ;;  %v3329_v35 = vsub.f32 %v9910_v45, %v13595_v52  ;;  %v3312_v2 = vand.u32 4294901760, %v3311_v13  ;;  %v3318_v29 = vand.u32 4294901760, %v3317_v15  ;;  %v13597_v13 = vld [vmem:[#allocation12_spill] sm:$0xff]  ;;  %v13599_v15 = vld [vmem:[#allocation14_spill] sm:$0xff]  ;;  %v13603_v52 = vld [vmem:[#allocation19_spill] sm:$0xff] }
 0x1d8   :  { %3056 = vmatprep.subr.mxu0 %v9653_v62  ;;  %3289 = vmatpush1.msra.mxu1 %v3288_v16  ;;  %v3324_v47 = vand.u32 4294901760, %v3323_v34  ;;  %v3336_v16 = vand.u32 4294901760, %v3335_v4  ;;  %v13596_v34 = vld [vmem:[#allocation33_spill] sm:$0xff]  ;;  %v13606_v4 = vld [vmem:[#allocation23_spill] sm:$0xff] }
 0x1d9   :  { %3058 = vmatpush1.msra.mxu0 %v9669_v0  ;;  %3295 = vmatprep.subr.mxu1 %v3294_v55  ;;  %v3330_v21 = vand.u32 4294901760, %v3329_v35  ;;  %v13598_v55 = vld [vmem:[#allocation13_spill] sm:$0xff]  ;;  %v13604_v35 = vld [vmem:[#allocation20_spill] sm:$0xff] }
 0x1da   :  { %3060 = vmatprep.subr.mxu0 %v9694_v20  ;;  %3301 = vmatpush1.msra.mxu1 %v3300_v46  ;;  %v13600_v46 = vld [vmem:[#allocation15_spill] sm:$0xff] }
 0x1db   :  { %3062 = vmatpush1.msra.mxu0 %v9722_v44  ;;  %3307 = vmatprep.subr.mxu1 %v3306_v1  ;;  %v13602_v1 = vld [vmem:[#allocation21_spill] sm:$0xff] }
 0x1dc   :  { %3064 = vmatprep.subr.mxu0 %v9735_v53  ;;  %3313 = vmatpush1.msra.mxu1 %v3312_v2  ;;  %v13605_v2 = vld [vmem:[#allocation22_spill] sm:$0xff] }
 0x1dd   :  { %3066 = vmatpush1.msra.mxu0 %v9750_v6  ;;  %3319 = vmatprep.subr.mxu1 %v3318_v29  ;;  %v13607_v29 = vld [vmem:[#allocation24_spill] sm:$0xff] }
 0x1de   :  { %3068 = vmatprep.subr.mxu0 %v9762_v14  ;;  %3325 = vmatpush1.msra.mxu1 %v3324_v47  ;;  %v13608_v47 = vld [vmem:[#allocation25_spill] sm:$0xff] }
 0x1df   :  { %3070 = vmatpush1.msra.mxu0 %v9778_v61  ;;  %3331 = vmatprep.subr.mxu1 %v3330_v21  ;;  %v13609_v21 = vld [vmem:[#allocation27_spill] sm:$0xff] }
 0x1e0   :  { %3072 = vmatprep.subr.mxu0 %v9793_v30  ;;  %3337 = vmatpush1.msra.mxu1 %v3336_v16  ;;  %v13610_v16 = vld [vmem:[#allocation17_spill] sm:$0xff] }
 0x1e1   :  { %3074 = vmatpush1.msra.mxu0 %v9802_v56  ;;  %7745 = vmatmul.mubr.msk.f32.vlgmr.msra.gmra.mxu1 %vm8220_vm0, %v13534_v24 }
 0x1e2   :  { %3531 = vmatprep.subr.mxu1 %v13568_v7  ;;  %3076 = vmatprep.subr.mxu0 %v9815_v37 }
 0x1e3   :  { %3533 = vmatpush1.msra.mxu1 %v9458_v32  ;;  %3078 = vmatpush1.msra.mxu0 %v9824_v3 }
 0x1e4   :  { %3535 = vmatprep.subr.mxu1 %v9464_v33  ;;  %3080 = vmatprep.subr.mxu0 %v9832_v59 }
 0x1e5   :  { %3377 = vmatprep.mubr.f32.mxu1 %v13214_v57  ;;  %3537 = vmatpush1.msra.mxu1 %v9468_v60 }
 0x1e6   :  { %3082 = vmatpush1.msra.mxu0 %v9845_v49  ;;  %7746 = vmatmul.mubr.msk.f32.gmra.mxu1 %vm8236_vm1, %v13534_v24  ;;  %v13615_v24 = vld [vmem:[#allocation41_spill] sm:$0xff] }
 0x1e7   :  { %3539 = vmatprep.subr.mxu1 %v9475_v31  ;;  %3084 = vmatprep.subr.mxu0 %v9853_v54 }
 0x1e8   :  { %3541 = vmatpush1.msra.mxu1 %v9503_v42  ;;  %3086 = vmatpush1.msra.mxu0 %v9863_v10 }
 0x1e9   :  { %3543 = vmatprep.subr.mxu1 %v9514_v5  ;;  %3088 = vmatprep.subr.mxu0 %v9873_v36 }
 0x1ea   :  { %3545 = vmatpush1.msra.mxu1 %v9546_v58  ;;  %3090 = vmatpush1.msra.mxu0 %v9883_v9 }
 0x1eb   :  { %3123 = vmatprep.mubr.f32.mxu0 %v13214_v57  ;;  %3547 = vmatprep.subr.mxu1 %v9578_v22 }
 0x1ec   :  { %3129 = vmatmul.mubr.f32.vlgmr.msra.gmra.mxu0 %v13596_v34  ;;  %3387 = vmatprep.subr.mxu0 %v13597_v13  ;;  %v13613_v34 = vld [vmem:[#allocation16_spill] sm:$0xff] }
 0x1ed   :  { %3549 = vmatpush1.msra.mxu1 %v9600_v23  ;;  %3390 = vmatpush1.msra.mxu0 %v13598_v55 }
 0x1ee   :  { %3551 = vmatprep.subr.mxu1 %v9619_v11  ;;  %3393 = vmatprep.subr.mxu0 %v13599_v15 }
 0x1ef   :  { %3553 = vmatpush1.msra.mxu1 %v9629_v38  ;;  %3134 = vmatprep.mubr.f32.mxu0 %v13214_v57 }
 0x1f0   :  { %3396 = vmatpush1.msra.mxu0 %v13600_v46  ;;  %3555 = vmatprep.subr.mxu1 %v9638_v17 }
 0x1f1   :  { %3140 = vmatmul.mubr.f32.gmra.mxu0 %v13601_v18  ;;  %3399 = vmatprep.subr.mxu0 %v13602_v1  ;;  %v13612_v18 = vld [vmem:[#allocation36_spill] sm:$0xff] }
 0x1f2   :  { %3557 = vmatpush1.msra.mxu1 %v9643_v39  ;;  %3402 = vmatpush1.msra.mxu0 %v13603_v52 }
 0x1f3   :  { %3559 = vmatprep.subr.mxu1 %v9653_v62  ;;  %3405 = vmatprep.subr.mxu0 %v13604_v35 }
 0x1f4   :  { %3561 = vmatpush1.msra.mxu1 %v9669_v0  ;;  %3408 = vmatpush1.msra.mxu0 %v13605_v2 }
 0x1f5   :  { %3563 = vmatprep.subr.mxu1 %v9694_v20  ;;  %3411 = vmatprep.subr.mxu0 %v13606_v4 }
 0x1f6   :  { %3565 = vmatpush1.msra.mxu1 %v9722_v44  ;;  %3414 = vmatpush1.msra.mxu0 %v13607_v29 }
 0x1f7   :  { %3567 = vmatprep.subr.mxu1 %v9735_v53  ;;  %3417 = vmatprep.subr.mxu0 %v13608_v47 }
 0x1f8   :  { %3569 = vmatpush1.msra.mxu1 %v9750_v6  ;;  %3420 = vmatpush1.msra.mxu0 %v13609_v21 }
 0x1f9   :  { %3571 = vmatprep.subr.mxu1 %v9762_v14  ;;  %3423 = vmatprep.subr.mxu0 %v13610_v16 }
 0x1fa   :  { %3573 = vmatpush1.msra.mxu1 %v9778_v61  ;;  %3426 = vmatpush1.msra.mxu0 %v13611_v27  ;;  %v13616_v27 = vld [vmem:[#allocation18_spill] sm:$0xff] }
 0x1fb   :  { %3575 = vmatprep.subr.mxu1 %v9793_v30  ;;  %3429 = vmatprep.subr.mxu0 %v13612_v18  ;;  %v10032_v30 = vpop.f32.mrf.mxu0 }
 0x1fc   :  { %3577 = vmatpush1.msra.mxu1 %v9802_v56  ;;  %3432 = vmatpush1.msra.mxu0 %v13613_v34  ;;  %v13617_v56 = vld [vmem:[#allocation38_spill] sm:$0xff]  ;;  %v10036_v34 = vpop.f32.mrf.mxu1 }
 0x1fd   :  { %3579 = vmatprep.subr.mxu1 %v9815_v37  ;;  %3435 = vmatprep.subr.mxu0 %v13614_v25 }
 0x1fe   :  { %3581 = vmatpush1.msra.mxu1 %v9824_v3  ;;  %3438 = vmatpush1.msra.mxu0 %v13615_v24 }
 0x1ff   :  { %3583 = vmatprep.subr.mxu1 %v9832_v59  ;;  %3441 = vmatprep.subr.mxu0 %v13616_v27  ;;  %v10044_v27 = vpop.f32.mrf.mxu0 }
 0x200   :  { %3585 = vmatpush1.msra.mxu1 %v9845_v49  ;;  %3444 = vmatpush1.msra.mxu0 %v13617_v56  ;;  %v10048_v56 = vpop.f32.mrf.mxu1 }
 0x201   :  { %3587 = vmatprep.subr.mxu1 %v9853_v54  ;;  %3447 = vmatprep.subr.mxu0 %v9813_v26  ;;  %v13618_v54 = vld [vmem:[#allocation31_spill] sm:$0xff] }
 0x202   :  { %3589 = vmatpush1.msra.mxu1 %v9863_v10  ;;  %3450 = vmatpush1.msra.mxu0 %v9822_v28  ;;  %v10060_v28 = vpop.f32.mrf.mxu1 }
 0x203   :  { %3591 = vmatprep.subr.mxu1 %v9873_v36  ;;  %3453 = vmatprep.subr.mxu0 %v9830_v51  ;;  %v308_v51 = vld [vmem:[#allocation2 + $0x7c8] sm:$0xff]  ;;  %v10056_v36 = vpop.f32.mrf.mxu0 }
 0x204   :  { %3593 = vmatpush1.msra.mxu1 %v9883_v9  ;;  %3626 = vmatprep.mubr.f32.mxu1 %v13214_v57  ;;  %v307_v9 = vld [vmem:[#allocation2 + $0x7c0] sm:$0xff] }
 0x205   :  { %3456 = vmatpush1.msra.mxu0 %v9843_v41  ;;  %3630 = vmatmul.mubr.f32.vlgmr.msra.gmra.mxu1 %v13618_v54  ;;  %v10066_v54 = vand.u32 4294901760, %v308_v51  ;;  %v10074_v41 = vpop.f32.mrf.mxu0 }
 0x206   :  { %3821 = vmatprep.subr.mxu1 %v13568_v7  ;;  %3459 = vmatprep.subr.mxu0 %v9851_v43  ;;  %v292_v7 = vld [vmem:[#allocation2 + $0x748] sm:$0xff]  ;;  %v10068_v43 = vpop.f32.mrf.mxu1 }
 0x207   :  { %3823 = vmatpush1.msra.mxu1 %v9458_v32  ;;  %3462 = vmatpush1.msra.mxu0 %v9861_v50  ;;  %v13619_v32 = vld [vmem:[#allocation34_spill] sm:$0xff]  ;;  %13620 = vst [vmem:[#allocation12_spill] sm:$0xff] %v10066_v54  ;;  %v291_v50 = vld [vmem:[#allocation2 + $0x740] sm:$0xff] }
 0x208   :  { %3825 = vmatprep.subr.mxu1 %v9464_v33  ;;  %3465 = vmatprep.subr.mxu0 %v9871_v19  ;;  %v10072_v33 = vand.u32 4294901760, %v307_v9  ;;  %v276_v19 = vld [vmem:[#allocation2 + $0x6c8] sm:$0xff] }
 0x209   :  { %3635 = vmatprep.mubr.f32.mxu1 %v13214_v57  ;;  %3827 = vmatpush1.msra.mxu1 %v9468_v60  ;;  %v10078_v60 = vand.u32 4294901760, %v292_v7 }
 0x20a   :  { %3468 = vmatpush1.msra.mxu0 %v9881_v12  ;;  %3639 = vmatmul.mubr.f32.gmra.mxu1 %v13619_v32  ;;  %v10082_v32 = vand.u32 4294901760, %v291_v50  ;;  %v10089_v12 = vand.u32 4294901760, %v276_v19 }
 0x20b   :  { %3829 = vmatprep.subr.mxu1 %v9475_v31  ;;  %3471 = vmatprep.subr.mxu0 %v9894_v40  ;;  %v1709_v31 = vpop.f32.mrf.mxu0  ;;  %v10087_v40 = vsub.f32 %v308_v51, %v10066_v54  ;;  %v10102_v51 = vsub.f32 %v292_v7, %v10078_v60  ;;  %v13626_v54 = vand.u32 4294901760, %v13598_v55  ;;  %v1566_v55 = vadd.f32 %v10024_v48, %v10032_v30 }
 0x20c   :  { %3831 = vmatpush1.msra.mxu1 %v9503_v42  ;;  %3474 = vmatpush1.msra.mxu0 %v9902_v63  ;;  %v10091_v42 = vpop.f32.mrf.mxu1  ;;  %v13623_v63 = vld [vmem:[#allocation29_spill] sm:$0xff]  ;;  %v10115_v7 = vsub.f32 %v276_v19, %v10089_v12  ;;  %v259_v19 = vld [vmem:[#allocation2 + $0x640] sm:$0xff] }
 0x20d   :  { %3833 = vmatprep.subr.mxu1 %v9514_v5  ;;  %3477 = vmatprep.subr.mxu0 %v9910_v45  ;;  %13621 = vst [vmem:[#allocation13_spill] sm:$0xff] %v10087_v40  ;;  %v10096_v5 = vsub.f32 %v307_v9, %v10072_v33  ;;  %v275_v45 = vld [vmem:[#allocation2 + $0x6c0] sm:$0xff]  ;;  %13625 = vst [vmem:[#allocation15_spill] sm:$0xff] %v10102_v51  ;;  %v1711_v9 = vpop.f32.mrf.mxu0 }
 0x20e   :  { %3835 = vmatpush1.msra.mxu1 %v9546_v58  ;;  %3480 = vmatpush1.msra.mxu0 %v9918_v8  ;;  %v13624_v58 = vand.u32 4294901760, %v13597_v13  ;;  %v10108_v8 = vsub.f32 %v291_v50, %v10082_v32  ;;  %13629 = vst [vmem:[#allocation19_spill] sm:$0xff] %v10115_v7  ;;  %v12906_v50 = vand.u32 4294901760, %v10102_v51  ;;  %v12905_v48 = vand.u32 4294901760, %v10115_v7 }
 0x20f   :  { %3513 = vmatprep.mubr.f32.mxu0 %v13214_v57  ;;  %3837 = vmatprep.subr.mxu1 %v9578_v22  ;;  %13622 = vst [vmem:[#allocation14_spill] sm:$0xff] %v10096_v5  ;;  %v260_v22 = vld [vmem:[#allocation2 + $0x648] sm:$0xff]  ;;  %v1717_v13 = vpop.f32.mrf.mxu0 }
 0x210   :  { %3516 = vmatmul.mubr.f32.vlgmr.msra.gmra.mxu0 %v13623_v63  ;;  %3648 = vmatprep.subr.mxu0 %v13624_v58  ;;  %13627 = vst [vmem:[#allocation21_spill] sm:$0xff] %v10108_v8  ;;  %v13628_v63 = vand.u32 4294901760, %v13599_v15  ;;  %v10117_v58 = vand.u32 4294901760, %v275_v45  ;;  %v13631_v15 = vld [vmem:[#allocation32_spill] sm:$0xff] }
 0x211   :  { %3839 = vmatpush1.msra.mxu1 %v9600_v23  ;;  %3652 = vmatpush1.msra.mxu0 %v13626_v54  ;;  %v10119_v23 = vpop.f32.mrf.mxu1  ;;  %v1710_v54 = vadd.f32 %v1709_v31, %v1566_v55  ;;  %v13640_v31 = vand.u32 4294901760, %v13606_v4 }
 0x212   :  { %3841 = vmatprep.subr.mxu1 %v9619_v11  ;;  %3656 = vmatprep.subr.mxu0 %v13628_v63  ;;  %v13630_v11 = vand.u32 4294901760, %v13600_v46  ;;  %v10128_v63 = vand.u32 4294901760, %v260_v22  ;;  %v13634_v46 = vand.u32 4294901760, %v10087_v40  ;;  %v10146_v30 = vsub.f32 %v275_v45, %v10117_v58  ;;  %v244_v45 = vld [vmem:[#allocation2 + $0x5c8] sm:$0xff] }
 0x213   :  { %3843 = vmatpush1.msra.mxu1 %v9629_v38  ;;  %3521 = vmatprep.mubr.f32.mxu0 %v13214_v57  ;;  %v13632_v38 = vand.u32 4294901760, %v13602_v1  ;;  %v1568_v1 = vadd.f32 %v10036_v34, %v10044_v27  ;;  %v13638_v27 = vand.u32 4294901760, %v13605_v2 }
 0x214   :  { %3660 = vmatpush1.msra.mxu0 %v13630_v11  ;;  %3845 = vmatprep.subr.mxu1 %v9638_v17  ;;  %v13633_v17 = vand.u32 4294901760, %v13603_v52  ;;  %v10142_v11 = vsub.f32 %v10087_v40, %v13634_v46  ;;  %13635 = vst [vmem:[#allocation20_spill] sm:$0xff] %v10146_v30  ;;  %v13637_v52 = vand.u32 4294901760, %v10096_v5  ;;  %v10160_v46 = vand.u32 4294901760, %v259_v19 }
 0x215   :  { %3524 = vmatmul.mubr.f32.gmra.mxu0 %v13631_v15  ;;  %3664 = vmatprep.subr.mxu0 %v13632_v38  ;;  %v10150_v38 = vpop.f32.mrf.mxu1  ;;  %v10171_v34 = vsub.f32 %v260_v22, %v10128_v63  ;;  %v13642_v22 = vand.u32 4294901760, %v13607_v29  ;;  %v12907_v4 = vand.u32 4294901760, %v10146_v30 }
 0x216   :  { %3847 = vmatpush1.msra.mxu1 %v9643_v39  ;;  %3668 = vmatpush1.msra.mxu0 %v13633_v17  ;;  %v13636_v39 = vand.u32 4294901760, %v13604_v35  ;;  %v10158_v17 = vsub.f32 %v10096_v5, %v13637_v52  ;;  %v1712_v35 = vadd.f32 %v1711_v9, %v1568_v1  ;;  %v1719_v52 = vpop.f32.mrf.mxu0  ;;  %v10192_v9 = vand.u32 4294901760, %v244_v45  ;;  %v243_v1 = vld [vmem:[#allocation2 + $0x5c0] sm:$0xff] }
 0x217   :  { %3849 = vmatprep.subr.mxu1 %v9653_v62  ;;  %v10168_v62 = vsub.f32 %v10102_v51, %v12906_v50  ;;  %13639 = vst [vmem:[#allocation22_spill] sm:$0xff] %v10171_v34  ;;  %v2111_v55 = vpop.f32.mrf.mxu1  ;;  %v10200_v29 = vsub.f32 %v259_v19, %v10160_v46  ;;  %v13646_v19 = vand.u32 4294901760, %v13610_v16  ;;  %v10224_v16 = vsub.f32 %v10146_v30, %v12907_v4  ;;  %v13652_v4 = vld [vmem:[#allocation45_spill] sm:$0xff] }
 0x218   :  { %3672 = vmatprep.subr.mxu0 %v13636_v39  ;;  %3851 = vmatpush1.msra.mxu1 %v9669_v0  ;;  %v13641_v0 = vand.u32 4294901760, %v10108_v8  ;;  %v1573_v39 = vadd.f32 %v10048_v56, %v10056_v36  ;;  %v13643_v56 = vand.u32 4294901760, %v13608_v47  ;;  %v4060_v36 = vand.u32 4294901760, %v10158_v17  ;;  %v195_v47 = vld [vmem:[#allocation2 + $0x440] sm:$0xff]  ;;  %v13685_v17 = vld [vmem:[#allocation46_spill] sm:$0xff] }
 0x219   :  { %3676 = vmatpush1.msra.mxu0 %v13638_v27  ;;  %3853 = vmatprep.subr.mxu1 %v9694_v20  ;;  %v10189_v20 = vsub.f32 %v10115_v7, %v12905_v48  ;;  %13644 = vst [vmem:[#allocation23_spill] sm:$0xff] %v10200_v29  ;;  %v1824_v27 = vadd.f32 %v10068_v43, %v1710_v54  ;;  %v228_v48 = vld [vmem:[#allocation2 + $0x548] sm:$0xff]  ;;  %v2113_v43 = vpop.f32.mrf.mxu1  ;;  %v227_v54 = vld [vmem:[#allocation2 + $0x540] sm:$0xff] }
 0x21a   :  { %3680 = vmatprep.subr.mxu0 %v13640_v31  ;;  %v10179_v2 = vsub.f32 %v10108_v8, %v13641_v0  ;;  %3855 = vmatpush1.msra.mxu1 %v9722_v44  ;;  %v4054_v44 = vand.u32 4294901760, %v10142_v11  ;;  %v1575_v31 = vadd.f32 %v10060_v28, %v10074_v41  ;;  %v1718_v0 = vadd.f32 %v1717_v13, %v1573_v39  ;;  %v7549_v13 = vld [vmem:[#allocation5 + $0x10] sm:$0xff]  ;;  %v13653_v28 = vld [vmem:[#allocation16_spill] sm:$0xff] }
 0x21b   :  { %3684 = vmatpush1.msra.mxu0 %v13642_v22  ;;  %3857 = vmatprep.subr.mxu1 %v9735_v53  ;;  %v13645_v53 = vand.u32 4294901760, %v13609_v21  ;;  %v12908_v22 = vand.u32 4294901760, %v10171_v34  ;;  %v1826_v21 = vadd.f32 %v10091_v42, %v1712_v35  ;;  %v13650_v42 = vld [vmem:[#allocation37_spill] sm:$0xff]  ;;  %v13651_v35 = vand.u32 4294901760, %v13612_v18  ;;  %v13682_v11 = vld [vmem:[#allocation44_spill] sm:$0xff] }
 0x21c   :  { %3688 = vmatprep.subr.mxu0 %v13643_v56  ;;  %3859 = vmatpush1.msra.mxu1 %v9750_v6  ;;  %v2000_v56 = vpop.f32.mrf.mxu0  ;;  %v10214_v6 = vand.u32 4294901760, %v243_v1  ;;  %v1720_v39 = vadd.f32 %v1719_v52, %v1575_v31  ;;  %v10233_v52 = vand.u32 4294901760, %v228_v48  ;;  %vm7581_vm6 = vcmp.ge.f32.partialorder %v7549_v13, 0.3  ;;  %v7566_v13 = vld [vmem:[#allocation5 + $0x98] sm:$0xff] }
 0x21d   :  { %3692 = vmatpush1.msra.mxu0 %v13645_v53  ;;  %3861 = vmatprep.subr.mxu1 %v9762_v14  ;;  %v2001_v41 = vadd.f32 %v2000_v56, %v1824_v27  ;;  %v13647_v53 = vld [vmem:[#allocation26_spill] sm:$0xff]  ;;  %v10227_v27 = vsub.f32 %v244_v45, %v10192_v9  ;;  %v211_v14 = vld [vmem:[#allocation2 + $0x4c0] sm:$0xff]  ;;  %v13654_v45 = vand.u32 4294901760, %v13653_v28  ;;  %v10243_v18 = vand.u32 4294901760, %v227_v54 }
 0x21e   :  { %3696 = vmatprep.subr.mxu0 %v13646_v19  ;;  %3863 = vmatpush1.msra.mxu1 %v9778_v61  ;;  %v13648_v50 = vand.u32 4294901760, %v13647_v53  ;;  %v2002_v56 = vpop.f32.mrf.mxu0  ;;  %v212_v19 = vld [vmem:[#allocation2 + $0x4c8] sm:$0xff]  ;;  %v12910_v61 = vand.u32 4294901760, %v10200_v29  ;;  %v7550_v53 = vld [vmem:[#allocation5 + $0x18] sm:$0xff]  ;;  %v10250_v28 = vsub.f32 %v243_v1, %v10214_v6  ;;  %vm7598_vm9 = vcmp.ge.f32.partialorder %v7566_v13, 0.3 }
 0x21f   :  { %13649 = vst [vmem:[#allocation24_spill] sm:$0xff] %v10227_v27  ;;  %3865 = vmatprep.subr.mxu1 %v13650_v42  ;;  %v2003_v31 = vadd.f32 %v2002_v56, %v1826_v21  ;;  %v10241_v42 = vsub.f32 %v10171_v34, %v12908_v22  ;;  %v13655_v21 = vand.u32 4294901760, %v13614_v25  ;;  %vm7582_vm7 = vcmp.ge.f32.partialorder %v7550_v53, 0.3  ;;  %v13658_v1 = vld [vmem:[#allocation18_spill] sm:$0xff]  ;;  %v13670_v53 = vld [vmem:[#allocation47_spill] sm:$0xff]  ;;  %3916 = vmatprep.mubr.f32.mxu1 %v13214_v57 }
 0x220   :  { %3700 = vmatpush1.msra.mxu0 %v13648_v50  ;;  %v2112_v50 = vadd.f32 %v2111_v55, %v2001_v41  ;;  %3867 = vmatpush1.msra.mxu1 %v13652_v4  ;;  %v1833_v55 = vadd.f32 %v10119_v23, %v1718_v0  ;;  %v196_v41 = vld [vmem:[#allocation2 + $0x448] sm:$0xff]  ;;  %v2118_v4 = vpop.f32.mrf.mxu1  ;;  %13656 = vst [vmem:[#allocation25_spill] sm:$0xff] %v10250_v28  ;;  %v2007_v22 = vpop.f32.mrf.mxu0  ;;  %v13657_v23 = vand.u32 4294901760, %v13615_v24  ;;  %v7565_v0 = vld [vmem:[#allocation5 + $0x90] sm:$0xff]  ;;  %v10257_v25 = vand.u32 4294901760, %v211_v14 }
 0x221   :  { %3704 = vmatprep.subr.mxu0 %v13651_v35  ;;  %3869 = vmatprep.subr.mxu1 %v9815_v37  ;;  %v2114_v35 = vadd.f32 %v2113_v43, %v2003_v31  ;;  %v13659_v43 = vand.u32 4294901760, %v13658_v1  ;;  %v10267_v24 = vand.u32 4294901760, %v196_v41  ;;  %vm7597_vm8 = vcmp.ge.f32.partialorder %v7565_v0, 0.3 }
 0x222   :  { %3708 = vmatpush1.msra.mxu0 %v13654_v45  ;;  %v7613_v56 = vmul.f32 1.4285715, %v2112_v50  ;;  %v10252_v45 = vand.u32 4294901760, %v212_v19  ;;  %3871 = vmatpush1.msra.mxu1 %v9824_v3  ;;  %v2008_v37 = vadd.f32 %v2007_v22, %v1833_v55  ;;  %v1835_v50 = vadd.f32 %v10150_v38, %v1720_v39  ;;  %v13661_v22 = vld [vmem:[#allocation38_spill] sm:$0xff]  ;;  %v2120_v1 = vpop.f32.mrf.mxu1 }
 0x223   :  { %3712 = vmatprep.subr.mxu0 %v13655_v21  ;;  %3873 = vmatprep.subr.mxu1 %v9832_v59  ;;  %v10265_v21 = vsub.f32 %v228_v48, %v10233_v52  ;;  %v7614_v3 = vmul.f32 1.4285715, %v2114_v35  ;;  %v13662_v55 = vand.u32 4294901760, %v13661_v22  ;;  %v10273_v59 = vsub.f32 %v227_v54, %v10243_v18  ;;  %v13664_v48 = vld [vmem:[#allocation43_spill] sm:$0xff]  ;;  %v13667_v54 = vld [vmem:[#allocation40_spill] sm:$0xff] }
 0x224   :  { %3716 = vmatpush1.msra.mxu0 %v13657_v23  ;;  %v7645_v31 = vsel %vm7581_vm6, %v7613_v56, 0.0  ;;  %v2009_v23 = vpop.f32.mrf.mxu0  ;;  %3875 = vmatpush1.msra.mxu1 %v9845_v49  ;;  %v2119_v38 = vadd.f32 %v2118_v4, %v2008_v37  ;;  %v10275_v56 = vand.u32 4294901760, %v195_v47  ;;  %v13665_v35 = vand.u32 4294901760, %v9813_v26  ;;  %v180_v22 = vld [vmem:[#allocation2 + $0x3c8] sm:$0xff] }
 0x225   :  { %3720 = vmatprep.subr.mxu0 %v13659_v43  ;;  %13660 = vst [vmem:[#allocation27_spill] sm:$0xff] %v10265_v21  ;;  %7677 = vst [vmem:[#allocation7 + $0x10] sm:$0xff] %v7645_v31  ;;  %v2010_v39 = vadd.f32 %v2009_v23, %v1835_v50  ;;  %3877 = vmatprep.subr.mxu1 %v13664_v48  ;;  %v12909_v49 = vand.u32 4294901760, %v10227_v27  ;;  %v7646_v43 = vsel %vm7582_vm7, %v7614_v3, 0.0  ;;  %v13668_v4 = vand.u32 4294901760, %v13667_v54  ;;  %v13671_v3 = vld [vmem:[#allocation48_spill] sm:$0xff] }
 0x226   :  { %3724 = vmatpush1.msra.mxu0 %v13662_v55  ;;  %13663 = vst [vmem:[#allocation17_spill] sm:$0xff] %v10273_v59  ;;  %v10283_v31 = vsub.f32 %v212_v19, %v10252_v45  ;;  %3879 = vmatpush1.msra.mxu1 %v9863_v10  ;;  %v12911_v37 = vand.u32 4294901760, %v10250_v28  ;;  %7678 = vst [vmem:[#allocation7 + $0x18] sm:$0xff] %v7646_v43  ;;  %v7629_v50 = vmul.f32 1.4285715, %v2119_v38  ;;  %v13672_v19 = vand.u32 4294901760, %v13671_v3 }
 0x227   :  { %3728 = vmatprep.subr.mxu0 %v13665_v35  ;;  %v10290_v26 = vsub.f32 %v211_v14, %v10257_v25  ;;  %v2121_v23 = vadd.f32 %v2120_v1, %v2010_v39  ;;  %3881 = vmatprep.subr.mxu1 %v13670_v53  ;;  %v10298_v10 = vsub.f32 %v10200_v29, %v12910_v61  ;;  %v12912_v55 = vand.u32 4294901760, %v10265_v21  ;;  %v179_v14 = vld [vmem:[#allocation2 + $0x3c0] sm:$0xff]  ;;  %v164_v54 = vld [vmem:[#allocation2 + $0x348] sm:$0xff] }
 0x228   :  { %13666 = vst [vmem:[#allocation36_spill] sm:$0xff] %v10283_v31  ;;  %3732 = vmatpush1.msra.mxu0 %v13668_v4  ;;  %v10302_v48 = vsub.f32 %v196_v41, %v10267_v24  ;;  %v13674_v38 = vld [vmem:[#allocation51_spill] sm:$0xff]  ;;  %v12913_v39 = vand.u32 4294901760, %v10273_v59  ;;  %v7661_v35 = vsel %vm7597_vm8, %v7629_v50, 0.0  ;;  %v10309_v43 = vsub.f32 %v195_v47, %v10275_v56  ;;  %v13676_v4 = vld [vmem:[#allocation42_spill] sm:$0xff]  ;;  %3805 = vmatprep.mubr.f32.mxu0 %v13214_v57 }
 0x229   :  { %13669 = vst [vmem:[#allocation39_spill] sm:$0xff] %v10290_v26  ;;  %3736 = vmatprep.subr.mxu0 %v13672_v19  ;;  %3883 = vmatpush1.msra.mxu1 %v13674_v38  ;;  %v7630_v1 = vmul.f32 1.4285715, %v2121_v23  ;;  %v13677_v53 = vand.u32 4294901760, %v13676_v4  ;;  %v13678_v41 = vmov 1.0   ;;  %v4084_v19 = vand.u32 4294901760, %v10224_v16 }
 0x22a   :  { %13673 = vst [vmem:[#allocation41_spill] sm:$0xff] %v10302_v48  ;;  %13675 = vst [vmem:[#allocation26_spill] sm:$0xff] %v10309_v43  ;;  %7749 = vmatmul.mubr.msk.f32.vlgmr.msra.gmra.mxu1 %vm8220_vm0, %v13678_v41  ;;  %v10320_v38 = vsub.f32 %v10227_v27, %v12909_v49  ;;  %v12914_v0 = vand.u32 4294901760, %v10283_v31  ;;  %v10323_v47 = vand.u32 4294901760, %v180_v22  ;;  %v163_v50 = vld [vmem:[#allocation2 + $0x340] sm:$0xff]  ;;  %4055 = vmatprep.subr.mxu1 %v4054_v44  ;;  %v13680_v23 = vld [vmem:[#allocation50_spill] sm:$0xff] }
 0x22b   :  { %3740 = vmatpush1.msra.mxu0 %v13677_v53  ;;  %7693 = vst [vmem:[#allocation7 + $0x90] sm:$0xff] %v7661_v35  ;;  %v13681_v4 = vand.u32 4294901760, %v13680_v23  ;;  %v10332_v16 = vsub.f32 %v10250_v28, %v12911_v37  ;;  %v7662_v49 = vsel %vm7598_vm9, %v7630_v1, 0.0  ;;  %v10336_v61 = vand.u32 4294901760, %v179_v14  ;;  %v148_v35 = vld [vmem:[#allocation2 + $0x2c8] sm:$0xff]  ;;  %4061 = vmatpush1.msra.mxu1 %v4060_v36  ;;  %v147_v1 = vld [vmem:[#allocation2 + $0x2c0] sm:$0xff] }
 0x22c   :  { %v13683_v44 = vand.u32 4294901760, %v13682_v11  ;;  %v4090_v23 = vand.u32 4294901760, %v10241_v42  ;;  %7694 = vst [vmem:[#allocation7 + $0x98] sm:$0xff] %v7662_v49  ;;  %v10349_v13 = vand.u32 4294901760, %v164_v54  ;;  %v13684_v53 = vand.u32 4294901760, %v10168_v62  ;;  %v132_v49 = vld [vmem:[#allocation2 + $0x248] sm:$0xff]  ;;  %3923 = vmatprep.mubr.f32.mxu1 %v13214_v57 }
 0x22d   :  { %3744 = vmatprep.subr.mxu0 %v13681_v4  ;;  %v10346_v4 = vsub.f32 %v10265_v21, %v12912_v55  ;;  %v13686_v36 = vand.u32 4294901760, %v13685_v17  ;;  %v4096_v11 = vand.u32 4294901760, %v10298_v10  ;;  %v10359_v42 = vsub.f32 %v10273_v59, %v12913_v39  ;;  %v131_v39 = vld [vmem:[#allocation2 + $0x240] sm:$0xff]  ;;  %v13700_v27 = vld [vmem:[#allocation53_spill] sm:$0xff] }
 0x22e   :  { %3748 = vmatpush1.msra.mxu0 %v13683_v44  ;;  %4067 = vmatprep.subr.mxu1 %v13684_v53  ;;  %v10362_v55 = vand.u32 4294901760, %v163_v50  ;;  %v13687_v62 = vand.u32 4294901760, %v10179_v2  ;;  %v4102_v53 = vand.u32 4294901760, %v10320_v38  ;;  %v10371_v10 = vsub.f32 %v10283_v31, %v12914_v0  ;;  %v13689_v44 = vld [vmem:[#allocation49_spill] sm:$0xff]  ;;  %v116_v31 = vld [vmem:[#allocation2 + $0x1c8] sm:$0xff] }
 0x22f   :  { %3752 = vmatprep.subr.mxu0 %v13686_v36  ;;  %v10374_v17 = vsub.f32 %v180_v22, %v10323_v47  ;;  %v10376_v36 = vand.u32 4294901760, %v148_v35  ;;  %v13690_v37 = vand.u32 4294901760, %v13689_v44  ;;  %7750 = vmatmul.mubr.msk.f32.gmra.mxu1 %vm8236_vm1, %v13678_v41  ;;  %v4108_v2 = vand.u32 4294901760, %v10332_v16 }
 0x230   :  { %4073 = vmatpush1.msra.mxu1 %v13687_v62  ;;  %v13692_v38 = vand.u32 4294901760, %v10290_v26  ;;  %v10390_v22 = vsub.f32 %v179_v14, %v10336_v61  ;;  %v10392_v0 = vand.u32 4294901760, %v147_v1  ;;  %v13694_v44 = vand.u32 4294901760, %v10189_v20  ;;  %4274 = vmatprep.mubr.f32.mxu1 %v13214_v57 }
 0x231   :  { %13688 = vst [vmem:[#allocation37_spill] sm:$0xff] %v10374_v17  ;;  %3756 = vmatpush1.msra.mxu0 %v13690_v37  ;;  %v13695_v37 = vld [vmem:[#allocation52_spill] sm:$0xff]  ;;  %v4114_v21 = vand.u32 4294901760, %v10346_v4  ;;  %v13697_v16 = vand.u32 4294901760, %v10302_v48  ;;  %v10407_v14 = vand.u32 4294901760, %v132_v49  ;;  %v13701_v20 = vand.u32 4294901760, %v13700_v27  ;;  %v10638_v15 = vpop.f32.mrf.mxu1 }
 0x232   :  { %v10387_v62 = vsub.f32 %v10290_v26, %v13692_v38  ;;  %13693 = vst [vmem:[#allocation45_spill] sm:$0xff] %v10390_v22  ;;  %4079 = vmatprep.subr.mxu1 %v13694_v44  ;;  %v13696_v59 = vand.u32 4294901760, %v13695_v37  ;;  %v10405_v38 = vsub.f32 %v164_v54, %v10349_v13  ;;  %v115_v26 = vld [vmem:[#allocation2 + $0x1c0] sm:$0xff]  ;;  %v4120_v44 = vand.u32 4294901760, %v10359_v42  ;;  %v100_v54 = vld [vmem:[#allocation2 + $0x148] sm:$0xff] }
 0x233   :  { %v10402_v28 = vsub.f32 %v10302_v48, %v13697_v16  ;;  %13699 = vst [vmem:[#allocation18_spill] sm:$0xff] %v10407_v14  ;;  %4085 = vmatpush1.msra.mxu1 %v4084_v19  ;;  %v10418_v37 = vsub.f32 %v163_v50, %v10362_v55  ;;  %v10420_v16 = vand.u32 4294901760, %v131_v39  ;;  %v13705_v48 = vld [vmem:[#allocation54_spill] sm:$0xff]  ;;  %v4126_v27 = vand.u32 4294901760, %v10371_v10  ;;  %v13707_v50 = vld [vmem:[#allocation11_spill] sm:$0xff]  ;;  %v84_v10 = vld [vmem:[#allocation2 + $0xc8] sm:$0xff] }
 0x234   :  { %3760 = vmatprep.subr.mxu0 %v13696_v59  ;;  %13698 = vst [vmem:[#allocation16_spill] sm:$0xff] %v10405_v38  ;;  %v13702_v59 = vand.u32 4294901760, %v10309_v43  ;;  %4091 = vmatprep.subr.mxu1 %v4090_v23  ;;  %v13706_v29 = vand.u32 4294901760, %v13705_v48  ;;  %v12945_v19 = vand.u32 4294901760, %v10374_v17  ;;  %v10427_v42 = vsub.f32 %v148_v35, %v10376_v36 }
 0x235   :  { %3764 = vmatpush1.msra.mxu0 %v13701_v20  ;;  %13703 = vst [vmem:[#allocation38_spill] sm:$0xff] %v10418_v37  ;;  %13704 = vst [vmem:[#allocation43_spill] sm:$0xff] %v10420_v16  ;;  %v10429_v20 = vand.u32 4294901760, %v116_v31  ;;  %4097 = vmatpush1.msra.mxu1 %v4096_v11  ;;  %v4132_v34 = vand.u32 4294901760, %v10387_v62  ;;  %v10438_v48 = vand.u32 4294901760, %v115_v26  ;;  %v4138_v35 = vand.u32 4294901760, %v10402_v28 }
 0x236   :  { %v10415_v4 = vsub.f32 %v10309_v43, %v13702_v59  ;;  %3768 = vmatprep.subr.mxu0 %v13706_v29  ;;  %v99_v59 = vld [vmem:[#allocation2 + $0x140] sm:$0xff]  ;;  %v13708_v43 = vand.u32 4294901760, %v13707_v50  ;;  %v10436_v29 = vsub.f32 %v147_v1, %v10392_v0  ;;  %4103 = vmatprep.subr.mxu1 %v4102_v53  ;;  %v10444_v50 = vsub.f32 %v132_v49, %v10407_v14  ;;  %v13711_v1 = vld [vmem:[#allocation12_spill] sm:$0xff] }
 0x237   :  { %v83_v62 = vld [vmem:[#allocation2 + $0xc0] sm:$0xff]  ;;  %v10455_v28 = vsub.f32 %v131_v39, %v10420_v16  ;;  %v10457_v11 = vand.u32 4294901760, %v99_v59  ;;  %v68_v49 = vld [vmem:[#allocation2 + $0x48] sm:$0xff]  ;;  %4109 = vmatpush1.msra.mxu1 %v4108_v2  ;;  %v4149_v30 = vsub.f32 %v10374_v17, %v12945_v19  ;;  %v10465_v8 = vsub.f32 %v116_v31, %v10429_v20 }
 0x238   :  { %3772 = vmatpush1.msra.mxu0 %v13708_v43  ;;  %13709 = vst [vmem:[#allocation40_spill] sm:$0xff] %v10436_v29  ;;  %13710 = vst [vmem:[#allocation47_spill] sm:$0xff] %v10444_v50  ;;  %v10446_v43 = vand.u32 4294901760, %v100_v54  ;;  %v4144_v23 = vand.u32 4294901760, %v10415_v4  ;;  %v10467_v4 = vand.u32 4294901760, %v84_v10  ;;  %v67_v53 = vld [vmem:[#allocation2 + $0x40] sm:$0xff]  ;;  %4115 = vmatprep.subr.mxu1 %v4114_v21  ;;  %v10475_v5 = vsub.f32 %v115_v26, %v10438_v48 }
 0x239   :  { %7747 = vmatmul.mubr.msk.f32.vlgmr.msra.gmra.mxu0 %vm8220_vm0, %v13678_v41  ;;  %3932 = vmatprep.subr.mxu0 %v13711_v1  ;;  %13712 = vst [vmem:[#allocation48_spill] sm:$0xff] %v10455_v28  ;;  %13713 = vst [vmem:[#allocation51_spill] sm:$0xff] %v10465_v8  ;;  %v13715_v39 = vand.u32 4294901760, %v10390_v22  ;;  %v10477_v19 = vand.u32 4294901760, %v83_v62  ;;  %v13717_v31 = vand.u32 4294901760, %v10405_v38  ;;  %v13720_v26 = vand.u32 4294901760, %v10418_v37 }
 0x23a   :  { %3934 = vmatpush1.msra.mxu0 %v10072_v33  ;;  %13714 = vst [vmem:[#allocation42_spill] sm:$0xff] %v10467_v4  ;;  %13716 = vst [vmem:[#allocation50_spill] sm:$0xff] %v10475_v5  ;;  %4121 = vmatpush1.msra.mxu1 %v4120_v44  ;;  %v10485_v17 = vsub.f32 %v100_v54, %v10446_v43  ;;  %v4150_v54 = vand.u32 4294901760, %v4149_v30  ;;  %v10508_v51 = vsub.f32 %v84_v10, %v10467_v4  ;;  %v13756_v3 = vld [vmem:[#allocation37_spill] sm:$0xff] }
 0x23b   :  { %3936 = vmatprep.subr.mxu0 %v10078_v60  ;;  %v4155_v2 = vsub.f32 %v10390_v22, %v13715_v39  ;;  %3812 = vmatprep.mubr.f32.mxu0 %v13214_v57  ;;  %v4161_v21 = vsub.f32 %v10405_v38, %v13717_v31  ;;  %v10487_v39 = vand.u32 4294901760, %v68_v49  ;;  %v4167_v44 = vsub.f32 %v10418_v37, %v13720_v26 }
 0x23c   :  { %13718 = vst [vmem:[#allocation44_spill] sm:$0xff] %v10485_v17  ;;  %3938 = vmatpush1.msra.mxu0 %v10082_v32  ;;  %4127 = vmatprep.subr.mxu1 %v4126_v27  ;;  %v10495_v22 = vsub.f32 %v99_v59, %v10457_v11  ;;  %v10497_v31 = vand.u32 4294901760, %v67_v53  ;;  %v13723_v27 = vand.u32 4294901760, %v10427_v42  ;;  %13724 = vst [vmem:[#allocation53_spill] sm:$0xff] %v10508_v51  ;;  %v13725_v37 = vand.u32 4294901760, %v10436_v29 }
 0x23d   :  { %13719 = vst [vmem:[#allocation46_spill] sm:$0xff] %v10487_v39  ;;  %7748 = vmatmul.mubr.msk.f32.gmra.mxu0 %vm8236_vm1, %v13678_v41  ;;  %3940 = vmatprep.subr.mxu0 %v10089_v12  ;;  %v4156_v59 = vand.u32 4294901760, %v4155_v2  ;;  %v10516_v30 = vsub.f32 %v83_v62, %v10477_v19  ;;  %v13727_v10 = vand.u32 4294901760, %v10444_v50  ;;  %v10524_v2 = vsub.f32 %v68_v49, %v10487_v39 }
 0x23e   :  { %13721 = vst [vmem:[#allocation49_spill] sm:$0xff] %v10495_v22  ;;  %13722 = vst [vmem:[#allocation52_spill] sm:$0xff] %v10497_v31  ;;  %v4173_v7 = vsub.f32 %v10427_v42, %v13723_v27  ;;  %4133 = vmatpush1.msra.mxu1 %v4132_v34  ;;  %3942 = vmatpush1.msra.mxu0 %v10117_v58  ;;  %v4179_v38 = vsub.f32 %v10436_v29, %v13725_v37  ;;  %v4162_v27 = vand.u32 4294901760, %v4161_v21 }
 0x23f   :  { %13726 = vst [vmem:[#allocation54_spill] sm:$0xff] %v10516_v30  ;;  %4139 = vmatprep.subr.mxu1 %v4138_v35  ;;  %3944 = vmatprep.subr.mxu0 %v10128_v63  ;;  %v4185_v34 = vsub.f32 %v10444_v50, %v13727_v10  ;;  %13728 = vst [vmem:[#allocation11_spill] sm:$0xff] %v10524_v2  ;;  %v4168_v37 = vand.u32 4294901760, %v4167_v44  ;;  %v13729_v62 = vand.u32 4294901760, %v10455_v28  ;;  %v13731_v49 = vand.u32 4294901760, %v10465_v8 }
 0x240   :  { %4145 = vmatpush1.msra.mxu1 %v4144_v23  ;;  %3946 = vmatpush1.msra.mxu0 %v10160_v46  ;;  %v10532_v21 = vsub.f32 %v67_v53, %v10497_v31  ;;  %v4174_v10 = vand.u32 4294901760, %v4173_v7  ;;  %v4180_v44 = vand.u32 4294901760, %v4179_v38 }
 0x241   :  { %v4191_v35 = vsub.f32 %v10455_v28, %v13729_v62  ;;  %4151 = vmatprep.subr.mxu1 %v4150_v54  ;;  %3948 = vmatprep.subr.mxu0 %v10192_v9  ;;  %v4197_v23 = vsub.f32 %v10465_v8, %v13731_v49  ;;  %v13732_v62 = vand.u32 4294901760, %v10475_v5  ;;  %v4186_v7 = vand.u32 4294901760, %v4185_v34 }
 0x242   :  { %13730 = vst [vmem:[#allocation12_spill] sm:$0xff] %v10532_v21  ;;  %4157 = vmatpush1.msra.mxu1 %v4156_v59  ;;  %3950 = vmatpush1.msra.mxu0 %v10214_v6  ;;  %v13733_v54 = vand.u32 4294901760, %v10485_v17  ;;  %v13734_v59 = vand.u32 4294901760, %v10495_v22  ;;  %v12956_v53 = vand.u32 4294901760, %v10532_v21  ;;  %v13735_v34 = vand.u32 4294901760, %v10508_v51 }
 0x243   :  { %v4203_v40 = vsub.f32 %v10475_v5, %v13732_v62  ;;  %4163 = vmatprep.subr.mxu1 %v4162_v27  ;;  %3952 = vmatprep.subr.mxu0 %v10233_v52  ;;  %v4192_v38 = vand.u32 4294901760, %v4191_v35  ;;  %v4198_v27 = vand.u32 4294901760, %v4197_v23  ;;  %v13736_v35 = vand.u32 4294901760, %v10516_v30 }
 0x244   :  { %v4209_v49 = vsub.f32 %v10485_v17, %v13733_v54  ;;  %4169 = vmatpush1.msra.mxu1 %v4168_v37  ;;  %3954 = vmatpush1.msra.mxu0 %v10243_v18  ;;  %v4215_v62 = vsub.f32 %v10495_v22, %v13734_v59  ;;  %v4221_v54 = vsub.f32 %v10508_v51, %v13735_v34 }
 0x245   :  { %4175 = vmatprep.subr.mxu1 %v4174_v10  ;;  %3956 = vmatprep.subr.mxu0 %v10252_v45  ;;  %v4204_v37 = vand.u32 4294901760, %v4203_v40  ;;  %v4227_v26 = vsub.f32 %v10516_v30, %v13736_v35  ;;  %v13737_v10 = vand.u32 4294901760, %v10524_v2  ;;  %v4239_v40 = vsub.f32 %v10532_v21, %v12956_v53  ;;  %v13743_v35 = vld [vmem:[#allocation35_spill] sm:$0xff] }
 0x246   :  { %4181 = vmatpush1.msra.mxu1 %v4180_v44  ;;  %3958 = vmatpush1.msra.mxu0 %v10257_v25  ;;  %v4210_v59 = vand.u32 4294901760, %v4209_v49  ;;  %v4216_v34 = vand.u32 4294901760, %v4215_v62  ;;  %v4222_v44 = vand.u32 4294901760, %v4221_v54  ;;  %v13739_v62 = vld [vmem:[#allocation13_spill] sm:$0xff]  ;;  %v13741_v54 = vld [vmem:[#allocation15_spill] sm:$0xff] }
 0x247   :  { %4187 = vmatprep.subr.mxu1 %v4186_v7  ;;  %3960 = vmatprep.subr.mxu0 %v10267_v24  ;;  %v4233_v23 = vsub.f32 %v10524_v2, %v13737_v10  ;;  %v4228_v7 = vand.u32 4294901760, %v4227_v26  ;;  %v13738_v26 = vld [vmem:[#allocation33_spill] sm:$0xff]  ;;  %v13745_v10 = vld [vmem:[#allocation20_spill] sm:$0xff]  ;;  %v13753_v53 = vld [vmem:[#allocation39_spill] sm:$0xff] }
 0x248   :  { %4193 = vmatpush1.msra.mxu1 %v4192_v38  ;;  %3962 = vmatpush1.msra.mxu0 %v10275_v56  ;;  %v4240_v38 = vand.u32 4294901760, %v4239_v40  ;;  %v13748_v40 = vld [vmem:[#allocation24_spill] sm:$0xff] }
 0x249   :  { %4199 = vmatprep.subr.mxu1 %v4198_v27  ;;  %3964 = vmatprep.subr.mxu0 %v10323_v47  ;;  %v4234_v49 = vand.u32 4294901760, %v4233_v23  ;;  %v13740_v27 = vld [vmem:[#allocation14_spill] sm:$0xff] }
 0x24a   :  { %4205 = vmatpush1.msra.mxu1 %v4204_v37  ;;  %3966 = vmatpush1.msra.mxu0 %v10336_v61  ;;  %v13742_v37 = vld [vmem:[#allocation21_spill] sm:$0xff]  ;;  %v13746_v23 = vld [vmem:[#allocation22_spill] sm:$0xff] }
 0x24b   :  { %4211 = vmatprep.subr.mxu1 %v4210_v59  ;;  %3968 = vmatprep.subr.mxu0 %v10349_v13  ;;  %v13744_v59 = vld [vmem:[#allocation19_spill] sm:$0xff] }
 0x24c   :  { %4217 = vmatpush1.msra.mxu1 %v4216_v34  ;;  %3970 = vmatpush1.msra.mxu0 %v10362_v55  ;;  %v13747_v34 = vld [vmem:[#allocation23_spill] sm:$0xff] }
 0x24d   :  { %4223 = vmatprep.subr.mxu1 %v4222_v44  ;;  %3972 = vmatprep.subr.mxu0 %v10376_v36  ;;  %v13749_v44 = vld [vmem:[#allocation25_spill] sm:$0xff] }
 0x24e   :  { %4229 = vmatpush1.msra.mxu1 %v4228_v7  ;;  %3974 = vmatpush1.msra.mxu0 %v10392_v0  ;;  %v13750_v7 = vld [vmem:[#allocation27_spill] sm:$0xff] }
 0x24f   :  { %4235 = vmatprep.subr.mxu1 %v4234_v49  ;;  %3976 = vmatprep.subr.mxu0 %v10407_v14  ;;  %v13751_v49 = vld [vmem:[#allocation17_spill] sm:$0xff] }
 0x250   :  { %4241 = vmatpush1.msra.mxu1 %v4240_v38  ;;  %3978 = vmatpush1.msra.mxu0 %v10420_v16  ;;  %v13752_v38 = vld [vmem:[#allocation36_spill] sm:$0xff] }
 0x251   :  { %7751 = vmatmul.mubr.msk.f32.vlgmr.msra.gmra.mxu1 %vm8220_vm0, %v13678_v41  ;;  %4435 = vmatprep.subr.mxu1 %v13711_v1 }
 0x252   :  { %3980 = vmatprep.subr.mxu0 %v10429_v20  ;;  %4437 = vmatpush1.msra.mxu1 %v10072_v33 }
 0x253   :  { %3982 = vmatpush1.msra.mxu0 %v10438_v48  ;;  %4439 = vmatprep.subr.mxu1 %v10078_v60 }
 0x254   :  { %3984 = vmatprep.subr.mxu0 %v10446_v43  ;;  %4281 = vmatprep.mubr.f32.mxu1 %v13214_v57 }
 0x255   :  { %4441 = vmatpush1.msra.mxu1 %v10082_v32  ;;  %3986 = vmatpush1.msra.mxu0 %v10457_v11 }
 0x256   :  { %7752 = vmatmul.mubr.msk.f32.gmra.mxu1 %vm8236_vm1, %v13678_v41  ;;  %4443 = vmatprep.subr.mxu1 %v10089_v12  ;;  %v13757_v41 = vld [vmem:[#allocation45_spill] sm:$0xff] }
 0x257   :  { %3988 = vmatprep.subr.mxu0 %v10467_v4  ;;  %4445 = vmatpush1.msra.mxu1 %v10117_v58 }
 0x258   :  { %3990 = vmatpush1.msra.mxu0 %v10477_v19  ;;  %4447 = vmatprep.subr.mxu1 %v10128_v63 }
 0x259   :  { %3992 = vmatprep.subr.mxu0 %v10487_v39  ;;  %4449 = vmatpush1.msra.mxu1 %v10160_v46 }
 0x25a   :  { %3994 = vmatpush1.msra.mxu0 %v10497_v31  ;;  %4027 = vmatprep.mubr.f32.mxu0 %v13214_v57 }
 0x25b   :  { %4451 = vmatprep.subr.mxu1 %v10192_v9  ;;  %4033 = vmatmul.mubr.f32.vlgmr.msra.gmra.mxu0 %v13738_v26  ;;  %v13755_v26 = vld [vmem:[#allocation26_spill] sm:$0xff] }
 0x25c   :  { %4291 = vmatprep.subr.mxu0 %v13739_v62  ;;  %4453 = vmatpush1.msra.mxu1 %v10214_v6 }
 0x25d   :  { %4294 = vmatpush1.msra.mxu0 %v13740_v27  ;;  %4455 = vmatprep.subr.mxu1 %v10233_v52 }
 0x25e   :  { %4297 = vmatprep.subr.mxu0 %v13741_v54  ;;  %4457 = vmatpush1.msra.mxu1 %v10243_v18 }
 0x25f   :  { %4038 = vmatprep.mubr.f32.mxu0 %v13214_v57  ;;  %4300 = vmatpush1.msra.mxu0 %v13742_v37 }
 0x260   :  { %4459 = vmatprep.subr.mxu1 %v10252_v45  ;;  %4044 = vmatmul.mubr.f32.gmra.mxu0 %v13743_v35  ;;  %v13754_v35 = vld [vmem:[#allocation41_spill] sm:$0xff] }
 0x261   :  { %4303 = vmatprep.subr.mxu0 %v13744_v59  ;;  %4461 = vmatpush1.msra.mxu1 %v10257_v25 }
 0x262   :  { %4306 = vmatpush1.msra.mxu0 %v13745_v10  ;;  %4463 = vmatprep.subr.mxu1 %v10267_v24 }
 0x263   :  { %4309 = vmatprep.subr.mxu0 %v13746_v23  ;;  %4465 = vmatpush1.msra.mxu1 %v10275_v56 }
 0x264   :  { %4312 = vmatpush1.msra.mxu0 %v13747_v34  ;;  %4467 = vmatprep.subr.mxu1 %v10323_v47 }
 0x265   :  { %4315 = vmatprep.subr.mxu0 %v13748_v40  ;;  %4469 = vmatpush1.msra.mxu1 %v10336_v61 }
 0x266   :  { %4318 = vmatpush1.msra.mxu0 %v13749_v44  ;;  %4471 = vmatprep.subr.mxu1 %v10349_v13 }
 0x267   :  { %4321 = vmatprep.subr.mxu0 %v13750_v7  ;;  %4473 = vmatpush1.msra.mxu1 %v10362_v55 }
 0x268   :  { %4324 = vmatpush1.msra.mxu0 %v13751_v49  ;;  %4475 = vmatprep.subr.mxu1 %v10376_v36 }
 0x269   :  { %4327 = vmatprep.subr.mxu0 %v13752_v38  ;;  %4477 = vmatpush1.msra.mxu1 %v10392_v0 }
 0x26a   :  { %4330 = vmatpush1.msra.mxu0 %v13753_v53  ;;  %4479 = vmatprep.subr.mxu1 %v10407_v14  ;;  %v13758_v53 = vld [vmem:[#allocation16_spill] sm:$0xff]  ;;  %v10646_v14 = vpop.f32.mrf.mxu0 }
 0x26b   :  { %4333 = vmatprep.subr.mxu0 %v13754_v35  ;;  %4481 = vmatpush1.msra.mxu1 %v10420_v16  ;;  %v13759_v16 = vld [vmem:[#allocation38_spill] sm:$0xff] }
 0x26c   :  { %4336 = vmatpush1.msra.mxu0 %v13755_v26  ;;  %4483 = vmatprep.subr.mxu1 %v10429_v20  ;;  %v10650_v26 = vpop.f32.mrf.mxu1 }
 0x26d   :  { %4339 = vmatprep.subr.mxu0 %v13756_v3  ;;  %4485 = vmatpush1.msra.mxu1 %v10438_v48 }
 0x26e   :  { %4342 = vmatpush1.msra.mxu0 %v13757_v41  ;;  %4487 = vmatprep.subr.mxu1 %v10446_v43 }
 0x26f   :  { %4345 = vmatprep.subr.mxu0 %v13758_v53  ;;  %4489 = vmatpush1.msra.mxu1 %v10457_v11  ;;  %v10658_v53 = vpop.f32.mrf.mxu0 }
 0x270   :  { %4348 = vmatpush1.msra.mxu0 %v13759_v16  ;;  %4491 = vmatprep.subr.mxu1 %v10467_v4  ;;  %v10662_v16 = vpop.f32.mrf.mxu1  ;;  %v13760_v4 = vld [vmem:[#allocation31_spill] sm:$0xff] }
 0x271   :  { %4351 = vmatprep.subr.mxu0 %v10427_v42  ;;  %4493 = vmatpush1.msra.mxu1 %v10477_v19 }
 0x272   :  { %4354 = vmatpush1.msra.mxu0 %v10436_v29  ;;  %4495 = vmatprep.subr.mxu1 %v10487_v39  ;;  %v10670_v39 = vpop.f32.mrf.mxu0  ;;  %v10674_v29 = vpop.f32.mrf.mxu1 }
 0x273   :  { %4357 = vmatprep.subr.mxu0 %v10444_v50  ;;  %4497 = vmatpush1.msra.mxu1 %v10497_v31  ;;  %v310_v50 = vld [vmem:[#allocation2 + $0x7d8] sm:$0xff]  ;;  %v309_v31 = vld [vmem:[#allocation2 + $0x7d0] sm:$0xff] }
 0x274   :  { %4530 = vmatprep.mubr.f32.mxu1 %v13214_v57  ;;  %4360 = vmatpush1.msra.mxu0 %v10455_v28  ;;  %v10688_v28 = vpop.f32.mrf.mxu0 }
 0x275   :  { %4534 = vmatmul.mubr.f32.vlgmr.msra.gmra.mxu1 %v13760_v4  ;;  %4725 = vmatprep.subr.mxu1 %v13711_v1  ;;  %v294_v1 = vld [vmem:[#allocation2 + $0x758] sm:$0xff]  ;;  %v10680_v4 = vand.u32 4294901760, %v310_v50 }
 0x276   :  { %4363 = vmatprep.subr.mxu0 %v10465_v8  ;;  %4727 = vmatpush1.msra.mxu1 %v10072_v33  ;;  %v13761_v33 = vld [vmem:[#allocation34_spill] sm:$0xff]  ;;  %v10682_v8 = vpop.f32.mrf.mxu1 }
 0x277   :  { %4366 = vmatpush1.msra.mxu0 %v10475_v5  ;;  %4729 = vmatprep.subr.mxu1 %v10078_v60  ;;  %13762 = vst [vmem:[#allocation13_spill] sm:$0xff] %v10680_v4  ;;  %v293_v5 = vld [vmem:[#allocation2 + $0x750] sm:$0xff]  ;;  %v10686_v60 = vand.u32 4294901760, %v309_v31 }
 0x278   :  { %4369 = vmatprep.subr.mxu0 %v10485_v17  ;;  %4539 = vmatprep.mubr.f32.mxu1 %v13214_v57  ;;  %v278_v17 = vld [vmem:[#allocation2 + $0x6d8] sm:$0xff] }
 0x279   :  { %4731 = vmatpush1.msra.mxu1 %v10082_v32  ;;  %4372 = vmatpush1.msra.mxu0 %v10495_v22  ;;  %v10692_v32 = vand.u32 4294901760, %v294_v1  ;;  %v10703_v22 = vand.u32 4294901760, %v278_v17 }
 0x27a   :  { %4543 = vmatmul.mubr.f32.gmra.mxu1 %v13761_v33  ;;  %4733 = vmatprep.subr.mxu1 %v10089_v12  ;;  %v10696_v33 = vand.u32 4294901760, %v293_v5  ;;  %v2613_v12 = vpop.f32.mrf.mxu0 }
 0x27b   :  { %4375 = vmatprep.subr.mxu0 %v10508_v51  ;;  %4735 = vmatpush1.msra.mxu1 %v10117_v58  ;;  %v10701_v51 = vsub.f32 %v310_v50, %v10680_v4  ;;  %v10705_v58 = vpop.f32.mrf.mxu1  ;;  %v10716_v50 = vsub.f32 %v294_v1, %v10692_v32  ;;  %v13768_v4 = vand.u32 4294901760, %v13740_v27  ;;  %v10729_v1 = vsub.f32 %v278_v17, %v10703_v22  ;;  %v261_v17 = vld [vmem:[#allocation2 + $0x650] sm:$0xff] }
 0x27c   :  { %4378 = vmatpush1.msra.mxu0 %v10516_v30  ;;  %4737 = vmatprep.subr.mxu1 %v10128_v63  ;;  %v10710_v63 = vsub.f32 %v309_v31, %v10686_v60  ;;  %v13765_v30 = vld [vmem:[#allocation29_spill] sm:$0xff]  ;;  %v2615_v31 = vpop.f32.mrf.mxu0  ;;  %v2470_v27 = vadd.f32 %v10638_v15, %v10646_v14 }
 0x27d   :  { %4381 = vmatprep.subr.mxu0 %v10524_v2  ;;  %4739 = vmatpush1.msra.mxu1 %v10160_v46  ;;  %13763 = vst [vmem:[#allocation14_spill] sm:$0xff] %v10701_v51  ;;  %v277_v2 = vld [vmem:[#allocation2 + $0x6d0] sm:$0xff]  ;;  %v13766_v46 = vand.u32 4294901760, %v13739_v62  ;;  %13767 = vst [vmem:[#allocation21_spill] sm:$0xff] %v10716_v50  ;;  %v12978_v15 = vand.u32 4294901760, %v10729_v1 }
 0x27e   :  { %4384 = vmatpush1.msra.mxu0 %v10532_v21  ;;  %4417 = vmatprep.mubr.f32.mxu0 %v13214_v57  ;;  %13764 = vst [vmem:[#allocation15_spill] sm:$0xff] %v10710_v63  ;;  %v10722_v21 = vsub.f32 %v293_v5, %v10696_v33  ;;  %13771 = vst [vmem:[#allocation20_spill] sm:$0xff] %v10729_v1  ;;  %v2621_v62 = vpop.f32.mrf.mxu0  ;;  %v2614_v5 = vadd.f32 %v2613_v12, %v2470_v27  ;;  %v13782_v12 = vand.u32 4294901760, %v13748_v40 }
 0x27f   :  { %4741 = vmatprep.subr.mxu1 %v10192_v9  ;;  %4420 = vmatmul.mubr.f32.vlgmr.msra.gmra.mxu0 %v13765_v30  ;;  %v262_v9 = vld [vmem:[#allocation2 + $0x658] sm:$0xff]  ;;  %v13770_v30 = vand.u32 4294901760, %v13741_v54  ;;  %v13773_v54 = vld [vmem:[#allocation32_spill] sm:$0xff] }
 0x280   :  { %4552 = vmatprep.subr.mxu0 %v13766_v46  ;;  %4743 = vmatpush1.msra.mxu1 %v10214_v6  ;;  %13769 = vst [vmem:[#allocation19_spill] sm:$0xff] %v10722_v21  ;;  %v10731_v46 = vand.u32 4294901760, %v277_v2  ;;  %v10733_v6 = vpop.f32.mrf.mxu1 }
 0x281   :  { %4556 = vmatpush1.msra.mxu0 %v13768_v4  ;;  %4745 = vmatprep.subr.mxu1 %v10233_v52  ;;  %v13772_v52 = vand.u32 4294901760, %v13742_v37  ;;  %v12979_v4 = vand.u32 4294901760, %v10716_v50  ;;  %v13776_v37 = vand.u32 4294901760, %v10701_v51 }
 0x282   :  { %4560 = vmatprep.subr.mxu0 %v13770_v30  ;;  %4747 = vmatpush1.msra.mxu1 %v10243_v18  ;;  %v10742_v30 = vand.u32 4294901760, %v262_v9  ;;  %v13774_v18 = vand.u32 4294901760, %v13744_v59  ;;  %v10760_v14 = vsub.f32 %v277_v2, %v10731_v46  ;;  %v2472_v59 = vadd.f32 %v10650_v26, %v10658_v53  ;;  %v246_v2 = vld [vmem:[#allocation2 + $0x5d8] sm:$0xff] }
 0x283   :  { %4425 = vmatprep.mubr.f32.mxu0 %v13214_v57  ;;  %4564 = vmatpush1.msra.mxu0 %v13772_v52  ;;  %v10756_v52 = vsub.f32 %v10701_v51, %v13776_v37  ;;  %v10774_v37 = vand.u32 4294901760, %v261_v17  ;;  %v13780_v53 = vand.u32 4294901760, %v13747_v34 }
 0x284   :  { %4749 = vmatprep.subr.mxu1 %v10252_v45  ;;  %4428 = vmatmul.mubr.f32.gmra.mxu0 %v13773_v54  ;;  %v13775_v45 = vand.u32 4294901760, %v13745_v10  ;;  %13777 = vst [vmem:[#allocation22_spill] sm:$0xff] %v10760_v14  ;;  %v13779_v10 = vand.u32 4294901760, %v10710_v63  ;;  %v10785_v26 = vsub.f32 %v262_v9, %v10742_v30  ;;  %v13784_v9 = vand.u32 4294901760, %v13749_v44 }
 0x285   :  { %4568 = vmatprep.subr.mxu0 %v13774_v18  ;;  %4751 = vmatpush1.msra.mxu1 %v10257_v25  ;;  %v10764_v18 = vpop.f32.mrf.mxu1  ;;  %v13778_v25 = vand.u32 4294901760, %v13746_v23  ;;  %v2616_v23 = vadd.f32 %v2615_v31, %v2472_v59  ;;  %v12980_v40 = vand.u32 4294901760, %v10760_v14  ;;  %v10806_v31 = vand.u32 4294901760, %v246_v2  ;;  %v245_v59 = vld [vmem:[#allocation2 + $0x5d0] sm:$0xff] }
 0x286   :  { %4572 = vmatpush1.msra.mxu0 %v13775_v45  ;;  %4753 = vmatprep.subr.mxu1 %v10267_v24  ;;  %v10772_v45 = vsub.f32 %v10710_v63, %v13779_v10  ;;  %v10782_v24 = vsub.f32 %v10716_v50, %v12979_v4  ;;  %13781 = vst [vmem:[#allocation23_spill] sm:$0xff] %v10785_v26  ;;  %v2623_v10 = vpop.f32.mrf.mxu0 }
 0x287   :  { %4576 = vmatprep.subr.mxu0 %v13778_v25  ;;  %4755 = vmatpush1.msra.mxu1 %v10275_v56  ;;  %v3015_v27 = vpop.f32.mrf.mxu1  ;;  %v13783_v56 = vand.u32 4294901760, %v10722_v21  ;;  %v2477_v25 = vadd.f32 %v10662_v16, %v10670_v39  ;;  %v13785_v16 = vand.u32 4294901760, %v13750_v7  ;;  %v10814_v44 = vsub.f32 %v261_v17, %v10774_v37  ;;  %v197_v7 = vld [vmem:[#allocation2 + $0x450] sm:$0xff] }
 0x288   :  { %4580 = vmatpush1.msra.mxu0 %v13780_v53  ;;  %4757 = vmatprep.subr.mxu1 %v10323_v47  ;;  %v10803_v47 = vsub.f32 %v10729_v1, %v12978_v15  ;;  %v4964_v39 = vand.u32 4294901760, %v10772_v45  ;;  %v2728_v53 = vadd.f32 %v10682_v8, %v2614_v5  ;;  %v230_v15 = vld [vmem:[#allocation2 + $0x558] sm:$0xff]  ;;  %v13788_v17 = vand.u32 4294901760, %v13752_v38  ;;  %v229_v5 = vld [vmem:[#allocation2 + $0x550] sm:$0xff]  ;;  %v13827_v45 = vld [vmem:[#allocation44_spill] sm:$0xff] }
 0x289   :  { %4584 = vmatprep.subr.mxu0 %v13782_v12  ;;  %v10793_v34 = vsub.f32 %v10722_v21, %v13783_v56  ;;  %4759 = vmatpush1.msra.mxu1 %v10336_v61  ;;  %v4958_v61 = vand.u32 4294901760, %v10756_v52  ;;  %13786 = vst [vmem:[#allocation24_spill] sm:$0xff] %v10814_v44  ;;  %v2479_v12 = vadd.f32 %v10674_v29, %v10688_v28  ;;  %v3017_v8 = vpop.f32.mrf.mxu1  ;;  %v13795_v29 = vld [vmem:[#allocation26_spill] sm:$0xff] }
 0x28a   :  { %4588 = vmatpush1.msra.mxu0 %v13784_v9  ;;  %4761 = vmatprep.subr.mxu1 %v10349_v13  ;;  %v2622_v56 = vadd.f32 %v2621_v62, %v2477_v25  ;;  %v13787_v13 = vand.u32 4294901760, %v13751_v49  ;;  %v12981_v9 = vand.u32 4294901760, %v10785_v26  ;;  %v7551_v62 = vld [vmem:[#allocation5 + $0x20] sm:$0xff]  ;;  %v2730_v49 = vadd.f32 %v10705_v58, %v2616_v23  ;;  %v13792_v58 = vld [vmem:[#allocation18_spill] sm:$0xff] }
 0x28b   :  { %4592 = vmatprep.subr.mxu0 %v13785_v16  ;;  %4763 = vmatpush1.msra.mxu1 %v10362_v55  ;;  %v2904_v16 = vpop.f32.mrf.mxu0  ;;  %v10828_v55 = vand.u32 4294901760, %v245_v59  ;;  %v2624_v25 = vadd.f32 %v2623_v10, %v2479_v12  ;;  %v10838_v38 = vsub.f32 %v10760_v14, %v12980_v40  ;;  %v13793_v23 = vand.u32 4294901760, %v13754_v35  ;;  %v13794_v40 = vld [vmem:[#allocation43_spill] sm:$0xff]  ;;  %v13824_v52 = vld [vmem:[#allocation50_spill] sm:$0xff] }
 0x28c   :  { %4596 = vmatpush1.msra.mxu0 %v13787_v13  ;;  %4765 = vmatprep.subr.mxu1 %v10376_v36  ;;  %v2905_v28 = vadd.f32 %v2904_v16, %v2728_v53  ;;  %v13789_v13 = vld [vmem:[#allocation39_spill] sm:$0xff]  ;;  %v10841_v53 = vsub.f32 %v246_v2, %v10806_v31  ;;  %v10847_v10 = vand.u32 4294901760, %v230_v15  ;;  %v213_v36 = vld [vmem:[#allocation2 + $0x4d0] sm:$0xff]  ;;  %v13796_v2 = vand.u32 4294901760, %v13795_v29 }
 0x28d   :  { %4600 = vmatprep.subr.mxu0 %v13788_v17  ;;  %4767 = vmatpush1.msra.mxu1 %v10392_v0  ;;  %v13790_v4 = vand.u32 4294901760, %v13789_v13  ;;  %v2906_v16 = vpop.f32.mrf.mxu0  ;;  %v214_v17 = vld [vmem:[#allocation2 + $0x4d8] sm:$0xff]  ;;  %v12983_v0 = vand.u32 4294901760, %v10814_v44  ;;  %v7552_v13 = vld [vmem:[#allocation5 + $0x28] sm:$0xff]  ;;  %vm7583_vm10 = vcmp.ge.f32.partialorder %v7551_v62, 0.3  ;;  %v10864_v29 = vsub.f32 %v245_v59, %v10828_v55 }
 0x28e   :  { %13791 = vst [vmem:[#allocation25_spill] sm:$0xff] %v10841_v53  ;;  %4769 = vmatprep.subr.mxu1 %v13792_v58  ;;  %v2907_v12 = vadd.f32 %v2906_v16, %v2730_v49  ;;  %v10855_v58 = vsub.f32 %v10785_v26, %v12981_v9  ;;  %v10857_v35 = vand.u32 4294901760, %v229_v5  ;;  %v13797_v49 = vand.u32 4294901760, %v13756_v3  ;;  %v13800_v59 = vld [vmem:[#allocation16_spill] sm:$0xff]  ;;  %4820 = vmatprep.mubr.f32.mxu1 %v13214_v57 }
 0x28f   :  { %4604 = vmatpush1.msra.mxu0 %v13790_v4  ;;  %v3016_v4 = vadd.f32 %v3015_v27, %v2905_v28  ;;  %4771 = vmatpush1.msra.mxu1 %v13794_v40  ;;  %v2737_v27 = vadd.f32 %v10733_v6, %v2622_v56  ;;  %v198_v28 = vld [vmem:[#allocation2 + $0x458] sm:$0xff]  ;;  %v3022_v40 = vpop.f32.mrf.mxu1  ;;  %13798 = vst [vmem:[#allocation27_spill] sm:$0xff] %v10864_v29  ;;  %v2911_v9 = vpop.f32.mrf.mxu0  ;;  %v13799_v6 = vand.u32 4294901760, %v13757_v41  ;;  %vm7584_vm11 = vcmp.ge.f32.partialorder %v7552_v13, 0.3  ;;  %v7567_v56 = vld [vmem:[#allocation5 + $0xa0] sm:$0xff] }
 0x290   :  { %4608 = vmatprep.subr.mxu0 %v13793_v23  ;;  %4773 = vmatprep.subr.mxu1 %v10429_v20  ;;  %v3018_v23 = vadd.f32 %v3017_v8, %v2907_v12  ;;  %v10871_v3 = vand.u32 4294901760, %v213_v36  ;;  %v13801_v8 = vand.u32 4294901760, %v13800_v59  ;;  %v10881_v41 = vand.u32 4294901760, %v198_v28  ;;  %v7568_v62 = vld [vmem:[#allocation5 + $0xa8] sm:$0xff]  ;;  %v13812_v13 = vld [vmem:[#allocation46_spill] sm:$0xff] }
 0x291   :  { %4612 = vmatpush1.msra.mxu0 %v13796_v2  ;;  %v7615_v16 = vmul.f32 1.4285715, %v3016_v4  ;;  %v10866_v2 = vand.u32 4294901760, %v214_v17  ;;  %4775 = vmatpush1.msra.mxu1 %v10438_v48  ;;  %v2912_v20 = vadd.f32 %v2911_v9, %v2737_v27  ;;  %v2739_v4 = vadd.f32 %v10764_v18, %v2624_v25  ;;  %v13803_v9 = vld [vmem:[#allocation38_spill] sm:$0xff]  ;;  %v3024_v59 = vpop.f32.mrf.mxu1 }
 0x292   :  { %4616 = vmatprep.subr.mxu0 %v13797_v49  ;;  %4777 = vmatprep.subr.mxu1 %v10446_v43  ;;  %v10879_v49 = vsub.f32 %v230_v15, %v10847_v10  ;;  %v7616_v48 = vmul.f32 1.4285715, %v3018_v23  ;;  %v13804_v27 = vand.u32 4294901760, %v13803_v9  ;;  %v10887_v43 = vsub.f32 %v229_v5, %v10857_v35  ;;  %v13806_v15 = vld [vmem:[#allocation42_spill] sm:$0xff]  ;;  %v13809_v5 = vld [vmem:[#allocation40_spill] sm:$0xff] }
 0x293   :  { %4620 = vmatpush1.msra.mxu0 %v13799_v6  ;;  %v7647_v12 = vsel %vm7583_vm10, %v7615_v16, 0.0  ;;  %v2913_v6 = vpop.f32.mrf.mxu0  ;;  %4779 = vmatpush1.msra.mxu1 %v10457_v11  ;;  %v3023_v18 = vadd.f32 %v3022_v40, %v2912_v20  ;;  %v10889_v16 = vand.u32 4294901760, %v197_v7  ;;  %v13807_v23 = vand.u32 4294901760, %v10427_v42  ;;  %v182_v9 = vld [vmem:[#allocation2 + $0x3d8] sm:$0xff] }
 0x294   :  { %4624 = vmatprep.subr.mxu0 %v13801_v8  ;;  %13802 = vst [vmem:[#allocation17_spill] sm:$0xff] %v10879_v49  ;;  %7679 = vst [vmem:[#allocation7 + $0x20] sm:$0xff] %v7647_v12  ;;  %v2914_v25 = vadd.f32 %v2913_v6, %v2739_v4  ;;  %4781 = vmatprep.subr.mxu1 %v13806_v15  ;;  %v12982_v11 = vand.u32 4294901760, %v10841_v53  ;;  %v7648_v8 = vsel %vm7584_vm11, %v7616_v48, 0.0  ;;  %vm7599_vm12 = vcmp.ge.f32.partialorder %v7567_v56, 0.3 }
 0x295   :  { %4628 = vmatpush1.msra.mxu0 %v13804_v27  ;;  %13805 = vst [vmem:[#allocation36_spill] sm:$0xff] %v10887_v43  ;;  %v10897_v12 = vsub.f32 %v214_v17, %v10866_v2  ;;  %4783 = vmatpush1.msra.mxu1 %v10477_v19  ;;  %v13810_v40 = vand.u32 4294901760, %v13809_v5  ;;  %v12984_v20 = vand.u32 4294901760, %v10864_v29  ;;  %7680 = vst [vmem:[#allocation7 + $0x28] sm:$0xff] %v7648_v8  ;;  %v7631_v4 = vmul.f32 1.4285715, %v3023_v18 }
 0x296   :  { %4632 = vmatprep.subr.mxu0 %v13807_v23  ;;  %v10904_v42 = vsub.f32 %v213_v36, %v10871_v3  ;;  %v3025_v6 = vadd.f32 %v3024_v59, %v2914_v25  ;;  %4785 = vmatprep.subr.mxu1 %v13812_v13  ;;  %v13813_v48 = vld [vmem:[#allocation47_spill] sm:$0xff]  ;;  %v10912_v19 = vsub.f32 %v10814_v44, %v12983_v0  ;;  %v12985_v27 = vand.u32 4294901760, %v10879_v49  ;;  %v181_v36 = vld [vmem:[#allocation2 + $0x3d0] sm:$0xff]  ;;  %v13816_v18 = vld [vmem:[#allocation52_spill] sm:$0xff] }
 0x297   :  { %13808 = vst [vmem:[#allocation41_spill] sm:$0xff] %v10897_v12  ;;  %4636 = vmatpush1.msra.mxu0 %v13810_v40  ;;  %v13814_v17 = vand.u32 4294901760, %v13813_v48  ;;  %v10916_v15 = vsub.f32 %v198_v28, %v10881_v41  ;;  %vm7600_vm13 = vcmp.ge.f32.partialorder %v7568_v62, 0.3  ;;  %4787 = vmatpush1.msra.mxu1 %v13816_v18  ;;  %v12986_v25 = vand.u32 4294901760, %v10887_v43  ;;  %v166_v5 = vld [vmem:[#allocation2 + $0x358] sm:$0xff] }
 0x298   :  { %13811 = vst [vmem:[#allocation37_spill] sm:$0xff] %v10904_v42  ;;  %v7663_v23 = vsel %vm7599_vm12, %v7631_v4, 0.0  ;;  %v7632_v59 = vmul.f32 1.4285715, %v3025_v6  ;;  %v10923_v8 = vsub.f32 %v197_v7, %v10889_v16  ;;  %v13818_v40 = vld [vmem:[#allocation48_spill] sm:$0xff]  ;;  %v13820_v28 = vmov 1.0   ;;  %4959 = vmatprep.subr.mxu1 %v4958_v61  ;;  %4709 = vmatprep.mubr.f32.mxu0 %v13214_v57 }
 0x299   :  { %4640 = vmatprep.subr.mxu0 %v13814_v17  ;;  %13815 = vst [vmem:[#allocation45_spill] sm:$0xff] %v10916_v15  ;;  %v13819_v13 = vand.u32 4294901760, %v13818_v40  ;;  %7755 = vmatmul.mubr.msk.f32.vlgmr.msra.gmra.mxu1 %vm8220_vm0, %v13820_v28  ;;  %v4988_v17 = vand.u32 4294901760, %v10838_v38  ;;  %v10934_v18 = vsub.f32 %v10841_v53, %v12982_v11  ;;  %v12987_v56 = vand.u32 4294901760, %v10897_v12  ;;  %7695 = vst [vmem:[#allocation7 + $0xa0] sm:$0xff] %v7663_v23  ;;  %v165_v4 = vld [vmem:[#allocation2 + $0x350] sm:$0xff] }
 0x29a   :  { %13817 = vst [vmem:[#allocation39_spill] sm:$0xff] %v10923_v8  ;;  %v10937_v7 = vand.u32 4294901760, %v182_v9  ;;  %v13822_v6 = vld [vmem:[#allocation51_spill] sm:$0xff]  ;;  %v10946_v38 = vsub.f32 %v10864_v29, %v12984_v20  ;;  %v7664_v11 = vsel %vm7600_vm13, %v7632_v59, 0.0  ;;  %v10950_v0 = vand.u32 4294901760, %v181_v36  ;;  %v150_v23 = vld [vmem:[#allocation2 + $0x2d8] sm:$0xff]  ;;  %4965 = vmatpush1.msra.mxu1 %v4964_v39  ;;  %4827 = vmatprep.mubr.f32.mxu1 %v13214_v57 }
 0x29b   :  { %4644 = vmatpush1.msra.mxu0 %v13819_v13  ;;  %v13823_v40 = vand.u32 4294901760, %v13822_v6  ;;  %v13825_v61 = vand.u32 4294901760, %v13824_v52  ;;  %v4994_v6 = vand.u32 4294901760, %v10855_v58  ;;  %7696 = vst [vmem:[#allocation7 + $0xa8] sm:$0xff] %v7664_v11  ;;  %v10963_v62 = vand.u32 4294901760, %v166_v5  ;;  %v149_v59 = vld [vmem:[#allocation2 + $0x2d0] sm:$0xff] }
 0x29c   :  { %v13826_v13 = vand.u32 4294901760, %v10782_v24  ;;  %v13828_v39 = vand.u32 4294901760, %v13827_v45  ;;  %v5000_v52 = vand.u32 4294901760, %v10912_v19  ;;  %v10973_v58 = vsub.f32 %v10887_v43, %v12986_v25  ;;  %v134_v11 = vld [vmem:[#allocation2 + $0x258] sm:$0xff]  ;;  %v133_v25 = vld [vmem:[#allocation2 + $0x250] sm:$0xff] }
 0x29d   :  { %4648 = vmatprep.subr.mxu0 %v13823_v40  ;;  %v10960_v40 = vsub.f32 %v10879_v49, %v12985_v27  ;;  %v10976_v27 = vand.u32 4294901760, %v165_v4  ;;  %v13829_v24 = vand.u32 4294901760, %v10793_v34  ;;  %v10985_v19 = vsub.f32 %v10897_v12, %v12987_v56  ;;  %7756 = vmatmul.mubr.msk.f32.gmra.mxu1 %vm8236_vm1, %v13820_v28  ;;  %v118_v12 = vld [vmem:[#allocation2 + $0x1d8] sm:$0xff] }
 0x29e   :  { %4652 = vmatpush1.msra.mxu0 %v13825_v61  ;;  %4971 = vmatprep.subr.mxu1 %v13826_v13  ;;  %v5006_v13 = vand.u32 4294901760, %v10934_v18  ;;  %v10988_v45 = vsub.f32 %v182_v9, %v10937_v7  ;;  %v13831_v61 = vld [vmem:[#allocation49_spill] sm:$0xff]  ;;  %v5012_v34 = vand.u32 4294901760, %v10946_v38  ;;  %v13834_v18 = vand.u32 4294901760, %v10904_v42  ;;  %v13842_v53 = vld [vmem:[#allocation54_spill] sm:$0xff] }
 0x29f   :  { %4656 = vmatprep.subr.mxu0 %v13828_v39  ;;  %4977 = vmatpush1.msra.mxu1 %v13829_v24  ;;  %v10990_v39 = vand.u32 4294901760, %v150_v23  ;;  %v13832_v20 = vand.u32 4294901760, %v13831_v61  ;;  %v11004_v9 = vsub.f32 %v181_v36, %v10950_v0  ;;  %v11006_v56 = vand.u32 4294901760, %v149_v59 }
 0x2a0   :  { %13830 = vst [vmem:[#allocation18_spill] sm:$0xff] %v10988_v45  ;;  %v11001_v24 = vsub.f32 %v10904_v42, %v13834_v18  ;;  %v13836_v61 = vand.u32 4294901760, %v10803_v47  ;;  %v5018_v49 = vand.u32 4294901760, %v10960_v40  ;;  %v13839_v38 = vand.u32 4294901760, %v10916_v15  ;;  %v117_v42 = vld [vmem:[#allocation2 + $0x1d0] sm:$0xff]  ;;  %5178 = vmatprep.mubr.f32.mxu1 %v13214_v57 }
 0x2a1   :  { %4660 = vmatpush1.msra.mxu0 %v13832_v20  ;;  %13835 = vst [vmem:[#allocation43_spill] sm:$0xff] %v11004_v9  ;;  %v13837_v20 = vld [vmem:[#allocation53_spill] sm:$0xff]  ;;  %v11019_v18 = vsub.f32 %v166_v5, %v10963_v62  ;;  %v11021_v36 = vand.u32 4294901760, %v134_v11  ;;  %v13843_v47 = vand.u32 4294901760, %v13842_v53  ;;  %v102_v5 = vld [vmem:[#allocation2 + $0x158] sm:$0xff]  ;;  %v5030_v53 = vand.u32 4294901760, %v10985_v19  ;;  %v11252_v54 = vpop.f32.mrf.mxu1 }
 0x2a2   :  { %4983 = vmatprep.subr.mxu1 %v13836_v61  ;;  %v13838_v43 = vand.u32 4294901760, %v13837_v20  ;;  %v11016_v29 = vsub.f32 %v10916_v15, %v13839_v38  ;;  %v5024_v61 = vand.u32 4294901760, %v10973_v58  ;;  %v11032_v20 = vsub.f32 %v165_v4, %v10976_v27  ;;  %v13847_v15 = vld [vmem:[#allocation11_spill] sm:$0xff]  ;;  %v13849_v4 = vld [vmem:[#allocation12_spill] sm:$0xff]  ;;  %v86_v19 = vld [vmem:[#allocation2 + $0xd8] sm:$0xff] }
 0x2a3   :  { %13840 = vst [vmem:[#allocation26_spill] sm:$0xff] %v11019_v18  ;;  %13841 = vst [vmem:[#allocation16_spill] sm:$0xff] %v11021_v36  ;;  %4989 = vmatpush1.msra.mxu1 %v4988_v17  ;;  %v11034_v38 = vand.u32 4294901760, %v133_v25  ;;  %v13848_v44 = vand.u32 4294901760, %v13847_v15  ;;  %v13018_v17 = vand.u32 4294901760, %v10988_v45  ;;  %v11041_v58 = vsub.f32 %v150_v23, %v10990_v39 }
 0x2a4   :  { %4664 = vmatprep.subr.mxu0 %v13838_v43  ;;  %v13844_v43 = vand.u32 4294901760, %v10923_v8  ;;  %13845 = vst [vmem:[#allocation38_spill] sm:$0xff] %v11032_v20  ;;  %4995 = vmatprep.subr.mxu1 %v4994_v6  ;;  %v5036_v26 = vand.u32 4294901760, %v11001_v24  ;;  %v11052_v15 = vand.u32 4294901760, %v117_v42  ;;  %v5042_v23 = vand.u32 4294901760, %v11016_v29  ;;  %v85_v24 = vld [vmem:[#allocation2 + $0xd0] sm:$0xff] }
 0x2a5   :  { %4668 = vmatpush1.msra.mxu0 %v13843_v47  ;;  %13846 = vst [vmem:[#allocation42_spill] sm:$0xff] %v11034_v38  ;;  %v11043_v47 = vand.u32 4294901760, %v118_v12  ;;  %5001 = vmatpush1.msra.mxu1 %v5000_v52  ;;  %v11069_v29 = vsub.f32 %v133_v25, %v11034_v38  ;;  %v5053_v14 = vsub.f32 %v10988_v45, %v13018_v17  ;;  %v13857_v25 = vand.u32 4294901760, %v11004_v9 }
 0x2a6   :  { %v11029_v40 = vsub.f32 %v10923_v8, %v13844_v43  ;;  %4672 = vmatprep.subr.mxu0 %v13848_v44  ;;  %v101_v43 = vld [vmem:[#allocation2 + $0x150] sm:$0xff]  ;;  %v13850_v8 = vand.u32 4294901760, %v13849_v4  ;;  %v11050_v44 = vsub.f32 %v149_v59, %v11006_v56  ;;  %5007 = vmatprep.subr.mxu1 %v5006_v13  ;;  %v11058_v4 = vsub.f32 %v134_v11, %v11021_v36  ;;  %v70_v11 = vld [vmem:[#allocation2 + $0x58] sm:$0xff] }
 0x2a7   :  { %v13853_v59 = vld [vmem:[#allocation13_spill] sm:$0xff]  ;;  %13854 = vst [vmem:[#allocation47_spill] sm:$0xff] %v11069_v29  ;;  %v11071_v52 = vand.u32 4294901760, %v101_v43  ;;  %5013 = vmatpush1.msra.mxu1 %v5012_v34  ;;  %v11079_v21 = vsub.f32 %v118_v12, %v11043_v47  ;;  %v5059_v34 = vsub.f32 %v11004_v9, %v13857_v25  ;;  %v11089_v63 = vsub.f32 %v117_v42, %v11052_v15  ;;  %v13898_v48 = vld [vmem:[#allocation18_spill] sm:$0xff] }
 0x2a8   :  { %4676 = vmatpush1.msra.mxu0 %v13850_v8  ;;  %13851 = vst [vmem:[#allocation40_spill] sm:$0xff] %v11050_v44  ;;  %13852 = vst [vmem:[#allocation46_spill] sm:$0xff] %v11058_v4  ;;  %v11060_v8 = vand.u32 4294901760, %v102_v5  ;;  %v5048_v6 = vand.u32 4294901760, %v11029_v40  ;;  %v11081_v40 = vand.u32 4294901760, %v86_v19  ;;  %v69_v13 = vld [vmem:[#allocation2 + $0x50] sm:$0xff]  ;;  %5019 = vmatprep.subr.mxu1 %v5018_v49 }
 0x2a9   :  { %7753 = vmatmul.mubr.msk.f32.vlgmr.msra.gmra.mxu0 %vm8220_vm0, %v13820_v28  ;;  %4836 = vmatprep.subr.mxu0 %v13853_v59  ;;  %13855 = vst [vmem:[#allocation52_spill] sm:$0xff] %v11079_v21  ;;  %13858 = vst [vmem:[#allocation51_spill] sm:$0xff] %v11089_v63  ;;  %v11091_v17 = vand.u32 4294901760, %v85_v24  ;;  %v13859_v12 = vand.u32 4294901760, %v11019_v18  ;;  %v11101_v25 = vand.u32 4294901760, %v70_v11  ;;  %v13862_v42 = vand.u32 4294901760, %v11032_v20 }
 0x2aa   :  { %4838 = vmatpush1.msra.mxu0 %v10686_v60  ;;  %13856 = vst [vmem:[#allocation48_spill] sm:$0xff] %v11081_v40  ;;  %5025 = vmatpush1.msra.mxu1 %v5024_v61  ;;  %v11099_v45 = vsub.f32 %v102_v5, %v11060_v8  ;;  %v11109_v9 = vsub.f32 %v101_v43, %v11071_v52  ;;  %v5054_v5 = vand.u32 4294901760, %v5053_v14  ;;  %v5060_v43 = vand.u32 4294901760, %v5059_v34 }
 0x2ab   :  { %4840 = vmatprep.subr.mxu0 %v10692_v32  ;;  %4716 = vmatprep.mubr.f32.mxu0 %v13214_v57  ;;  %v5065_v49 = vsub.f32 %v11019_v18, %v13859_v12  ;;  %13861 = vst [vmem:[#allocation44_spill] sm:$0xff] %v11101_v25  ;;  %v5071_v61 = vsub.f32 %v11032_v20, %v13862_v42  ;;  %v11111_v12 = vand.u32 4294901760, %v69_v13  ;;  %v13867_v20 = vand.u32 4294901760, %v11050_v44 }
 0x2ac   :  { %13860 = vst [vmem:[#allocation50_spill] sm:$0xff] %v11099_v45  ;;  %4842 = vmatpush1.msra.mxu0 %v10696_v33  ;;  %5031 = vmatprep.subr.mxu1 %v5030_v53  ;;  %13863 = vst [vmem:[#allocation49_spill] sm:$0xff] %v11109_v9  ;;  %v13865_v53 = vand.u32 4294901760, %v11041_v58  ;;  %v11122_v50 = vsub.f32 %v86_v19, %v11081_v40  ;;  %v11130_v14 = vsub.f32 %v85_v24, %v11091_v17 }
 0x2ad   :  { %13864 = vst [vmem:[#allocation53_spill] sm:$0xff] %v11111_v12  ;;  %7754 = vmatmul.mubr.msk.f32.gmra.mxu0 %vm8236_vm1, %v13820_v28  ;;  %4844 = vmatprep.subr.mxu0 %v10703_v22  ;;  %v5083_v18 = vsub.f32 %v11050_v44, %v13867_v20  ;;  %v13869_v19 = vand.u32 4294901760, %v11058_v4  ;;  %v11138_v34 = vsub.f32 %v70_v11, %v11101_v25  ;;  %v5072_v20 = vand.u32 4294901760, %v5071_v61 }
 0x2ae   :  { %v5077_v1 = vsub.f32 %v11041_v58, %v13865_v53  ;;  %13866 = vst [vmem:[#allocation54_spill] sm:$0xff] %v11122_v50  ;;  %5037 = vmatpush1.msra.mxu1 %v5036_v26  ;;  %4846 = vmatpush1.msra.mxu0 %v10731_v46  ;;  %13868 = vst [vmem:[#allocation11_spill] sm:$0xff] %v11130_v14  ;;  %v5066_v53 = vand.u32 4294901760, %v5065_v49  ;;  %v13871_v24 = vand.u32 4294901760, %v11069_v29  ;;  %v13873_v11 = vand.u32 4294901760, %v11079_v21 }
 0x2af   :  { %5043 = vmatprep.subr.mxu1 %v5042_v23  ;;  %4848 = vmatprep.subr.mxu0 %v10742_v30  ;;  %v5089_v26 = vsub.f32 %v11058_v4, %v13869_v19  ;;  %13870 = vst [vmem:[#allocation12_spill] sm:$0xff] %v11138_v34  ;;  %v11146_v49 = vsub.f32 %v69_v13, %v11111_v12  ;;  %v5084_v61 = vand.u32 4294901760, %v5083_v18 }
 0x2b0   :  { %5049 = vmatpush1.msra.mxu1 %v5048_v6  ;;  %4850 = vmatpush1.msra.mxu0 %v10774_v37  ;;  %v5095_v23 = vsub.f32 %v11069_v29, %v13871_v24  ;;  %v5078_v19 = vand.u32 4294901760, %v5077_v1  ;;  %v5101_v6 = vsub.f32 %v11079_v21, %v13873_v11  ;;  %v13874_v24 = vand.u32 4294901760, %v11089_v63 }
 0x2b1   :  { %13872 = vst [vmem:[#allocation13_spill] sm:$0xff] %v11146_v49  ;;  %5055 = vmatprep.subr.mxu1 %v5054_v5  ;;  %4852 = vmatprep.subr.mxu0 %v10806_v31  ;;  %v5090_v1 = vand.u32 4294901760, %v5089_v26  ;;  %v13875_v5 = vand.u32 4294901760, %v11099_v45  ;;  %v13029_v13 = vand.u32 4294901760, %v11146_v49  ;;  %v13877_v26 = vand.u32 4294901760, %v11122_v50 }
 0x2b2   :  { %5061 = vmatpush1.msra.mxu1 %v5060_v43  ;;  %4854 = vmatpush1.msra.mxu0 %v10828_v55  ;;  %v5107_v51 = vsub.f32 %v11089_v63, %v13874_v24  ;;  %v5096_v18 = vand.u32 4294901760, %v5095_v23  ;;  %v13876_v43 = vand.u32 4294901760, %v11109_v9  ;;  %v13878_v23 = vand.u32 4294901760, %v11130_v14 }
 0x2b3   :  { %5067 = vmatprep.subr.mxu1 %v5066_v53  ;;  %4856 = vmatprep.subr.mxu0 %v10847_v10  ;;  %v5113_v11 = vsub.f32 %v11099_v45, %v13875_v5  ;;  %v5102_v53 = vand.u32 4294901760, %v5101_v6  ;;  %v5125_v5 = vsub.f32 %v11122_v50, %v13877_v26 }
 0x2b4   :  { %5073 = vmatpush1.msra.mxu1 %v5072_v20  ;;  %4858 = vmatpush1.msra.mxu0 %v10857_v35  ;;  %v5119_v24 = vsub.f32 %v11109_v9, %v13876_v43  ;;  %v5108_v20 = vand.u32 4294901760, %v5107_v51  ;;  %v5131_v42 = vsub.f32 %v11130_v14, %v13878_v23  ;;  %v5143_v51 = vsub.f32 %v11146_v49, %v13029_v13  ;;  %v13885_v23 = vld [vmem:[#allocation35_spill] sm:$0xff]  ;;  %v13895_v13 = vld [vmem:[#allocation37_spill] sm:$0xff] }
 0x2b5   :  { %5079 = vmatprep.subr.mxu1 %v5078_v19  ;;  %4860 = vmatprep.subr.mxu0 %v10866_v2  ;;  %v5114_v43 = vand.u32 4294901760, %v5113_v11  ;;  %v13879_v19 = vand.u32 4294901760, %v11138_v34 }
 0x2b6   :  { %5085 = vmatpush1.msra.mxu1 %v5084_v61  ;;  %4862 = vmatpush1.msra.mxu0 %v10871_v3  ;;  %v5120_v26 = vand.u32 4294901760, %v5119_v24  ;;  %v5126_v61 = vand.u32 4294901760, %v5125_v5  ;;  %v13881_v24 = vld [vmem:[#allocation14_spill] sm:$0xff]  ;;  %v13883_v5 = vld [vmem:[#allocation21_spill] sm:$0xff] }
 0x2b7   :  { %5091 = vmatprep.subr.mxu1 %v5090_v1  ;;  %4864 = vmatprep.subr.mxu0 %v10881_v41  ;;  %v5137_v6 = vsub.f32 %v11138_v34, %v13879_v19  ;;  %v5132_v1 = vand.u32 4294901760, %v5131_v42  ;;  %v13880_v42 = vld [vmem:[#allocation33_spill] sm:$0xff]  ;;  %v13887_v19 = vld [vmem:[#allocation22_spill] sm:$0xff] }
 0x2b8   :  { %5097 = vmatpush1.msra.mxu1 %v5096_v18  ;;  %4866 = vmatpush1.msra.mxu0 %v10889_v16  ;;  %v5144_v18 = vand.u32 4294901760, %v5143_v51  ;;  %v13890_v51 = vld [vmem:[#allocation25_spill] sm:$0xff] }
 0x2b9   :  { %5103 = vmatprep.subr.mxu1 %v5102_v53  ;;  %4868 = vmatprep.subr.mxu0 %v10937_v7  ;;  %v5138_v11 = vand.u32 4294901760, %v5137_v6  ;;  %v13882_v53 = vld [vmem:[#allocation15_spill] sm:$0xff] }
 0x2ba   :  { %5109 = vmatpush1.msra.mxu1 %v5108_v20  ;;  %4870 = vmatpush1.msra.mxu0 %v10950_v0  ;;  %v13884_v20 = vld [vmem:[#allocation19_spill] sm:$0xff] }
 0x2bb   :  { %5115 = vmatprep.subr.mxu1 %v5114_v43  ;;  %4872 = vmatprep.subr.mxu0 %v10963_v62  ;;  %v13886_v43 = vld [vmem:[#allocation20_spill] sm:$0xff]  ;;  %v13888_v6 = vld [vmem:[#allocation23_spill] sm:$0xff] }
 0x2bc   :  { %5121 = vmatpush1.msra.mxu1 %v5120_v26  ;;  %4874 = vmatpush1.msra.mxu0 %v10976_v27  ;;  %v13889_v26 = vld [vmem:[#allocation24_spill] sm:$0xff] }
 0x2bd   :  { %5127 = vmatprep.subr.mxu1 %v5126_v61  ;;  %4876 = vmatprep.subr.mxu0 %v10990_v39  ;;  %v13891_v61 = vld [vmem:[#allocation27_spill] sm:$0xff] }
 0x2be   :  { %5133 = vmatpush1.msra.mxu1 %v5132_v1  ;;  %4878 = vmatpush1.msra.mxu0 %v11006_v56  ;;  %v13892_v1 = vld [vmem:[#allocation17_spill] sm:$0xff] }
 0x2bf   :  { %5139 = vmatprep.subr.mxu1 %v5138_v11  ;;  %4880 = vmatprep.subr.mxu0 %v11021_v36  ;;  %v13893_v11 = vld [vmem:[#allocation36_spill] sm:$0xff] }
 0x2c0   :  { %5145 = vmatpush1.msra.mxu1 %v5144_v18  ;;  %4882 = vmatpush1.msra.mxu0 %v11034_v38  ;;  %v13894_v18 = vld [vmem:[#allocation41_spill] sm:$0xff] }
 0x2c1   :  { %7757 = vmatmul.mubr.msk.f32.vlgmr.msra.gmra.mxu1 %vm8220_vm0, %v13820_v28  ;;  %5339 = vmatprep.subr.mxu1 %v13853_v59 }
 0x2c2   :  { %4884 = vmatprep.subr.mxu0 %v11043_v47  ;;  %5341 = vmatpush1.msra.mxu1 %v10686_v60 }
 0x2c3   :  { %4886 = vmatpush1.msra.mxu0 %v11052_v15  ;;  %5343 = vmatprep.subr.mxu1 %v10692_v32 }
 0x2c4   :  { %4888 = vmatprep.subr.mxu0 %v11060_v8  ;;  %5185 = vmatprep.mubr.f32.mxu1 %v13214_v57 }
 0x2c5   :  { %5345 = vmatpush1.msra.mxu1 %v10696_v33  ;;  %4890 = vmatpush1.msra.mxu0 %v11071_v52 }
 0x2c6   :  { %7758 = vmatmul.mubr.msk.f32.gmra.mxu1 %vm8236_vm1, %v13820_v28  ;;  %5347 = vmatprep.subr.mxu1 %v10703_v22  ;;  %v13899_v28 = vld [vmem:[#allocation43_spill] sm:$0xff] }
 0x2c7   :  { %4892 = vmatprep.subr.mxu0 %v11081_v40  ;;  %5349 = vmatpush1.msra.mxu1 %v10731_v46 }
 0x2c8   :  { %4894 = vmatpush1.msra.mxu0 %v11091_v17  ;;  %5351 = vmatprep.subr.mxu1 %v10742_v30 }
 0x2c9   :  { %4896 = vmatprep.subr.mxu0 %v11101_v25  ;;  %5353 = vmatpush1.msra.mxu1 %v10774_v37 }
 0x2ca   :  { %4898 = vmatpush1.msra.mxu0 %v11111_v12  ;;  %4931 = vmatprep.mubr.f32.mxu0 %v13214_v57 }
 0x2cb   :  { %5355 = vmatprep.subr.mxu1 %v10806_v31  ;;  %4937 = vmatmul.mubr.f32.vlgmr.msra.gmra.mxu0 %v13880_v42  ;;  %v13897_v42 = vld [vmem:[#allocation39_spill] sm:$0xff] }
 0x2cc   :  { %5195 = vmatprep.subr.mxu0 %v13881_v24  ;;  %5357 = vmatpush1.msra.mxu1 %v10828_v55 }
 0x2cd   :  { %5198 = vmatpush1.msra.mxu0 %v13882_v53  ;;  %5359 = vmatprep.subr.mxu1 %v10847_v10 }
 0x2ce   :  { %5201 = vmatprep.subr.mxu0 %v13883_v5  ;;  %5361 = vmatpush1.msra.mxu1 %v10857_v35 }
 0x2cf   :  { %4942 = vmatprep.mubr.f32.mxu0 %v13214_v57  ;;  %5204 = vmatpush1.msra.mxu0 %v13884_v20 }
 0x2d0   :  { %5363 = vmatprep.subr.mxu1 %v10866_v2  ;;  %4948 = vmatmul.mubr.f32.gmra.mxu0 %v13885_v23  ;;  %v13896_v23 = vld [vmem:[#allocation45_spill] sm:$0xff] }
 0x2d1   :  { %5207 = vmatprep.subr.mxu0 %v13886_v43  ;;  %5365 = vmatpush1.msra.mxu1 %v10871_v3 }
 0x2d2   :  { %5210 = vmatpush1.msra.mxu0 %v13887_v19  ;;  %5367 = vmatprep.subr.mxu1 %v10881_v41 }
 0x2d3   :  { %5213 = vmatprep.subr.mxu0 %v13888_v6  ;;  %5369 = vmatpush1.msra.mxu1 %v10889_v16 }
 0x2d4   :  { %5216 = vmatpush1.msra.mxu0 %v13889_v26  ;;  %5371 = vmatprep.subr.mxu1 %v10937_v7 }
 0x2d5   :  { %5219 = vmatprep.subr.mxu0 %v13890_v51  ;;  %5373 = vmatpush1.msra.mxu1 %v10950_v0 }
 0x2d6   :  { %5222 = vmatpush1.msra.mxu0 %v13891_v61  ;;  %5375 = vmatprep.subr.mxu1 %v10963_v62 }
 0x2d7   :  { %5225 = vmatprep.subr.mxu0 %v13892_v1  ;;  %5377 = vmatpush1.msra.mxu1 %v10976_v27 }
 0x2d8   :  { %5228 = vmatpush1.msra.mxu0 %v13893_v11  ;;  %5379 = vmatprep.subr.mxu1 %v10990_v39 }
 0x2d9   :  { %5231 = vmatprep.subr.mxu0 %v13894_v18  ;;  %5381 = vmatpush1.msra.mxu1 %v11006_v56 }
 0x2da   :  { %5234 = vmatpush1.msra.mxu0 %v13895_v13  ;;  %5383 = vmatprep.subr.mxu1 %v11021_v36  ;;  %v13900_v13 = vld [vmem:[#allocation26_spill] sm:$0xff]  ;;  %v11260_v36 = vpop.f32.mrf.mxu0 }
 0x2db   :  { %5237 = vmatprep.subr.mxu0 %v13896_v23  ;;  %5385 = vmatpush1.msra.mxu1 %v11034_v38  ;;  %v13901_v38 = vld [vmem:[#allocation38_spill] sm:$0xff] }
 0x2dc   :  { %5240 = vmatpush1.msra.mxu0 %v13897_v42  ;;  %5387 = vmatprep.subr.mxu1 %v11043_v47  ;;  %v11264_v42 = vpop.f32.mrf.mxu1 }
 0x2dd   :  { %5243 = vmatprep.subr.mxu0 %v13898_v48  ;;  %5389 = vmatpush1.msra.mxu1 %v11052_v15 }
 0x2de   :  { %5246 = vmatpush1.msra.mxu0 %v13899_v28  ;;  %5391 = vmatprep.subr.mxu1 %v11060_v8 }
 0x2df   :  { %5249 = vmatprep.subr.mxu0 %v13900_v13  ;;  %5393 = vmatpush1.msra.mxu1 %v11071_v52  ;;  %v11272_v13 = vpop.f32.mrf.mxu0 }
 0x2e0   :  { %5252 = vmatpush1.msra.mxu0 %v13901_v38  ;;  %5395 = vmatprep.subr.mxu1 %v11081_v40  ;;  %v11276_v38 = vpop.f32.mrf.mxu1  ;;  %v13902_v40 = vld [vmem:[#allocation31_spill] sm:$0xff] }
 0x2e1   :  { %5255 = vmatprep.subr.mxu0 %v11041_v58  ;;  %5397 = vmatpush1.msra.mxu1 %v11091_v17 }
 0x2e2   :  { %5258 = vmatpush1.msra.mxu0 %v11050_v44  ;;  %5399 = vmatprep.subr.mxu1 %v11101_v25  ;;  %v11284_v25 = vpop.f32.mrf.mxu0  ;;  %v11288_v44 = vpop.f32.mrf.mxu1 }
 0x2e3   :  { %5261 = vmatprep.subr.mxu0 %v11058_v4  ;;  %5401 = vmatpush1.msra.mxu1 %v11111_v12  ;;  %v312_v4 = vld [vmem:[#allocation2 + $0x7e8] sm:$0xff]  ;;  %v311_v12 = vld [vmem:[#allocation2 + $0x7e0] sm:$0xff] }
 0x2e4   :  { %5434 = vmatprep.mubr.f32.mxu1 %v13214_v57  ;;  %5264 = vmatpush1.msra.mxu0 %v11069_v29  ;;  %v11302_v29 = vpop.f32.mrf.mxu0 }
 0x2e5   :  { %5438 = vmatmul.mubr.f32.vlgmr.msra.gmra.mxu1 %v13902_v40  ;;  %5629 = vmatprep.subr.mxu1 %v13853_v59  ;;  %v296_v59 = vld [vmem:[#allocation2 + $0x768] sm:$0xff]  ;;  %v11294_v40 = vand.u32 4294901760, %v312_v4 }
 0x2e6   :  { %5267 = vmatprep.subr.mxu0 %v11079_v21  ;;  %5631 = vmatpush1.msra.mxu1 %v10686_v60  ;;  %v13903_v60 = vld [vmem:[#allocation34_spill] sm:$0xff]  ;;  %v11296_v21 = vpop.f32.mrf.mxu1 }
 0x2e7   :  { %5270 = vmatpush1.msra.mxu0 %v11089_v63  ;;  %5633 = vmatprep.subr.mxu1 %v10692_v32  ;;  %13904 = vst [vmem:[#allocation14_spill] sm:$0xff] %v11294_v40  ;;  %v295_v63 = vld [vmem:[#allocation2 + $0x760] sm:$0xff]  ;;  %v11300_v32 = vand.u32 4294901760, %v311_v12 }
 0x2e8   :  { %5273 = vmatprep.subr.mxu0 %v11099_v45  ;;  %5443 = vmatprep.mubr.f32.mxu1 %v13214_v57  ;;  %v280_v45 = vld [vmem:[#allocation2 + $0x6e8] sm:$0xff] }
 0x2e9   :  { %5635 = vmatpush1.msra.mxu1 %v10696_v33  ;;  %5276 = vmatpush1.msra.mxu0 %v11109_v9  ;;  %v11306_v33 = vand.u32 4294901760, %v296_v59  ;;  %v11317_v9 = vand.u32 4294901760, %v280_v45 }
 0x2ea   :  { %5447 = vmatmul.mubr.f32.gmra.mxu1 %v13903_v60  ;;  %5637 = vmatprep.subr.mxu1 %v10703_v22  ;;  %v11310_v60 = vand.u32 4294901760, %v295_v63  ;;  %v3517_v22 = vpop.f32.mrf.mxu0 }
 0x2eb   :  { %5279 = vmatprep.subr.mxu0 %v11122_v50  ;;  %5639 = vmatpush1.msra.mxu1 %v10731_v46  ;;  %v11315_v50 = vsub.f32 %v312_v4, %v11294_v40  ;;  %v11319_v46 = vpop.f32.mrf.mxu1  ;;  %v11330_v4 = vsub.f32 %v296_v59, %v11306_v33  ;;  %v13910_v40 = vand.u32 4294901760, %v13882_v53  ;;  %v11343_v59 = vsub.f32 %v280_v45, %v11317_v9  ;;  %v263_v45 = vld [vmem:[#allocation2 + $0x660] sm:$0xff] }
 0x2ec   :  { %5282 = vmatpush1.msra.mxu0 %v11130_v14  ;;  %5641 = vmatprep.subr.mxu1 %v10742_v30  ;;  %v11324_v30 = vsub.f32 %v311_v12, %v11300_v32  ;;  %v13907_v14 = vld [vmem:[#allocation29_spill] sm:$0xff]  ;;  %v3519_v12 = vpop.f32.mrf.mxu0  ;;  %v3374_v53 = vadd.f32 %v11252_v54, %v11260_v36 }
 0x2ed   :  { %5285 = vmatprep.subr.mxu0 %v11138_v34  ;;  %5643 = vmatpush1.msra.mxu1 %v10774_v37  ;;  %13905 = vst [vmem:[#allocation15_spill] sm:$0xff] %v11315_v50  ;;  %v279_v34 = vld [vmem:[#allocation2 + $0x6e0] sm:$0xff]  ;;  %v13908_v37 = vand.u32 4294901760, %v13881_v24  ;;  %13909 = vst [vmem:[#allocation19_spill] sm:$0xff] %v11330_v4  ;;  %v13051_v54 = vand.u32 4294901760, %v11343_v59 }
 0x2ee   :  { %5288 = vmatpush1.msra.mxu0 %v11146_v49  ;;  %5321 = vmatprep.mubr.f32.mxu0 %v13214_v57  ;;  %13906 = vst [vmem:[#allocation21_spill] sm:$0xff] %v11324_v30  ;;  %v11336_v49 = vsub.f32 %v295_v63, %v11310_v60  ;;  %13913 = vst [vmem:[#allocation22_spill] sm:$0xff] %v11343_v59  ;;  %v3525_v24 = vpop.f32.mrf.mxu0  ;;  %v3518_v63 = vadd.f32 %v3517_v22, %v3374_v53  ;;  %v13924_v22 = vand.u32 4294901760, %v13890_v51 }
 0x2ef   :  { %5645 = vmatprep.subr.mxu1 %v10806_v31  ;;  %5324 = vmatmul.mubr.f32.vlgmr.msra.gmra.mxu0 %v13907_v14  ;;  %v264_v31 = vld [vmem:[#allocation2 + $0x668] sm:$0xff]  ;;  %v13912_v14 = vand.u32 4294901760, %v13883_v5 }
 0x2f0   :  { %5456 = vmatprep.subr.mxu0 %v13908_v37  ;;  %5647 = vmatpush1.msra.mxu1 %v10828_v55  ;;  %13911 = vst [vmem:[#allocation20_spill] sm:$0xff] %v11336_v49  ;;  %v11345_v37 = vand.u32 4294901760, %v279_v34  ;;  %v11347_v55 = vpop.f32.mrf.mxu1  ;;  %v13915_v5 = vld [vmem:[#allocation32_spill] sm:$0xff] }
 0x2f1   :  { %5460 = vmatpush1.msra.mxu0 %v13910_v40  ;;  %5649 = vmatprep.subr.mxu1 %v10847_v10  ;;  %v13914_v10 = vand.u32 4294901760, %v13884_v20  ;;  %v13052_v40 = vand.u32 4294901760, %v11330_v4  ;;  %v13918_v20 = vand.u32 4294901760, %v11315_v50 }
 0x2f2   :  { %5464 = vmatprep.subr.mxu0 %v13912_v14  ;;  %5651 = vmatpush1.msra.mxu1 %v10857_v35  ;;  %v11356_v14 = vand.u32 4294901760, %v264_v31  ;;  %v13916_v35 = vand.u32 4294901760, %v13886_v43  ;;  %v11374_v36 = vsub.f32 %v279_v34, %v11345_v37  ;;  %v3376_v43 = vadd.f32 %v11264_v42, %v11272_v13  ;;  %v248_v34 = vld [vmem:[#allocation2 + $0x5e8] sm:$0xff] }
 0x2f3   :  { %5329 = vmatprep.mubr.f32.mxu0 %v13214_v57  ;;  %5468 = vmatpush1.msra.mxu0 %v13914_v10  ;;  %v11370_v10 = vsub.f32 %v11315_v50, %v13918_v20  ;;  %v11388_v20 = vand.u32 4294901760, %v263_v45  ;;  %v13922_v13 = vand.u32 4294901760, %v13889_v26 }
 0x2f4   :  { %5653 = vmatprep.subr.mxu1 %v10866_v2  ;;  %5332 = vmatmul.mubr.f32.gmra.mxu0 %v13915_v5  ;;  %v13917_v2 = vand.u32 4294901760, %v13887_v19  ;;  %13919 = vst [vmem:[#allocation23_spill] sm:$0xff] %v11374_v36  ;;  %v13921_v19 = vand.u32 4294901760, %v11324_v30  ;;  %v11399_v42 = vsub.f32 %v264_v31, %v11356_v14  ;;  %v13926_v31 = vand.u32 4294901760, %v13891_v61 }
 0x2f5   :  { %5472 = vmatprep.subr.mxu0 %v13916_v35  ;;  %5655 = vmatpush1.msra.mxu1 %v10871_v3  ;;  %v11378_v35 = vpop.f32.mrf.mxu1  ;;  %v13920_v3 = vand.u32 4294901760, %v13888_v6  ;;  %v3520_v6 = vadd.f32 %v3519_v12, %v3376_v43  ;;  %v13053_v51 = vand.u32 4294901760, %v11374_v36  ;;  %v11420_v12 = vand.u32 4294901760, %v248_v34  ;;  %v247_v43 = vld [vmem:[#allocation2 + $0x5e0] sm:$0xff] }
 0x2f6   :  { %5476 = vmatpush1.msra.mxu0 %v13917_v2  ;;  %5657 = vmatprep.subr.mxu1 %v10881_v41  ;;  %v11386_v2 = vsub.f32 %v11324_v30, %v13921_v19  ;;  %v11396_v41 = vsub.f32 %v11330_v4, %v13052_v40  ;;  %13923 = vst [vmem:[#allocation24_spill] sm:$0xff] %v11399_v42  ;;  %v3527_v19 = vpop.f32.mrf.mxu0 }
 0x2f7   :  { %5480 = vmatprep.subr.mxu0 %v13920_v3  ;;  %5659 = vmatpush1.msra.mxu1 %v10889_v16  ;;  %v3919_v53 = vpop.f32.mrf.mxu1  ;;  %v13925_v16 = vand.u32 4294901760, %v11336_v49  ;;  %v3381_v3 = vadd.f32 %v11276_v38, %v11284_v25  ;;  %v13927_v38 = vand.u32 4294901760, %v13892_v1  ;;  %v11428_v61 = vsub.f32 %v263_v45, %v11388_v20  ;;  %v199_v1 = vld [vmem:[#allocation2 + $0x460] sm:$0xff] }
 0x2f8   :  { %5484 = vmatpush1.msra.mxu0 %v13922_v13  ;;  %5661 = vmatprep.subr.mxu1 %v10937_v7  ;;  %v11417_v7 = vsub.f32 %v11343_v59, %v13051_v54  ;;  %v5868_v25 = vand.u32 4294901760, %v11386_v2  ;;  %v3632_v13 = vadd.f32 %v11296_v21, %v3518_v63  ;;  %v232_v54 = vld [vmem:[#allocation2 + $0x568] sm:$0xff]  ;;  %v13930_v45 = vand.u32 4294901760, %v13894_v18  ;;  %v231_v63 = vld [vmem:[#allocation2 + $0x560] sm:$0xff]  ;;  %v13969_v2 = vld [vmem:[#allocation50_spill] sm:$0xff] }
 0x2f9   :  { %5488 = vmatprep.subr.mxu0 %v13924_v22  ;;  %v11407_v26 = vsub.f32 %v11336_v49, %v13925_v16  ;;  %5663 = vmatpush1.msra.mxu1 %v10950_v0  ;;  %v5862_v0 = vand.u32 4294901760, %v11370_v10  ;;  %13928 = vst [vmem:[#allocation25_spill] sm:$0xff] %v11428_v61  ;;  %v3383_v22 = vadd.f32 %v11288_v44, %v11302_v29  ;;  %v3921_v21 = vpop.f32.mrf.mxu1  ;;  %v13937_v44 = vld [vmem:[#allocation39_spill] sm:$0xff] }
 0x2fa   :  { %5492 = vmatpush1.msra.mxu0 %v13926_v31  ;;  %5665 = vmatprep.subr.mxu1 %v10963_v62  ;;  %v3526_v16 = vadd.f32 %v3525_v24, %v3381_v3  ;;  %v13929_v62 = vand.u32 4294901760, %v13893_v11  ;;  %v13054_v31 = vand.u32 4294901760, %v11399_v42  ;;  %v7553_v24 = vld [vmem:[#allocation5 + $0x30] sm:$0xff]  ;;  %v3634_v11 = vadd.f32 %v11319_v46, %v3520_v6  ;;  %v13934_v46 = vld [vmem:[#allocation16_spill] sm:$0xff]  ;;  %v13966_v10 = vld [vmem:[#allocation51_spill] sm:$0xff] }
 0x2fb   :  { %5496 = vmatprep.subr.mxu0 %v13927_v38  ;;  %5667 = vmatpush1.msra.mxu1 %v10976_v27  ;;  %v3808_v38 = vpop.f32.mrf.mxu0  ;;  %v11442_v27 = vand.u32 4294901760, %v247_v43  ;;  %v3528_v3 = vadd.f32 %v3527_v19, %v3383_v22  ;;  %v11452_v18 = vsub.f32 %v11374_v36, %v13053_v51  ;;  %v13935_v6 = vand.u32 4294901760, %v13896_v23  ;;  %v13936_v51 = vld [vmem:[#allocation42_spill] sm:$0xff] }
 0x2fc   :  { %5500 = vmatpush1.msra.mxu0 %v13929_v62  ;;  %5669 = vmatprep.subr.mxu1 %v10990_v39  ;;  %v3809_v29 = vadd.f32 %v3808_v38, %v3632_v13  ;;  %v13931_v62 = vld [vmem:[#allocation37_spill] sm:$0xff]  ;;  %v11455_v13 = vsub.f32 %v248_v34, %v11420_v12  ;;  %v11461_v19 = vand.u32 4294901760, %v232_v54  ;;  %v215_v39 = vld [vmem:[#allocation2 + $0x4e0] sm:$0xff]  ;;  %v13938_v34 = vand.u32 4294901760, %v13937_v44 }
 0x2fd   :  { %5504 = vmatprep.subr.mxu0 %v13930_v45  ;;  %5671 = vmatpush1.msra.mxu1 %v11006_v56  ;;  %v13932_v40 = vand.u32 4294901760, %v13931_v62  ;;  %v3810_v38 = vpop.f32.mrf.mxu0  ;;  %v216_v45 = vld [vmem:[#allocation2 + $0x4e8] sm:$0xff]  ;;  %v13056_v56 = vand.u32 4294901760, %v11428_v61  ;;  %v7554_v62 = vld [vmem:[#allocation5 + $0x38] sm:$0xff]  ;;  %vm7585_vm14 = vcmp.ge.f32.partialorder %v7553_v24, 0.3  ;;  %v11478_v44 = vsub.f32 %v247_v43, %v11442_v27 }
 0x2fe   :  { %13933 = vst [vmem:[#allocation27_spill] sm:$0xff] %v11455_v13  ;;  %5673 = vmatprep.subr.mxu1 %v13934_v46  ;;  %v3811_v22 = vadd.f32 %v3810_v38, %v3634_v11  ;;  %v11469_v46 = vsub.f32 %v11399_v42, %v13054_v31  ;;  %v11471_v23 = vand.u32 4294901760, %v231_v63  ;;  %v13939_v11 = vand.u32 4294901760, %v13898_v48  ;;  %v13942_v43 = vld [vmem:[#allocation26_spill] sm:$0xff]  ;;  %5724 = vmatprep.mubr.f32.mxu1 %v13214_v57 }
 0x2ff   :  { %5508 = vmatpush1.msra.mxu0 %v13932_v40  ;;  %v3920_v40 = vadd.f32 %v3919_v53, %v3809_v29  ;;  %5675 = vmatpush1.msra.mxu1 %v13936_v51  ;;  %v3641_v53 = vadd.f32 %v11347_v55, %v3526_v16  ;;  %v200_v29 = vld [vmem:[#allocation2 + $0x468] sm:$0xff]  ;;  %v3926_v51 = vpop.f32.mrf.mxu1  ;;  %13940 = vst [vmem:[#allocation17_spill] sm:$0xff] %v11478_v44  ;;  %v3815_v31 = vpop.f32.mrf.mxu0  ;;  %v13941_v55 = vand.u32 4294901760, %v13899_v28  ;;  %vm7586_vm15 = vcmp.ge.f32.partialorder %v7554_v62, 0.3  ;;  %v7569_v16 = vld [vmem:[#allocation5 + $0xb0] sm:$0xff] }
 0x300   :  { %5512 = vmatprep.subr.mxu0 %v13935_v6  ;;  %5677 = vmatprep.subr.mxu1 %v11043_v47  ;;  %v3922_v6 = vadd.f32 %v3921_v21, %v3811_v22  ;;  %v11485_v48 = vand.u32 4294901760, %v215_v39  ;;  %v13943_v21 = vand.u32 4294901760, %v13942_v43  ;;  %v11495_v28 = vand.u32 4294901760, %v200_v29  ;;  %v7570_v24 = vld [vmem:[#allocation5 + $0xb8] sm:$0xff]  ;;  %v13954_v62 = vld [vmem:[#allocation44_spill] sm:$0xff] }
 0x301   :  { %5516 = vmatpush1.msra.mxu0 %v13938_v34  ;;  %v7617_v38 = vmul.f32 1.4285715, %v3920_v40  ;;  %v11480_v34 = vand.u32 4294901760, %v216_v45  ;;  %5679 = vmatpush1.msra.mxu1 %v11052_v15  ;;  %v3816_v47 = vadd.f32 %v3815_v31, %v3641_v53  ;;  %v3643_v40 = vadd.f32 %v11378_v35, %v3528_v3  ;;  %v13945_v31 = vld [vmem:[#allocation38_spill] sm:$0xff]  ;;  %v3928_v43 = vpop.f32.mrf.mxu1 }
 0x302   :  { %5520 = vmatprep.subr.mxu0 %v13939_v11  ;;  %5681 = vmatprep.subr.mxu1 %v11060_v8  ;;  %v11493_v11 = vsub.f32 %v232_v54, %v11461_v19  ;;  %v7618_v15 = vmul.f32 1.4285715, %v3922_v6  ;;  %v13946_v53 = vand.u32 4294901760, %v13945_v31  ;;  %v11501_v8 = vsub.f32 %v231_v63, %v11471_v23  ;;  %v13948_v54 = vld [vmem:[#allocation48_spill] sm:$0xff] }
 0x303   :  { %5524 = vmatpush1.msra.mxu0 %v13941_v55  ;;  %v7649_v22 = vsel %vm7585_vm14, %v7617_v38, 0.0  ;;  %v3817_v55 = vpop.f32.mrf.mxu0  ;;  %5683 = vmatpush1.msra.mxu1 %v11071_v52  ;;  %v3927_v35 = vadd.f32 %v3926_v51, %v3816_v47  ;;  %v11503_v38 = vand.u32 4294901760, %v199_v1  ;;  %v13949_v6 = vand.u32 4294901760, %v11041_v58  ;;  %v13951_v63 = vld [vmem:[#allocation40_spill] sm:$0xff] }
 0x304   :  { %5528 = vmatprep.subr.mxu0 %v13943_v21  ;;  %13944 = vst [vmem:[#allocation36_spill] sm:$0xff] %v11493_v11  ;;  %7681 = vst [vmem:[#allocation7 + $0x30] sm:$0xff] %v7649_v22  ;;  %v3818_v3 = vadd.f32 %v3817_v55, %v3643_v40  ;;  %5685 = vmatprep.subr.mxu1 %v13948_v54  ;;  %v13055_v52 = vand.u32 4294901760, %v11455_v13  ;;  %v7650_v21 = vsel %vm7586_vm15, %v7618_v15, 0.0  ;;  %vm7601_vm2 = vcmp.ge.f32.partialorder %v7569_v16, 0.3 }
 0x305   :  { %5532 = vmatpush1.msra.mxu0 %v13946_v53  ;;  %13947 = vst [vmem:[#allocation41_spill] sm:$0xff] %v11501_v8  ;;  %v11511_v22 = vsub.f32 %v216_v45, %v11480_v34  ;;  %5687 = vmatpush1.msra.mxu1 %v11091_v17  ;;  %v13952_v51 = vand.u32 4294901760, %v13951_v63  ;;  %v13057_v47 = vand.u32 4294901760, %v11478_v44  ;;  %7682 = vst [vmem:[#allocation7 + $0x38] sm:$0xff] %v7650_v21  ;;  %v7633_v40 = vmul.f32 1.4285715, %v3927_v35 }
 0x306   :  { %5536 = vmatprep.subr.mxu0 %v13949_v6  ;;  %v11518_v58 = vsub.f32 %v215_v39, %v11485_v48  ;;  %v3929_v55 = vadd.f32 %v3928_v43, %v3818_v3  ;;  %v184_v31 = vld [vmem:[#allocation2 + $0x3e8] sm:$0xff]  ;;  %5689 = vmatprep.subr.mxu1 %v13954_v62  ;;  %v13955_v15 = vld [vmem:[#allocation46_spill] sm:$0xff]  ;;  %v11526_v17 = vsub.f32 %v11428_v61, %v13056_v56  ;;  %v13058_v53 = vand.u32 4294901760, %v11493_v11  ;;  %v183_v39 = vld [vmem:[#allocation2 + $0x3e0] sm:$0xff] }
 0x307   :  { %13950 = vst [vmem:[#allocation45_spill] sm:$0xff] %v11511_v22  ;;  %5540 = vmatpush1.msra.mxu0 %v13952_v51  ;;  %v13956_v45 = vand.u32 4294901760, %v13955_v15  ;;  %v11530_v54 = vsub.f32 %v200_v29, %v11495_v28  ;;  %vm7602_vm3 = vcmp.ge.f32.partialorder %v7570_v24, 0.3  ;;  %v13958_v35 = vld [vmem:[#allocation53_spill] sm:$0xff]  ;;  %v13059_v3 = vand.u32 4294901760, %v11501_v8  ;;  %5613 = vmatprep.mubr.f32.mxu0 %v13214_v57 }
 0x308   :  { %13953 = vst [vmem:[#allocation18_spill] sm:$0xff] %v11518_v58  ;;  %5691 = vmatpush1.msra.mxu1 %v13958_v35  ;;  %v7665_v6 = vsel %vm7601_vm2, %v7633_v40, 0.0  ;;  %v7634_v43 = vmul.f32 1.4285715, %v3929_v55  ;;  %v11537_v21 = vsub.f32 %v199_v1, %v11503_v38  ;;  %v168_v63 = vld [vmem:[#allocation2 + $0x368] sm:$0xff]  ;;  %v13960_v51 = vld [vmem:[#allocation47_spill] sm:$0xff]  ;;  %v11548_v35 = vsub.f32 %v11455_v13, %v13055_v52 }
 0x309   :  { %5544 = vmatprep.subr.mxu0 %v13956_v45  ;;  %13957 = vst [vmem:[#allocation43_spill] sm:$0xff] %v11530_v54  ;;  %v13961_v62 = vand.u32 4294901760, %v13960_v51  ;;  %v13962_v29 = vmov 1.0   ;;  %v5892_v45 = vand.u32 4294901760, %v11452_v18  ;;  %v13060_v16 = vand.u32 4294901760, %v11511_v22  ;;  %7697 = vst [vmem:[#allocation7 + $0xb0] sm:$0xff] %v7665_v6  ;;  %5863 = vmatprep.subr.mxu1 %v5862_v0 }
 0x30a   :  { %13959 = vst [vmem:[#allocation37_spill] sm:$0xff] %v11537_v21  ;;  %7761 = vmatmul.mubr.msk.f32.vlgmr.msra.gmra.mxu1 %vm8220_vm0, %v13962_v29  ;;  %v11551_v1 = vand.u32 4294901760, %v184_v31  ;;  %v167_v40 = vld [vmem:[#allocation2 + $0x360] sm:$0xff]  ;;  %v13964_v55 = vld [vmem:[#allocation52_spill] sm:$0xff]  ;;  %v11560_v18 = vsub.f32 %v11478_v44, %v13057_v47  ;;  %v7666_v52 = vsel %vm7602_vm3, %v7634_v43, 0.0  ;;  %v11564_v56 = vand.u32 4294901760, %v183_v39 }
 0x30b   :  { %5548 = vmatpush1.msra.mxu0 %v13961_v62  ;;  %v13965_v51 = vand.u32 4294901760, %v13964_v55  ;;  %v152_v6 = vld [vmem:[#allocation2 + $0x2e8] sm:$0xff]  ;;  %5869 = vmatpush1.msra.mxu1 %v5868_v25  ;;  %v13967_v0 = vand.u32 4294901760, %v13966_v10  ;;  %v5898_v55 = vand.u32 4294901760, %v11469_v46  ;;  %7698 = vst [vmem:[#allocation7 + $0xb8] sm:$0xff] %v7666_v52  ;;  %v11577_v24 = vand.u32 4294901760, %v168_v63 }
 0x30c   :  { %v151_v43 = vld [vmem:[#allocation2 + $0x2e0] sm:$0xff]  ;;  %v13968_v62 = vand.u32 4294901760, %v11396_v41  ;;  %v13970_v25 = vand.u32 4294901760, %v13969_v2  ;;  %v5904_v10 = vand.u32 4294901760, %v11526_v17  ;;  %v11587_v46 = vsub.f32 %v11501_v8, %v13059_v3  ;;  %v136_v52 = vld [vmem:[#allocation2 + $0x268] sm:$0xff]  ;;  %5731 = vmatprep.mubr.f32.mxu1 %v13214_v57 }
 0x30d   :  { %5552 = vmatprep.subr.mxu0 %v13965_v51  ;;  %v11574_v51 = vsub.f32 %v11493_v11, %v13058_v53  ;;  %v11590_v53 = vand.u32 4294901760, %v167_v40  ;;  %v13971_v41 = vand.u32 4294901760, %v11407_v26  ;;  %v11599_v17 = vsub.f32 %v11511_v22, %v13060_v16  ;;  %v135_v3 = vld [vmem:[#allocation2 + $0x260] sm:$0xff]  ;;  %v120_v22 = vld [vmem:[#allocation2 + $0x1e8] sm:$0xff] }
 0x30e   :  { %5556 = vmatpush1.msra.mxu0 %v13967_v0  ;;  %5875 = vmatprep.subr.mxu1 %v13968_v62  ;;  %v5910_v62 = vand.u32 4294901760, %v11548_v35  ;;  %v11602_v2 = vsub.f32 %v184_v31, %v11551_v1  ;;  %v13973_v0 = vld [vmem:[#allocation49_spill] sm:$0xff]  ;;  %v5916_v26 = vand.u32 4294901760, %v11560_v18  ;;  %v13976_v35 = vand.u32 4294901760, %v11518_v58  ;;  %v13984_v13 = vld [vmem:[#allocation11_spill] sm:$0xff] }
 0x30f   :  { %5560 = vmatprep.subr.mxu0 %v13970_v25  ;;  %5881 = vmatpush1.msra.mxu1 %v13971_v41  ;;  %v11604_v25 = vand.u32 4294901760, %v152_v6  ;;  %v13974_v47 = vand.u32 4294901760, %v13973_v0  ;;  %v11618_v31 = vsub.f32 %v183_v39, %v11564_v56  ;;  %v11620_v16 = vand.u32 4294901760, %v151_v43 }
 0x310   :  { %13972 = vst [vmem:[#allocation16_spill] sm:$0xff] %v11602_v2  ;;  %7762 = vmatmul.mubr.msk.f32.gmra.mxu1 %vm8236_vm1, %v13962_v29  ;;  %v11615_v41 = vsub.f32 %v11518_v58, %v13976_v35  ;;  %v13978_v0 = vand.u32 4294901760, %v11417_v7  ;;  %v5922_v11 = vand.u32 4294901760, %v11574_v51  ;;  %v13981_v18 = vand.u32 4294901760, %v11530_v54  ;;  %v119_v58 = vld [vmem:[#allocation2 + $0x1e0] sm:$0xff] }
 0x311   :  { %5564 = vmatpush1.msra.mxu0 %v13974_v47  ;;  %13977 = vst [vmem:[#allocation42_spill] sm:$0xff] %v11618_v31  ;;  %v13979_v47 = vld [vmem:[#allocation54_spill] sm:$0xff]  ;;  %v11633_v35 = vsub.f32 %v168_v63, %v11577_v24  ;;  %v11635_v39 = vand.u32 4294901760, %v136_v52  ;;  %v13985_v7 = vand.u32 4294901760, %v13984_v13  ;;  %v104_v63 = vld [vmem:[#allocation2 + $0x168] sm:$0xff]  ;;  %v5934_v13 = vand.u32 4294901760, %v11599_v17  ;;  %6082 = vmatprep.mubr.f32.mxu1 %v13214_v57  ;;  %v11866_v5 = vpop.f32.mrf.mxu1 }
 0x312   :  { %5887 = vmatprep.subr.mxu1 %v13978_v0  ;;  %v13980_v8 = vand.u32 4294901760, %v13979_v47  ;;  %v11630_v44 = vsub.f32 %v11530_v54, %v13981_v18  ;;  %v5928_v0 = vand.u32 4294901760, %v11587_v46  ;;  %v11646_v47 = vsub.f32 %v167_v40, %v11590_v53  ;;  %v13989_v54 = vld [vmem:[#allocation12_spill] sm:$0xff]  ;;  %v13991_v40 = vld [vmem:[#allocation13_spill] sm:$0xff] }
 0x313   :  { %13982 = vst [vmem:[#allocation39_spill] sm:$0xff] %v11633_v35  ;;  %13983 = vst [vmem:[#allocation26_spill] sm:$0xff] %v11635_v39  ;;  %5893 = vmatpush1.msra.mxu1 %v5892_v45  ;;  %v11648_v18 = vand.u32 4294901760, %v135_v3  ;;  %v13990_v61 = vand.u32 4294901760, %v13989_v54  ;;  %v13091_v45 = vand.u32 4294901760, %v11602_v2  ;;  %v11655_v46 = vsub.f32 %v152_v6, %v11604_v25  ;;  %v88_v17 = vld [vmem:[#allocation2 + $0xe8] sm:$0xff] }
 0x314   :  { %5568 = vmatprep.subr.mxu0 %v13980_v8  ;;  %v13986_v8 = vand.u32 4294901760, %v11537_v21  ;;  %13987 = vst [vmem:[#allocation38_spill] sm:$0xff] %v11646_v47  ;;  %5899 = vmatprep.subr.mxu1 %v5898_v55  ;;  %v5940_v42 = vand.u32 4294901760, %v11615_v41  ;;  %v11666_v54 = vand.u32 4294901760, %v119_v58  ;;  %v5946_v6 = vand.u32 4294901760, %v11630_v44  ;;  %v87_v41 = vld [vmem:[#allocation2 + $0xe0] sm:$0xff] }
 0x315   :  { %5572 = vmatpush1.msra.mxu0 %v13985_v7  ;;  %13988 = vst [vmem:[#allocation48_spill] sm:$0xff] %v11648_v18  ;;  %v11657_v7 = vand.u32 4294901760, %v120_v22  ;;  %5905 = vmatpush1.msra.mxu1 %v5904_v10  ;;  %v11683_v44 = vsub.f32 %v135_v3, %v11648_v18  ;;  %v5957_v36 = vsub.f32 %v11602_v2, %v13091_v45  ;;  %v13999_v3 = vand.u32 4294901760, %v11618_v31 }
 0x316   :  { %v11643_v51 = vsub.f32 %v11537_v21, %v13986_v8  ;;  %5576 = vmatprep.subr.mxu0 %v13990_v61  ;;  %v103_v8 = vld [vmem:[#allocation2 + $0x160] sm:$0xff]  ;;  %v13992_v21 = vand.u32 4294901760, %v13991_v40  ;;  %v11664_v61 = vsub.f32 %v151_v43, %v11620_v16  ;;  %5911 = vmatprep.subr.mxu1 %v5910_v62  ;;  %v11672_v40 = vsub.f32 %v136_v52, %v11635_v39  ;;  %v13995_v43 = vld [vmem:[#allocation14_spill] sm:$0xff]  ;;  %v72_v52 = vld [vmem:[#allocation2 + $0x68] sm:$0xff] }
 0x317   :  { %13996 = vst [vmem:[#allocation46_spill] sm:$0xff] %v11683_v44  ;;  %v11685_v10 = vand.u32 4294901760, %v103_v8  ;;  %5917 = vmatpush1.msra.mxu1 %v5916_v26  ;;  %v11693_v49 = vsub.f32 %v120_v22, %v11657_v7  ;;  %v71_v62 = vld [vmem:[#allocation2 + $0x60] sm:$0xff]  ;;  %v5963_v26 = vsub.f32 %v11618_v31, %v13999_v3  ;;  %v11703_v30 = vsub.f32 %v119_v58, %v11666_v54  ;;  %v14040_v15 = vld [vmem:[#allocation16_spill] sm:$0xff] }
 0x318   :  { %5580 = vmatpush1.msra.mxu0 %v13992_v21  ;;  %13993 = vst [vmem:[#allocation40_spill] sm:$0xff] %v11664_v61  ;;  %13994 = vst [vmem:[#allocation44_spill] sm:$0xff] %v11672_v40  ;;  %v11674_v21 = vand.u32 4294901760, %v104_v63  ;;  %v5952_v55 = vand.u32 4294901760, %v11643_v51  ;;  %v11695_v51 = vand.u32 4294901760, %v88_v17  ;;  %5923 = vmatprep.subr.mxu1 %v5922_v11  ;;  %v11705_v45 = vand.u32 4294901760, %v87_v41 }
 0x319   :  { %7759 = vmatmul.mubr.msk.f32.vlgmr.msra.gmra.mxu0 %vm8220_vm0, %v13962_v29  ;;  %5740 = vmatprep.subr.mxu0 %v13995_v43  ;;  %13997 = vst [vmem:[#allocation53_spill] sm:$0xff] %v11693_v49  ;;  %14000 = vst [vmem:[#allocation52_spill] sm:$0xff] %v11703_v30  ;;  %v14001_v22 = vand.u32 4294901760, %v11633_v35  ;;  %v11715_v3 = vand.u32 4294901760, %v72_v52  ;;  %v14004_v58 = vand.u32 4294901760, %v11646_v47  ;;  %v11723_v31 = vsub.f32 %v103_v8, %v11685_v10 }
 0x31a   :  { %5742 = vmatpush1.msra.mxu0 %v11300_v32  ;;  %13998 = vst [vmem:[#allocation47_spill] sm:$0xff] %v11695_v51  ;;  %5929 = vmatpush1.msra.mxu1 %v5928_v0  ;;  %v11713_v2 = vsub.f32 %v104_v63, %v11674_v21  ;;  %v5958_v63 = vand.u32 4294901760, %v5957_v36  ;;  %v11736_v4 = vsub.f32 %v88_v17, %v11695_v51  ;;  %v5964_v8 = vand.u32 4294901760, %v5963_v26 }
 0x31b   :  { %5744 = vmatprep.subr.mxu0 %v11306_v33  ;;  %5620 = vmatprep.mubr.f32.mxu0 %v13214_v57  ;;  %v5969_v11 = vsub.f32 %v11633_v35, %v14001_v22  ;;  %14003 = vst [vmem:[#allocation50_spill] sm:$0xff] %v11715_v3  ;;  %v5975_v0 = vsub.f32 %v11646_v47, %v14004_v58  ;;  %14005 = vst [vmem:[#allocation49_spill] sm:$0xff] %v11723_v31  ;;  %v11725_v22 = vand.u32 4294901760, %v71_v62 }
 0x31c   :  { %14002 = vst [vmem:[#allocation51_spill] sm:$0xff] %v11713_v2  ;;  %5746 = vmatpush1.msra.mxu0 %v11310_v60  ;;  %5935 = vmatprep.subr.mxu1 %v5934_v13  ;;  %v14007_v13 = vand.u32 4294901760, %v11655_v46  ;;  %14008 = vst [vmem:[#allocation11_spill] sm:$0xff] %v11736_v4  ;;  %v14009_v47 = vand.u32 4294901760, %v11664_v61  ;;  %v11744_v36 = vsub.f32 %v87_v41, %v11705_v45  ;;  %v14011_v17 = vand.u32 4294901760, %v11672_v40 }
 0x31d   :  { %14006 = vst [vmem:[#allocation54_spill] sm:$0xff] %v11725_v22  ;;  %7760 = vmatmul.mubr.msk.f32.gmra.mxu0 %vm8236_vm1, %v13962_v29  ;;  %5748 = vmatprep.subr.mxu0 %v11317_v9  ;;  %v11752_v26 = vsub.f32 %v72_v52, %v11715_v3  ;;  %v14013_v41 = vand.u32 4294901760, %v11683_v44  ;;  %v14015_v52 = vand.u32 4294901760, %v11693_v49 }
 0x31e   :  { %v5981_v59 = vsub.f32 %v11655_v46, %v14007_v13  ;;  %5941 = vmatpush1.msra.mxu1 %v5940_v42  ;;  %5750 = vmatpush1.msra.mxu0 %v11345_v37  ;;  %v5987_v35 = vsub.f32 %v11664_v61, %v14009_v47  ;;  %14010 = vst [vmem:[#allocation12_spill] sm:$0xff] %v11744_v36  ;;  %v5970_v13 = vand.u32 4294901760, %v5969_v11  ;;  %v5976_v47 = vand.u32 4294901760, %v5975_v0 }
 0x31f   :  { %5947 = vmatprep.subr.mxu1 %v5946_v6  ;;  %5752 = vmatprep.subr.mxu0 %v11356_v14  ;;  %v5993_v42 = vsub.f32 %v11672_v40, %v14011_v17  ;;  %14012 = vst [vmem:[#allocation13_spill] sm:$0xff] %v11752_v26  ;;  %v5999_v6 = vsub.f32 %v11683_v44, %v14013_v41  ;;  %v14016_v41 = vand.u32 4294901760, %v11703_v30 }
 0x320   :  { %5953 = vmatpush1.msra.mxu1 %v5952_v55  ;;  %5754 = vmatpush1.msra.mxu0 %v11388_v20  ;;  %v11760_v11 = vsub.f32 %v71_v62, %v11725_v22  ;;  %v5982_v17 = vand.u32 4294901760, %v5981_v59  ;;  %v6005_v55 = vsub.f32 %v11693_v49, %v14015_v52  ;;  %v5988_v0 = vand.u32 4294901760, %v5987_v35 }
 0x321   :  { %5959 = vmatprep.subr.mxu1 %v5958_v63  ;;  %5756 = vmatprep.subr.mxu0 %v11420_v12  ;;  %v6011_v50 = vsub.f32 %v11703_v30, %v14016_v41  ;;  %v5994_v59 = vand.u32 4294901760, %v5993_v42  ;;  %v14017_v63 = vand.u32 4294901760, %v11713_v2  ;;  %v6000_v35 = vand.u32 4294901760, %v5999_v6 }
 0x322   :  { %14014 = vst [vmem:[#allocation14_spill] sm:$0xff] %v11760_v11  ;;  %5965 = vmatpush1.msra.mxu1 %v5964_v8  ;;  %5758 = vmatpush1.msra.mxu0 %v11442_v27  ;;  %v14018_v8 = vand.u32 4294901760, %v11723_v31  ;;  %v13102_v62 = vand.u32 4294901760, %v11760_v11  ;;  %v14019_v42 = vand.u32 4294901760, %v11736_v4  ;;  %v14020_v6 = vand.u32 4294901760, %v11744_v36 }
 0x323   :  { %5971 = vmatprep.subr.mxu1 %v5970_v13  ;;  %5760 = vmatprep.subr.mxu0 %v11461_v19  ;;  %v6017_v52 = vsub.f32 %v11713_v2, %v14017_v63  ;;  %v6006_v13 = vand.u32 4294901760, %v6005_v55 }
 0x324   :  { %5977 = vmatpush1.msra.mxu1 %v5976_v47  ;;  %5762 = vmatpush1.msra.mxu0 %v11471_v23  ;;  %v6023_v41 = vsub.f32 %v11723_v31, %v14018_v8  ;;  %v6029_v63 = vsub.f32 %v11736_v4, %v14019_v42  ;;  %v6012_v47 = vand.u32 4294901760, %v6011_v50  ;;  %v6035_v58 = vsub.f32 %v11744_v36, %v14020_v6  ;;  %v14027_v6 = vld [vmem:[#allocation35_spill] sm:$0xff] }
 0x325   :  { %5983 = vmatprep.subr.mxu1 %v5982_v17  ;;  %5764 = vmatprep.subr.mxu0 %v11480_v34  ;;  %v6018_v8 = vand.u32 4294901760, %v6017_v52  ;;  %v14021_v17 = vand.u32 4294901760, %v11752_v26  ;;  %v6047_v50 = vsub.f32 %v11760_v11, %v13102_v62  ;;  %v14037_v62 = vld [vmem:[#allocation18_spill] sm:$0xff] }
 0x326   :  { %5989 = vmatpush1.msra.mxu1 %v5988_v0  ;;  %5766 = vmatpush1.msra.mxu0 %v11485_v48  ;;  %v6024_v42 = vand.u32 4294901760, %v6023_v41  ;;  %v6030_v0 = vand.u32 4294901760, %v6029_v63  ;;  %v14023_v41 = vld [vmem:[#allocation15_spill] sm:$0xff] }
 0x327   :  { %5995 = vmatprep.subr.mxu1 %v5994_v59  ;;  %5768 = vmatprep.subr.mxu0 %v11495_v28  ;;  %v6041_v55 = vsub.f32 %v11752_v26, %v14021_v17  ;;  %v6036_v59 = vand.u32 4294901760, %v6035_v58  ;;  %v14022_v58 = vld [vmem:[#allocation33_spill] sm:$0xff]  ;;  %v14025_v63 = vld [vmem:[#allocation19_spill] sm:$0xff] }
 0x328   :  { %6001 = vmatpush1.msra.mxu1 %v6000_v35  ;;  %5770 = vmatpush1.msra.mxu0 %v11503_v38  ;;  %v6048_v35 = vand.u32 4294901760, %v6047_v50  ;;  %v14029_v17 = vld [vmem:[#allocation23_spill] sm:$0xff] }
 0x329   :  { %6007 = vmatprep.subr.mxu1 %v6006_v13  ;;  %5772 = vmatprep.subr.mxu0 %v11551_v1  ;;  %v6042_v52 = vand.u32 4294901760, %v6041_v55  ;;  %v14024_v13 = vld [vmem:[#allocation21_spill] sm:$0xff]  ;;  %v14030_v55 = vld [vmem:[#allocation24_spill] sm:$0xff]  ;;  %v14032_v50 = vld [vmem:[#allocation27_spill] sm:$0xff] }
 0x32a   :  { %6013 = vmatpush1.msra.mxu1 %v6012_v47  ;;  %5774 = vmatpush1.msra.mxu0 %v11564_v56  ;;  %v14026_v47 = vld [vmem:[#allocation20_spill] sm:$0xff] }
 0x32b   :  { %6019 = vmatprep.subr.mxu1 %v6018_v8  ;;  %5776 = vmatprep.subr.mxu0 %v11577_v24  ;;  %v14028_v8 = vld [vmem:[#allocation22_spill] sm:$0xff] }
 0x32c   :  { %6025 = vmatpush1.msra.mxu1 %v6024_v42  ;;  %5778 = vmatpush1.msra.mxu0 %v11590_v53  ;;  %v14031_v42 = vld [vmem:[#allocation25_spill] sm:$0xff] }
 0x32d   :  { %6031 = vmatprep.subr.mxu1 %v6030_v0  ;;  %5780 = vmatprep.subr.mxu0 %v11604_v25  ;;  %v14033_v0 = vld [vmem:[#allocation17_spill] sm:$0xff] }
 0x32e   :  { %6037 = vmatpush1.msra.mxu1 %v6036_v59  ;;  %5782 = vmatpush1.msra.mxu0 %v11620_v16  ;;  %v14034_v59 = vld [vmem:[#allocation36_spill] sm:$0xff] }
 0x32f   :  { %6043 = vmatprep.subr.mxu1 %v6042_v52  ;;  %5784 = vmatprep.subr.mxu0 %v11635_v39  ;;  %v14035_v52 = vld [vmem:[#allocation41_spill] sm:$0xff] }
 0x330   :  { %6049 = vmatpush1.msra.mxu1 %v6048_v35  ;;  %5786 = vmatpush1.msra.mxu0 %v11648_v18  ;;  %v14036_v35 = vld [vmem:[#allocation45_spill] sm:$0xff] }
 0x331   :  { %7763 = vmatmul.mubr.msk.f32.vlgmr.msra.gmra.mxu1 %vm8220_vm0, %v13962_v29  ;;  %6243 = vmatprep.subr.mxu1 %v13995_v43 }
 0x332   :  { %5788 = vmatprep.subr.mxu0 %v11657_v7  ;;  %6245 = vmatpush1.msra.mxu1 %v11300_v32 }
 0x333   :  { %5790 = vmatpush1.msra.mxu0 %v11666_v54  ;;  %6247 = vmatprep.subr.mxu1 %v11306_v33 }
 0x334   :  { %5792 = vmatprep.subr.mxu0 %v11674_v21  ;;  %6089 = vmatprep.mubr.f32.mxu1 %v13214_v57 }
 0x335   :  { %6249 = vmatpush1.msra.mxu1 %v11310_v60  ;;  %5794 = vmatpush1.msra.mxu0 %v11685_v10 }
 0x336   :  { %7764 = vmatmul.mubr.msk.f32.gmra.mxu1 %vm8236_vm1, %v13962_v29  ;;  %6251 = vmatprep.subr.mxu1 %v11317_v9  ;;  %v14041_v29 = vld [vmem:[#allocation42_spill] sm:$0xff] }
 0x337   :  { %5796 = vmatprep.subr.mxu0 %v11695_v51  ;;  %6253 = vmatpush1.msra.mxu1 %v11345_v37 }
 0x338   :  { %5798 = vmatpush1.msra.mxu0 %v11705_v45  ;;  %6255 = vmatprep.subr.mxu1 %v11356_v14 }
 0x339   :  { %5800 = vmatprep.subr.mxu0 %v11715_v3  ;;  %6257 = vmatpush1.msra.mxu1 %v11388_v20 }
 0x33a   :  { %5802 = vmatpush1.msra.mxu0 %v11725_v22  ;;  %5835 = vmatprep.mubr.f32.mxu0 %v13214_v57 }
 0x33b   :  { %6259 = vmatprep.subr.mxu1 %v11420_v12  ;;  %5841 = vmatmul.mubr.f32.vlgmr.msra.gmra.mxu0 %v14022_v58  ;;  %v14039_v58 = vld [vmem:[#allocation37_spill] sm:$0xff] }
 0x33c   :  { %6099 = vmatprep.subr.mxu0 %v14023_v41  ;;  %6261 = vmatpush1.msra.mxu1 %v11442_v27 }
 0x33d   :  { %6102 = vmatpush1.msra.mxu0 %v14024_v13  ;;  %6263 = vmatprep.subr.mxu1 %v11461_v19 }
 0x33e   :  { %6105 = vmatprep.subr.mxu0 %v14025_v63  ;;  %6265 = vmatpush1.msra.mxu1 %v11471_v23 }
 0x33f   :  { %5846 = vmatprep.mubr.f32.mxu0 %v13214_v57  ;;  %6108 = vmatpush1.msra.mxu0 %v14026_v47 }
 0x340   :  { %6267 = vmatprep.subr.mxu1 %v11480_v34  ;;  %5852 = vmatmul.mubr.f32.gmra.mxu0 %v14027_v6  ;;  %v14038_v6 = vld [vmem:[#allocation43_spill] sm:$0xff] }
 0x341   :  { %6111 = vmatprep.subr.mxu0 %v14028_v8  ;;  %6269 = vmatpush1.msra.mxu1 %v11485_v48 }
 0x342   :  { %6114 = vmatpush1.msra.mxu0 %v14029_v17  ;;  %6271 = vmatprep.subr.mxu1 %v11495_v28 }
 0x343   :  { %6117 = vmatprep.subr.mxu0 %v14030_v55  ;;  %6273 = vmatpush1.msra.mxu1 %v11503_v38 }
 0x344   :  { %6120 = vmatpush1.msra.mxu0 %v14031_v42  ;;  %6275 = vmatprep.subr.mxu1 %v11551_v1 }
 0x345   :  { %6123 = vmatprep.subr.mxu0 %v14032_v50  ;;  %6277 = vmatpush1.msra.mxu1 %v11564_v56 }
 0x346   :  { %6126 = vmatpush1.msra.mxu0 %v14033_v0  ;;  %6279 = vmatprep.subr.mxu1 %v11577_v24 }
 0x347   :  { %6129 = vmatprep.subr.mxu0 %v14034_v59  ;;  %6281 = vmatpush1.msra.mxu1 %v11590_v53 }
 0x348   :  { %6132 = vmatpush1.msra.mxu0 %v14035_v52  ;;  %6283 = vmatprep.subr.mxu1 %v11604_v25 }
 0x349   :  { %6135 = vmatprep.subr.mxu0 %v14036_v35  ;;  %6285 = vmatpush1.msra.mxu1 %v11620_v16 }
 0x34a   :  { %6138 = vmatpush1.msra.mxu0 %v14037_v62  ;;  %6287 = vmatprep.subr.mxu1 %v11635_v39  ;;  %v14042_v62 = vld [vmem:[#allocation39_spill] sm:$0xff]  ;;  %v11874_v39 = vpop.f32.mrf.mxu0 }
 0x34b   :  { %6141 = vmatprep.subr.mxu0 %v14038_v6  ;;  %6289 = vmatpush1.msra.mxu1 %v11648_v18  ;;  %v14043_v18 = vld [vmem:[#allocation38_spill] sm:$0xff] }
 0x34c   :  { %6144 = vmatpush1.msra.mxu0 %v14039_v58  ;;  %6291 = vmatprep.subr.mxu1 %v11657_v7  ;;  %v11878_v58 = vpop.f32.mrf.mxu1 }
 0x34d   :  { %6147 = vmatprep.subr.mxu0 %v14040_v15  ;;  %6293 = vmatpush1.msra.mxu1 %v11666_v54 }
 0x34e   :  { %6150 = vmatpush1.msra.mxu0 %v14041_v29  ;;  %6295 = vmatprep.subr.mxu1 %v11674_v21 }
 0x34f   :  { %6153 = vmatprep.subr.mxu0 %v14042_v62  ;;  %6297 = vmatpush1.msra.mxu1 %v11685_v10  ;;  %v11886_v62 = vpop.f32.mrf.mxu0 }
 0x350   :  { %6156 = vmatpush1.msra.mxu0 %v14043_v18  ;;  %6299 = vmatprep.subr.mxu1 %v11695_v51  ;;  %v11890_v18 = vpop.f32.mrf.mxu1  ;;  %v14044_v51 = vld [vmem:[#allocation31_spill] sm:$0xff] }
 0x351   :  { %6159 = vmatprep.subr.mxu0 %v11655_v46  ;;  %6301 = vmatpush1.msra.mxu1 %v11705_v45 }
 0x352   :  { %6162 = vmatpush1.msra.mxu0 %v11664_v61  ;;  %6303 = vmatprep.subr.mxu1 %v11715_v3  ;;  %v11898_v3 = vpop.f32.mrf.mxu0  ;;  %v11902_v61 = vpop.f32.mrf.mxu1 }
 0x353   :  { %6165 = vmatprep.subr.mxu0 %v11672_v40  ;;  %6305 = vmatpush1.msra.mxu1 %v11725_v22  ;;  %v314_v40 = vld [vmem:[#allocation2 + $0x7f8] sm:$0xff]  ;;  %v313_v22 = vld [vmem:[#allocation2 + $0x7f0] sm:$0xff] }
 0x354   :  { %6338 = vmatprep.mubr.f32.mxu1 %v13214_v57  ;;  %6168 = vmatpush1.msra.mxu0 %v11683_v44  ;;  %v11916_v44 = vpop.f32.mrf.mxu0 }
 0x355   :  { %6342 = vmatmul.mubr.f32.vlgmr.msra.gmra.mxu1 %v14044_v51  ;;  %6533 = vmatprep.subr.mxu1 %v13995_v43  ;;  %v298_v43 = vld [vmem:[#allocation2 + $0x778] sm:$0xff]  ;;  %v11908_v51 = vand.u32 4294901760, %v314_v40 }
 0x356   :  { %6171 = vmatprep.subr.mxu0 %v11693_v49  ;;  %6535 = vmatpush1.msra.mxu1 %v11300_v32  ;;  %v14045_v32 = vld [vmem:[#allocation34_spill] sm:$0xff]  ;;  %v11910_v49 = vpop.f32.mrf.mxu1 }
 0x357   :  { %6174 = vmatpush1.msra.mxu0 %v11703_v30  ;;  %6537 = vmatprep.subr.mxu1 %v11306_v33  ;;  %14046 = vst [vmem:[#allocation15_spill] sm:$0xff] %v11908_v51  ;;  %v297_v30 = vld [vmem:[#allocation2 + $0x770] sm:$0xff]  ;;  %v11914_v33 = vand.u32 4294901760, %v313_v22 }
 0x358   :  { %6177 = vmatprep.subr.mxu0 %v11713_v2  ;;  %6347 = vmatprep.mubr.f32.mxu1 %v13214_v57  ;;  %v282_v2 = vld [vmem:[#allocation2 + $0x6f8] sm:$0xff] }
 0x359   :  { %6539 = vmatpush1.msra.mxu1 %v11310_v60  ;;  %6180 = vmatpush1.msra.mxu0 %v11723_v31  ;;  %v11920_v60 = vand.u32 4294901760, %v298_v43  ;;  %v11931_v31 = vand.u32 4294901760, %v282_v2 }
 0x35a   :  { %6351 = vmatmul.mubr.f32.gmra.mxu1 %v14045_v32  ;;  %6541 = vmatprep.subr.mxu1 %v11317_v9  ;;  %v11924_v32 = vand.u32 4294901760, %v297_v30  ;;  %v4421_v9 = vpop.f32.mrf.mxu0 }
 0x35b   :  { %6183 = vmatprep.subr.mxu0 %v11736_v4  ;;  %6543 = vmatpush1.msra.mxu1 %v11345_v37  ;;  %v11929_v4 = vsub.f32 %v314_v40, %v11908_v51  ;;  %v11933_v37 = vpop.f32.mrf.mxu1  ;;  %v11944_v40 = vsub.f32 %v298_v43, %v11920_v60  ;;  %v14052_v51 = vand.u32 4294901760, %v14024_v13  ;;  %v11957_v43 = vsub.f32 %v282_v2, %v11931_v31  ;;  %v265_v2 = vld [vmem:[#allocation2 + $0x670] sm:$0xff] }
 0x35c   :  { %6186 = vmatpush1.msra.mxu0 %v11744_v36  ;;  %6545 = vmatprep.subr.mxu1 %v11356_v14  ;;  %v11938_v14 = vsub.f32 %v313_v22, %v11914_v33  ;;  %v14049_v36 = vld [vmem:[#allocation29_spill] sm:$0xff]  ;;  %v4423_v22 = vpop.f32.mrf.mxu0  ;;  %v4278_v13 = vadd.f32 %v11866_v5, %v11874_v39 }
 0x35d   :  { %6189 = vmatprep.subr.mxu0 %v11752_v26  ;;  %6547 = vmatpush1.msra.mxu1 %v11388_v20  ;;  %14047 = vst [vmem:[#allocation21_spill] sm:$0xff] %v11929_v4  ;;  %v281_v26 = vld [vmem:[#allocation2 + $0x6f0] sm:$0xff]  ;;  %v14050_v20 = vand.u32 4294901760, %v14023_v41  ;;  %14051 = vst [vmem:[#allocation20_spill] sm:$0xff] %v11944_v40  ;;  %v13124_v5 = vand.u32 4294901760, %v11957_v43 }
 0x35e   :  { %6192 = vmatpush1.msra.mxu0 %v11760_v11  ;;  %6225 = vmatprep.mubr.f32.mxu0 %v13214_v57  ;;  %14048 = vst [vmem:[#allocation19_spill] sm:$0xff] %v11938_v14  ;;  %v11950_v11 = vsub.f32 %v297_v30, %v11924_v32  ;;  %14055 = vst [vmem:[#allocation23_spill] sm:$0xff] %v11957_v43  ;;  %v4429_v41 = vpop.f32.mrf.mxu0  ;;  %v4422_v30 = vadd.f32 %v4421_v9, %v4278_v13  ;;  %v14066_v9 = vand.u32 4294901760, %v14032_v50 }
 0x35f   :  { %6549 = vmatprep.subr.mxu1 %v11420_v12  ;;  %6228 = vmatmul.mubr.f32.vlgmr.msra.gmra.mxu0 %v14049_v36  ;;  %v266_v12 = vld [vmem:[#allocation2 + $0x678] sm:$0xff]  ;;  %v14054_v36 = vand.u32 4294901760, %v14025_v63  ;;  %v14057_v63 = vld [vmem:[#allocation32_spill] sm:$0xff] }
 0x360   :  { %6360 = vmatprep.subr.mxu0 %v14050_v20  ;;  %6551 = vmatpush1.msra.mxu1 %v11442_v27  ;;  %14053 = vst [vmem:[#allocation22_spill] sm:$0xff] %v11950_v11  ;;  %v11959_v20 = vand.u32 4294901760, %v281_v26  ;;  %v11961_v27 = vpop.f32.mrf.mxu1 }
 0x361   :  { %6364 = vmatpush1.msra.mxu0 %v14052_v51  ;;  %6553 = vmatprep.subr.mxu1 %v11461_v19  ;;  %v14056_v19 = vand.u32 4294901760, %v14026_v47  ;;  %v13125_v51 = vand.u32 4294901760, %v11944_v40  ;;  %v14060_v47 = vand.u32 4294901760, %v11929_v4 }
 0x362   :  { %6368 = vmatprep.subr.mxu0 %v14054_v36  ;;  %6555 = vmatpush1.msra.mxu1 %v11471_v23  ;;  %v11970_v36 = vand.u32 4294901760, %v266_v12  ;;  %v14058_v23 = vand.u32 4294901760, %v14028_v8  ;;  %v11988_v39 = vsub.f32 %v281_v26, %v11959_v20  ;;  %v4280_v8 = vadd.f32 %v11878_v58, %v11886_v62  ;;  %v250_v26 = vld [vmem:[#allocation2 + $0x5f8] sm:$0xff] }
 0x363   :  { %6233 = vmatprep.mubr.f32.mxu0 %v13214_v57  ;;  %6372 = vmatpush1.msra.mxu0 %v14056_v19  ;;  %v11984_v19 = vsub.f32 %v11929_v4, %v14060_v47  ;;  %v12002_v47 = vand.u32 4294901760, %v265_v2  ;;  %v14064_v62 = vand.u32 4294901760, %v14031_v42 }
 0x364   :  { %6557 = vmatprep.subr.mxu1 %v11480_v34  ;;  %6236 = vmatmul.mubr.f32.gmra.mxu0 %v14057_v63  ;;  %v14059_v34 = vand.u32 4294901760, %v14029_v17  ;;  %14061 = vst [vmem:[#allocation24_spill] sm:$0xff] %v11988_v39  ;;  %v14063_v17 = vand.u32 4294901760, %v11938_v14  ;;  %v12013_v58 = vsub.f32 %v266_v12, %v11970_v36  ;;  %v14068_v12 = vand.u32 4294901760, %v14033_v0 }
 0x365   :  { %6376 = vmatprep.subr.mxu0 %v14058_v23  ;;  %6559 = vmatpush1.msra.mxu1 %v11485_v48  ;;  %v11992_v23 = vpop.f32.mrf.mxu1  ;;  %v14062_v48 = vand.u32 4294901760, %v14030_v55  ;;  %v4424_v55 = vadd.f32 %v4423_v22, %v4280_v8  ;;  %v13126_v50 = vand.u32 4294901760, %v11988_v39  ;;  %v12034_v22 = vand.u32 4294901760, %v250_v26  ;;  %v249_v8 = vld [vmem:[#allocation2 + $0x5f0] sm:$0xff] }
 0x366   :  { %6380 = vmatpush1.msra.mxu0 %v14059_v34  ;;  %6561 = vmatprep.subr.mxu1 %v11495_v28  ;;  %v12000_v34 = vsub.f32 %v11938_v14, %v14063_v17  ;;  %v12010_v28 = vsub.f32 %v11944_v40, %v13125_v51  ;;  %14065 = vst [vmem:[#allocation25_spill] sm:$0xff] %v12013_v58  ;;  %v4431_v17 = vpop.f32.mrf.mxu0 }
 0x367   :  { %6384 = vmatprep.subr.mxu0 %v14062_v48  ;;  %6563 = vmatpush1.msra.mxu1 %v11503_v38  ;;  %v4823_v13 = vpop.f32.mrf.mxu1  ;;  %v14067_v38 = vand.u32 4294901760, %v11950_v11  ;;  %v4285_v48 = vadd.f32 %v11890_v18, %v11898_v3  ;;  %v14069_v18 = vand.u32 4294901760, %v14034_v59  ;;  %v12042_v0 = vsub.f32 %v265_v2, %v12002_v47  ;;  %v201_v59 = vld [vmem:[#allocation2 + $0x470] sm:$0xff] }
 0x368   :  { %6388 = vmatpush1.msra.mxu0 %v14064_v62  ;;  %6565 = vmatprep.subr.mxu1 %v11551_v1  ;;  %v12031_v1 = vsub.f32 %v11957_v43, %v13124_v5  ;;  %v6772_v3 = vand.u32 4294901760, %v12000_v34  ;;  %v4536_v62 = vadd.f32 %v11910_v49, %v4422_v30  ;;  %v234_v5 = vld [vmem:[#allocation2 + $0x578] sm:$0xff]  ;;  %v14072_v2 = vand.u32 4294901760, %v14036_v35  ;;  %v233_v30 = vld [vmem:[#allocation2 + $0x570] sm:$0xff]  ;;  %v14111_v34 = vld [vmem:[#allocation51_spill] sm:$0xff] }
 0x369   :  { %6392 = vmatprep.subr.mxu0 %v14066_v9  ;;  %v12021_v42 = vsub.f32 %v11950_v11, %v14067_v38  ;;  %6567 = vmatpush1.msra.mxu1 %v11564_v56  ;;  %v6766_v56 = vand.u32 4294901760, %v11984_v19  ;;  %14070 = vst [vmem:[#allocation27_spill] sm:$0xff] %v12042_v0  ;;  %v4287_v9 = vadd.f32 %v11902_v61, %v11916_v44  ;;  %v4825_v49 = vpop.f32.mrf.mxu1  ;;  %v14079_v61 = vld [vmem:[#allocation37_spill] sm:$0xff]  ;;  %v14108_v19 = vld [vmem:[#allocation52_spill] sm:$0xff] }
 0x36a   :  { %6396 = vmatpush1.msra.mxu0 %v14068_v12  ;;  %6569 = vmatprep.subr.mxu1 %v11577_v24  ;;  %v4430_v38 = vadd.f32 %v4429_v41, %v4285_v48  ;;  %v14071_v24 = vand.u32 4294901760, %v14035_v52  ;;  %v13127_v12 = vand.u32 4294901760, %v12013_v58  ;;  %v7555_v41 = vld [vmem:[#allocation5 + $0x40] sm:$0xff]  ;;  %v4538_v52 = vadd.f32 %v11933_v37, %v4424_v55  ;;  %v14076_v37 = vld [vmem:[#allocation26_spill] sm:$0xff] }
 0x36b   :  { %6400 = vmatprep.subr.mxu0 %v14069_v18  ;;  %6571 = vmatpush1.msra.mxu1 %v11590_v53  ;;  %v4712_v18 = vpop.f32.mrf.mxu0  ;;  %v12056_v53 = vand.u32 4294901760, %v249_v8  ;;  %v4432_v48 = vadd.f32 %v4431_v17, %v4287_v9  ;;  %v12066_v35 = vsub.f32 %v11988_v39, %v13126_v50  ;;  %v14077_v55 = vand.u32 4294901760, %v14038_v6  ;;  %v14078_v50 = vld [vmem:[#allocation48_spill] sm:$0xff] }
 0x36c   :  { %6404 = vmatpush1.msra.mxu0 %v14071_v24  ;;  %6573 = vmatprep.subr.mxu1 %v11604_v25  ;;  %v4713_v44 = vadd.f32 %v4712_v18, %v4536_v62  ;;  %v14073_v24 = vld [vmem:[#allocation18_spill] sm:$0xff]  ;;  %v12069_v62 = vsub.f32 %v250_v26, %v12034_v22  ;;  %v12075_v17 = vand.u32 4294901760, %v234_v5  ;;  %v217_v25 = vld [vmem:[#allocation2 + $0x4f0] sm:$0xff]  ;;  %v14080_v26 = vand.u32 4294901760, %v14079_v61 }
 0x36d   :  { %6408 = vmatprep.subr.mxu0 %v14072_v2  ;;  %6575 = vmatpush1.msra.mxu1 %v11620_v16  ;;  %v14074_v51 = vand.u32 4294901760, %v14073_v24  ;;  %v4714_v18 = vpop.f32.mrf.mxu0  ;;  %v218_v2 = vld [vmem:[#allocation2 + $0x4f8] sm:$0xff]  ;;  %v13129_v16 = vand.u32 4294901760, %v12042_v0  ;;  %v7556_v24 = vld [vmem:[#allocation5 + $0x48] sm:$0xff]  ;;  %vm7587_vm4 = vcmp.ge.f32.partialorder %v7555_v41, 0.3  ;;  %v12092_v61 = vsub.f32 %v249_v8, %v12056_v53 }
 0x36e   :  { %14075 = vst [vmem:[#allocation17_spill] sm:$0xff] %v12069_v62  ;;  %6577 = vmatprep.subr.mxu1 %v14076_v37  ;;  %v4715_v9 = vadd.f32 %v4714_v18, %v4538_v52  ;;  %v12083_v37 = vsub.f32 %v12013_v58, %v13127_v12  ;;  %v12085_v6 = vand.u32 4294901760, %v233_v30  ;;  %v14081_v52 = vand.u32 4294901760, %v14040_v15  ;;  %v14084_v8 = vld [vmem:[#allocation39_spill] sm:$0xff]  ;;  %v7572_v41 = vld [vmem:[#allocation5 + $0xc8] sm:$0xff]  ;;  %6628 = vmatprep.mubr.f32.mxu1 %v13214_v57 }
 0x36f   :  { %6412 = vmatpush1.msra.mxu0 %v14074_v51  ;;  %v4824_v51 = vadd.f32 %v4823_v13, %v4713_v44  ;;  %6579 = vmatpush1.msra.mxu1 %v14078_v50  ;;  %v4545_v13 = vadd.f32 %v11961_v27, %v4430_v38  ;;  %v202_v44 = vld [vmem:[#allocation2 + $0x478] sm:$0xff]  ;;  %v4830_v50 = vpop.f32.mrf.mxu1  ;;  %14082 = vst [vmem:[#allocation36_spill] sm:$0xff] %v12092_v61  ;;  %v4719_v12 = vpop.f32.mrf.mxu0  ;;  %v14083_v27 = vand.u32 4294901760, %v14041_v29  ;;  %vm7588_vm5 = vcmp.ge.f32.partialorder %v7556_v24, 0.3  ;;  %v7571_v38 = vld [vmem:[#allocation5 + $0xc0] sm:$0xff] }
 0x370   :  { %6416 = vmatprep.subr.mxu0 %v14077_v55  ;;  %6581 = vmatprep.subr.mxu1 %v11657_v7  ;;  %v4826_v55 = vadd.f32 %v4825_v49, %v4715_v9  ;;  %v12099_v15 = vand.u32 4294901760, %v217_v25  ;;  %v14085_v49 = vand.u32 4294901760, %v14084_v8  ;;  %v12109_v29 = vand.u32 4294901760, %v202_v44  ;;  %v14096_v24 = vld [vmem:[#allocation50_spill] sm:$0xff] }
 0x371   :  { %6420 = vmatpush1.msra.mxu0 %v14080_v26  ;;  %v7619_v18 = vmul.f32 1.4285715, %v4824_v51  ;;  %v12094_v26 = vand.u32 4294901760, %v218_v2  ;;  %6583 = vmatpush1.msra.mxu1 %v11666_v54  ;;  %v4720_v7 = vadd.f32 %v4719_v12, %v4545_v13  ;;  %v4547_v51 = vadd.f32 %v11992_v23, %v4432_v48  ;;  %v14087_v12 = vld [vmem:[#allocation38_spill] sm:$0xff]  ;;  %v4832_v8 = vpop.f32.mrf.mxu1 }
 0x372   :  { %6424 = vmatprep.subr.mxu0 %v14081_v52  ;;  %6585 = vmatprep.subr.mxu1 %v11674_v21  ;;  %v12107_v52 = vsub.f32 %v234_v5, %v12075_v17  ;;  %v7620_v54 = vmul.f32 1.4285715, %v4826_v55  ;;  %v14088_v13 = vand.u32 4294901760, %v14087_v12  ;;  %v12115_v21 = vsub.f32 %v233_v30, %v12085_v6  ;;  %v14090_v5 = vld [vmem:[#allocation47_spill] sm:$0xff]  ;;  %v14093_v30 = vld [vmem:[#allocation40_spill] sm:$0xff]  ;;  %v186_v12 = vld [vmem:[#allocation2 + $0x3f8] sm:$0xff] }
 0x373   :  { %6428 = vmatpush1.msra.mxu0 %v14083_v27  ;;  %v7651_v9 = vsel %vm7587_vm4, %v7619_v18, 0.0  ;;  %v4721_v27 = vpop.f32.mrf.mxu0  ;;  %6587 = vmatpush1.msra.mxu1 %v11685_v10  ;;  %v4831_v23 = vadd.f32 %v4830_v50, %v4720_v7  ;;  %v12117_v18 = vand.u32 4294901760, %v201_v59  ;;  %v14091_v55 = vand.u32 4294901760, %v11655_v46 }
 0x374   :  { %6432 = vmatprep.subr.mxu0 %v14085_v49  ;;  %14086 = vst [vmem:[#allocation41_spill] sm:$0xff] %v12107_v52  ;;  %7683 = vst [vmem:[#allocation7 + $0x40] sm:$0xff] %v7651_v9  ;;  %v4722_v48 = vadd.f32 %v4721_v27, %v4547_v51  ;;  %6589 = vmatprep.subr.mxu1 %v14090_v5  ;;  %v13128_v10 = vand.u32 4294901760, %v12069_v62  ;;  %v7652_v49 = vsel %vm7588_vm5, %v7620_v54, 0.0  ;;  %vm7603_vm6 = vcmp.ge.f32.partialorder %v7571_v38, 0.3 }
 0x375   :  { %6436 = vmatpush1.msra.mxu0 %v14088_v13  ;;  %14089 = vst [vmem:[#allocation45_spill] sm:$0xff] %v12115_v21  ;;  %v12125_v9 = vsub.f32 %v218_v2, %v12094_v26  ;;  %6591 = vmatpush1.msra.mxu1 %v11705_v45  ;;  %v14094_v50 = vand.u32 4294901760, %v14093_v30  ;;  %v13130_v7 = vand.u32 4294901760, %v12092_v61  ;;  %7684 = vst [vmem:[#allocation7 + $0x48] sm:$0xff] %v7652_v49  ;;  %v7635_v51 = vmul.f32 1.4285715, %v4831_v23 }
 0x376   :  { %6440 = vmatprep.subr.mxu0 %v14091_v55  ;;  %v12132_v46 = vsub.f32 %v217_v25, %v12099_v15  ;;  %v4833_v27 = vadd.f32 %v4832_v8, %v4722_v48  ;;  %6593 = vmatprep.subr.mxu1 %v14096_v24  ;;  %v14097_v54 = vld [vmem:[#allocation44_spill] sm:$0xff]  ;;  %v12140_v45 = vsub.f32 %v12042_v0, %v13129_v16  ;;  %v13131_v13 = vand.u32 4294901760, %v12107_v52  ;;  %v185_v25 = vld [vmem:[#allocation2 + $0x3f0] sm:$0xff]  ;;  %v14100_v23 = vld [vmem:[#allocation54_spill] sm:$0xff] }
 0x377   :  { %14092 = vst [vmem:[#allocation43_spill] sm:$0xff] %v12125_v9  ;;  %6444 = vmatpush1.msra.mxu0 %v14094_v50  ;;  %v14098_v2 = vand.u32 4294901760, %v14097_v54  ;;  %v12144_v5 = vsub.f32 %v202_v44, %v12109_v29  ;;  %vm7604_vm7 = vcmp.ge.f32.partialorder %v7572_v41, 0.3  ;;  %6595 = vmatpush1.msra.mxu1 %v14100_v23  ;;  %v13132_v48 = vand.u32 4294901760, %v12115_v21  ;;  %v170_v30 = vld [vmem:[#allocation2 + $0x378] sm:$0xff] }
 0x378   :  { %14095 = vst [vmem:[#allocation16_spill] sm:$0xff] %v12132_v46  ;;  %v7667_v55 = vsel %vm7603_vm6, %v7635_v51, 0.0  ;;  %v7636_v8 = vmul.f32 1.4285715, %v4833_v27  ;;  %v12151_v49 = vsub.f32 %v201_v59, %v12117_v18  ;;  %v14102_v50 = vld [vmem:[#allocation46_spill] sm:$0xff]  ;;  %v14104_v44 = vmov 1.0   ;;  %6767 = vmatprep.subr.mxu1 %v6766_v56  ;;  %6517 = vmatprep.mubr.f32.mxu0 %v13214_v57 }
 0x379   :  { %6448 = vmatprep.subr.mxu0 %v14098_v2  ;;  %14099 = vst [vmem:[#allocation42_spill] sm:$0xff] %v12144_v5  ;;  %v14103_v24 = vand.u32 4294901760, %v14102_v50  ;;  %7767 = vmatmul.mubr.msk.f32.vlgmr.msra.gmra.mxu1 %vm8220_vm0, %v14104_v44  ;;  %v6796_v2 = vand.u32 4294901760, %v12066_v35  ;;  %v12162_v23 = vsub.f32 %v12069_v62, %v13128_v10  ;;  %v13133_v38 = vand.u32 4294901760, %v12125_v9  ;;  %7699 = vst [vmem:[#allocation7 + $0xc0] sm:$0xff] %v7667_v55  ;;  %v169_v51 = vld [vmem:[#allocation2 + $0x370] sm:$0xff] }
 0x37a   :  { %14101 = vst [vmem:[#allocation18_spill] sm:$0xff] %v12151_v49  ;;  %v12165_v59 = vand.u32 4294901760, %v186_v12  ;;  %v14106_v27 = vld [vmem:[#allocation53_spill] sm:$0xff]  ;;  %v12174_v35 = vsub.f32 %v12092_v61, %v13130_v7  ;;  %v7668_v10 = vsel %vm7604_vm7, %v7636_v8, 0.0  ;;  %v12178_v16 = vand.u32 4294901760, %v185_v25  ;;  %v154_v55 = vld [vmem:[#allocation2 + $0x2f8] sm:$0xff]  ;;  %6773 = vmatpush1.msra.mxu1 %v6772_v3  ;;  %6635 = vmatprep.mubr.f32.mxu1 %v13214_v57 }
 0x37b   :  { %6452 = vmatpush1.msra.mxu0 %v14103_v24  ;;  %v14107_v50 = vand.u32 4294901760, %v14106_v27  ;;  %v14109_v56 = vand.u32 4294901760, %v14108_v19  ;;  %v6802_v27 = vand.u32 4294901760, %v12083_v37  ;;  %7700 = vst [vmem:[#allocation7 + $0xc8] sm:$0xff] %v7668_v10  ;;  %v12191_v41 = vand.u32 4294901760, %v170_v30  ;;  %v153_v8 = vld [vmem:[#allocation2 + $0x2f0] sm:$0xff] }
 0x37c   :  { %v14110_v24 = vand.u32 4294901760, %v12010_v28  ;;  %v14112_v3 = vand.u32 4294901760, %v14111_v34  ;;  %v6808_v19 = vand.u32 4294901760, %v12140_v45  ;;  %v12201_v37 = vsub.f32 %v12115_v21, %v13132_v48  ;;  %v138_v10 = vld [vmem:[#allocation2 + $0x278] sm:$0xff]  ;;  %v137_v48 = vld [vmem:[#allocation2 + $0x270] sm:$0xff]  ;;  %v14126_v62 = vld [vmem:[#allocation12_spill] sm:$0xff] }
 0x37d   :  { %6456 = vmatprep.subr.mxu0 %v14107_v50  ;;  %v12188_v50 = vsub.f32 %v12107_v52, %v13131_v13  ;;  %v12204_v13 = vand.u32 4294901760, %v169_v51  ;;  %v14113_v28 = vand.u32 4294901760, %v12021_v42  ;;  %v12213_v45 = vsub.f32 %v12125_v9, %v13133_v38  ;;  %7768 = vmatmul.mubr.msk.f32.gmra.mxu1 %vm8236_vm1, %v14104_v44  ;;  %v122_v9 = vld [vmem:[#allocation2 + $0x1f8] sm:$0xff] }
 0x37e   :  { %6460 = vmatpush1.msra.mxu0 %v14109_v56  ;;  %6779 = vmatprep.subr.mxu1 %v14110_v24  ;;  %v6814_v24 = vand.u32 4294901760, %v12162_v23  ;;  %v12216_v34 = vsub.f32 %v186_v12, %v12165_v59  ;;  %v14115_v56 = vld [vmem:[#allocation49_spill] sm:$0xff]  ;;  %v6820_v42 = vand.u32 4294901760, %v12174_v35  ;;  %v14118_v23 = vand.u32 4294901760, %v12132_v46 }
 0x37f   :  { %6464 = vmatprep.subr.mxu0 %v14112_v3  ;;  %6785 = vmatpush1.msra.mxu1 %v14113_v28  ;;  %v12218_v3 = vand.u32 4294901760, %v154_v55  ;;  %v14116_v7 = vand.u32 4294901760, %v14115_v56  ;;  %v12232_v12 = vsub.f32 %v185_v25, %v12178_v16  ;;  %v12234_v38 = vand.u32 4294901760, %v153_v8 }
 0x380   :  { %14114 = vst [vmem:[#allocation26_spill] sm:$0xff] %v12216_v34  ;;  %v12229_v28 = vsub.f32 %v12132_v46, %v14118_v23  ;;  %v14120_v56 = vand.u32 4294901760, %v12031_v1  ;;  %v6826_v52 = vand.u32 4294901760, %v12188_v50  ;;  %v14123_v35 = vand.u32 4294901760, %v12144_v5  ;;  %v121_v46 = vld [vmem:[#allocation2 + $0x1f0] sm:$0xff]  ;;  %6986 = vmatprep.mubr.f32.mxu1 %v13214_v57 }
 0x381   :  { %6468 = vmatpush1.msra.mxu0 %v14116_v7  ;;  %14119 = vst [vmem:[#allocation48_spill] sm:$0xff] %v12232_v12  ;;  %v14121_v7 = vld [vmem:[#allocation11_spill] sm:$0xff]  ;;  %v12247_v23 = vsub.f32 %v170_v30, %v12191_v41  ;;  %v12249_v25 = vand.u32 4294901760, %v138_v10  ;;  %v14127_v1 = vand.u32 4294901760, %v14126_v62  ;;  %v106_v30 = vld [vmem:[#allocation2 + $0x178] sm:$0xff]  ;;  %v6838_v62 = vand.u32 4294901760, %v12213_v45  ;;  %v5181_v63 = vpop.f32.mrf.mxu1 }
 0x382   :  { %6791 = vmatprep.subr.mxu1 %v14120_v56  ;;  %v14122_v21 = vand.u32 4294901760, %v14121_v7  ;;  %v12244_v61 = vsub.f32 %v12144_v5, %v14123_v35  ;;  %v6832_v56 = vand.u32 4294901760, %v12201_v37  ;;  %v12260_v7 = vsub.f32 %v169_v51, %v12204_v13  ;;  %v14131_v5 = vld [vmem:[#allocation13_spill] sm:$0xff]  ;;  %v14133_v51 = vld [vmem:[#allocation14_spill] sm:$0xff] }
 0x383   :  { %14124 = vst [vmem:[#allocation37_spill] sm:$0xff] %v12247_v23  ;;  %14125 = vst [vmem:[#allocation39_spill] sm:$0xff] %v12249_v25  ;;  %6797 = vmatpush1.msra.mxu1 %v6796_v2  ;;  %v12262_v35 = vand.u32 4294901760, %v137_v48  ;;  %v14132_v0 = vand.u32 4294901760, %v14131_v5  ;;  %v13164_v2 = vand.u32 4294901760, %v12216_v34  ;;  %v12269_v37 = vsub.f32 %v154_v55, %v12218_v3  ;;  %v90_v45 = vld [vmem:[#allocation2 + $0xf8] sm:$0xff] }
 0x384   :  { %6472 = vmatprep.subr.mxu0 %v14122_v21  ;;  %v14128_v21 = vand.u32 4294901760, %v12151_v49  ;;  %14129 = vst [vmem:[#allocation38_spill] sm:$0xff] %v12260_v7  ;;  %6803 = vmatprep.subr.mxu1 %v6802_v27  ;;  %v6844_v58 = vand.u32 4294901760, %v12229_v28  ;;  %v12280_v5 = vand.u32 4294901760, %v121_v46  ;;  %v6850_v55 = vand.u32 4294901760, %v12244_v61  ;;  %v89_v28 = vld [vmem:[#allocation2 + $0xf0] sm:$0xff] }
 0x385   :  { %6476 = vmatpush1.msra.mxu0 %v14127_v1  ;;  %14130 = vst [vmem:[#allocation47_spill] sm:$0xff] %v12262_v35  ;;  %v12271_v1 = vand.u32 4294901760, %v122_v9  ;;  %6809 = vmatpush1.msra.mxu1 %v6808_v19  ;;  %v12297_v61 = vsub.f32 %v137_v48, %v12262_v35  ;;  %v6861_v39 = vsub.f32 %v12216_v34, %v13164_v2  ;;  %v14138_v48 = vand.u32 4294901760, %v12232_v12 }
 0x386   :  { %v12257_v50 = vsub.f32 %v12151_v49, %v14128_v21  ;;  %6480 = vmatprep.subr.mxu0 %v14132_v0  ;;  %v105_v21 = vld [vmem:[#allocation2 + $0x170] sm:$0xff]  ;;  %v14134_v49 = vand.u32 4294901760, %v14133_v51  ;;  %v12278_v0 = vsub.f32 %v153_v8, %v12234_v38  ;;  %6815 = vmatprep.subr.mxu1 %v6814_v24  ;;  %v12286_v51 = vsub.f32 %v138_v10, %v12249_v25  ;;  %v14136_v8 = vld [vmem:[#allocation15_spill] sm:$0xff]  ;;  %v74_v10 = vld [vmem:[#allocation2 + $0x78] sm:$0xff] }
 0x387   :  { %v12299_v19 = vand.u32 4294901760, %v105_v21  ;;  %6821 = vmatpush1.msra.mxu1 %v6820_v42  ;;  %v12307_v11 = vsub.f32 %v122_v9, %v12271_v1  ;;  %v73_v24 = vld [vmem:[#allocation2 + $0x70] sm:$0xff]  ;;  %v6867_v42 = vsub.f32 %v12232_v12, %v14138_v48  ;;  %v12317_v14 = vsub.f32 %v121_v46, %v12280_v5  ;;  %v14173_v54 = vld [vmem:[#allocation26_spill] sm:$0xff] }
 0x388   :  { %6484 = vmatpush1.msra.mxu0 %v14134_v49  ;;  %v12288_v49 = vand.u32 4294901760, %v106_v30  ;;  %v6856_v27 = vand.u32 4294901760, %v12257_v50  ;;  %v12309_v50 = vand.u32 4294901760, %v90_v45  ;;  %6827 = vmatprep.subr.mxu1 %v6826_v52  ;;  %v12319_v2 = vand.u32 4294901760, %v89_v28 }
 0x389   :  { %7765 = vmatmul.mubr.msk.f32.vlgmr.msra.gmra.mxu0 %vm8220_vm0, %v14104_v44  ;;  %6644 = vmatprep.subr.mxu0 %v14136_v8  ;;  %14137 = vst [vmem:[#allocation50_spill] sm:$0xff] %v12299_v19  ;;  %v14139_v9 = vand.u32 4294901760, %v12247_v23  ;;  %v12329_v48 = vand.u32 4294901760, %v74_v10  ;;  %v14141_v46 = vand.u32 4294901760, %v12260_v7  ;;  %v12337_v12 = vsub.f32 %v105_v21, %v12299_v19 }
 0x38a   :  { %14135 = vst [vmem:[#allocation40_spill] sm:$0xff] %v12288_v49  ;;  %6646 = vmatpush1.msra.mxu0 %v11914_v33  ;;  %6833 = vmatpush1.msra.mxu1 %v6832_v56  ;;  %v12327_v34 = vsub.f32 %v106_v30, %v12288_v49  ;;  %v6862_v30 = vand.u32 4294901760, %v6861_v39  ;;  %v12350_v40 = vsub.f32 %v90_v45, %v12309_v50  ;;  %v6868_v21 = vand.u32 4294901760, %v6867_v42 }
 0x38b   :  { %6648 = vmatprep.subr.mxu0 %v11920_v60  ;;  %6524 = vmatprep.mubr.f32.mxu0 %v13214_v57  ;;  %v6873_v52 = vsub.f32 %v12247_v23, %v14139_v9  ;;  %14140 = vst [vmem:[#allocation44_spill] sm:$0xff] %v12329_v48  ;;  %v6879_v56 = vsub.f32 %v12260_v7, %v14141_v46  ;;  %v12339_v9 = vand.u32 4294901760, %v73_v24  ;;  %v14144_v7 = vand.u32 4294901760, %v12278_v0 }
 0x38c   :  { %6650 = vmatpush1.msra.mxu0 %v11924_v32  ;;  %6839 = vmatprep.subr.mxu1 %v6838_v62  ;;  %v14143_v62 = vand.u32 4294901760, %v12269_v37  ;;  %v12358_v39 = vsub.f32 %v89_v28, %v12319_v2  ;;  %v14145_v45 = vand.u32 4294901760, %v12286_v51  ;;  %v12366_v42 = vsub.f32 %v74_v10, %v12329_v48 }
 0x38d   :  { %14142 = vst [vmem:[#allocation54_spill] sm:$0xff] %v12339_v9  ;;  %7766 = vmatmul.mubr.msk.f32.gmra.mxu0 %vm8236_vm1, %v14104_v44  ;;  %6652 = vmatprep.subr.mxu0 %v11931_v31  ;;  %v6891_v23 = vsub.f32 %v12278_v0, %v14144_v7  ;;  %v6880_v7 = vand.u32 4294901760, %v6879_v56  ;;  %v14146_v28 = vand.u32 4294901760, %v12297_v61  ;;  %v14148_v10 = vand.u32 4294901760, %v12307_v11 }
 0x38e   :  { %v6885_v43 = vsub.f32 %v12269_v37, %v14143_v62  ;;  %6845 = vmatpush1.msra.mxu1 %v6844_v58  ;;  %6654 = vmatpush1.msra.mxu0 %v11959_v20  ;;  %v6874_v62 = vand.u32 4294901760, %v6873_v52  ;;  %v6897_v58 = vsub.f32 %v12286_v51, %v14145_v45  ;;  %v12374_v52 = vsub.f32 %v73_v24, %v12339_v9 }
 0x38f   :  { %6851 = vmatprep.subr.mxu1 %v6850_v55  ;;  %6656 = vmatprep.subr.mxu0 %v11970_v36  ;;  %v6903_v55 = vsub.f32 %v12297_v61, %v14146_v28  ;;  %v6892_v56 = vand.u32 4294901760, %v6891_v23  ;;  %v14149_v28 = vand.u32 4294901760, %v12317_v14 }
 0x390   :  { %6857 = vmatpush1.msra.mxu1 %v6856_v27  ;;  %6658 = vmatpush1.msra.mxu0 %v12002_v47  ;;  %14147 = vst [vmem:[#allocation46_spill] sm:$0xff] %v12374_v52  ;;  %v6886_v45 = vand.u32 4294901760, %v6885_v43  ;;  %v6909_v27 = vsub.f32 %v12307_v11, %v14148_v10  ;;  %v6898_v43 = vand.u32 4294901760, %v6897_v58  ;;  %v13175_v24 = vand.u32 4294901760, %v12374_v52 }
 0x391   :  { %6863 = vmatprep.subr.mxu1 %v6862_v30  ;;  %6660 = vmatprep.subr.mxu0 %v12034_v22  ;;  %v6915_v4 = vsub.f32 %v12317_v14, %v14149_v28  ;;  %v14150_v30 = vand.u32 4294901760, %v12327_v34  ;;  %v6904_v23 = vand.u32 4294901760, %v6903_v55  ;;  %v14152_v58 = vand.u32 4294901760, %v12350_v40 }
 0x392   :  { %6869 = vmatpush1.msra.mxu1 %v6868_v21  ;;  %6662 = vmatpush1.msra.mxu0 %v12056_v53  ;;  %v14151_v21 = vand.u32 4294901760, %v12337_v12  ;;  %v14153_v55 = vand.u32 4294901760, %v12358_v39 }
 0x393   :  { %6875 = vmatprep.subr.mxu1 %v6874_v62  ;;  %6664 = vmatprep.subr.mxu0 %v12075_v17  ;;  %v6921_v10 = vsub.f32 %v12327_v34, %v14150_v30  ;;  %v6910_v62 = vand.u32 4294901760, %v6909_v27  ;;  %v6933_v30 = vsub.f32 %v12350_v40, %v14152_v58 }
 0x394   :  { %6881 = vmatpush1.msra.mxu1 %v6880_v7  ;;  %6666 = vmatpush1.msra.mxu0 %v12085_v6  ;;  %v6927_v28 = vsub.f32 %v12337_v12, %v14151_v21  ;;  %v6916_v7 = vand.u32 4294901760, %v6915_v4  ;;  %v6939_v46 = vsub.f32 %v12358_v39, %v14153_v55  ;;  %v6951_v4 = vsub.f32 %v12374_v52, %v13175_v24  ;;  %v14160_v55 = vld [vmem:[#allocation35_spill] sm:$0xff]  ;;  %v14172_v24 = vld [vmem:[#allocation18_spill] sm:$0xff] }
 0x395   :  { %6887 = vmatprep.subr.mxu1 %v6886_v45  ;;  %6668 = vmatprep.subr.mxu0 %v12094_v26  ;;  %v6922_v21 = vand.u32 4294901760, %v6921_v10  ;;  %v14154_v45 = vand.u32 4294901760, %v12366_v42 }
 0x396   :  { %6893 = vmatpush1.msra.mxu1 %v6892_v56  ;;  %6670 = vmatpush1.msra.mxu0 %v12099_v15  ;;  %v6928_v58 = vand.u32 4294901760, %v6927_v28  ;;  %v6934_v56 = vand.u32 4294901760, %v6933_v30  ;;  %v14156_v28 = vld [vmem:[#allocation21_spill] sm:$0xff]  ;;  %v14158_v30 = vld [vmem:[#allocation20_spill] sm:$0xff] }
 0x397   :  { %6899 = vmatprep.subr.mxu1 %v6898_v43  ;;  %6672 = vmatprep.subr.mxu0 %v12109_v29  ;;  %v6945_v27 = vsub.f32 %v12366_v42, %v14154_v45  ;;  %v6940_v43 = vand.u32 4294901760, %v6939_v46  ;;  %v14155_v46 = vld [vmem:[#allocation33_spill] sm:$0xff]  ;;  %v14162_v45 = vld [vmem:[#allocation24_spill] sm:$0xff] }
 0x398   :  { %6905 = vmatpush1.msra.mxu1 %v6904_v23  ;;  %6674 = vmatpush1.msra.mxu0 %v12117_v18  ;;  %v6952_v23 = vand.u32 4294901760, %v6951_v4  ;;  %v14165_v4 = vld [vmem:[#allocation17_spill] sm:$0xff] }
 0x399   :  { %6911 = vmatprep.subr.mxu1 %v6910_v62  ;;  %6676 = vmatprep.subr.mxu0 %v12165_v59  ;;  %v6946_v10 = vand.u32 4294901760, %v6945_v27  ;;  %v14157_v62 = vld [vmem:[#allocation19_spill] sm:$0xff]  ;;  %v14163_v27 = vld [vmem:[#allocation25_spill] sm:$0xff] }
 0x39a   :  { %6917 = vmatpush1.msra.mxu1 %v6916_v7  ;;  %6678 = vmatpush1.msra.mxu0 %v12178_v16  ;;  %v14159_v7 = vld [vmem:[#allocation22_spill] sm:$0xff] }
 0x39b   :  { %6923 = vmatprep.subr.mxu1 %v6922_v21  ;;  %6680 = vmatprep.subr.mxu0 %v12191_v41  ;;  %v14161_v21 = vld [vmem:[#allocation23_spill] sm:$0xff] }
 0x39c   :  { %6929 = vmatpush1.msra.mxu1 %v6928_v58  ;;  %6682 = vmatpush1.msra.mxu0 %v12204_v13  ;;  %v14164_v58 = vld [vmem:[#allocation27_spill] sm:$0xff] }
 0x39d   :  { %6935 = vmatprep.subr.mxu1 %v6934_v56  ;;  %6684 = vmatprep.subr.mxu0 %v12218_v3  ;;  %v14166_v56 = vld [vmem:[#allocation36_spill] sm:$0xff] }
 0x39e   :  { %6941 = vmatpush1.msra.mxu1 %v6940_v43  ;;  %6686 = vmatpush1.msra.mxu0 %v12234_v38  ;;  %v14167_v43 = vld [vmem:[#allocation41_spill] sm:$0xff] }
 0x39f   :  { %6947 = vmatprep.subr.mxu1 %v6946_v10  ;;  %6688 = vmatprep.subr.mxu0 %v12249_v25  ;;  %v14168_v10 = vld [vmem:[#allocation45_spill] sm:$0xff] }
 0x3a0   :  { %6953 = vmatpush1.msra.mxu1 %v6952_v23  ;;  %6690 = vmatpush1.msra.mxu0 %v12262_v35  ;;  %v14169_v23 = vld [vmem:[#allocation43_spill] sm:$0xff] }
 0x3a1   :  { %7769 = vmatmul.mubr.msk.f32.vlgmr.msra.gmra.mxu1 %vm8220_vm0, %v14104_v44  ;;  %7147 = vmatprep.subr.mxu1 %v14136_v8 }
 0x3a2   :  { %6692 = vmatprep.subr.mxu0 %v12271_v1  ;;  %7149 = vmatpush1.msra.mxu1 %v11914_v33 }
 0x3a3   :  { %6694 = vmatpush1.msra.mxu0 %v12280_v5  ;;  %7151 = vmatprep.subr.mxu1 %v11920_v60 }
 0x3a4   :  { %6696 = vmatprep.subr.mxu0 %v12288_v49  ;;  %6993 = vmatprep.mubr.f32.mxu1 %v13214_v57 }
 0x3a5   :  { %7153 = vmatpush1.msra.mxu1 %v11924_v32  ;;  %6698 = vmatpush1.msra.mxu0 %v12299_v19 }
 0x3a6   :  { %7770 = vmatmul.mubr.msk.f32.gmra.mxu1 %vm8236_vm1, %v14104_v44  ;;  %7155 = vmatprep.subr.mxu1 %v11931_v31  ;;  %v14174_v44 = vld [vmem:[#allocation48_spill] sm:$0xff] }
 0x3a7   :  { %6700 = vmatprep.subr.mxu0 %v12309_v50  ;;  %7157 = vmatpush1.msra.mxu1 %v11959_v20 }
 0x3a8   :  { %6702 = vmatpush1.msra.mxu0 %v12319_v2  ;;  %7159 = vmatprep.subr.mxu1 %v11970_v36 }
 0x3a9   :  { %6704 = vmatprep.subr.mxu0 %v12329_v48  ;;  %7161 = vmatpush1.msra.mxu1 %v12002_v47 }
 0x3aa   :  { %6706 = vmatpush1.msra.mxu0 %v12339_v9  ;;  %6739 = vmatprep.mubr.f32.mxu0 %v13214_v57 }
 0x3ab   :  { %7163 = vmatprep.subr.mxu1 %v12034_v22  ;;  %6745 = vmatmul.mubr.f32.vlgmr.msra.gmra.mxu0 %v14155_v46  ;;  %v14170_v46 = vld [vmem:[#allocation16_spill] sm:$0xff] }
 0x3ac   :  { %7003 = vmatprep.subr.mxu0 %v14156_v28  ;;  %7165 = vmatpush1.msra.mxu1 %v12056_v53 }
 0x3ad   :  { %7006 = vmatpush1.msra.mxu0 %v14157_v62  ;;  %7167 = vmatprep.subr.mxu1 %v12075_v17 }
 0x3ae   :  { %7009 = vmatprep.subr.mxu0 %v14158_v30  ;;  %7169 = vmatpush1.msra.mxu1 %v12085_v6 }
 0x3af   :  { %6750 = vmatprep.mubr.f32.mxu0 %v13214_v57  ;;  %7012 = vmatpush1.msra.mxu0 %v14159_v7 }
 0x3b0   :  { %7171 = vmatprep.subr.mxu1 %v12094_v26  ;;  %6756 = vmatmul.mubr.f32.gmra.mxu0 %v14160_v55  ;;  %v14171_v55 = vld [vmem:[#allocation42_spill] sm:$0xff] }
 0x3b1   :  { %7015 = vmatprep.subr.mxu0 %v14161_v21  ;;  %7173 = vmatpush1.msra.mxu1 %v12099_v15 }
 0x3b2   :  { %7018 = vmatpush1.msra.mxu0 %v14162_v45  ;;  %7175 = vmatprep.subr.mxu1 %v12109_v29 }
 0x3b3   :  { %7021 = vmatprep.subr.mxu0 %v14163_v27  ;;  %7177 = vmatpush1.msra.mxu1 %v12117_v18 }
 0x3b4   :  { %7024 = vmatpush1.msra.mxu0 %v14164_v58  ;;  %7179 = vmatprep.subr.mxu1 %v12165_v59 }
 0x3b5   :  { %7027 = vmatprep.subr.mxu0 %v14165_v4  ;;  %7181 = vmatpush1.msra.mxu1 %v12178_v16 }
 0x3b6   :  { %7030 = vmatpush1.msra.mxu0 %v14166_v56  ;;  %7183 = vmatprep.subr.mxu1 %v12191_v41 }
 0x3b7   :  { %7033 = vmatprep.subr.mxu0 %v14167_v43  ;;  %7185 = vmatpush1.msra.mxu1 %v12204_v13 }
 0x3b8   :  { %7036 = vmatpush1.msra.mxu0 %v14168_v10  ;;  %7187 = vmatprep.subr.mxu1 %v12218_v3 }
 0x3b9   :  { %7039 = vmatprep.subr.mxu0 %v14169_v23  ;;  %7189 = vmatpush1.msra.mxu1 %v12234_v38 }
 0x3ba   :  { %7042 = vmatpush1.msra.mxu0 %v14170_v46  ;;  %7191 = vmatprep.subr.mxu1 %v12249_v25  ;;  %v14175_v46 = vld [vmem:[#allocation37_spill] sm:$0xff]  ;;  %v4938_v25 = vpop.f32.mrf.mxu0 }
 0x3bb   :  { %7045 = vmatprep.subr.mxu0 %v14171_v55  ;;  %7193 = vmatpush1.msra.mxu1 %v12262_v35  ;;  %v14176_v55 = vld [vmem:[#allocation38_spill] sm:$0xff]  ;;  %v5183_v35 = vpop.f32.mrf.mxu1 }
 0x3bc   :  { %7048 = vmatpush1.msra.mxu0 %v14172_v24  ;;  %7195 = vmatprep.subr.mxu1 %v12271_v1 }
 0x3bd   :  { %7051 = vmatprep.subr.mxu0 %v14173_v54  ;;  %7197 = vmatpush1.msra.mxu1 %v12280_v5 }
 0x3be   :  { %7054 = vmatpush1.msra.mxu0 %v14174_v44  ;;  %7199 = vmatprep.subr.mxu1 %v12288_v49  ;;  %v4940_v49 = vpop.f32.mrf.mxu0 }
 0x3bf   :  { %7057 = vmatprep.subr.mxu0 %v14175_v46  ;;  %7201 = vmatpush1.msra.mxu1 %v12299_v19  ;;  %v5188_v19 = vpop.f32.mrf.mxu1 }
 0x3c0   :  { %7060 = vmatpush1.msra.mxu0 %v14176_v55  ;;  %7203 = vmatprep.subr.mxu1 %v12309_v50  ;;  %v14177_v55 = vld [vmem:[#allocation31_spill] sm:$0xff] }
 0x3c1   :  { %7063 = vmatprep.subr.mxu0 %v12269_v37  ;;  %7205 = vmatpush1.msra.mxu1 %v12319_v2 }
 0x3c2   :  { %7066 = vmatpush1.msra.mxu0 %v12278_v0  ;;  %7207 = vmatprep.subr.mxu1 %v12329_v48  ;;  %v4949_v48 = vpop.f32.mrf.mxu0 }
 0x3c3   :  { %7069 = vmatprep.subr.mxu0 %v12286_v51  ;;  %7209 = vmatpush1.msra.mxu1 %v12339_v9  ;;  %v5190_v9 = vpop.f32.mrf.mxu1 }
 0x3c4   :  { %7242 = vmatprep.mubr.f32.mxu1 %v13214_v57  ;;  %7072 = vmatpush1.msra.mxu0 %v12297_v61 }
 0x3c5   :  { %7246 = vmatmul.mubr.f32.vlgmr.msra.gmra.mxu1 %v14177_v55  ;;  %7437 = vmatprep.subr.mxu1 %v14136_v8  ;;  %v14178_v55 = vld [vmem:[#allocation34_spill] sm:$0xff]  ;;  %v5439_v8 = vpop.f32.mrf.mxu1 }
 0x3c6   :  { %7075 = vmatprep.subr.mxu0 %v12307_v11  ;;  %7439 = vmatpush1.msra.mxu1 %v11914_v33  ;;  %v4951_v33 = vpop.f32.mrf.mxu0 }
 0x3c7   :  { %7078 = vmatpush1.msra.mxu0 %v12317_v14  ;;  %7441 = vmatprep.subr.mxu1 %v11920_v60  ;;  %v5441_v60 = vpop.f32.mrf.mxu1 }
 0x3c8   :  { %7081 = vmatprep.subr.mxu0 %v12327_v34  ;;  %7251 = vmatprep.mubr.f32.mxu1 %v13214_v57 }
 0x3c9   :  { %7443 = vmatpush1.msra.mxu1 %v11924_v32  ;;  %7084 = vmatpush1.msra.mxu0 %v12337_v12  ;;  %v5325_v32 = vpop.f32.mrf.mxu0 }
 0x3ca   :  { %7255 = vmatmul.mubr.f32.gmra.mxu1 %v14178_v55  ;;  %7445 = vmatprep.subr.mxu1 %v11931_v31  ;;  %v14179_v31 = vld [vmem:[#allocation29_spill] sm:$0xff]  ;;  %v14182_v55 = vand.u32 4294901760, %v14158_v30  ;;  %v14186_v30 = vand.u32 4294901760, %v14162_v45  ;;  %v5191_v45 = vadd.f32 %v5190_v9, %v4951_v33  ;;  %v14194_v9 = vld [vmem:[#allocation16_spill] sm:$0xff] }
 0x3cb   :  { %7087 = vmatprep.subr.mxu0 %v12350_v40  ;;  %7447 = vmatpush1.msra.mxu1 %v11959_v20  ;;  %v14180_v20 = vand.u32 4294901760, %v14156_v28  ;;  %v14184_v28 = vld [vmem:[#allocation32_spill] sm:$0xff] }
 0x3cc   :  { %7090 = vmatpush1.msra.mxu0 %v12358_v39  ;;  %7449 = vmatprep.subr.mxu1 %v11970_v36  ;;  %v14181_v36 = vand.u32 4294901760, %v14157_v62  ;;  %v14185_v62 = vand.u32 4294901760, %v14161_v21 }
 0x3cd   :  { %7093 = vmatprep.subr.mxu0 %v12366_v42  ;;  %7451 = vmatpush1.msra.mxu1 %v12002_v47  ;;  %v5327_v47 = vpop.f32.mrf.mxu0 }
 0x3ce   :  { %7096 = vmatpush1.msra.mxu0 %v12374_v52  ;;  %7129 = vmatprep.mubr.f32.mxu0 %v13214_v57  ;;  %v5448_v52 = vpop.f32.mrf.mxu1 }
 0x3cf   :  { %7453 = vmatprep.subr.mxu1 %v12034_v22  ;;  %7132 = vmatmul.mubr.f32.vlgmr.msra.gmra.mxu0 %v14179_v31  ;;  %v14183_v22 = vand.u32 4294901760, %v14159_v7  ;;  %v14187_v7 = vand.u32 4294901760, %v14163_v27 }
 0x3d0   :  { %7264 = vmatprep.subr.mxu0 %v14180_v20  ;;  %7455 = vmatpush1.msra.mxu1 %v12056_v53  ;;  %v5182_v53 = vadd.f32 %v5181_v63, %v4938_v25  ;;  %v5450_v31 = vpop.f32.mrf.mxu1  ;;  %v14188_v63 = vand.u32 4294901760, %v14164_v58 }
 0x3d1   :  { %7268 = vmatpush1.msra.mxu0 %v14181_v36  ;;  %7457 = vmatprep.subr.mxu1 %v12075_v17  ;;  %v5333_v17 = vpop.f32.mrf.mxu0  ;;  %v14199_v36 = vld [vmem:[#allocation47_spill] sm:$0xff] }
 0x3d2   :  { %7272 = vmatprep.subr.mxu0 %v14182_v55  ;;  %7459 = vmatpush1.msra.mxu1 %v12085_v6  ;;  %v5184_v6 = vadd.f32 %v5183_v35, %v4940_v49  ;;  %v5326_v20 = vadd.f32 %v5325_v32, %v5182_v53  ;;  %v5727_v25 = vpop.f32.mrf.mxu1  ;;  %v5189_v35 = vadd.f32 %v5188_v19, %v4949_v48 }
 0x3d3   :  { %7137 = vmatprep.mubr.f32.mxu0 %v13214_v57  ;;  %7276 = vmatpush1.msra.mxu0 %v14183_v22  ;;  %v5335_v49 = vpop.f32.mrf.mxu0 }
 0x3d4   :  { %7461 = vmatprep.subr.mxu1 %v12094_v26  ;;  %7140 = vmatmul.mubr.f32.gmra.mxu0 %v14184_v28  ;;  %v5328_v26 = vadd.f32 %v5327_v47, %v5184_v6  ;;  %v5440_v21 = vadd.f32 %v5439_v8, %v5326_v20  ;;  %v5334_v27 = vadd.f32 %v5333_v17, %v5189_v35  ;;  %v5729_v48 = vpop.f32.mrf.mxu1  ;;  %v14196_v8 = vld [vmem:[#allocation39_spill] sm:$0xff]  ;;  %v14200_v47 = vand.u32 4294901760, %v14172_v24  ;;  %v7573_v24 = vld [vmem:[#allocation5 + $0xd0] sm:$0xff]  ;;  %v14203_v6 = vld [vmem:[#allocation40_spill] sm:$0xff] }
 0x3d5   :  { %7280 = vmatprep.subr.mxu0 %v14185_v62  ;;  %7463 = vmatpush1.msra.mxu1 %v12099_v15  ;;  %v14189_v15 = vand.u32 4294901760, %v14165_v4  ;;  %v14202_v62 = vand.u32 4294901760, %v14174_v44  ;;  %vm7605_vm10 = vcmp.ge.f32.partialorder %v7573_v24, 0.3  ;;  %v14209_v35 = vand.u32 4294901760, %v12278_v0 }
 0x3d6   :  { %7284 = vmatpush1.msra.mxu0 %v14186_v30  ;;  %7465 = vmatprep.subr.mxu1 %v12109_v29  ;;  %v14190_v29 = vand.u32 4294901760, %v14166_v56  ;;  %v5442_v4 = vadd.f32 %v5441_v60, %v5328_v26  ;;  %v5336_v56 = vadd.f32 %v5335_v49, %v5191_v45  ;;  %v5449_v60 = vadd.f32 %v5448_v52, %v5334_v27  ;;  %v5734_v55 = vpop.f32.mrf.mxu1 }
 0x3d7   :  { %7288 = vmatprep.subr.mxu0 %v14187_v7  ;;  %7467 = vmatpush1.msra.mxu1 %v12117_v18  ;;  %v14191_v18 = vand.u32 4294901760, %v14167_v43  ;;  %v14195_v43 = vand.u32 4294901760, %v14194_v9  ;;  %v14205_v7 = vld [vmem:[#allocation50_spill] sm:$0xff]  ;;  %v14214_v0 = vmov 1.0  }
 0x3d8   :  { %7292 = vmatpush1.msra.mxu0 %v14188_v63  ;;  %7469 = vmatprep.subr.mxu1 %v12165_v59  ;;  %v14192_v59 = vand.u32 4294901760, %v14168_v10  ;;  %v14197_v10 = vld [vmem:[#allocation42_spill] sm:$0xff]  ;;  %v5451_v30 = vadd.f32 %v5450_v31, %v5336_v56  ;;  %v14208_v31 = vand.u32 4294901760, %v12269_v37 }
 0x3d9   :  { %7296 = vmatprep.subr.mxu0 %v14189_v15  ;;  %7471 = vmatpush1.msra.mxu1 %v12178_v16  ;;  %v5616_v19 = vpop.f32.mrf.mxu0  ;;  %v14193_v16 = vand.u32 4294901760, %v14169_v23  ;;  %v14198_v33 = vand.u32 4294901760, %v14197_v10  ;;  %v7558_v23 = vld [vmem:[#allocation5 + $0x58] sm:$0xff] }
 0x3da   :  { %7300 = vmatpush1.msra.mxu0 %v14190_v29  ;;  %7473 = vmatprep.subr.mxu1 %v12191_v41  ;;  %v5617_v58 = vadd.f32 %v5616_v19, %v5440_v21  ;;  %v7557_v41 = vld [vmem:[#allocation5 + $0x50] sm:$0xff]  ;;  %vm7590_vm9 = vcmp.ge.f32.partialorder %v7558_v23, 0.3  ;;  %v14206_v63 = vld [vmem:[#allocation38_spill] sm:$0xff]  ;;  %v14211_v21 = vand.u32 4294901760, %v12286_v51  ;;  %v14217_v19 = vand.u32 4294901760, %v12317_v14 }
 0x3db   :  { %7304 = vmatprep.subr.mxu0 %v14191_v18  ;;  %7475 = vmatpush1.msra.mxu1 %v12204_v13  ;;  %v5618_v13 = vpop.f32.mrf.mxu0  ;;  %vm7589_vm8 = vcmp.ge.f32.partialorder %v7557_v41, 0.3  ;;  %v7574_v15 = vld [vmem:[#allocation5 + $0xd8] sm:$0xff]  ;;  %v14210_v18 = vld [vmem:[#allocation44_spill] sm:$0xff]  ;;  %v14223_v14 = vand.u32 4294901760, %v12366_v42 }
 0x3dc   :  { %7308 = vmatpush1.msra.mxu0 %v14192_v59  ;;  %7477 = vmatprep.subr.mxu1 %v12218_v3  ;;  %v5728_v3 = vadd.f32 %v5727_v25, %v5617_v58  ;;  %v5619_v32 = vadd.f32 %v5618_v13, %v5442_v4  ;;  %vm7606_vm11 = vcmp.ge.f32.partialorder %v7574_v15, 0.3  ;;  %v14212_v37 = vld [vmem:[#allocation54_spill] sm:$0xff]  ;;  %v14216_v59 = vand.u32 4294901760, %v12307_v11 }
 0x3dd   :  { %7312 = vmatprep.subr.mxu0 %v14193_v16  ;;  %7479 = vmatpush1.msra.mxu1 %v12234_v38  ;;  %v14201_v38 = vand.u32 4294901760, %v14173_v54  ;;  %v5623_v28 = vpop.f32.mrf.mxu0  ;;  %v14219_v16 = vand.u32 4294901760, %v12337_v12  ;;  %v14221_v11 = vand.u32 4294901760, %v12350_v40  ;;  %v14222_v58 = vand.u32 4294901760, %v12358_v39  ;;  %v14224_v41 = vld [vmem:[#allocation46_spill] sm:$0xff] }
 0x3de   :  { %7316 = vmatpush1.msra.mxu0 %v14195_v43  ;;  %7481 = vmatprep.subr.mxu1 %v14196_v8  ;;  %v7621_v22 = vmul.f32 1.4285715, %v5728_v3  ;;  %v5730_v53 = vadd.f32 %v5729_v48, %v5619_v32  ;;  %v5624_v17 = vadd.f32 %v5623_v28, %v5449_v60  ;;  %v14225_v4 = vand.u32 4294901760, %v14224_v41 }
 0x3df   :  { %7320 = vmatprep.subr.mxu0 %v14198_v33  ;;  %7483 = vmatpush1.msra.mxu1 %v14199_v36  ;;  %v5625_v20 = vpop.f32.mrf.mxu0 }
 0x3e0   :  { %7324 = vmatpush1.msra.mxu0 %v14200_v47  ;;  %7485 = vmatprep.subr.mxu1 %v12271_v1  ;;  %v14204_v1 = vand.u32 4294901760, %v14175_v46  ;;  %v7653_v54 = vsel %vm7589_vm8, %v7621_v22, 0.0  ;;  %v7622_v52 = vmul.f32 1.4285715, %v5730_v53  ;;  %v5735_v44 = vadd.f32 %v5734_v55, %v5624_v17  ;;  %v5736_v46 = vpop.f32.mrf.mxu1 }
 0x3e1   :  { %7328 = vmatprep.subr.mxu0 %v14201_v38  ;;  %7487 = vmatpush1.msra.mxu1 %v12280_v5  ;;  %v14207_v5 = vand.u32 4294901760, %v14206_v63  ;;  %7685 = vst [vmem:[#allocation7 + $0x50] sm:$0xff] %v7653_v54  ;;  %v5626_v26 = vadd.f32 %v5625_v20, %v5451_v30  ;;  %v7560_v63 = vld [vmem:[#allocation5 + $0x68] sm:$0xff] }
 0x3e2   :  { %7332 = vmatpush1.msra.mxu0 %v14202_v62  ;;  %7489 = vmatprep.subr.mxu1 %v14203_v6  ;;  %v7654_v25 = vsel %vm7590_vm9, %v7622_v52, 0.0  ;;  %v7637_v49 = vmul.f32 1.4285715, %v5735_v44  ;;  %v7559_v6 = vld [vmem:[#allocation5 + $0x60] sm:$0xff] }
 0x3e3   :  { %7336 = vmatprep.subr.mxu0 %v14204_v1  ;;  %7491 = vmatpush1.msra.mxu1 %v14205_v7  ;;  %7686 = vst [vmem:[#allocation7 + $0x58] sm:$0xff] %v7654_v25  ;;  %v5737_v29 = vadd.f32 %v5736_v46, %v5626_v26  ;;  %v7575_v25 = vld [vmem:[#allocation5 + $0xe0] sm:$0xff] }
 0x3e4   :  { %7340 = vmatpush1.msra.mxu0 %v14207_v5  ;;  %7493 = vmatprep.subr.mxu1 %v12309_v50  ;;  %v7669_v50 = vsel %vm7605_vm10, %v7637_v49, 0.0  ;;  %vm7607_vm12 = vcmp.ge.f32.partialorder %v7575_v25, 0.3 }
 0x3e5   :  { %7344 = vmatprep.subr.mxu0 %v14208_v31  ;;  %7495 = vmatpush1.msra.mxu1 %v12319_v2  ;;  %v7638_v45 = vmul.f32 1.4285715, %v5737_v29  ;;  %v14213_v2 = vand.u32 4294901760, %v12297_v61  ;;  %7701 = vst [vmem:[#allocation7 + $0xd0] sm:$0xff] %v7669_v50  ;;  %v14218_v61 = vand.u32 4294901760, %v12327_v34  ;;  %v7576_v50 = vld [vmem:[#allocation5 + $0xe8] sm:$0xff] }
 0x3e6   :  { %7348 = vmatpush1.msra.mxu0 %v14209_v35  ;;  %7497 = vmatprep.subr.mxu1 %v14210_v18  ;;  %vm7608_vm13 = vcmp.ge.f32.partialorder %v7576_v50, 0.3 }
 0x3e7   :  { %7352 = vmatprep.subr.mxu0 %v14211_v21  ;;  %7499 = vmatpush1.msra.mxu1 %v14212_v37  ;;  %v7670_v51 = vsel %vm7606_vm11, %v7638_v45, 0.0 }
 0x3e8   :  { %7532 = vmatprep.mubr.f32.mxu1 %v13214_v57  ;;  %7356 = vmatpush1.msra.mxu0 %v14213_v2  ;;  %7702 = vst [vmem:[#allocation7 + $0xd8] sm:$0xff] %v7670_v51 }
 0x3e9   :  { %7773 = vmatmul.mubr.msk.f32.vlgmr.msra.gmra.mxu1 %vm8220_vm0, %v14214_v0  ;;  %7360 = vmatprep.subr.mxu0 %v14216_v59 }
 0x3ea   :  { %7539 = vmatprep.mubr.f32.mxu1 %v13214_v57  ;;  %7364 = vmatpush1.msra.mxu0 %v14217_v19 }
 0x3eb   :  { %7421 = vmatprep.mubr.f32.mxu0 %v13214_v57  ;;  %7368 = vmatprep.subr.mxu0 %v14218_v61 }
 0x3ec   :  { %7372 = vmatpush1.msra.mxu0 %v14219_v16 }
 0x3ed   :  { %7774 = vmatmul.mubr.msk.f32.gmra.mxu1 %vm8236_vm1, %v14214_v0  ;;  %7376 = vmatprep.subr.mxu0 %v14221_v11 }
 0x3ee   :  { %7380 = vmatpush1.msra.mxu0 %v14222_v58 }
 0x3ef   :  { %7384 = vmatprep.subr.mxu0 %v14223_v14 }
 0x3f0   :  { %7388 = vmatpush1.msra.mxu0 %v14225_v4 }
 0x3f1   :  { %7771 = vmatmul.mubr.msk.f32.vlgmr.msra.gmra.mxu0 %vm8220_vm0, %v14214_v0  ;;  %v6085_v40 = vpop.f32.mrf.mxu1  ;;  %vm7591_vm0 = vcmp.ge.f32.partialorder %v7559_v6, 0.3 }
 0x3f2   :  { %7428 = vmatprep.mubr.f32.mxu0 %v13214_v57 }
 0x3f3   :  { %v6087_v12 = vpop.f32.mrf.mxu1 }
 0x3f5   :  { %7772 = vmatmul.mubr.msk.f32.gmra.mxu0 %vm8236_vm1, %v14214_v0  ;;  %vm7592_vm1 = vcmp.ge.f32.partialorder %v7560_v63, 0.3 }
 0x3f6   :  { %v6092_v56 = vpop.f32.mrf.mxu1 }
 0x3f8   :  { %v6094_v9 = vpop.f32.mrf.mxu1 }
 0x3fb   :  { %v5842_v34 = vpop.f32.mrf.mxu0 }
 0x3fc   :  { %v6086_v32 = vadd.f32 %v6085_v40, %v5842_v34 }
 0x3fd   :  { %v5844_v39 = vpop.f32.mrf.mxu0 }
 0x3fe   :  { %v6088_v57 = vadd.f32 %v6087_v12, %v5844_v39 }
 0x400   :  { %v5853_v42 = vpop.f32.mrf.mxu0 }
 0x401   :  { %v6093_v55 = vadd.f32 %v6092_v56, %v5853_v42 }
 0x402   :  { %v5855_v13 = vpop.f32.mrf.mxu0 }
 0x403   :  { %v6095_v28 = vadd.f32 %v6094_v9, %v5855_v13 }
 0x415   :  { %v6343_v43 = vpop.f32.mrf.mxu1 }
 0x417   :  { %v6345_v10 = vpop.f32.mrf.mxu1 }
 0x41a   :  { %v6352_v3 = vpop.f32.mrf.mxu1 }
 0x41c   :  { %v6354_v36 = vpop.f32.mrf.mxu1 }
 0x41f   :  { %v6229_v8 = vpop.f32.mrf.mxu0 }
 0x420   :  { %v6230_v47 = vadd.f32 %v6229_v8, %v6086_v32 }
 0x421   :  { %v6231_v33 = vpop.f32.mrf.mxu0 }
 0x422   :  { %v6232_v60 = vadd.f32 %v6231_v33, %v6088_v57  ;;  %v6344_v53 = vadd.f32 %v6343_v43, %v6230_v47 }
 0x424   :  { %v6237_v23 = vpop.f32.mrf.mxu0  ;;  %v6346_v1 = vadd.f32 %v6345_v10, %v6232_v60 }
 0x425   :  { %v6238_v62 = vadd.f32 %v6237_v23, %v6093_v55 }
 0x426   :  { %v6239_v22 = vpop.f32.mrf.mxu0 }
 0x427   :  { %v6240_v54 = vadd.f32 %v6239_v22, %v6095_v28  ;;  %v6353_v5 = vadd.f32 %v6352_v3, %v6238_v62  ;;  %v7561_v22 = vld [vmem:[#allocation5 + $0x70] sm:$0xff] }
 0x428   :  { %vm7593_vm14 = vcmp.ge.f32.partialorder %v7561_v22, 0.3 }
 0x429   :  { %v6355_v35 = vadd.f32 %v6354_v36, %v6240_v54 }
 0x439   :  { %v6631_v38 = vpop.f32.mrf.mxu1 }
 0x43b   :  { %v6633_v24 = vpop.f32.mrf.mxu1 }
 0x43d   :  { %v6638_v44 = vpop.f32.mrf.mxu1 }
 0x43f   :  { %v6640_v45 = vpop.f32.mrf.mxu1 }
 0x449   :  { %v6520_v17 = vpop.f32.mrf.mxu0 }
 0x44a   :  { %v6521_v30 = vadd.f32 %v6520_v17, %v6344_v53 }
 0x44b   :  { %v6522_v52 = vpop.f32.mrf.mxu0 }
 0x44c   :  { %v6632_v20 = vadd.f32 %v6631_v38, %v6521_v30  ;;  %v6523_v7 = vadd.f32 %v6522_v52, %v6346_v1 }
 0x44d   :  { %v6527_v31 = vpop.f32.mrf.mxu0 }
 0x44e   :  { %v7623_v26 = vmul.f32 1.4285715, %v6632_v20  ;;  %v6634_v15 = vadd.f32 %v6633_v24, %v6523_v7  ;;  %v6528_v46 = vadd.f32 %v6527_v31, %v6353_v5  ;;  %v7562_v24 = vld [vmem:[#allocation5 + $0x78] sm:$0xff]  ;;  %v7577_v7 = vld [vmem:[#allocation5 + $0xf0] sm:$0xff] }
 0x44f   :  { %v6529_v18 = vpop.f32.mrf.mxu0  ;;  %vm7594_vm15 = vcmp.ge.f32.partialorder %v7562_v24, 0.3  ;;  %vm7609_vm2 = vcmp.ge.f32.partialorder %v7577_v7, 0.3 }
 0x450   :  { %v7655_v49 = vsel %vm7591_vm0, %v7623_v26, 0.0  ;;  %v7624_v29 = vmul.f32 1.4285715, %v6634_v15  ;;  %v6639_v21 = vadd.f32 %v6638_v44, %v6528_v46  ;;  %v6530_v37 = vadd.f32 %v6529_v18, %v6355_v35  ;;  %v7578_v46 = vld [vmem:[#allocation5 + $0xf8] sm:$0xff] }
 0x451   :  { %7687 = vst [vmem:[#allocation7 + $0x60] sm:$0xff] %v7655_v49  ;;  %vm7610_vm3 = vcmp.ge.f32.partialorder %v7578_v46, 0.3 }
 0x452   :  { %v7656_v2 = vsel %vm7592_vm1, %v7624_v29, 0.0  ;;  %v7639_v0 = vmul.f32 1.4285715, %v6639_v21  ;;  %v6641_v27 = vadd.f32 %v6640_v45, %v6530_v37 }
 0x453   :  { %7688 = vst [vmem:[#allocation7 + $0x68] sm:$0xff] %v7656_v2 }
 0x454   :  { %v7671_v59 = vsel %vm7607_vm12, %v7639_v0, 0.0  ;;  %v7640_v51 = vmul.f32 1.4285715, %v6641_v27 }
 0x455   :  { %7703 = vst [vmem:[#allocation7 + $0xe0] sm:$0xff] %v7671_v59 }
 0x456   :  { %v7672_v19 = vsel %vm7608_vm13, %v7640_v51, 0.0 }
 0x457   :  { %7704 = vst [vmem:[#allocation7 + $0xe8] sm:$0xff] %v7672_v19 }
 0x461   :  { %v6989_v61 = vpop.f32.mrf.mxu1 }
 0x463   :  { %v6991_v16 = vpop.f32.mrf.mxu1 }
 0x466   :  { %v6996_v11 = vpop.f32.mrf.mxu1 }
 0x468   :  { %v6998_v14 = vpop.f32.mrf.mxu1 }
 0x46b   :  { %v6746_v48 = vpop.f32.mrf.mxu0 }
 0x46c   :  { %v6990_v42 = vadd.f32 %v6989_v61, %v6746_v48 }
 0x46d   :  { %v6748_v58 = vpop.f32.mrf.mxu0 }
 0x46e   :  { %v6992_v13 = vadd.f32 %v6991_v16, %v6748_v58 }
 0x470   :  { %v6757_v41 = vpop.f32.mrf.mxu0 }
 0x471   :  { %v6997_v33 = vadd.f32 %v6996_v11, %v6757_v41 }
 0x472   :  { %v6759_v40 = vpop.f32.mrf.mxu0 }
 0x473   :  { %v6999_v23 = vadd.f32 %v6998_v14, %v6759_v40 }
 0x485   :  { %v7247_v4 = vpop.f32.mrf.mxu1 }
 0x487   :  { %v7249_v34 = vpop.f32.mrf.mxu1 }
 0x48a   :  { %v7256_v39 = vpop.f32.mrf.mxu1 }
 0x48c   :  { %v7258_v9 = vpop.f32.mrf.mxu1 }
 0x48f   :  { %v7133_v12 = vpop.f32.mrf.mxu0 }
 0x490   :  { %v7134_v8 = vadd.f32 %v7133_v12, %v6990_v42 }
 0x491   :  { %v7135_v56 = vpop.f32.mrf.mxu0 }
 0x492   :  { %v7136_v3 = vadd.f32 %v7135_v56, %v6992_v13  ;;  %v7248_v36 = vadd.f32 %v7247_v4, %v7134_v8 }
 0x494   :  { %v7141_v43 = vpop.f32.mrf.mxu0  ;;  %v7250_v53 = vadd.f32 %v7249_v34, %v7136_v3 }
 0x495   :  { %v7142_v57 = vadd.f32 %v7141_v43, %v6997_v33 }
 0x496   :  { %v7143_v32 = vpop.f32.mrf.mxu0 }
 0x497   :  { %v7144_v38 = vadd.f32 %v7143_v32, %v6999_v23  ;;  %v7257_v30 = vadd.f32 %v7256_v39, %v7142_v57 }
 0x499   :  { %v7259_v63 = vadd.f32 %v7258_v9, %v7144_v38 }
 0x4a9   :  { %v7535_v10 = vpop.f32.mrf.mxu1 }
 0x4ab   :  { %v7537_v47 = vpop.f32.mrf.mxu1 }
 0x4ad   :  { %v7542_v6 = vpop.f32.mrf.mxu1 }
 0x4af   :  { %v7544_v25 = vpop.f32.mrf.mxu1 }
 0x4b1   :  { %v7424_v60 = vpop.f32.mrf.mxu0 }
 0x4b2   :  { %v7425_v55 = vadd.f32 %v7424_v60, %v7248_v36 }
 0x4b3   :  { %v7426_v28 = vpop.f32.mrf.mxu0 }
 0x4b4   :  { %v7536_v62 = vadd.f32 %v7535_v10, %v7425_v55  ;;  %v7427_v17 = vadd.f32 %v7426_v28, %v7250_v53 }
 0x4b5   :  { %v7431_v1 = vpop.f32.mrf.mxu0 }
 0x4b6   :  { %v7625_v54 = vmul.f32 1.4285715, %v7536_v62  ;;  %v7538_v52 = vadd.f32 %v7537_v47, %v7427_v17  ;;  %v7432_v20 = vadd.f32 %v7431_v1, %v7257_v30 }
 0x4b7   :  { %v7433_v5 = vpop.f32.mrf.mxu0 }
 0x4b8   :  { %v7657_v44 = vsel %vm7593_vm14, %v7625_v54, 0.0  ;;  %v7626_v26 = vmul.f32 1.4285715, %v7538_v52  ;;  %v7543_v15 = vadd.f32 %v7542_v6, %v7432_v20  ;;  %v7434_v31 = vadd.f32 %v7433_v5, %v7259_v63 }
 0x4b9   :  { %7689 = vst [vmem:[#allocation7 + $0x70] sm:$0xff] %v7657_v44 }
 0x4ba   :  { %v7658_v35 = vsel %vm7594_vm15, %v7626_v26, 0.0  ;;  %v7641_v49 = vmul.f32 1.4285715, %v7543_v15  ;;  %v7545_v29 = vadd.f32 %v7544_v25, %v7434_v31 }
 0x4bb   :  { %7690 = vst [vmem:[#allocation7 + $0x78] sm:$0xff] %v7658_v35 }
 0x4bc   :  { %v7673_v18 = vsel %vm7609_vm2, %v7641_v49, 0.0  ;;  %v7642_v21 = vmul.f32 1.4285715, %v7545_v29 }
 0x4bd   :  { %7705 = vst [vmem:[#allocation7 + $0xf0] sm:$0xff] %v7673_v18 }
 0x4be   :  { %v7674_v37 = vsel %vm7610_vm3, %v7642_v21, 0.0 }
 0x4bf   :  { %7706 = vst [vmem:[#allocation7 + $0xf8] sm:$0xff] %v7674_v37 }
 0x4c0   :  { %7835 = shalt.err (!%p7832_p0)
}
 0x4c1   :  { %7718 = dma.vmem_to_hbm [thread:$0]  %s7713_s2, 4096, %s12635_s3, [#allocation4], %s7851_s15, %s7851_s15, %s7852_s16  }
 0x4c2   :  { %7848 = dma.done.wait [#allocation4], 4096  }
 0x4c3   :  { %7849 = vsyncadd [#allocation4], 4294963200 }
 0x4c4   :  { %7722 = vsyncpa [#allocation3], 1 }
 0x4c5   :  { %7723 = vsyncpa [#allocation6], 1 }
 0x4c6   :  { %7724 = vsyncpa [#allocation4], 1 }

</bundles_post_ra>
